<compile_context>
chip_gen: v7x
topology: tpu7x:2x2x1
jax: 0.10.0
libtpu: 0.0.40
codegen_flags: <defaults>
</compile_context>

<pallas_src>
import math

import jax
import jax.numpy as jnp
from jax.experimental import pallas as pl
from jax.experimental.pallas import tpu as pltpu

BN_EPS = 1e-5

# Model hyper-parameters ("args") -- module constants so the jitted forward
# only closes over static Python ints.
NUM_CHANNELS = 1
KERNEL_SIZE = 3
STRIDE = 1
NUM_CNN_BLOCKS = 2
NUM_PHONEMES = 40
NUM_NEURONS = 500
F_BIG = 64                                   # mfcc / delta / delta2 filters
F_DIST = 32                                  # dist filters
DIST_PADDING = (KERNEL_SIZE - STRIDE) // 2   # = 1 ("same" padding, dist head)

C_TRIPLE = 256   # 3*64 fused-head output channels, padded up to 2*128
C_DIST = 128     # 32 dist channels padded to 128 (lane-dense stores)


# ----------------------------------------------------------------------------
# Pallas kernel: out = PReLU((x @ w) * scale + shift, alpha)
#   x: (Mp, K), w: (K, N); scale/shift/alpha: (1, N) broadcast over rows.
#   Bias and BatchNorm(eval) are pre-folded into scale/shift on the host.
#   The output block doubles as the f32 accumulator (its block index is
#   constant along the K reduction axis, so it stays resident in VMEM).
# ----------------------------------------------------------------------------
def _fused_matmul_kernel(x_ref, w_ref, scale_ref, shift_ref, alpha_ref, o_ref):
    k = pl.program_id(1)

    @pl.when(k == 0)
    def _():
        o_ref[...] = jnp.zeros_like(o_ref)

    o_ref[...] += jnp.dot(x_ref[...], w_ref[...],
                          preferred_element_type=jnp.float32)

    @pl.when(k == pl.num_programs(1) - 1)
    def _():
        y = o_ref[...] * scale_ref[...] + shift_ref[...]
        o_ref[...] = jnp.where(y >= 0.0, y, alpha_ref[...] * y).astype(o_ref.dtype)


def fused_matmul_bn_prelu(x, w, scale, shift, alpha, *, tn=256,
                          weight_tile_budget=4 << 20):
    """Fused (x @ w) * scale + shift -> PReLU(alpha).  Returns (M, N) f32.

    x: (M, K) f32/bf16, w: (K, N) f32/bf16 with N a multiple of 128 (callers
    pad/fuse so stores are lane-dense), scale/shift/alpha: (N,) f32.
    """
    M, K = x.shape
    Kw, N = w.shape
    assert K == Kw, (K, Kw)
    assert N % 128 == 0, N        # callers guarantee lane-dense outputs

    # Pad rows to a multiple of 8 for sublane-dense stores (only hits the
    # tiny batch=2 pred-head matmuls).
    Mp = max(8, ((M + 7) // 8) * 8)
    if Mp != M:
        x = jnp.pad(x, ((0, Mp - M), (0, 0)))

    # N tiling: 256-wide tiles when they divide N -> a "parallel" grid axis
    # that shards across v7x's 2 TensorCores; otherwise one full-N tile.
    if N % tn != 0:
        tn = N
    nn = N // tn

    # K tiling: single step when the weight tile fits the budget, else the
    # largest 128-multiple divisor of K that does.  ~4 MiB double-buffered is
    # comfortable on v5e/v6e (128 MiB VMEM) and on v7x (64 MiB).
    itemsize = jnp.dtype(w.dtype).itemsize
    tk = K
    if K * tn * itemsize > weight_tile_budget and K % 128 == 0:
        cands = [t for t in range(128, K, 128)
                 if K % t == 0 and t * tn * itemsize <= weight_tile_budget]
        if cands:
            tk = max(cands)
    nk = K // tk

    def row(v):
        return jnp.asarray(v, jnp.float32).reshape(1, N)

    vec_spec = pl.BlockSpec((1, tn), lambda n, k: (0, n))
    out = pl.pallas_call(
        _fused_matmul_kernel,
        out_shape=jax.ShapeDtypeStruct((Mp, N), jnp.float32),
        grid_spec=pltpu.PrefetchScalarGridSpec(
            num_scalar_prefetch=0,
            grid=(nn, nk),                         # reduction axis last
            in_specs=[
                pl.BlockSpec((Mp, tk), lambda n, k: (0, k)),
                pl.BlockSpec((tk, tn), lambda n, k: (k, n)),
                vec_spec, vec_spec, vec_spec,
            ],
            out_specs=pl.BlockSpec((Mp, tn), lambda n, k: (0, n)),
        ),
        compiler_params=pltpu.CompilerParams(
            dimension_semantics=("parallel", "arbitrary")),
    )(x, w, row(scale), row(shift), row(alpha))
    return out[:M] if Mp != M else out


# ----------------------------------------------------------------------------
# Glue: im2col patch extraction (plain JAX) for NHWC conv, stride 1.
# K ordering is (kh, kw, c), matching weight.transpose(2,3,1,0).reshape(K, F).
# ----------------------------------------------------------------------------
def im2col_nhwc(x, kh, kw, pad):
    B, H, W, C = x.shape
    if pad > 0:
        x = jnp.pad(x, ((0, 0), (pad, pad), (pad, pad), (0, 0)))
    Hp, Wp = x.shape[1], x.shape[2]
    OH, OW = Hp - kh + 1, Wp - kw + 1
    cols = [x[:, i:i + OH, j:j + OW, :] for i in range(kh) for j in range(kw)]
    p = jnp.stack(cols, axis=3)                     # (B, OH, OW, kh*kw, C)
    return p.reshape(B * OH * OW, kh * kw * C), OH, OW


# ----------------------------------------------------------------------------
# Parameter construction (deterministic, matches the PyTorch init schemes).
# ----------------------------------------------------------------------------
def init_fcnn_params(key, in_channels, num_filters, kernel_size, num_blocks):
    params = []
    cin = in_channels
    for _ in range(num_blocks):
        key, kw_, kb_, kg_ = jax.random.split(key, 4)
        fan_in = cin * kernel_size * kernel_size
        w = jax.random.normal(kw_, (num_filters, cin, kernel_size, kernel_size),
                              jnp.float32) * math.sqrt(2.0 / fan_in)  # kaiming fan_in
        bound = 1.0 / math.sqrt(fan_in)
        b = jax.random.uniform(kb_, (num_filters,), jnp.float32, -bound, bound)
        gamma = jnp.clip(jax.random.normal(kg_, (num_filters,), jnp.float32)
                         * math.sqrt(2.0 / 9.0 / 64.0), -0.025, 0.025)
        beta = jnp.zeros((num_filters,), jnp.float32)
        alpha = jnp.full((num_filters,), 0.25, jnp.float32)   # PReLU(num_filters)
        params.append(dict(w=w, b=b, gamma=gamma, beta=beta, alpha=alpha))
        cin = num_filters
    return params, key


def init_fcn_params(key, num_features, num_phonemes, num_neurons=NUM_NEURONS):
    key, k1, k2, k3, k4 = jax.random.split(key, 5)
    b1d = 1.0 / math.sqrt(num_features)
    w1 = jax.random.uniform(k1, (num_neurons, num_features), jnp.float32, -b1d, b1d)
    b1 = jax.random.uniform(k2, (num_neurons,), jnp.float32, -b1d, b1d)
    b2d = 1.0 / math.sqrt(num_neurons)
    w2 = jax.random.uniform(k3, (num_phonemes, num_neurons), jnp.float32, -b2d, b2d)
    b2 = jax.random.uniform(k4, (num_phonemes,), jnp.float32, -b2d, b2d)
    return dict(w1=w1, b1=b1, w2=w2, b2=b2), key


# ----------------------------------------------------------------------------
# Host-side prep: fold BN+bias, fuse heads (block-diagonal), pad lane-dense.
# ----------------------------------------------------------------------------
def _fold_bn(p):
    scale = p['gamma'] / math.sqrt(1.0 + BN_EPS)   # BN eval, running stats (0,1)
    shift = p['b'] * scale + p['beta']             # conv bias folded in
    return scale, shift, p['alpha']


def prepare_params(mfcc_p, dist_p, delta_p, delta2_p, pred_p):
    ks = KERNEL_SIZE
    heads = [mfcc_p, delta_p, delta2_p]
    in_ch = [0, 1, 1]    # fused input = concat([mfccs, deltas], channel axis)

    # ---- fused triple head (mfcc + delta + delta2), 256 output channels ----
    triple = []
    w4 = jnp.zeros((ks, ks, 2, C_TRIPLE), jnp.float32)
    sc = jnp.zeros((C_TRIPLE,), jnp.float32)
    sh = jnp.zeros((C_TRIPLE,), jnp.float32)
    al = jnp.full((C_TRIPLE,), 0.25, jnp.float32)
    for h, (hp, c) in enumerate(zip(heads, in_ch)):
        p = hp[0]
        wt = jnp.transpose(p['w'], (2, 3, 1, 0))        # (ks, ks, 1, 64)
        sl = slice(h * F_BIG, (h + 1) * F_BIG)
        w4 = w4.at[:, :, c, sl].set(wt[:, :, 0, :])
        s_, b_, a_ = _fold_bn(p)
        sc, sh, al = sc.at[sl].set(s_), sh.at[sl].set(b_), al.at[sl].set(a_)
    triple.append(dict(w=w4.reshape(ks * ks * 2, C_TRIPLE),
                       scale=sc, shift=sh, alpha=al))

    for blk in range(1, NUM_CNN_BLOCKS):                # block-diag over channels
        w4 = jnp.zeros((ks, ks, C_TRIPLE, C_TRIPLE), jnp.float32)
        sc = jnp.zeros((C_TRIPLE,), jnp.float32)
        sh = jnp.zeros((C_TRIPLE,), jnp.float32)
        al = jnp.full((C_TRIPLE,), 0.25, jnp.float32)
        for h, hp in enumerate(heads):
            p = hp[blk]
            sl = slice(h * F_BIG, (h + 1) * F_BIG)
            w4 = w4.at[:, :, sl, sl].set(jnp.transpose(p['w'], (2, 3, 1, 0)))
            s_, b_, a_ = _fold_bn(p)
            sc, sh, al = sc.at[sl].set(s_), sh.at[sl].set(b_), al.at[sl].set(a_)
        triple.append(dict(w=w4.reshape(ks * ks * C_TRIPLE, C_TRIPLE),
                           scale=sc, shift=sh, alpha=al))

    # ---- dist head: 32 real channels padded to 128 (lane-dense stores) ----
    dist = []
    p = dist_p[0]
    w4 = jnp.zeros((ks, ks, 1, C_DIST), jnp.float32)
    w4 = w4.at[:, :, 0, :F_DIST].set(jnp.transpose(p['w'], (2, 3, 1, 0))[:, :, 0, :])
    s_, b_, a_ = _fold_bn(p)
    sc = jnp.zeros((C_DIST,), jnp.float32).at[:F_DIST].set(s_)
    sh = jnp.zeros((C_DIST,), jnp.float32).at[:F_DIST].set(b_)
    al = jnp.full((C_DIST,), 0.25, jnp.float32).at[:F_DIST].set(a_)
    dist.append(dict(w=w4.reshape(ks * ks * 1, C_DIST), scale=sc, shift=sh, alpha=al))
    for blk in range(1, NUM_CNN_BLOCKS):
        p = dist_p[blk]
        w4 = jnp.zeros((ks, ks, C_DIST, C_DIST), jnp.float32)
        w4 = w4.at[:, :, :F_DIST, :F_DIST].set(jnp.transpose(p['w'], (2, 3, 1, 0)))
        s_, b_, a_ = _fold_bn(p)
        sc = jnp.zeros((C_DIST,), jnp.float32).at[:F_DIST].set(s_)
        sh = jnp.zeros((C_DIST,), jnp.float32).at[:F_DIST].set(b_)
        al = jnp.full((C_DIST,), 0.25, jnp.float32).at[:F_DIST].set(a_)
        dist.append(dict(w=w4.reshape(ks * ks * C_DIST, C_DIST),
                         scale=sc, shift=sh, alpha=al))

    # ---- pred FC head: pad 500->512 and 40->128; bf16 weights, f32 acc ----
    num_features = pred_p['w1'].shape[1]
    n_hid = ((NUM_NEURONS + 127) // 128) * 128           # 512
    n_out = ((NUM_PHONEMES + 127) // 128) * 128          # 128
    inv = 1.0 / math.sqrt(1.0 + BN_EPS)                  # BN1d eval, gamma=1, beta=0
    w1 = jnp.zeros((num_features, n_hid), jnp.float32)
    w1 = w1.at[:, :NUM_NEURONS].set(pred_p['w1'].T)
    shift1 = jnp.zeros((n_hid,), jnp.float32).at[:NUM_NEURONS].set(pred_p['b1'] * inv)
    scale1 = jnp.full((n_hid,), inv, jnp.float32)
    alpha1 = jnp.full((n_hid,), 0.25, jnp.float32)       # nn.PReLU() scalar 0.25
    w2 = jnp.zeros((n_hid, n_out), jnp.float32)
    w2 = w2.at[:NUM_NEURONS, :NUM_PHONEMES].set(pred_p['w2'].T)
    shift2 = jnp.zeros((n_out,), jnp.float32).at[:NUM_PHONEMES].set(pred_p['b2'])
    scale2 = jnp.ones((n_out,), jnp.float32)
    alpha2 = jnp.ones((n_out,), jnp.float32)             # identity activation
    pred = dict(w1=w1.astype(jnp.bfloat16), w2=w2.astype(jnp.bfloat16),
                scale1=scale1, shift1=shift1, alpha1=alpha1,
                scale2=scale2, shift2=shift2, alpha2=alpha2)

    return dict(triple=triple, dist=dist, pred=pred)


# ----------------------------------------------------------------------------
# Forward pass (jit-compiled; inputs are NCHW like PyTorch).
# ----------------------------------------------------------------------------
def _conv_stack(layers, x_nhwc, pad):
    B = x_nhwc.shape[0]
    x = x_nhwc
    for layer in layers:
        p, OH, OW = im2col_nhwc(x, KERNEL_SIZE, KERNEL_SIZE, pad)
        y = fused_matmul_bn_prelu(p, layer['w'], layer['scale'],
                                  layer['shift'], layer['alpha'])
        x = y.reshape(B, OH, OW, layer['w'].shape[1])
    return x


def _flatten_nchw(y_nhwc, c0, c1):
    B = y_nhwc.shape[0]
    return jnp.transpose(y_nhwc[..., c0:c1], (0, 3, 1, 2)).reshape(B, -1)


def multihead_cnn_forward(prep, mfccs, dists, deltas, deltas2):
    # NOTE: original PyTorch code feeds `deltas` (not `deltas2`) to delta2_model.
    del deltas2
    to_nhwc = lambda t: jnp.transpose(t, (0, 2, 3, 1))

    tri_in = jnp.concatenate([to_nhwc(mfccs), to_nhwc(deltas)], axis=-1)
    tri = _conv_stack(prep['triple'], tri_in, pad=0)                  # (B,4,4,256)
    dst = _conv_stack(prep['dist'], to_nhwc(dists), pad=DIST_PADDING)  # (B,8,8,128)

    feats = jnp.concatenate([
        _flatten_nchw(tri, 0, F_BIG),                   # mfcc head
        _flatten_nchw(dst, 0, F_DIST),                  # dist head
        _flatten_nchw(tri, F_BIG, 2 * F_BIG),           # delta head
        _flatten_nchw(tri, 2 * F_BIG, 3 * F_BIG),       # delta2 head
    ], axis=1)                                          # (B, 5120)

    pred = prep['pred']
    h = fused_matmul_bn_prelu(feats.astype(jnp.bfloat16), pred['w1'],
                              pred['scale1'], pred['shift1'], pred['alpha1'])
    out = fused_matmul_bn_prelu(h.astype(jnp.bfloat16), pred['w2'],
                                pred['scale2'], pred['shift2'], pred['alpha2'])
    return out[:, :NUM_PHONEMES]


# ----------------------------------------------------------------------------
# Pure-JAX (non-Pallas, unfused) reference for numerical validation.
# ----------------------------------------------------------------------------
def reference_forward(mfcc_p, dist_p, delta_p, delta2_p, pred_p,
                      mfccs, dists, deltas, deltas2):
    del deltas2
    hi = jax.lax.Precision.HIGHEST
    inv = 1.0 / math.sqrt(1.0 + BN_EPS)

    def conv_head(x_nchw, plist, pad):
        x = jnp.transpose(x_nchw, (0, 2, 3, 1))
        B = x.shape[0]
        for p in plist:
            F_out, Cin, kh, kw = p['w'].shape
            patches, OH, OW = im2col_nhwc(x, kh, kw, pad)
            wm = jnp.transpose(p['w'], (2, 3, 1, 0)).reshape(kh * kw * Cin, F_out)
            y = (jnp.dot(patches, wm, precision=hi) + p['b']) * (p['gamma'] * inv) + p['beta']
            y = jnp.where(y >= 0.0, y, p['alpha'] * y)
            x = y.reshape(B, OH, OW, F_out)
        return jnp.transpose(x, (0, 3, 1, 2)).reshape(B, -1)

    feats = jnp.concatenate([
        conv_head(mfccs, mfcc_p, 0),
        conv_head(dists, dist_p, DIST_PADDING),
        conv_head(deltas, delta_p, 0),
        conv_head(deltas, delta2_p, 0),        # original module behavior
    ], axis=1)

    h = jnp.dot(feats.astype(jnp.bfloat16), pred_p['w1'].T.astype(jnp.bfloat16),
                preferred_element_type=jnp.float32)
    h = (h + pred_p['b1']) * inv
    h = jnp.where(h >= 0.0, h, 0.25 * h)
    out = jnp.dot(h.astype(jnp.bfloat16), pred_p['w2'].T.astype(jnp.bfloat16),
                  preferred_element_type=jnp.float32) + pred_p['b2']
    return out


# ----------------------------------------------------------------------------
# Main.
# ----------------------------------------------------------------------------
if __name__ == "__main__":
    batch = 2
    H = W = 8

    key = jax.random.PRNGKey(0)
    mfcc_p, key = init_fcnn_params(key, NUM_CHANNELS, F_BIG, KERNEL_SIZE, NUM_CNN_BLOCKS)
    dist_p, key = init_fcnn_params(key, NUM_CHANNELS, F_DIST, KERNEL_SIZE, NUM_CNN_BLOCKS)
    delta_p, key = init_fcnn_params(key, NUM_CHANNELS, F_BIG, KERNEL_SIZE, NUM_CNN_BLOCKS)
    delta2_p, key = init_fcnn_params(key, NUM_CHANNELS, F_BIG, KERNEL_SIZE, NUM_CNN_BLOCKS)

    # num_features: mfcc 64*4*4 + dist 32*8*8 + delta 64*4*4 + delta2 64*4*4 = 5120
    num_features = F_BIG * 16 + F_DIST * 64 + F_BIG * 16 + F_BIG * 16
    pred_p, key = init_fcn_params(key, num_features, NUM_PHONEMES)

    prep = prepare_params(mfcc_p, dist_p, delta_p, delta2_p, pred_p)

    k1, k2, k3, k4 = jax.random.split(jax.random.PRNGKey(0), 4)
    mfccs = jax.random.normal(k1, (batch, NUM_CHANNELS, H, W), jnp.float32)
    dists = jax.random.normal(k2, (batch, NUM_CHANNELS, H, W), jnp.float32)
    deltas = jax.random.normal(k3, (batch, NUM_CHANNELS, H, W), jnp.float32)
    deltas2 = jax.random.normal(k4, (batch, NUM_CHANNELS, H, W), jnp.float32)

    fwd = jax.jit(multihead_cnn_forward)
    out = jax.block_until_ready(fwd(prep, mfccs, dists, deltas, deltas2))

    assert out.shape == (batch, NUM_PHONEMES), out.shape
    assert bool(jnp.all(jnp.isfinite(out)))

    # Validate the fused Pallas path against the unfused pure-JAX reference
    # (pred head uses the same bf16 quantization in both, so tolerance only
    # covers accumulation-order noise).
    ref = reference_forward(mfcc_p, dist_p, delta_p, delta2_p, pred_p,
                            mfccs, dists, deltas, deltas2)
    assert bool(jnp.allclose(out, ref, rtol=5e-2, atol=5e-3)), \
        float(jnp.max(jnp.abs(out - ref)))

    print("KERNEL_OK")
</pallas_src>

<mosaic_0001>
module attributes {stable_mosaic.version = 11 : i64} {
  func.func @_fused_matmul_kernel(%arg0: i32, %arg1: i32, %arg2: memref<128x9xf32, #tpu.memory_space<vmem>>, %arg3: memref<9x128xf32, #tpu.memory_space<vmem>>, %arg4: memref<1x128xf32, #tpu.memory_space<vmem>>, %arg5: memref<1x128xf32, #tpu.memory_space<vmem>>, %arg6: memref<1x128xf32, #tpu.memory_space<vmem>>, %arg7: memref<128x128xf32, #tpu.memory_space<vmem>>) attributes {dimension_semantics = [#tpu.dimension_semantics<parallel>, #tpu.dimension_semantics<arbitrary>], iteration_bounds = array<i64: 1, 1>, scalar_prefetch = 0 : i64, scratch_operands = 0 : i64, tpu.core_type = #tpu.core_type<tc>, window_params = [{transform_indices = @transform_0, window_bounds = array<i64: 128, 9>}, {transform_indices = @transform_1, window_bounds = array<i64: 9, 128>}, {transform_indices = @transform_2, window_bounds = array<i64: 1, 128>}, {transform_indices = @transform_3, window_bounds = array<i64: 1, 128>}, {transform_indices = @transform_4, window_bounds = array<i64: 1, 128>}, {transform_indices = @transform_5, window_bounds = array<i64: 128, 128>}]} {
    %c0_i32 = arith.constant 0 : i32
    %0 = arith.cmpi eq, %arg1, %c0_i32 : i32
    %1 = arith.extui %0 : i1 to i32
    %c0_i32_0 = arith.constant 0 : i32
    %2 = arith.cmpi ne, %1, %c0_i32_0 : i32
    scf.if %2 {
      %cst_10 = arith.constant 0.000000e+00 : f32
      %12 = vector.broadcast %cst_10 : f32 to vector<128x128xf32>
      %c0_11 = arith.constant 0 : index
      %c0_12 = arith.constant 0 : index
      %13 = vector.load %arg7[%c0_11, %c0_12] : memref<128x128xf32, #tpu.memory_space<vmem>>, vector<128x128xf32>
      tpu.vector_store %arg7[%c0_11, %c0_12], %12 {strides = array<i32>} : memref<128x128xf32, #tpu.memory_space<vmem>>, vector<128x128xf32>,
    } else {
    }
    %c0 = arith.constant 0 : index
    %c0_1 = arith.constant 0 : index
    %3 = vector.load %arg7[%c0, %c0_1] : memref<128x128xf32, #tpu.memory_space<vmem>>, vector<128x128xf32>
    %c0_2 = arith.constant 0 : index
    %c0_3 = arith.constant 0 : index
    %4 = vector.load %arg2[%c0_2, %c0_3] : memref<128x9xf32, #tpu.memory_space<vmem>>, vector<128x9xf32>
    %c0_4 = arith.constant 0 : index
    %c0_5 = arith.constant 0 : index
    %5 = vector.load %arg3[%c0_4, %c0_5] : memref<9x128xf32, #tpu.memory_space<vmem>>, vector<9x128xf32>
    %cst = arith.constant dense<0.000000e+00> : vector<128x128xf32>
    %6 = tpu.matmul %4, %5, %cst {dimension_numbers = #tpu.dot_dimension_numbers<[1], [0], [0], [1], [0, 0, 1, 1], [], []>} : vector<128x9xf32>, vector<9x128xf32>, vector<128x128xf32> -> vector<128x128xf32>
    %7 = arith.addf %3, %6 : vector<128x128xf32>
    %c0_6 = arith.constant 0 : index
    %c0_7 = arith.constant 0 : index
    %8 = vector.load %arg7[%c0_6, %c0_7] : memref<128x128xf32, #tpu.memory_space<vmem>>, vector<128x128xf32>
    tpu.vector_store %arg7[%c0_6, %c0_7], %7 {strides = array<i32>} : memref<128x128xf32, #tpu.memory_space<vmem>>, vector<128x128xf32>,
    %c0_i32_8 = arith.constant 0 : i32
    %9 = arith.cmpi eq, %arg1, %c0_i32_8 : i32
    %10 = arith.extui %9 : i1 to i32
    %c0_i32_9 = arith.constant 0 : i32
    %11 = arith.cmpi ne, %10, %c0_i32_9 : i32
    scf.if %11 {
      %c0_10 = arith.constant 0 : index
      %c0_11 = arith.constant 0 : index
      %12 = vector.load %arg7[%c0_10, %c0_11] : memref<128x128xf32, #tpu.memory_space<vmem>>, vector<128x128xf32>
      %c0_12 = arith.constant 0 : index
      %c0_13 = arith.constant 0 : index
      %13 = vector.load %arg4[%c0_12, %c0_13] : memref<1x128xf32, #tpu.memory_space<vmem>>, vector<1x128xf32>
      %14 = vector.broadcast %13 : vector<1x128xf32> to vector<128x128xf32>
      %15 = arith.mulf %12, %14 : vector<128x128xf32>
      %c0_14 = arith.constant 0 : index
      %c0_15 = arith.constant 0 : index
      %16 = vector.load %arg5[%c0_14, %c0_15] : memref<1x128xf32, #tpu.memory_space<vmem>>, vector<1x128xf32>
      %17 = vector.broadcast %16 : vector<1x128xf32> to vector<128x128xf32>
      %18 = arith.addf %15, %17 : vector<128x128xf32>
      %cst_16 = arith.constant 0.000000e+00 : f32
      %19 = vector.broadcast %cst_16 : f32 to vector<128x128xf32>
      %20 = arith.cmpf oge, %18, %19 : vector<128x128xf32>
      %c0_17 = arith.constant 0 : index
      %c0_18 = arith.constant 0 : index
      %21 = vector.load %arg6[%c0_17, %c0_18] : memref<1x128xf32, #tpu.memory_space<vmem>>, vector<1x128xf32>
      %22 = vector.broadcast %21 : vector<1x128xf32> to vector<128x128xf32>
      %23 = arith.mulf %22, %18 : vector<128x128xf32>
      %24 = arith.select %20, %18, %23 : vector<128x128xi1>, vector<128x128xf32>
      %c0_19 = arith.constant 0 : index
      %c0_20 = arith.constant 0 : index
      %25 = vector.load %arg7[%c0_19, %c0_20] : memref<128x128xf32, #tpu.memory_space<vmem>>, vector<128x128xf32>
      tpu.vector_store %arg7[%c0_19, %c0_20], %24 {strides = array<i32>} : memref<128x128xf32, #tpu.memory_space<vmem>>, vector<128x128xf32>,
    } else {
    }
    return
  }
  func.func @transform_0(%arg0: i32, %arg1: i32) -> (i32, i32) {
    %c0_i32 = arith.constant 0 : i32
    %c0_i32_0 = arith.constant 0 : i32
    return %c0_i32, %arg1 : i32, i32
  }
  func.func @transform_1(%arg0: i32, %arg1: i32) -> (i32, i32) {
    %c0_i32 = arith.constant 0 : i32
    return %arg1, %arg0 : i32, i32
  }
  func.func @transform_2(%arg0: i32, %arg1: i32) -> (i32, i32) {
    %c0_i32 = arith.constant 0 : i32
    %c0_i32_0 = arith.constant 0 : i32
    return %c0_i32, %arg0 : i32, i32
  }
  func.func @transform_3(%arg0: i32, %arg1: i32) -> (i32, i32) {
    %c0_i32 = arith.constant 0 : i32
    %c0_i32_0 = arith.constant 0 : i32
    return %c0_i32, %arg0 : i32, i32
  }
  func.func @transform_4(%arg0: i32, %arg1: i32) -> (i32, i32) {
    %c0_i32 = arith.constant 0 : i32
    %c0_i32_0 = arith.constant 0 : i32
    return %c0_i32, %arg0 : i32, i32
  }
  func.func @transform_5(%arg0: i32, %arg1: i32) -> (i32, i32) {
    %c0_i32 = arith.constant 0 : i32
    %c0_i32_0 = arith.constant 0 : i32
    return %c0_i32, %arg0 : i32, i32
  }
}

module attributes {stable_mosaic.version = 11 : i64} {
  func.func @_fused_matmul_kernel(%arg0: i32, %arg1: i32, %arg2: memref<128x1152xf32, #tpu.memory_space<vmem>>, %arg3: memref<1152x128xf32, #tpu.memory_space<vmem>>, %arg4: memref<1x128xf32, #tpu.memory_space<vmem>>, %arg5: memref<1x128xf32, #tpu.memory_space<vmem>>, %arg6: memref<1x128xf32, #tpu.memory_space<vmem>>, %arg7: memref<128x128xf32, #tpu.memory_space<vmem>>) attributes {dimension_semantics = [#tpu.dimension_semantics<parallel>, #tpu.dimension_semantics<arbitrary>], iteration_bounds = array<i64: 1, 1>, scalar_prefetch = 0 : i64, scratch_operands = 0 : i64, tpu.core_type = #tpu.core_type<tc>, window_params = [{transform_indices = @transform_0, window_bounds = array<i64: 128, 1152>}, {transform_indices = @transform_1, window_bounds = array<i64: 1152, 128>}, {transform_indices = @transform_2, window_bounds = array<i64: 1, 128>}, {transform_indices = @transform_3, window_bounds = array<i64: 1, 128>}, {transform_indices = @transform_4, window_bounds = array<i64: 1, 128>}, {transform_indices = @transform_5, window_bounds = array<i64: 128, 128>}]} {
    %c0_i32 = arith.constant 0 : i32
    %0 = arith.cmpi eq, %arg1, %c0_i32 : i32
    %1 = arith.extui %0 : i1 to i32
    %c0_i32_0 = arith.constant 0 : i32
    %2 = arith.cmpi ne, %1, %c0_i32_0 : i32
    scf.if %2 {
      %cst_10 = arith.constant 0.000000e+00 : f32
      %12 = vector.broadcast %cst_10 : f32 to vector<128x128xf32>
      %c0_11 = arith.constant 0 : index
      %c0_12 = arith.constant 0 : index
      %13 = vector.load %arg7[%c0_11, %c0_12] : memref<128x128xf32, #tpu.memory_space<vmem>>, vector<128x128xf32>
      tpu.vector_store %arg7[%c0_11, %c0_12], %12 {strides = array<i32>} : memref<128x128xf32, #tpu.memory_space<vmem>>, vector<128x128xf32>,
    } else {
    }
    %c0 = arith.constant 0 : index
    %c0_1 = arith.constant 0 : index
    %3 = vector.load %arg7[%c0, %c0_1] : memref<128x128xf32, #tpu.memory_space<vmem>>, vector<128x128xf32>
    %c0_2 = arith.constant 0 : index
    %c0_3 = arith.constant 0 : index
    %4 = vector.load %arg2[%c0_2, %c0_3] : memref<128x1152xf32, #tpu.memory_space<vmem>>, vector<128x1152xf32>
    %c0_4 = arith.constant 0 : index
    %c0_5 = arith.constant 0 : index
    %5 = vector.load %arg3[%c0_4, %c0_5] : memref<1152x128xf32, #tpu.memory_space<vmem>>, vector<1152x128xf32>
    %cst = arith.constant dense<0.000000e+00> : vector<128x128xf32>
    %6 = tpu.matmul %4, %5, %cst {dimension_numbers = #tpu.dot_dimension_numbers<[1], [0], [0], [1], [0, 0, 1, 1], [], []>} : vector<128x1152xf32>, vector<1152x128xf32>, vector<128x128xf32> -> vector<128x128xf32>
    %7 = arith.addf %3, %6 : vector<128x128xf32>
    %c0_6 = arith.constant 0 : index
    %c0_7 = arith.constant 0 : index
    %8 = vector.load %arg7[%c0_6, %c0_7] : memref<128x128xf32, #tpu.memory_space<vmem>>, vector<128x128xf32>
    tpu.vector_store %arg7[%c0_6, %c0_7], %7 {strides = array<i32>} : memref<128x128xf32, #tpu.memory_space<vmem>>, vector<128x128xf32>,
    %c0_i32_8 = arith.constant 0 : i32
    %9 = arith.cmpi eq, %arg1, %c0_i32_8 : i32
    %10 = arith.extui %9 : i1 to i32
    %c0_i32_9 = arith.constant 0 : i32
    %11 = arith.cmpi ne, %10, %c0_i32_9 : i32
    scf.if %11 {
      %c0_10 = arith.constant 0 : index
      %c0_11 = arith.constant 0 : index
      %12 = vector.load %arg7[%c0_10, %c0_11] : memref<128x128xf32, #tpu.memory_space<vmem>>, vector<128x128xf32>
      %c0_12 = arith.constant 0 : index
      %c0_13 = arith.constant 0 : index
      %13 = vector.load %arg4[%c0_12, %c0_13] : memref<1x128xf32, #tpu.memory_space<vmem>>, vector<1x128xf32>
      %14 = vector.broadcast %13 : vector<1x128xf32> to vector<128x128xf32>
      %15 = arith.mulf %12, %14 : vector<128x128xf32>
      %c0_14 = arith.constant 0 : index
      %c0_15 = arith.constant 0 : index
      %16 = vector.load %arg5[%c0_14, %c0_15] : memref<1x128xf32, #tpu.memory_space<vmem>>, vector<1x128xf32>
      %17 = vector.broadcast %16 : vector<1x128xf32> to vector<128x128xf32>
      %18 = arith.addf %15, %17 : vector<128x128xf32>
      %cst_16 = arith.constant 0.000000e+00 : f32
      %19 = vector.broadcast %cst_16 : f32 to vector<128x128xf32>
      %20 = arith.cmpf oge, %18, %19 : vector<128x128xf32>
      %c0_17 = arith.constant 0 : index
      %c0_18 = arith.constant 0 : index
      %21 = vector.load %arg6[%c0_17, %c0_18] : memref<1x128xf32, #tpu.memory_space<vmem>>, vector<1x128xf32>
      %22 = vector.broadcast %21 : vector<1x128xf32> to vector<128x128xf32>
      %23 = arith.mulf %22, %18 : vector<128x128xf32>
      %24 = arith.select %20, %18, %23 : vector<128x128xi1>, vector<128x128xf32>
      %c0_19 = arith.constant 0 : index
      %c0_20 = arith.constant 0 : index
      %25 = vector.load %arg7[%c0_19, %c0_20] : memref<128x128xf32, #tpu.memory_space<vmem>>, vector<128x128xf32>
      tpu.vector_store %arg7[%c0_19, %c0_20], %24 {strides = array<i32>} : memref<128x128xf32, #tpu.memory_space<vmem>>, vector<128x128xf32>,
    } else {
    }
    return
  }
  func.func @transform_0(%arg0: i32, %arg1: i32) -> (i32, i32) {
    %c0_i32 = arith.constant 0 : i32
    %c0_i32_0 = arith.constant 0 : i32
    return %c0_i32, %arg1 : i32, i32
  }
  func.func @transform_1(%arg0: i32, %arg1: i32) -> (i32, i32) {
    %c0_i32 = arith.constant 0 : i32
    return %arg1, %arg0 : i32, i32
  }
  func.func @transform_2(%arg0: i32, %arg1: i32) -> (i32, i32) {
    %c0_i32 = arith.constant 0 : i32
    %c0_i32_0 = arith.constant 0 : i32
    return %c0_i32, %arg0 : i32, i32
  }
  func.func @transform_3(%arg0: i32, %arg1: i32) -> (i32, i32) {
    %c0_i32 = arith.constant 0 : i32
    %c0_i32_0 = arith.constant 0 : i32
    return %c0_i32, %arg0 : i32, i32
  }
  func.func @transform_4(%arg0: i32, %arg1: i32) -> (i32, i32) {
    %c0_i32 = arith.constant 0 : i32
    %c0_i32_0 = arith.constant 0 : i32
    return %c0_i32, %arg0 : i32, i32
  }
  func.func @transform_5(%arg0: i32, %arg1: i32) -> (i32, i32) {
    %c0_i32 = arith.constant 0 : i32
    %c0_i32_0 = arith.constant 0 : i32
    return %c0_i32, %arg0 : i32, i32
  }
}

module attributes {stable_mosaic.version = 11 : i64} {
  func.func @_fused_matmul_kernel(%arg0: i32, %arg1: i32, %arg2: memref<72x18xf32, #tpu.memory_space<vmem>>, %arg3: memref<18x256xf32, #tpu.memory_space<vmem>>, %arg4: memref<1x256xf32, #tpu.memory_space<vmem>>, %arg5: memref<1x256xf32, #tpu.memory_space<vmem>>, %arg6: memref<1x256xf32, #tpu.memory_space<vmem>>, %arg7: memref<72x256xf32, #tpu.memory_space<vmem>>) attributes {dimension_semantics = [#tpu.dimension_semantics<parallel>, #tpu.dimension_semantics<arbitrary>], iteration_bounds = array<i64: 1, 1>, scalar_prefetch = 0 : i64, scratch_operands = 0 : i64, tpu.core_type = #tpu.core_type<tc>, window_params = [{transform_indices = @transform_0, window_bounds = array<i64: 72, 18>}, {transform_indices = @transform_1, window_bounds = array<i64: 18, 256>}, {transform_indices = @transform_2, window_bounds = array<i64: 1, 256>}, {transform_indices = @transform_3, window_bounds = array<i64: 1, 256>}, {transform_indices = @transform_4, window_bounds = array<i64: 1, 256>}, {transform_indices = @transform_5, window_bounds = array<i64: 72, 256>}]} {
    %c0_i32 = arith.constant 0 : i32
    %0 = arith.cmpi eq, %arg1, %c0_i32 : i32
    %1 = arith.extui %0 : i1 to i32
    %c0_i32_0 = arith.constant 0 : i32
    %2 = arith.cmpi ne, %1, %c0_i32_0 : i32
    scf.if %2 {
      %cst_10 = arith.constant 0.000000e+00 : f32
      %12 = vector.broadcast %cst_10 : f32 to vector<72x256xf32>
      %c0_11 = arith.constant 0 : index
      %c0_12 = arith.constant 0 : index
      %13 = vector.load %arg7[%c0_11, %c0_12] : memref<72x256xf32, #tpu.memory_space<vmem>>, vector<72x256xf32>
      tpu.vector_store %arg7[%c0_11, %c0_12], %12 {strides = array<i32>} : memref<72x256xf32, #tpu.memory_space<vmem>>, vector<72x256xf32>,
    } else {
    }
    %c0 = arith.constant 0 : index
    %c0_1 = arith.constant 0 : index
    %3 = vector.load %arg7[%c0, %c0_1] : memref<72x256xf32, #tpu.memory_space<vmem>>, vector<72x256xf32>
    %c0_2 = arith.constant 0 : index
    %c0_3 = arith.constant 0 : index
    %4 = vector.load %arg2[%c0_2, %c0_3] : memref<72x18xf32, #tpu.memory_space<vmem>>, vector<72x18xf32>
    %c0_4 = arith.constant 0 : index
    %c0_5 = arith.constant 0 : index
    %5 = vector.load %arg3[%c0_4, %c0_5] : memref<18x256xf32, #tpu.memory_space<vmem>>, vector<18x256xf32>
    %cst = arith.constant dense<0.000000e+00> : vector<72x256xf32>
    %6 = tpu.matmul %4, %5, %cst {dimension_numbers = #tpu.dot_dimension_numbers<[1], [0], [0], [1], [0, 0, 1, 1], [], []>} : vector<72x18xf32>, vector<18x256xf32>, vector<72x256xf32> -> vector<72x256xf32>
    %7 = arith.addf %3, %6 : vector<72x256xf32>
    %c0_6 = arith.constant 0 : index
    %c0_7 = arith.constant 0 : index
    %8 = vector.load %arg7[%c0_6, %c0_7] : memref<72x256xf32, #tpu.memory_space<vmem>>, vector<72x256xf32>
    tpu.vector_store %arg7[%c0_6, %c0_7], %7 {strides = array<i32>} : memref<72x256xf32, #tpu.memory_space<vmem>>, vector<72x256xf32>,
    %c0_i32_8 = arith.constant 0 : i32
    %9 = arith.cmpi eq, %arg1, %c0_i32_8 : i32
    %10 = arith.extui %9 : i1 to i32
    %c0_i32_9 = arith.constant 0 : i32
    %11 = arith.cmpi ne, %10, %c0_i32_9 : i32
    scf.if %11 {
      %c0_10 = arith.constant 0 : index
      %c0_11 = arith.constant 0 : index
      %12 = vector.load %arg7[%c0_10, %c0_11] : memref<72x256xf32, #tpu.memory_space<vmem>>, vector<72x256xf32>
      %c0_12 = arith.constant 0 : index
      %c0_13 = arith.constant 0 : index
      %13 = vector.load %arg4[%c0_12, %c0_13] : memref<1x256xf32, #tpu.memory_space<vmem>>, vector<1x256xf32>
      %14 = vector.broadcast %13 : vector<1x256xf32> to vector<72x256xf32>
      %15 = arith.mulf %12, %14 : vector<72x256xf32>
      %c0_14 = arith.constant 0 : index
      %c0_15 = arith.constant 0 : index
      %16 = vector.load %arg5[%c0_14, %c0_15] : memref<1x256xf32, #tpu.memory_space<vmem>>, vector<1x256xf32>
      %17 = vector.broadcast %16 : vector<1x256xf32> to vector<72x256xf32>
      %18 = arith.addf %15, %17 : vector<72x256xf32>
      %cst_16 = arith.constant 0.000000e+00 : f32
      %19 = vector.broadcast %cst_16 : f32 to vector<72x256xf32>
      %20 = arith.cmpf oge, %18, %19 : vector<72x256xf32>
      %c0_17 = arith.constant 0 : index
      %c0_18 = arith.constant 0 : index
      %21 = vector.load %arg6[%c0_17, %c0_18] : memref<1x256xf32, #tpu.memory_space<vmem>>, vector<1x256xf32>
      %22 = vector.broadcast %21 : vector<1x256xf32> to vector<72x256xf32>
      %23 = arith.mulf %22, %18 : vector<72x256xf32>
      %24 = arith.select %20, %18, %23 : vector<72x256xi1>, vector<72x256xf32>
      %c0_19 = arith.constant 0 : index
      %c0_20 = arith.constant 0 : index
      %25 = vector.load %arg7[%c0_19, %c0_20] : memref<72x256xf32, #tpu.memory_space<vmem>>, vector<72x256xf32>
      tpu.vector_store %arg7[%c0_19, %c0_20], %24 {strides = array<i32>} : memref<72x256xf32, #tpu.memory_space<vmem>>, vector<72x256xf32>,
    } else {
    }
    return
  }
  func.func @transform_0(%arg0: i32, %arg1: i32) -> (i32, i32) {
    %c0_i32 = arith.constant 0 : i32
    %c0_i32_0 = arith.constant 0 : i32
    return %c0_i32, %arg1 : i32, i32
  }
  func.func @transform_1(%arg0: i32, %arg1: i32) -> (i32, i32) {
    %c0_i32 = arith.constant 0 : i32
    return %arg1, %arg0 : i32, i32
  }
  func.func @transform_2(%arg0: i32, %arg1: i32) -> (i32, i32) {
    %c0_i32 = arith.constant 0 : i32
    %c0_i32_0 = arith.constant 0 : i32
    return %c0_i32, %arg0 : i32, i32
  }
  func.func @transform_3(%arg0: i32, %arg1: i32) -> (i32, i32) {
    %c0_i32 = arith.constant 0 : i32
    %c0_i32_0 = arith.constant 0 : i32
    return %c0_i32, %arg0 : i32, i32
  }
  func.func @transform_4(%arg0: i32, %arg1: i32) -> (i32, i32) {
    %c0_i32 = arith.constant 0 : i32
    %c0_i32_0 = arith.constant 0 : i32
    return %c0_i32, %arg0 : i32, i32
  }
  func.func @transform_5(%arg0: i32, %arg1: i32) -> (i32, i32) {
    %c0_i32 = arith.constant 0 : i32
    %c0_i32_0 = arith.constant 0 : i32
    return %c0_i32, %arg0 : i32, i32
  }
}

module attributes {stable_mosaic.version = 11 : i64} {
  func.func @_fused_matmul_kernel(%arg0: i32, %arg1: i32, %arg2: memref<32x2304xf32, #tpu.memory_space<vmem>>, %arg3: memref<2304x256xf32, #tpu.memory_space<vmem>>, %arg4: memref<1x256xf32, #tpu.memory_space<vmem>>, %arg5: memref<1x256xf32, #tpu.memory_space<vmem>>, %arg6: memref<1x256xf32, #tpu.memory_space<vmem>>, %arg7: memref<32x256xf32, #tpu.memory_space<vmem>>) attributes {dimension_semantics = [#tpu.dimension_semantics<parallel>, #tpu.dimension_semantics<arbitrary>], iteration_bounds = array<i64: 1, 1>, scalar_prefetch = 0 : i64, scratch_operands = 0 : i64, tpu.core_type = #tpu.core_type<tc>, window_params = [{transform_indices = @transform_0, window_bounds = array<i64: 32, 2304>}, {transform_indices = @transform_1, window_bounds = array<i64: 2304, 256>}, {transform_indices = @transform_2, window_bounds = array<i64: 1, 256>}, {transform_indices = @transform_3, window_bounds = array<i64: 1, 256>}, {transform_indices = @transform_4, window_bounds = array<i64: 1, 256>}, {transform_indices = @transform_5, window_bounds = array<i64: 32, 256>}]} {
    %c0_i32 = arith.constant 0 : i32
    %0 = arith.cmpi eq, %arg1, %c0_i32 : i32
    %1 = arith.extui %0 : i1 to i32
    %c0_i32_0 = arith.constant 0 : i32
    %2 = arith.cmpi ne, %1, %c0_i32_0 : i32
    scf.if %2 {
      %cst_10 = arith.constant 0.000000e+00 : f32
      %12 = vector.broadcast %cst_10 : f32 to vector<32x256xf32>
      %c0_11 = arith.constant 0 : index
      %c0_12 = arith.constant 0 : index
      %13 = vector.load %arg7[%c0_11, %c0_12] : memref<32x256xf32, #tpu.memory_space<vmem>>, vector<32x256xf32>
      tpu.vector_store %arg7[%c0_11, %c0_12], %12 {strides = array<i32>} : memref<32x256xf32, #tpu.memory_space<vmem>>, vector<32x256xf32>,
    } else {
    }
    %c0 = arith.constant 0 : index
    %c0_1 = arith.constant 0 : index
    %3 = vector.load %arg7[%c0, %c0_1] : memref<32x256xf32, #tpu.memory_space<vmem>>, vector<32x256xf32>
    %c0_2 = arith.constant 0 : index
    %c0_3 = arith.constant 0 : index
    %4 = vector.load %arg2[%c0_2, %c0_3] : memref<32x2304xf32, #tpu.memory_space<vmem>>, vector<32x2304xf32>
    %c0_4 = arith.constant 0 : index
    %c0_5 = arith.constant 0 : index
    %5 = vector.load %arg3[%c0_4, %c0_5] : memref<2304x256xf32, #tpu.memory_space<vmem>>, vector<2304x256xf32>
    %cst = arith.constant dense<0.000000e+00> : vector<32x256xf32>
    %6 = tpu.matmul %4, %5, %cst {dimension_numbers = #tpu.dot_dimension_numbers<[1], [0], [0], [1], [0, 0, 1, 1], [], []>} : vector<32x2304xf32>, vector<2304x256xf32>, vector<32x256xf32> -> vector<32x256xf32>
    %7 = arith.addf %3, %6 : vector<32x256xf32>
    %c0_6 = arith.constant 0 : index
    %c0_7 = arith.constant 0 : index
    %8 = vector.load %arg7[%c0_6, %c0_7] : memref<32x256xf32, #tpu.memory_space<vmem>>, vector<32x256xf32>
    tpu.vector_store %arg7[%c0_6, %c0_7], %7 {strides = array<i32>} : memref<32x256xf32, #tpu.memory_space<vmem>>, vector<32x256xf32>,
    %c0_i32_8 = arith.constant 0 : i32
    %9 = arith.cmpi eq, %arg1, %c0_i32_8 : i32
    %10 = arith.extui %9 : i1 to i32
    %c0_i32_9 = arith.constant 0 : i32
    %11 = arith.cmpi ne, %10, %c0_i32_9 : i32
    scf.if %11 {
      %c0_10 = arith.constant 0 : index
      %c0_11 = arith.constant 0 : index
      %12 = vector.load %arg7[%c0_10, %c0_11] : memref<32x256xf32, #tpu.memory_space<vmem>>, vector<32x256xf32>
      %c0_12 = arith.constant 0 : index
      %c0_13 = arith.constant 0 : index
      %13 = vector.load %arg4[%c0_12, %c0_13] : memref<1x256xf32, #tpu.memory_space<vmem>>, vector<1x256xf32>
      %14 = vector.broadcast %13 : vector<1x256xf32> to vector<32x256xf32>
      %15 = arith.mulf %12, %14 : vector<32x256xf32>
      %c0_14 = arith.constant 0 : index
      %c0_15 = arith.constant 0 : index
      %16 = vector.load %arg5[%c0_14, %c0_15] : memref<1x256xf32, #tpu.memory_space<vmem>>, vector<1x256xf32>
      %17 = vector.broadcast %16 : vector<1x256xf32> to vector<32x256xf32>
      %18 = arith.addf %15, %17 : vector<32x256xf32>
      %cst_16 = arith.constant 0.000000e+00 : f32
      %19 = vector.broadcast %cst_16 : f32 to vector<32x256xf32>
      %20 = arith.cmpf oge, %18, %19 : vector<32x256xf32>
      %c0_17 = arith.constant 0 : index
      %c0_18 = arith.constant 0 : index
      %21 = vector.load %arg6[%c0_17, %c0_18] : memref<1x256xf32, #tpu.memory_space<vmem>>, vector<1x256xf32>
      %22 = vector.broadcast %21 : vector<1x256xf32> to vector<32x256xf32>
      %23 = arith.mulf %22, %18 : vector<32x256xf32>
      %24 = arith.select %20, %18, %23 : vector<32x256xi1>, vector<32x256xf32>
      %c0_19 = arith.constant 0 : index
      %c0_20 = arith.constant 0 : index
      %25 = vector.load %arg7[%c0_19, %c0_20] : memref<32x256xf32, #tpu.memory_space<vmem>>, vector<32x256xf32>
      tpu.vector_store %arg7[%c0_19, %c0_20], %24 {strides = array<i32>} : memref<32x256xf32, #tpu.memory_space<vmem>>, vector<32x256xf32>,
    } else {
    }
    return
  }
  func.func @transform_0(%arg0: i32, %arg1: i32) -> (i32, i32) {
    %c0_i32 = arith.constant 0 : i32
    %c0_i32_0 = arith.constant 0 : i32
    return %c0_i32, %arg1 : i32, i32
  }
  func.func @transform_1(%arg0: i32, %arg1: i32) -> (i32, i32) {
    %c0_i32 = arith.constant 0 : i32
    return %arg1, %arg0 : i32, i32
  }
  func.func @transform_2(%arg0: i32, %arg1: i32) -> (i32, i32) {
    %c0_i32 = arith.constant 0 : i32
    %c0_i32_0 = arith.constant 0 : i32
    return %c0_i32, %arg0 : i32, i32
  }
  func.func @transform_3(%arg0: i32, %arg1: i32) -> (i32, i32) {
    %c0_i32 = arith.constant 0 : i32
    %c0_i32_0 = arith.constant 0 : i32
    return %c0_i32, %arg0 : i32, i32
  }
  func.func @transform_4(%arg0: i32, %arg1: i32) -> (i32, i32) {
    %c0_i32 = arith.constant 0 : i32
    %c0_i32_0 = arith.constant 0 : i32
    return %c0_i32, %arg0 : i32, i32
  }
  func.func @transform_5(%arg0: i32, %arg1: i32) -> (i32, i32) {
    %c0_i32 = arith.constant 0 : i32
    %c0_i32_0 = arith.constant 0 : i32
    return %c0_i32, %arg0 : i32, i32
  }
}

module attributes {stable_mosaic.version = 11 : i64} {
  func.func @_fused_matmul_kernel(%arg0: i32, %arg1: i32, %arg2: memref<8x5120xbf16, #tpu.memory_space<vmem>>, %arg3: memref<5120x256xbf16, #tpu.memory_space<vmem>>, %arg4: memref<1x256xf32, #tpu.memory_space<vmem>>, %arg5: memref<1x256xf32, #tpu.memory_space<vmem>>, %arg6: memref<1x256xf32, #tpu.memory_space<vmem>>, %arg7: memref<8x256xf32, #tpu.memory_space<vmem>>) attributes {dimension_semantics = [#tpu.dimension_semantics<parallel>, #tpu.dimension_semantics<arbitrary>], iteration_bounds = array<i64: 2, 1>, scalar_prefetch = 0 : i64, scratch_operands = 0 : i64, tpu.core_type = #tpu.core_type<tc>, window_params = [{transform_indices = @transform_0, window_bounds = array<i64: 8, 5120>}, {transform_indices = @transform_1, window_bounds = array<i64: 5120, 256>}, {transform_indices = @transform_2, window_bounds = array<i64: 1, 256>}, {transform_indices = @transform_3, window_bounds = array<i64: 1, 256>}, {transform_indices = @transform_4, window_bounds = array<i64: 1, 256>}, {transform_indices = @transform_5, window_bounds = array<i64: 8, 256>}]} {
    %c0_i32 = arith.constant 0 : i32
    %0 = arith.cmpi eq, %arg1, %c0_i32 : i32
    %1 = arith.extui %0 : i1 to i32
    %c0_i32_0 = arith.constant 0 : i32
    %2 = arith.cmpi ne, %1, %c0_i32_0 : i32
    scf.if %2 {
      %cst_10 = arith.constant 0.000000e+00 : f32
      %12 = vector.broadcast %cst_10 : f32 to vector<8x256xf32>
      %c0_11 = arith.constant 0 : index
      %c0_12 = arith.constant 0 : index
      %13 = vector.load %arg7[%c0_11, %c0_12] : memref<8x256xf32, #tpu.memory_space<vmem>>, vector<8x256xf32>
      tpu.vector_store %arg7[%c0_11, %c0_12], %12 {strides = array<i32>} : memref<8x256xf32, #tpu.memory_space<vmem>>, vector<8x256xf32>,
    } else {
    }
    %c0 = arith.constant 0 : index
    %c0_1 = arith.constant 0 : index
    %3 = vector.load %arg7[%c0, %c0_1] : memref<8x256xf32, #tpu.memory_space<vmem>>, vector<8x256xf32>
    %c0_2 = arith.constant 0 : index
    %c0_3 = arith.constant 0 : index
    %4 = vector.load %arg2[%c0_2, %c0_3] : memref<8x5120xbf16, #tpu.memory_space<vmem>>, vector<8x5120xbf16>
    %c0_4 = arith.constant 0 : index
    %c0_5 = arith.constant 0 : index
    %5 = vector.load %arg3[%c0_4, %c0_5] : memref<5120x256xbf16, #tpu.memory_space<vmem>>, vector<5120x256xbf16>
    %cst = arith.constant dense<0.000000e+00> : vector<8x256xf32>
    %6 = tpu.matmul %4, %5, %cst {dimension_numbers = #tpu.dot_dimension_numbers<[1], [0], [0], [1], [0, 0, 1, 1], [], []>} : vector<8x5120xbf16>, vector<5120x256xbf16>, vector<8x256xf32> -> vector<8x256xf32>
    %7 = arith.addf %3, %6 : vector<8x256xf32>
    %c0_6 = arith.constant 0 : index
    %c0_7 = arith.constant 0 : index
    %8 = vector.load %arg7[%c0_6, %c0_7] : memref<8x256xf32, #tpu.memory_space<vmem>>, vector<8x256xf32>
    tpu.vector_store %arg7[%c0_6, %c0_7], %7 {strides = array<i32>} : memref<8x256xf32, #tpu.memory_space<vmem>>, vector<8x256xf32>,
    %c0_i32_8 = arith.constant 0 : i32
    %9 = arith.cmpi eq, %arg1, %c0_i32_8 : i32
    %10 = arith.extui %9 : i1 to i32
    %c0_i32_9 = arith.constant 0 : i32
    %11 = arith.cmpi ne, %10, %c0_i32_9 : i32
    scf.if %11 {
      %c0_10 = arith.constant 0 : index
      %c0_11 = arith.constant 0 : index
      %12 = vector.load %arg7[%c0_10, %c0_11] : memref<8x256xf32, #tpu.memory_space<vmem>>, vector<8x256xf32>
      %c0_12 = arith.constant 0 : index
      %c0_13 = arith.constant 0 : index
      %13 = vector.load %arg4[%c0_12, %c0_13] : memref<1x256xf32, #tpu.memory_space<vmem>>, vector<1x256xf32>
      %14 = vector.broadcast %13 : vector<1x256xf32> to vector<8x256xf32>
      %15 = arith.mulf %12, %14 : vector<8x256xf32>
      %c0_14 = arith.constant 0 : index
      %c0_15 = arith.constant 0 : index
      %16 = vector.load %arg5[%c0_14, %c0_15] : memref<1x256xf32, #tpu.memory_space<vmem>>, vector<1x256xf32>
      %17 = vector.broadcast %16 : vector<1x256xf32> to vector<8x256xf32>
      %18 = arith.addf %15, %17 : vector<8x256xf32>
      %cst_16 = arith.constant 0.000000e+00 : f32
      %19 = vector.broadcast %cst_16 : f32 to vector<8x256xf32>
      %20 = arith.cmpf oge, %18, %19 : vector<8x256xf32>
      %c0_17 = arith.constant 0 : index
      %c0_18 = arith.constant 0 : index
      %21 = vector.load %arg6[%c0_17, %c0_18] : memref<1x256xf32, #tpu.memory_space<vmem>>, vector<1x256xf32>
      %22 = vector.broadcast %21 : vector<1x256xf32> to vector<8x256xf32>
      %23 = arith.mulf %22, %18 : vector<8x256xf32>
      %24 = arith.select %20, %18, %23 : vector<8x256xi1>, vector<8x256xf32>
      %c0_19 = arith.constant 0 : index
      %c0_20 = arith.constant 0 : index
      %25 = vector.load %arg7[%c0_19, %c0_20] : memref<8x256xf32, #tpu.memory_space<vmem>>, vector<8x256xf32>
      tpu.vector_store %arg7[%c0_19, %c0_20], %24 {strides = array<i32>} : memref<8x256xf32, #tpu.memory_space<vmem>>, vector<8x256xf32>,
    } else {
    }
    return
  }
  func.func @transform_0(%arg0: i32, %arg1: i32) -> (i32, i32) {
    %c0_i32 = arith.constant 0 : i32
    %c0_i32_0 = arith.constant 0 : i32
    return %c0_i32, %arg1 : i32, i32
  }
  func.func @transform_1(%arg0: i32, %arg1: i32) -> (i32, i32) {
    %c0_i32 = arith.constant 0 : i32
    return %arg1, %arg0 : i32, i32
  }
  func.func @transform_2(%arg0: i32, %arg1: i32) -> (i32, i32) {
    %c0_i32 = arith.constant 0 : i32
    %c0_i32_0 = arith.constant 0 : i32
    return %c0_i32, %arg0 : i32, i32
  }
  func.func @transform_3(%arg0: i32, %arg1: i32) -> (i32, i32) {
    %c0_i32 = arith.constant 0 : i32
    %c0_i32_0 = arith.constant 0 : i32
    return %c0_i32, %arg0 : i32, i32
  }
  func.func @transform_4(%arg0: i32, %arg1: i32) -> (i32, i32) {
    %c0_i32 = arith.constant 0 : i32
    %c0_i32_0 = arith.constant 0 : i32
    return %c0_i32, %arg0 : i32, i32
  }
  func.func @transform_5(%arg0: i32, %arg1: i32) -> (i32, i32) {
    %c0_i32 = arith.constant 0 : i32
    %c0_i32_0 = arith.constant 0 : i32
    return %c0_i32, %arg0 : i32, i32
  }
}

module attributes {stable_mosaic.version = 11 : i64} {
  func.func @_fused_matmul_kernel(%arg0: i32, %arg1: i32, %arg2: memref<8x512xbf16, #tpu.memory_space<vmem>>, %arg3: memref<512x128xbf16, #tpu.memory_space<vmem>>, %arg4: memref<1x128xf32, #tpu.memory_space<vmem>>, %arg5: memref<1x128xf32, #tpu.memory_space<vmem>>, %arg6: memref<1x128xf32, #tpu.memory_space<vmem>>, %arg7: memref<8x128xf32, #tpu.memory_space<vmem>>) attributes {dimension_semantics = [#tpu.dimension_semantics<parallel>, #tpu.dimension_semantics<arbitrary>], iteration_bounds = array<i64: 1, 1>, scalar_prefetch = 0 : i64, scratch_operands = 0 : i64, tpu.core_type = #tpu.core_type<tc>, window_params = [{transform_indices = @transform_0, window_bounds = array<i64: 8, 512>}, {transform_indices = @transform_1, window_bounds = array<i64: 512, 128>}, {transform_indices = @transform_2, window_bounds = array<i64: 1, 128>}, {transform_indices = @transform_3, window_bounds = array<i64: 1, 128>}, {transform_indices = @transform_4, window_bounds = array<i64: 1, 128>}, {transform_indices = @transform_5, window_bounds = array<i64: 8, 128>}]} {
    %c0_i32 = arith.constant 0 : i32
    %0 = arith.cmpi eq, %arg1, %c0_i32 : i32
    %1 = arith.extui %0 : i1 to i32
    %c0_i32_0 = arith.constant 0 : i32
    %2 = arith.cmpi ne, %1, %c0_i32_0 : i32
    scf.if %2 {
      %cst_10 = arith.constant 0.000000e+00 : f32
      %12 = vector.broadcast %cst_10 : f32 to vector<8x128xf32>
      %c0_11 = arith.constant 0 : index
      %c0_12 = arith.constant 0 : index
      %13 = vector.load %arg7[%c0_11, %c0_12] : memref<8x128xf32, #tpu.memory_space<vmem>>, vector<8x128xf32>
      tpu.vector_store %arg7[%c0_11, %c0_12], %12 {strides = array<i32>} : memref<8x128xf32, #tpu.memory_space<vmem>>, vector<8x128xf32>,
    } else {
    }
    %c0 = arith.constant 0 : index
    %c0_1 = arith.constant 0 : index
    %3 = vector.load %arg7[%c0, %c0_1] : memref<8x128xf32, #tpu.memory_space<vmem>>, vector<8x128xf32>
    %c0_2 = arith.constant 0 : index
    %c0_3 = arith.constant 0 : index
    %4 = vector.load %arg2[%c0_2, %c0_3] : memref<8x512xbf16, #tpu.memory_space<vmem>>, vector<8x512xbf16>
    %c0_4 = arith.constant 0 : index
    %c0_5 = arith.constant 0 : index
    %5 = vector.load %arg3[%c0_4, %c0_5] : memref<512x128xbf16, #tpu.memory_space<vmem>>, vector<512x128xbf16>
    %cst = arith.constant dense<0.000000e+00> : vector<8x128xf32>
    %6 = tpu.matmul %4, %5, %cst {dimension_numbers = #tpu.dot_dimension_numbers<[1], [0], [0], [1], [0, 0, 1, 1], [], []>} : vector<8x512xbf16>, vector<512x128xbf16>, vector<8x128xf32> -> vector<8x128xf32>
    %7 = arith.addf %3, %6 : vector<8x128xf32>
    %c0_6 = arith.constant 0 : index
    %c0_7 = arith.constant 0 : index
    %8 = vector.load %arg7[%c0_6, %c0_7] : memref<8x128xf32, #tpu.memory_space<vmem>>, vector<8x128xf32>
    tpu.vector_store %arg7[%c0_6, %c0_7], %7 {strides = array<i32>} : memref<8x128xf32, #tpu.memory_space<vmem>>, vector<8x128xf32>,
    %c0_i32_8 = arith.constant 0 : i32
    %9 = arith.cmpi eq, %arg1, %c0_i32_8 : i32
    %10 = arith.extui %9 : i1 to i32
    %c0_i32_9 = arith.constant 0 : i32
    %11 = arith.cmpi ne, %10, %c0_i32_9 : i32
    scf.if %11 {
      %c0_10 = arith.constant 0 : index
      %c0_11 = arith.constant 0 : index
      %12 = vector.load %arg7[%c0_10, %c0_11] : memref<8x128xf32, #tpu.memory_space<vmem>>, vector<8x128xf32>
      %c0_12 = arith.constant 0 : index
      %c0_13 = arith.constant 0 : index
      %13 = vector.load %arg4[%c0_12, %c0_13] : memref<1x128xf32, #tpu.memory_space<vmem>>, vector<1x128xf32>
      %14 = vector.broadcast %13 : vector<1x128xf32> to vector<8x128xf32>
      %15 = arith.mulf %12, %14 : vector<8x128xf32>
      %c0_14 = arith.constant 0 : index
      %c0_15 = arith.constant 0 : index
      %16 = vector.load %arg5[%c0_14, %c0_15] : memref<1x128xf32, #tpu.memory_space<vmem>>, vector<1x128xf32>
      %17 = vector.broadcast %16 : vector<1x128xf32> to vector<8x128xf32>
      %18 = arith.addf %15, %17 : vector<8x128xf32>
      %cst_16 = arith.constant 0.000000e+00 : f32
      %19 = vector.broadcast %cst_16 : f32 to vector<8x128xf32>
      %20 = arith.cmpf oge, %18, %19 : vector<8x128xf32>
      %c0_17 = arith.constant 0 : index
      %c0_18 = arith.constant 0 : index
      %21 = vector.load %arg6[%c0_17, %c0_18] : memref<1x128xf32, #tpu.memory_space<vmem>>, vector<1x128xf32>
      %22 = vector.broadcast %21 : vector<1x128xf32> to vector<8x128xf32>
      %23 = arith.mulf %22, %18 : vector<8x128xf32>
      %24 = arith.select %20, %18, %23 : vector<8x128xi1>, vector<8x128xf32>
      %c0_19 = arith.constant 0 : index
      %c0_20 = arith.constant 0 : index
      %25 = vector.load %arg7[%c0_19, %c0_20] : memref<8x128xf32, #tpu.memory_space<vmem>>, vector<8x128xf32>
      tpu.vector_store %arg7[%c0_19, %c0_20], %24 {strides = array<i32>} : memref<8x128xf32, #tpu.memory_space<vmem>>, vector<8x128xf32>,
    } else {
    }
    return
  }
  func.func @transform_0(%arg0: i32, %arg1: i32) -> (i32, i32) {
    %c0_i32 = arith.constant 0 : i32
    %c0_i32_0 = arith.constant 0 : i32
    return %c0_i32, %arg1 : i32, i32
  }
  func.func @transform_1(%arg0: i32, %arg1: i32) -> (i32, i32) {
    %c0_i32 = arith.constant 0 : i32
    return %arg1, %arg0 : i32, i32
  }
  func.func @transform_2(%arg0: i32, %arg1: i32) -> (i32, i32) {
    %c0_i32 = arith.constant 0 : i32
    %c0_i32_0 = arith.constant 0 : i32
    return %c0_i32, %arg0 : i32, i32
  }
  func.func @transform_3(%arg0: i32, %arg1: i32) -> (i32, i32) {
    %c0_i32 = arith.constant 0 : i32
    %c0_i32_0 = arith.constant 0 : i32
    return %c0_i32, %arg0 : i32, i32
  }
  func.func @transform_4(%arg0: i32, %arg1: i32) -> (i32, i32) {
    %c0_i32 = arith.constant 0 : i32
    %c0_i32_0 = arith.constant 0 : i32
    return %c0_i32, %arg0 : i32, i32
  }
  func.func @transform_5(%arg0: i32, %arg1: i32) -> (i32, i32) {
    %c0_i32 = arith.constant 0 : i32
    %c0_i32_0 = arith.constant 0 : i32
    return %c0_i32, %arg0 : i32, i32
  }
}

</mosaic_0001>

<bundles_post_ra>
// kernel: multihead_cnn_forward.8
= control target key start
LH: loop header
LB: loop body
LE: loop exit
PB: predicated region body
PF: predicated region fallthrough
CT: control target
= control target key end

     0   :  { %10 = vsyncpa [#allocation3], 0  ;;  %s930_s0 = inlined_call_operand.vmem [shape: f32[128,9], index: 0, kind: input, shape index: {}]   ;;  %s931_s1 = inlined_call_operand.hbm [shape: f32[9,128], index: 1, kind: input, shape index: {}]   ;;  %s932_s2 = inlined_call_operand.hbm [shape: f32[1,128], index: 2, kind: input, shape index: {}]   ;;  %s933_s3 = inlined_call_operand.hbm [shape: f32[1,128], index: 3, kind: input, shape index: {}]   ;;  %s934_s4 = inlined_call_operand.hbm [shape: f32[1,128], index: 4, kind: input, shape index: {}]   ;;  %s935_s5 = inlined_call_operand.vmem [shape: f32[128,128], index: 5, kind: output, shape index: {}]  }
   0x1   :  { %11 = vsyncpa [#allocation5], 0 }
   0x2   :  { %12 = vsyncpa [#allocation8], 0  ;;  %s672_s18 = smov [#allocation4]   ;;  %s673_s20 = smov [#allocation2]  }
   0x3   :  { %s33_s19 = sshll.u32 %s672_s18, 4  ;;  %s20_s21 = sshll.u32 %s673_s20, 4  ;;  %s34_s19 = int_to_ptr.vmem [resolvable:$true] %s33_s19  ;;  %s709_s21 = int_to_ptr.vmem [resolvable:$true] %s20_s21 }
   0x4   :  { %s578_s24 = scalar_lea.hbm %s932_s2, 16 }
   0x5   :  { %p579_p0 = scmp.ne.s32.totalorder %s932_s2, %s578_s24  ;;  %p582_p1 = scmp.lt.u32.totalorder %s578_s24, %s932_s2 }
   0x7   :  { %p584_p2 = pnand %p582_p1, %p579_p0 }
   0x9   :  { %587 = shalt.err (!%p584_p2)
}
   0xa   :  { %s588_s29 = scalar_lea.vmem %s34_s19, 16  ;;  %s592_s30 = scalar_lea.vmem %s34_s19, 32 }
   0xb   :  { %p589_p3 = scmp.ne.s32.totalorder %s34_s19, %s588_s29  ;;  %p593_p4 = scmp.lt.s32.totalorder %s34_s19, %s34_s19 }
   0xc   :  { %p594_p5 = scmp.lt.s32.totalorder %s592_s30, %s588_s29 }
   0xe   :  { %p595_p6 = por %p594_p5, %p593_p4 }
  0x10   :  { %p596_p7 = pnand %p595_p6, %p589_p3 }
  0x12   :  { %599 = shalt.err (!%p596_p7)
}
  0x13   :  { %36 = dma.hbm_to_vmem [thread:$0]  %s932_s2, 16, %s34_s19, [#allocation5]  }
  0x14   :  { %s600_s10 = scalar_lea.hbm %s931_s1, 256 }
  0x15   :  { %p601_p8 = scmp.ne.s32.totalorder %s931_s1, %s600_s10  ;;  %p604_p9 = scmp.lt.u32.totalorder %s600_s10, %s931_s1 }
  0x17   :  { %p606_p10 = pnand %p604_p9, %p601_p8 }
  0x19   :  { %609 = shalt.err (!%p606_p10)
}
  0x1a   :  { %s610_s15 = scalar_lea.vmem %s709_s21, 256  ;;  %p615_p12 = scmp.lt.s32.totalorder %s709_s21, %s709_s21 }
  0x1b   :  { %p611_p11 = scmp.ne.s32.totalorder %s709_s21, %s610_s15  ;;  %p616_p13 = scmp.lt.s32.totalorder %s610_s15, %s610_s15 }
  0x1d   :  { %p617_p0 = por %p616_p13, %p615_p12 }
  0x1f   :  { %p618_p1 = pnand %p617_p0, %p611_p11 }
  0x21   :  { %621 = shalt.err (!%p618_p1)
}
  0x22   :  { %s674_s2 = smov 128   ;;  %s675_s16 = smov 8  }
  0x23   :  { %26 = dma.hbm_to_vmem [thread:$0]  %s931_s1, 256, %s709_s21, [#allocation3], %s674_s2, %s674_s2, %s675_s16  }
  0x24   :  { %s676_s19 = smov [#allocation6]   ;;  %s677_s22 = smov [#allocation7]  }
  0x25   :  { %s43_s20 = sshll.u32 %s676_s19, 4  ;;  %s53_s23 = sshll.u32 %s677_s22, 4  ;;  %s44_s20 = int_to_ptr.vmem [resolvable:$true] %s43_s20  ;;  %s54_s23 = int_to_ptr.vmem [resolvable:$true] %s53_s23 }
  0x26   :  { %s622_s26 = scalar_lea.hbm %s933_s3, 16 }
  0x27   :  { %p623_p2 = scmp.ne.s32.totalorder %s933_s3, %s622_s26  ;;  %p626_p3 = scmp.lt.u32.totalorder %s622_s26, %s933_s3 }
  0x29   :  { %p628_p4 = pnand %p626_p3, %p623_p2 }
  0x2b   :  { %631 = shalt.err (!%p628_p4)
}
  0x2c   :  { %s632_s1 = scalar_lea.vmem %s44_s20, 16  ;;  %s636_s21 = scalar_lea.vmem %s44_s20, 32 }
  0x2d   :  { %p633_p5 = scmp.ne.s32.totalorder %s44_s20, %s632_s1  ;;  %p637_p6 = scmp.lt.s32.totalorder %s44_s20, %s44_s20 }
  0x2e   :  { %p638_p7 = scmp.lt.s32.totalorder %s636_s21, %s632_s1 }
  0x30   :  { %p639_p8 = por %p638_p7, %p637_p6 }
  0x32   :  { %p640_p9 = pnand %p639_p8, %p633_p5 }
  0x34   :  { %643 = shalt.err (!%p640_p9)
}
  0x35   :  { %46 = dma.hbm_to_vmem [thread:$0]  %s933_s3, 16, %s44_s20, [#allocation5]  }
  0x36   :  { %s644_s10 = scalar_lea.hbm %s934_s4, 16 }
  0x37   :  { %p645_p10 = scmp.ne.s32.totalorder %s934_s4, %s644_s10  ;;  %p648_p11 = scmp.lt.u32.totalorder %s644_s10, %s934_s4 }
  0x39   :  { %p650_p12 = pnand %p648_p11, %p645_p10 }
  0x3b   :  { %653 = shalt.err (!%p650_p12)
}
  0x3c   :  { %s654_s15 = scalar_lea.vmem %s54_s23, 16  ;;  %s658_s2 = scalar_lea.vmem %s54_s23, 32 }
  0x3d   :  { %p655_p13 = scmp.ne.s32.totalorder %s54_s23, %s654_s15  ;;  %p659_p0 = scmp.lt.s32.totalorder %s54_s23, %s54_s23 }
  0x3e   :  { %p660_p1 = scmp.lt.s32.totalorder %s658_s2, %s654_s15 }
  0x40   :  { %p661_p2 = por %p660_p1, %p659_p0 }
  0x42   :  { %p662_p3 = pnand %p661_p2, %p655_p13 }
  0x44   :  { %665 = shalt.err (!%p662_p3)
}
  0x45   :  { %56 = dma.hbm_to_vmem [thread:$0]  %s934_s4, 16, %s54_s23, [#allocation8]  }
  0x46   :  { %666 = dma.done.wait [#allocation3], 256  }
  0x47   :  { %667 = vsyncadd [#allocation3], 4294967040 }
  0x48   :  { %668 = dma.done.wait [#allocation5], 32  }
  0x49   :  { %669 = vsyncadd [#allocation5], 4294967264 }
  0x4a   :  { %670 = dma.done.wait [#allocation8], 16  }
  0x4b   :  { %671 = vsyncadd [#allocation8], 4294967280  ;;  %vm172_vm0 = vcmask 1040384   ;;  %vm123_vm1 = vcmask 72704   ;;  %vm678_vm2 = vmmov 1   ;;  %v121_v0 = vld [vmem:[#allocation2] sm:$0xff] }
  0x4c   :  { %vm563_vm3 = vmpackc.low %vm172_vm0, %vm678_vm2  ;;  %v122_v1 = vld [vmem:[#allocation2 + $0x8] sm:$0x1]  ;;  %v105_v2 = vld [vmem:[%s930_s0] sm:$0xff] }
  0x4d   :  { %v562_v3 = vpack.c.bf16 %v122_v1, %v121_v0  ;;  %538 = vmatprep.mubr.msk.f32.mxu0 %vm123_vm1, %v105_v2  ;;  %v113_v4 = vld [vmem:[%s930_s0 + $0x40] sm:$0xff]  ;;  %v106_v5 = vld [vmem:[%s930_s0 + $0x8] sm:$0xff]  ;;  %v107_v7 = vld [vmem:[%s930_s0 + $0x10] sm:$0xff] }
  0x4e   :  { %550 = vmatprep.mubr.msk.f32.mxu1 %vm123_vm1, %v113_v4  ;;  %v114_v6 = vld [vmem:[%s930_s0 + $0x48] sm:$0xff]  ;;  %v115_v8 = vld [vmem:[%s930_s0 + $0x50] sm:$0xff]  ;;  %v108_v9 = vld [vmem:[%s930_s0 + $0x18] sm:$0xff] }
  0x4f   :  { %564 = vmatprep.subr.msk.bf16.mxu0 %vm563_vm3, %v562_v3  ;;  %568 = vmatprep.subr.msk.bf16.mxu1 %vm563_vm3, %v562_v3  ;;  %v116_v10 = vld [vmem:[%s930_s0 + $0x58] sm:$0xff]  ;;  %v109_v11 = vld [vmem:[%s930_s0 + $0x20] sm:$0xff]  ;;  %v110_v13 = vld [vmem:[%s930_s0 + $0x28] sm:$0xff] }
  0x50   :  { %567 = vmatpush3.bf16.msk.msra.mxu0 %vm563_vm3, %v562_v3  ;;  %569 = vmatpush3.bf16.msk.msra.mxu1 %vm563_vm3, %v562_v3  ;;  %v117_v12 = vld [vmem:[%s930_s0 + $0x60] sm:$0xff]  ;;  %v118_v14 = vld [vmem:[%s930_s0 + $0x68] sm:$0xff]  ;;  %v111_v15 = vld [vmem:[%s930_s0 + $0x30] sm:$0xff] }
  0x51   :  { %v119_v16 = vld [vmem:[%s930_s0 + $0x70] sm:$0xff]  ;;  %v112_v17 = vld [vmem:[%s930_s0 + $0x38] sm:$0xff] }
  0x52   :  { %v120_v18 = vld [vmem:[%s930_s0 + $0x78] sm:$0xff]  ;;  %v828_v20 = vld [vmem:[#allocation4] ss:$0 sm:$0xff]  ;;  %v830_v24 = vld [vmem:[#allocation6] ss:$0 sm:$0xff] }
  0x53   :  { %539 = vmatmul.mubr.msk.f32.vlgmr.msra.gmra.mrb[0].mxu0 %vm123_vm1, %v106_v5  ;;  %551 = vmatmul.mubr.msk.f32.vlgmr.msra.gmra.mrb[0].mxu1 %vm123_vm1, %v114_v6  ;;  %v834_v27 = vld [vmem:[#allocation7] ss:$0 sm:$0xff] }
  0x54   :  { %541 = vmatprep.mubr.msk.f32.mxu0 %vm123_vm1, %v107_v7  ;;  %553 = vmatprep.mubr.msk.f32.mxu1 %vm123_vm1, %v115_v8 }
  0x57   :  { %542 = vmatmul.mubr.msk.f32.gmra.mrb[2].mxu0 %vm123_vm1, %v108_v9  ;;  %554 = vmatmul.mubr.msk.f32.gmra.mrb[2].mxu1 %vm123_vm1, %v116_v10 }
  0x58   :  { %544 = vmatprep.mubr.msk.f32.mxu0 %vm123_vm1, %v109_v11  ;;  %556 = vmatprep.mubr.msk.f32.mxu1 %vm123_vm1, %v117_v12 }
  0x5b   :  { %545 = vmatmul.mubr.msk.f32.gmra.mrb[4].mxu0 %vm123_vm1, %v110_v13  ;;  %557 = vmatmul.mubr.msk.f32.gmra.mrb[4].mxu1 %vm123_vm1, %v118_v14 }
  0x5c   :  { %547 = vmatprep.mubr.msk.f32.mxu0 %vm123_vm1, %v111_v15  ;;  %559 = vmatprep.mubr.msk.f32.mxu1 %vm123_vm1, %v119_v16 }
  0x5f   :  { %548 = vmatmul.mubr.msk.f32.gmra.mrb[6].mxu0 %vm123_vm1, %v112_v17  ;;  %560 = vmatmul.mubr.msk.f32.gmra.mrb[6].mxu1 %vm123_vm1, %v120_v18 }
 0x126   :  { %v540_v19 = vpop.f32.mrb[0].mxu0  ;;  %v552_v21 = vpop.f32.mrb[0].mxu1 }
 0x127   :  { %v242_v22 = vpop.f32.mrb[1].mxu0  ;;  %v282_v23 = vpop.f32.mrb[1].mxu1  ;;  %v380_v25 = vmul.f32 %v540_v19, %v828_v20  ;;  %v388_v26 = vmul.f32 %v552_v21, %v828_v20 }
 0x128   :  { %v379_v28 = vmul.f32 %v828_v20, %v242_v22  ;;  %v387_v29 = vmul.f32 %v828_v20, %v282_v23 }
 0x129   :  { %v403_v32 = vadd.f32 %v830_v24, %v380_v25  ;;  %v411_v33 = vadd.f32 %v830_v24, %v388_v26 }
 0x12a   :  { %v543_v30 = vpop.f32.mrb[2].mxu0  ;;  %v555_v31 = vpop.f32.mrb[2].mxu1  ;;  %v402_v36 = vadd.f32 %v830_v24, %v379_v28  ;;  %v410_v37 = vadd.f32 %v830_v24, %v387_v29 }
 0x12b   :  { %v252_v34 = vpop.f32.mrb[3].mxu0  ;;  %v292_v35 = vpop.f32.mrb[3].mxu1  ;;  %vm419_vm4 = vcmp.ge.f32.partialorder %v403_v32, 0.0  ;;  %v442_v38 = vmul.f32 %v834_v27, %v403_v32  ;;  %vm427_vm5 = vcmp.ge.f32.partialorder %v411_v33, 0.0  ;;  %v450_v39 = vmul.f32 %v834_v27, %v411_v33 }
 0x12c   :  { %vm418_vm6 = vcmp.ge.f32.partialorder %v402_v36, 0.0  ;;  %v441_v40 = vmul.f32 %v834_v27, %v402_v36  ;;  %vm426_vm7 = vcmp.ge.f32.partialorder %v410_v37, 0.0  ;;  %v449_v41 = vmul.f32 %v834_v27, %v410_v37 }
 0x12d   :  { %v458_v44 = vsel %vm419_vm4, %v403_v32, %v442_v38  ;;  %v466_v45 = vsel %vm427_vm5, %v411_v33, %v450_v39  ;;  %v382_v46 = vmul.f32 %v543_v30, %v828_v20  ;;  %v390_v47 = vmul.f32 %v555_v31, %v828_v20 }
 0x12e   :  { %v546_v42 = vpop.f32.mrb[4].mxu0  ;;  %v558_v43 = vpop.f32.mrb[4].mxu1  ;;  %474 = vst [vmem:[%s935_s5 + $0x8] sm:$0xff] %v458_v44  ;;  %482 = vst [vmem:[%s935_s5 + $0x48] sm:$0xff] %v466_v45  ;;  %v457_v50 = vsel %vm418_vm6, %v402_v36, %v441_v40  ;;  %v465_v51 = vsel %vm426_vm7, %v410_v37, %v449_v41  ;;  %v381_v52 = vmul.f32 %v828_v20, %v252_v34 }
 0x12f   :  { %v262_v48 = vpop.f32.mrb[5].mxu0  ;;  %v302_v49 = vpop.f32.mrb[5].mxu1  ;;  %v389_v53 = vmul.f32 %v828_v20, %v292_v35  ;;  %473 = vst [vmem:[%s935_s5] sm:$0xff] %v457_v50  ;;  %481 = vst [vmem:[%s935_s5 + $0x40] sm:$0xff] %v465_v51  ;;  %v405_v54 = vadd.f32 %v830_v24, %v382_v46  ;;  %v413_v55 = vadd.f32 %v830_v24, %v390_v47 }
 0x130   :  { %v404_v56 = vadd.f32 %v830_v24, %v381_v52  ;;  %v384_v4 = vmul.f32 %v546_v42, %v828_v20  ;;  %v392_v5 = vmul.f32 %v558_v43, %v828_v20  ;;  %v383_v8 = vmul.f32 %v828_v20, %v262_v48 }
 0x131   :  { %v412_v57 = vadd.f32 %v830_v24, %v389_v53  ;;  %vm421_vm8 = vcmp.ge.f32.partialorder %v405_v54, 0.0  ;;  %v444_v60 = vmul.f32 %v834_v27, %v405_v54  ;;  %vm429_vm9 = vcmp.ge.f32.partialorder %v413_v55, 0.0 }
 0x132   :  { %v549_v58 = vpop.f32.mrb[6].mxu0  ;;  %v561_v59 = vpop.f32.mrb[6].mxu1  ;;  %v452_v61 = vmul.f32 %v834_v27, %v413_v55  ;;  %vm420_vm10 = vcmp.ge.f32.partialorder %v404_v56, 0.0  ;;  %v443_v0 = vmul.f32 %v834_v27, %v404_v56  ;;  %v391_v9 = vmul.f32 %v828_v20, %v302_v49 }
 0x133   :  { %v272_v62 = vpop.f32.mrb[7].mxu0  ;;  %v312_v63 = vpop.f32.mrb[7].mxu1  ;;  %vm428_vm11 = vcmp.ge.f32.partialorder %v412_v57, 0.0  ;;  %v451_v1 = vmul.f32 %v834_v27, %v412_v57  ;;  %v460_v2 = vsel %vm421_vm8, %v405_v54, %v444_v60  ;;  %v407_v10 = vadd.f32 %v830_v24, %v384_v4 }
 0x134   :  { %v468_v3 = vsel %vm429_vm9, %v413_v55, %v452_v61  ;;  %476 = vst [vmem:[%s935_s5 + $0x18] sm:$0xff] %v460_v2  ;;  %v459_v6 = vsel %vm420_vm10, %v404_v56, %v443_v0  ;;  %v415_v11 = vadd.f32 %v830_v24, %v392_v5  ;;  %v406_v12 = vadd.f32 %v830_v24, %v383_v8 }
 0x135   :  { %484 = vst [vmem:[%s935_s5 + $0x58] sm:$0xff] %v468_v3  ;;  %v467_v7 = vsel %vm428_vm11, %v412_v57, %v451_v1  ;;  %475 = vst [vmem:[%s935_s5 + $0x10] sm:$0xff] %v459_v6  ;;  %v414_v13 = vadd.f32 %v830_v24, %v391_v9  ;;  %vm423_vm12 = vcmp.ge.f32.partialorder %v407_v10, 0.0  ;;  %v446_v14 = vmul.f32 %v834_v27, %v407_v10 }
 0x136   :  { %483 = vst [vmem:[%s935_s5 + $0x50] sm:$0xff] %v467_v7  ;;  %vm431_vm13 = vcmp.ge.f32.partialorder %v415_v11, 0.0  ;;  %v454_v15 = vmul.f32 %v834_v27, %v415_v11  ;;  %vm422_vm14 = vcmp.ge.f32.partialorder %v406_v12, 0.0  ;;  %v445_v16 = vmul.f32 %v834_v27, %v406_v12 }
 0x137   :  { %vm430_vm15 = vcmp.ge.f32.partialorder %v414_v13, 0.0  ;;  %v453_v17 = vmul.f32 %v834_v27, %v414_v13  ;;  %v462_v18 = vsel %vm423_vm12, %v407_v10, %v446_v14  ;;  %v386_v21 = vmul.f32 %v549_v58, %v828_v20 }
 0x138   :  { %v470_v19 = vsel %vm431_vm13, %v415_v11, %v454_v15  ;;  %v394_v22 = vmul.f32 %v561_v59, %v828_v20  ;;  %478 = vst [vmem:[%s935_s5 + $0x28] sm:$0xff] %v462_v18  ;;  %v461_v23 = vsel %vm422_vm14, %v406_v12, %v445_v16  ;;  %v385_v26 = vmul.f32 %v828_v20, %v272_v62 }
 0x139   :  { %486 = vst [vmem:[%s935_s5 + $0x68] sm:$0xff] %v470_v19  ;;  %v469_v25 = vsel %vm430_vm15, %v414_v13, %v453_v17  ;;  %v393_v28 = vmul.f32 %v828_v20, %v312_v63  ;;  %477 = vst [vmem:[%s935_s5 + $0x20] sm:$0xff] %v461_v23  ;;  %v409_v29 = vadd.f32 %v830_v24, %v386_v21 }
 0x13a   :  { %485 = vst [vmem:[%s935_s5 + $0x60] sm:$0xff] %v469_v25  ;;  %v417_v30 = vadd.f32 %v830_v24, %v394_v22  ;;  %v408_v31 = vadd.f32 %v830_v24, %v385_v26 }
 0x13b   :  { %v416_v32 = vadd.f32 %v830_v24, %v393_v28  ;;  %vm425_vm0 = vcmp.ge.f32.partialorder %v409_v29, 0.0  ;;  %v448_v33 = vmul.f32 %v834_v27, %v409_v29 }
 0x13c   :  { %vm433_vm1 = vcmp.ge.f32.partialorder %v417_v30, 0.0  ;;  %v456_v20 = vmul.f32 %v834_v27, %v417_v30  ;;  %vm424_vm2 = vcmp.ge.f32.partialorder %v408_v31, 0.0  ;;  %v447_v34 = vmul.f32 %v834_v27, %v408_v31 }
 0x13d   :  { %vm432_vm3 = vcmp.ge.f32.partialorder %v416_v32, 0.0  ;;  %v455_v35 = vmul.f32 %v834_v27, %v416_v32  ;;  %v464_v36 = vsel %vm425_vm0, %v409_v29, %v448_v33 }
 0x13e   :  { %v472_v37 = vsel %vm433_vm1, %v417_v30, %v456_v20  ;;  %480 = vst [vmem:[%s935_s5 + $0x38] sm:$0xff] %v464_v36  ;;  %v463_v24 = vsel %vm424_vm2, %v408_v31, %v447_v34 }
 0x13f   :  { %488 = vst [vmem:[%s935_s5 + $0x78] sm:$0xff] %v472_v37  ;;  %v471_v38 = vsel %vm432_vm3, %v416_v32, %v455_v35  ;;  %479 = vst [vmem:[%s935_s5 + $0x30] sm:$0xff] %v463_v24 }
 0x140   :  { %487 = vst [vmem:[%s935_s5 + $0x70] sm:$0xff] %v471_v38 }
 0x141   :  { %493 = vsyncpa [#allocation3], 1 }
 0x142   :  { %494 = vsyncpa [#allocation5], 1 }
 0x143   :  { %495 = vsyncpa [#allocation8], 1 }

// kernel: multihead_cnn_forward.9
= control target key start
LH: loop header
LB: loop body
LE: loop exit
PB: predicated region body
PF: predicated region fallthrough
CT: control target
= control target key end

     0   :  { %10 = vsyncpa [#allocation3], 0  ;;  %s2696_s0 = inlined_call_operand.vmem [shape: f32[128,1152], index: 0, kind: input, shape index: {}]   ;;  %s2697_s1 = inlined_call_operand.hbm [shape: f32[1152,128], index: 1, kind: input, shape index: {}]   ;;  %s2698_s2 = inlined_call_operand.hbm [shape: f32[1,128], index: 2, kind: input, shape index: {}]   ;;  %s2699_s3 = inlined_call_operand.hbm [shape: f32[1,128], index: 3, kind: input, shape index: {}]   ;;  %s2700_s4 = inlined_call_operand.hbm [shape: f32[1,128], index: 4, kind: input, shape index: {}]   ;;  %s2701_s5 = inlined_call_operand.vmem [shape: f32[128,128], index: 5, kind: output, shape index: {}]  }
   0x1   :  { %11 = vsyncpa [#allocation5], 0 }
   0x2   :  { %12 = vsyncpa [#allocation8], 0  ;;  %s1981_s18 = smov [#allocation4]   ;;  %s1982_s20 = smov [#allocation2]  }
   0x3   :  { %s33_s19 = sshll.u32 %s1981_s18, 4  ;;  %s20_s21 = sshll.u32 %s1982_s20, 4  ;;  %s34_s19 = int_to_ptr.vmem [resolvable:$true] %s33_s19  ;;  %s2017_s21 = int_to_ptr.vmem [resolvable:$true] %s20_s21 }
   0x4   :  { %s1887_s24 = scalar_lea.hbm %s2698_s2, 16 }
   0x5   :  { %p1888_p0 = scmp.ne.s32.totalorder %s2698_s2, %s1887_s24  ;;  %p1891_p1 = scmp.lt.u32.totalorder %s1887_s24, %s2698_s2 }
   0x7   :  { %p1893_p2 = pnand %p1891_p1, %p1888_p0 }
   0x9   :  { %1896 = shalt.err (!%p1893_p2)
}
   0xa   :  { %s1897_s29 = scalar_lea.vmem %s34_s19, 16  ;;  %s1901_s30 = scalar_lea.vmem %s34_s19, 32 }
   0xb   :  { %p1898_p3 = scmp.ne.s32.totalorder %s34_s19, %s1897_s29  ;;  %p1902_p4 = scmp.lt.s32.totalorder %s34_s19, %s34_s19 }
   0xc   :  { %p1903_p5 = scmp.lt.s32.totalorder %s1901_s30, %s1897_s29 }
   0xe   :  { %p1904_p6 = por %p1903_p5, %p1902_p4 }
  0x10   :  { %p1905_p7 = pnand %p1904_p6, %p1898_p3 }
  0x12   :  { %1908 = shalt.err (!%p1905_p7)
}
  0x13   :  { %36 = dma.hbm_to_vmem [thread:$0]  %s2698_s2, 16, %s34_s19, [#allocation5]  }
  0x14   :  { %s1909_s10 = scalar_lea.hbm %s2697_s1, 18432 }
  0x15   :  { %p1910_p8 = scmp.ne.s32.totalorder %s2697_s1, %s1909_s10  ;;  %p1913_p9 = scmp.lt.u32.totalorder %s1909_s10, %s2697_s1 }
  0x17   :  { %p1915_p10 = pnand %p1913_p9, %p1910_p8 }
  0x19   :  { %1918 = shalt.err (!%p1915_p10)
}
  0x1a   :  { %s1919_s15 = scalar_lea.vmem %s2017_s21, 18432  ;;  %p1924_p12 = scmp.lt.s32.totalorder %s2017_s21, %s2017_s21 }
  0x1b   :  { %p1920_p11 = scmp.ne.s32.totalorder %s2017_s21, %s1919_s15  ;;  %p1925_p13 = scmp.lt.s32.totalorder %s1919_s15, %s1919_s15 }
  0x1d   :  { %p1926_p0 = por %p1925_p13, %p1924_p12 }
  0x1f   :  { %p1927_p1 = pnand %p1926_p0, %p1920_p11 }
  0x21   :  { %1930 = shalt.err (!%p1927_p1)
}
  0x22   :  { %s1983_s2 = smov 128   ;;  %s1984_s16 = smov 8  }
  0x23   :  { %26 = dma.hbm_to_vmem [thread:$0]  %s2697_s1, 18432, %s2017_s21, [#allocation3], %s1983_s2, %s1983_s2, %s1984_s16  }
  0x24   :  { %s1985_s19 = smov [#allocation6]   ;;  %s1986_s22 = smov [#allocation7]  }
  0x25   :  { %s43_s20 = sshll.u32 %s1985_s19, 4  ;;  %s53_s23 = sshll.u32 %s1986_s22, 4  ;;  %s44_s20 = int_to_ptr.vmem [resolvable:$true] %s43_s20  ;;  %s54_s23 = int_to_ptr.vmem [resolvable:$true] %s53_s23 }
  0x26   :  { %s1931_s26 = scalar_lea.hbm %s2699_s3, 16 }
  0x27   :  { %p1932_p2 = scmp.ne.s32.totalorder %s2699_s3, %s1931_s26  ;;  %p1935_p3 = scmp.lt.u32.totalorder %s1931_s26, %s2699_s3 }
  0x29   :  { %p1937_p4 = pnand %p1935_p3, %p1932_p2 }
  0x2b   :  { %1940 = shalt.err (!%p1937_p4)
}
  0x2c   :  { %s1941_s1 = scalar_lea.vmem %s44_s20, 16  ;;  %s1945_s21 = scalar_lea.vmem %s44_s20, 32 }
  0x2d   :  { %p1942_p5 = scmp.ne.s32.totalorder %s44_s20, %s1941_s1  ;;  %p1946_p6 = scmp.lt.s32.totalorder %s44_s20, %s44_s20 }
  0x2e   :  { %p1947_p7 = scmp.lt.s32.totalorder %s1945_s21, %s1941_s1 }
  0x30   :  { %p1948_p8 = por %p1947_p7, %p1946_p6 }
  0x32   :  { %p1949_p9 = pnand %p1948_p8, %p1942_p5 }
  0x34   :  { %1952 = shalt.err (!%p1949_p9)
}
  0x35   :  { %46 = dma.hbm_to_vmem [thread:$0]  %s2699_s3, 16, %s44_s20, [#allocation5]  }
  0x36   :  { %s1953_s10 = scalar_lea.hbm %s2700_s4, 16 }
  0x37   :  { %p1954_p10 = scmp.ne.s32.totalorder %s2700_s4, %s1953_s10  ;;  %p1957_p11 = scmp.lt.u32.totalorder %s1953_s10, %s2700_s4 }
  0x39   :  { %p1959_p12 = pnand %p1957_p11, %p1954_p10 }
  0x3b   :  { %1962 = shalt.err (!%p1959_p12)
}
  0x3c   :  { %s1963_s15 = scalar_lea.vmem %s54_s23, 16  ;;  %s1967_s2 = scalar_lea.vmem %s54_s23, 32 }
  0x3d   :  { %p1964_p13 = scmp.ne.s32.totalorder %s54_s23, %s1963_s15  ;;  %p1968_p0 = scmp.lt.s32.totalorder %s54_s23, %s54_s23 }
  0x3e   :  { %p1969_p1 = scmp.lt.s32.totalorder %s1967_s2, %s1963_s15 }
  0x40   :  { %p1970_p2 = por %p1969_p1, %p1968_p0 }
  0x42   :  { %p1971_p3 = pnand %p1970_p2, %p1964_p13 }
  0x44   :  { %1974 = shalt.err (!%p1971_p3)
}
  0x45   :  { %56 = dma.hbm_to_vmem [thread:$0]  %s2700_s4, 16, %s54_s23, [#allocation8]  }
  0x46   :  { %1975 = dma.done.wait [#allocation3], 18432  }
  0x47   :  { %1976 = vsyncadd [#allocation3], 4294948864 }
  0x48   :  { %1977 = dma.done.wait [#allocation5], 32  }
  0x49   :  { %1978 = vsyncadd [#allocation5], 4294967264 }
  0x4a   :  { %1979 = dma.done.wait [#allocation8], 16  }
  0x4b   :  { %1980 = vsyncadd [#allocation8], 4294967280  ;;  %v265_v0 = vld [vmem:[#allocation2 + $0x80] sm:$0xff]  ;;  %v266_v1 = vld [vmem:[#allocation2 + $0x88] sm:$0xff] }
  0x4c   :  { %v297_v2 = vld [vmem:[#allocation2 + $0x180] sm:$0xff]  ;;  %v1704_v3 = vpack.c.bf16 %v266_v1, %v265_v0  ;;  %v298_v4 = vld [vmem:[#allocation2 + $0x188] sm:$0xff]  ;;  %v267_v11 = vld [vmem:[#allocation2 + $0x90] sm:$0xff] }
  0x4d   :  { %v249_v5 = vld [vmem:[#allocation2] sm:$0xff]  ;;  %v250_v6 = vld [vmem:[#allocation2 + $0x8] sm:$0xff]  ;;  %v1736_v7 = vpack.c.bf16 %v298_v4, %v297_v2  ;;  %v268_v13 = vld [vmem:[#allocation2 + $0x98] sm:$0xff] }
  0x4e   :  { %v1706_v8 = vpack.c.bf16 %v250_v6, %v249_v5  ;;  %v281_v9 = vld [vmem:[#allocation2 + $0x100] sm:$0xff]  ;;  %v282_v10 = vld [vmem:[#allocation2 + $0x108] sm:$0xff]  ;;  %1705 = vmatprep.subr.bf16.mxu0 %v1704_v3  ;;  %v299_v14 = vld [vmem:[#allocation2 + $0x190] sm:$0xff]  ;;  %v1708_v16 = vpack.c.bf16 %v268_v13, %v267_v11 }
  0x4f   :  { %v1738_v12 = vpack.c.bf16 %v282_v10, %v281_v9  ;;  %v300_v15 = vld [vmem:[#allocation2 + $0x198] sm:$0xff]  ;;  %1737 = vmatprep.subr.bf16.mxu1 %v1736_v7  ;;  %v251_v18 = vld [vmem:[#allocation2 + $0x10] sm:$0xff]  ;;  %v269_v23 = vld [vmem:[#allocation2 + $0xa0] sm:$0xff] }
  0x50   :  { %1707 = vmatpush3.bf16.msra.mxu0 %v1706_v8  ;;  %v1740_v17 = vpack.c.bf16 %v300_v15, %v299_v14  ;;  %v252_v19 = vld [vmem:[#allocation2 + $0x18] sm:$0xff]  ;;  %v283_v20 = vld [vmem:[#allocation2 + $0x110] sm:$0xff]  ;;  %v270_v24 = vld [vmem:[#allocation2 + $0xa8] sm:$0xff] }
  0x51   :  { %1739 = vmatpush3.bf16.msra.mxu1 %v1738_v12  ;;  %v1710_v21 = vpack.c.bf16 %v252_v19, %v251_v18  ;;  %v284_v22 = vld [vmem:[#allocation2 + $0x118] sm:$0xff]  ;;  %1709 = vmatprep.subr.bf16.mxu0 %v1708_v16  ;;  %v1712_v26 = vpack.c.bf16 %v270_v24, %v269_v23  ;;  %v301_v27 = vld [vmem:[#allocation2 + $0x1a0] sm:$0xff]  ;;  %v302_v28 = vld [vmem:[#allocation2 + $0x1a8] sm:$0xff] }
  0x52   :  { %1741 = vmatprep.subr.bf16.mxu1 %v1740_v17  ;;  %v1742_v25 = vpack.c.bf16 %v284_v22, %v283_v20  ;;  %v253_v29 = vld [vmem:[#allocation2 + $0x20] sm:$0xff]  ;;  %v1744_v30 = vpack.c.bf16 %v302_v28, %v301_v27  ;;  %v254_v31 = vld [vmem:[#allocation2 + $0x28] sm:$0xff]  ;;  %v271_v35 = vld [vmem:[#allocation2 + $0xb0] sm:$0xff] }
  0x53   :  { %v285_v32 = vld [vmem:[#allocation2 + $0x120] sm:$0xff]  ;;  %v286_v33 = vld [vmem:[#allocation2 + $0x128] sm:$0xff]  ;;  %v1714_v34 = vpack.c.bf16 %v254_v31, %v253_v29  ;;  %v272_v36 = vld [vmem:[#allocation2 + $0xb8] sm:$0xff] }
  0x54   :  { %1711 = vmatpush3.bf16.msra.mxu0 %v1710_v21  ;;  %v303_v37 = vld [vmem:[#allocation2 + $0x1b0] sm:$0xff]  ;;  %v1746_v38 = vpack.c.bf16 %v286_v33, %v285_v32  ;;  %v1716_v39 = vpack.c.bf16 %v272_v36, %v271_v35  ;;  %v304_v40 = vld [vmem:[#allocation2 + $0x1b8] sm:$0xff]  ;;  %v273_v46 = vld [vmem:[#allocation2 + $0xc0] sm:$0xff] }
  0x55   :  { %1743 = vmatpush3.bf16.msra.mxu1 %v1742_v25  ;;  %1713 = vmatprep.subr.bf16.mxu0 %v1712_v26  ;;  %v255_v41 = vld [vmem:[#allocation2 + $0x30] sm:$0xff]  ;;  %v256_v42 = vld [vmem:[#allocation2 + $0x38] sm:$0xff]  ;;  %v1748_v43 = vpack.c.bf16 %v304_v40, %v303_v37  ;;  %v274_v47 = vld [vmem:[#allocation2 + $0xc8] sm:$0xff] }
  0x56   :  { %1745 = vmatprep.subr.bf16.mxu1 %v1744_v30  ;;  %v287_v44 = vld [vmem:[#allocation2 + $0x130] sm:$0xff]  ;;  %v288_v45 = vld [vmem:[#allocation2 + $0x138] sm:$0xff]  ;;  %v305_v48 = vld [vmem:[#allocation2 + $0x1c0] sm:$0xff]  ;;  %v1718_v50 = vpack.c.bf16 %v256_v42, %v255_v41  ;;  %v1720_v52 = vpack.c.bf16 %v274_v47, %v273_v46 }
  0x57   :  { %v306_v49 = vld [vmem:[#allocation2 + $0x1c8] sm:$0xff]  ;;  %v1750_v51 = vpack.c.bf16 %v288_v45, %v287_v44  ;;  %v257_v53 = vld [vmem:[#allocation2 + $0x40] sm:$0xff]  ;;  %v275_v58 = vld [vmem:[#allocation2 + $0xd0] sm:$0xff] }
  0x58   :  { %1715 = vmatpush3.bf16.msra.mxu0 %v1714_v34  ;;  %v258_v54 = vld [vmem:[#allocation2 + $0x48] sm:$0xff]  ;;  %v289_v55 = vld [vmem:[#allocation2 + $0x140] sm:$0xff]  ;;  %v1752_v56 = vpack.c.bf16 %v306_v49, %v305_v48  ;;  %v276_v59 = vld [vmem:[#allocation2 + $0xd8] sm:$0xff] }
  0x59   :  { %1747 = vmatpush3.bf16.msra.mxu1 %v1746_v38  ;;  %1717 = vmatprep.subr.bf16.mxu0 %v1716_v39  ;;  %v290_v57 = vld [vmem:[#allocation2 + $0x148] sm:$0xff]  ;;  %v307_v60 = vld [vmem:[#allocation2 + $0x1d0] sm:$0xff]  ;;  %v308_v61 = vld [vmem:[#allocation2 + $0x1d8] sm:$0xff]  ;;  %v1722_v62 = vpack.c.bf16 %v258_v54, %v257_v53  ;;  %v1724_v0 = vpack.c.bf16 %v276_v59, %v275_v58 }
  0x5a   :  { %1749 = vmatprep.subr.bf16.mxu1 %v1748_v43  ;;  %v1754_v63 = vpack.c.bf16 %v290_v57, %v289_v55  ;;  %v259_v1 = vld [vmem:[#allocation2 + $0x50] sm:$0xff]  ;;  %v260_v2 = vld [vmem:[#allocation2 + $0x58] sm:$0xff]  ;;  %v1756_v4 = vpack.c.bf16 %v308_v61, %v307_v60  ;;  %v277_v6 = vld [vmem:[#allocation2 + $0xe0] sm:$0xff] }
  0x5b   :  { %v291_v3 = vld [vmem:[#allocation2 + $0x150] sm:$0xff]  ;;  %v292_v5 = vld [vmem:[#allocation2 + $0x158] sm:$0xff]  ;;  %v278_v7 = vld [vmem:[#allocation2 + $0xe8] sm:$0xff]  ;;  %v1726_v10 = vpack.c.bf16 %v260_v2, %v259_v1 }
  0x5c   :  { %1719 = vmatpush3.bf16.msra.mxu0 %v1718_v50  ;;  %v309_v8 = vld [vmem:[#allocation2 + $0x1e0] sm:$0xff]  ;;  %v310_v9 = vld [vmem:[#allocation2 + $0x1e8] sm:$0xff]  ;;  %v1758_v13 = vpack.c.bf16 %v292_v5, %v291_v3  ;;  %v1728_v14 = vpack.c.bf16 %v278_v7, %v277_v6  ;;  %v108_v17 = vld [vmem:[%s2696_s0 + $0x18] sm:$0xff] }
  0x5d   :  { %1751 = vmatpush3.bf16.msra.mxu1 %v1750_v51  ;;  %1721 = vmatprep.subr.bf16.mxu0 %v1720_v52  ;;  %v261_v11 = vld [vmem:[#allocation2 + $0x60] sm:$0xff]  ;;  %v262_v12 = vld [vmem:[#allocation2 + $0x68] sm:$0xff]  ;;  %v1760_v18 = vpack.c.bf16 %v310_v9, %v309_v8  ;;  %v279_v20 = vld [vmem:[#allocation2 + $0xf0] sm:$0xff] }
  0x5e   :  { %1753 = vmatprep.subr.bf16.mxu1 %v1752_v56  ;;  %v293_v15 = vld [vmem:[#allocation2 + $0x160] sm:$0xff]  ;;  %v106_v16 = vld [vmem:[%s2696_s0 + $0x8] sm:$0xff]  ;;  %v280_v21 = vld [vmem:[#allocation2 + $0xf8] sm:$0xff]  ;;  %602 = vmatprep.mubr.f32.mxu1 %v108_v17  ;;  %v1730_v24 = vpack.c.bf16 %v262_v12, %v261_v11 }
  0x5f   :  { %v294_v19 = vld [vmem:[#allocation2 + $0x168] sm:$0xff]  ;;  %457 = vmatprep.mubr.f32.mxu0 %v106_v16  ;;  %v311_v22 = vld [vmem:[#allocation2 + $0x1f0] sm:$0xff]  ;;  %v312_v23 = vld [vmem:[#allocation2 + $0x1f8] sm:$0xff]  ;;  %v1732_v26 = vpack.c.bf16 %v280_v21, %v279_v20 }
  0x60   :  { %1723 = vmatpush3.bf16.msra.mxu0 %v1722_v62  ;;  %v1762_v25 = vpack.c.bf16 %v294_v19, %v293_v15  ;;  %v263_v27 = vld [vmem:[#allocation2 + $0x70] sm:$0xff]  ;;  %v264_v28 = vld [vmem:[#allocation2 + $0x78] sm:$0xff]  ;;  %v1764_v30 = vpack.c.bf16 %v312_v23, %v311_v22  ;;  %v329_v32 = vld [vmem:[#allocation2 + $0x280] sm:$0xff] }
  0x61   :  { %1755 = vmatpush3.bf16.msra.mxu1 %v1754_v63  ;;  %1725 = vmatprep.subr.bf16.mxu0 %v1724_v0  ;;  %v295_v29 = vld [vmem:[#allocation2 + $0x170] sm:$0xff]  ;;  %v296_v31 = vld [vmem:[#allocation2 + $0x178] sm:$0xff]  ;;  %v330_v33 = vld [vmem:[#allocation2 + $0x288] sm:$0xff]  ;;  %v1734_v36 = vpack.c.bf16 %v264_v28, %v263_v27 }
  0x62   :  { %1757 = vmatprep.subr.bf16.mxu1 %v1756_v4  ;;  %v361_v34 = vld [vmem:[#allocation2 + $0x380] sm:$0xff]  ;;  %v362_v35 = vld [vmem:[#allocation2 + $0x388] sm:$0xff]  ;;  %v1766_v37 = vpack.c.bf16 %v296_v31, %v295_v29  ;;  %v1768_v38 = vpack.c.bf16 %v330_v33, %v329_v32  ;;  %v331_v44 = vld [vmem:[#allocation2 + $0x290] sm:$0xff] }
  0x63   :  { %v313_v39 = vld [vmem:[#allocation2 + $0x200] sm:$0xff]  ;;  %v314_v40 = vld [vmem:[#allocation2 + $0x208] sm:$0xff]  ;;  %v1800_v41 = vpack.c.bf16 %v362_v35, %v361_v34  ;;  %v332_v45 = vld [vmem:[#allocation2 + $0x298] sm:$0xff] }
  0x64   :  { %1727 = vmatpush3.bf16.msra.mxu0 %v1726_v10  ;;  %v345_v42 = vld [vmem:[#allocation2 + $0x300] sm:$0xff]  ;;  %v346_v43 = vld [vmem:[#allocation2 + $0x308] sm:$0xff]  ;;  %v1770_v47 = vpack.c.bf16 %v314_v40, %v313_v39  ;;  %v363_v48 = vld [vmem:[#allocation2 + $0x390] sm:$0xff]  ;;  %v1772_v54 = vpack.c.bf16 %v332_v45, %v331_v44 }
  0x65   :  { %1759 = vmatpush3.bf16.msra.mxu1 %v1758_v13  ;;  %1729 = vmatprep.subr.bf16.mxu0 %v1728_v14  ;;  %v105_v46 = vld [vmem:[%s2696_s0] sm:$0xff]  ;;  %v364_v49 = vld [vmem:[#allocation2 + $0x398] sm:$0xff]  ;;  %v107_v50 = vld [vmem:[%s2696_s0 + $0x10] sm:$0xff]  ;;  %v1802_v51 = vpack.c.bf16 %v346_v43, %v345_v42 }
  0x66   :  { %1761 = vmatprep.subr.bf16.mxu1 %v1760_v18  ;;  %v115_v52 = vld [vmem:[%s2696_s0 + $0x50] sm:$0xff]  ;;  %v117_v53 = vld [vmem:[%s2696_s0 + $0x60] sm:$0xff]  ;;  %v316_v56 = vld [vmem:[#allocation2 + $0x218] sm:$0xff]  ;;  %v1804_v58 = vpack.c.bf16 %v364_v49, %v363_v48 }
  0x67   :  { %v315_v55 = vld [vmem:[#allocation2 + $0x210] sm:$0xff]  ;;  %v348_v59 = vld [vmem:[#allocation2 + $0x318] sm:$0xff]  ;;  %v333_v60 = vld [vmem:[#allocation2 + $0x2a0] sm:$0xff] }
  0x68   :  { %1731 = vmatpush3.bf16.msra.mxu0 %v1730_v24  ;;  %v347_v57 = vld [vmem:[#allocation2 + $0x310] sm:$0xff]  ;;  %v334_v61 = vld [vmem:[#allocation2 + $0x2a8] sm:$0xff]  ;;  %v365_v63 = vld [vmem:[#allocation2 + $0x3a0] sm:$0xff]  ;;  %v1774_v4 = vpack.c.bf16 %v316_v56, %v315_v55 }
  0x69   :  { %1763 = vmatpush3.bf16.msra.mxu1 %v1762_v25  ;;  %1733 = vmatprep.subr.bf16.mxu0 %v1732_v26  ;;  %v114_v62 = vld [vmem:[%s2696_s0 + $0x48] sm:$0xff]  ;;  %v116_v1 = vld [vmem:[%s2696_s0 + $0x58] sm:$0xff]  ;;  %v1806_v5 = vpack.c.bf16 %v348_v59, %v347_v57  ;;  %v1776_v6 = vpack.c.bf16 %v334_v61, %v333_v60  ;;  %v317_v7 = vld [vmem:[#allocation2 + $0x220] sm:$0xff] }
  0x6a   :  { %1765 = vmatprep.subr.bf16.mxu1 %v1764_v30  ;;  %v366_v0 = vld [vmem:[#allocation2 + $0x3a8] sm:$0xff]  ;;  %v124_v2 = vld [vmem:[%s2696_s0 + $0x98] sm:$0xff]  ;;  %v349_v9 = vld [vmem:[#allocation2 + $0x320] sm:$0xff] }
  0x6b   :  { %v126_v3 = vld [vmem:[%s2696_s0 + $0xa8] sm:$0xff]  ;;  %v1808_v10 = vpack.c.bf16 %v366_v0, %v365_v63  ;;  %v335_v12 = vld [vmem:[#allocation2 + $0x2b0] sm:$0xff]  ;;  %v336_v13 = vld [vmem:[#allocation2 + $0x2b8] sm:$0xff] }
  0x6c   :  { %1735 = vmatpush3.bf16.msra.mxu0 %v1734_v36  ;;  %v318_v8 = vld [vmem:[#allocation2 + $0x228] sm:$0xff]  ;;  %v123_v14 = vld [vmem:[%s2696_s0 + $0x90] sm:$0xff]  ;;  %v368_v16 = vld [vmem:[#allocation2 + $0x3b8] sm:$0xff]  ;;  %v1780_v22 = vpack.c.bf16 %v336_v13, %v335_v12 }
  0x6d   :  { %1767 = vmatpush3.bf16.msra.mxu1 %v1766_v37  ;;  %1769 = vmatprep.subr.bf16.mxu0 %v1768_v38  ;;  %v350_v11 = vld [vmem:[#allocation2 + $0x328] sm:$0xff]  ;;  %v367_v15 = vld [vmem:[#allocation2 + $0x3b0] sm:$0xff]  ;;  %v125_v17 = vld [vmem:[%s2696_s0 + $0xa0] sm:$0xff]  ;;  %v1778_v19 = vpack.c.bf16 %v318_v8, %v317_v7 }
  0x6e   :  { %1801 = vmatprep.subr.bf16.mxu1 %v1800_v41  ;;  %v133_v18 = vld [vmem:[%s2696_s0 + $0xe0] sm:$0xff]  ;;  %v135_v20 = vld [vmem:[%s2696_s0 + $0xf0] sm:$0xff]  ;;  %v1810_v21 = vpack.c.bf16 %v350_v11, %v349_v9  ;;  %v320_v24 = vld [vmem:[#allocation2 + $0x238] sm:$0xff]  ;;  %v1812_v26 = vpack.c.bf16 %v368_v16, %v367_v15 }
  0x6f   :  { %458 = vmatmul.mubr.f32.vlgmr.msra.gmra.mrb[0].mxu0 %v105_v46  ;;  %v319_v23 = vld [vmem:[#allocation2 + $0x230] sm:$0xff]  ;;  %v132_v25 = vld [vmem:[%s2696_s0 + $0xd8] sm:$0xff]  ;;  %v337_v29 = vld [vmem:[#allocation2 + $0x2c0] sm:$0xff] }
  0x70   :  { %603 = vmatmul.mubr.f32.vlgmr.msra.gmra.mrb[0].mxu1 %v107_v50  ;;  %1771 = vmatpush3.bf16.msra.mxu0 %v1770_v47  ;;  %v351_v27 = vld [vmem:[#allocation2 + $0x330] sm:$0xff]  ;;  %v352_v28 = vld [vmem:[#allocation2 + $0x338] sm:$0xff]  ;;  %v338_v30 = vld [vmem:[#allocation2 + $0x2c8] sm:$0xff]  ;;  %v1782_v34 = vpack.c.bf16 %v320_v24, %v319_v23 }
  0x71   :  { %1803 = vmatpush3.bf16.msra.mxu1 %v1802_v51  ;;  %462 = vmatprep.mubr.f32.mxu0 %v115_v52  ;;  %v369_v31 = vld [vmem:[#allocation2 + $0x3c0] sm:$0xff]  ;;  %v134_v32 = vld [vmem:[%s2696_s0 + $0xe8] sm:$0xff]  ;;  %v144_v36 = vld [vmem:[%s2696_s0 + $0x138] sm:$0xff]  ;;  %v1814_v37 = vpack.c.bf16 %v352_v28, %v351_v27  ;;  %v1784_v38 = vpack.c.bf16 %v338_v30, %v337_v29 }
  0x72   :  { %607 = vmatprep.mubr.f32.mxu1 %v117_v53  ;;  %1773 = vmatprep.subr.bf16.mxu0 %v1772_v54  ;;  %v142_v33 = vld [vmem:[%s2696_s0 + $0x128] sm:$0xff]  ;;  %v321_v39 = vld [vmem:[#allocation2 + $0x240] sm:$0xff]  ;;  %v143_v45 = vld [vmem:[%s2696_s0 + $0x130] sm:$0xff] }
  0x73   :  { %463 = vmatmul.mubr.f32.gmra.mrb[2].mxu0 %v114_v62  ;;  %1805 = vmatprep.subr.bf16.mxu1 %v1804_v58  ;;  %v370_v35 = vld [vmem:[#allocation2 + $0x3c8] sm:$0xff]  ;;  %v353_v42 = vld [vmem:[#allocation2 + $0x340] sm:$0xff]  ;;  %v151_v46 = vld [vmem:[%s2696_s0 + $0x170] sm:$0xff] }
  0x74   :  { %608 = vmatmul.mubr.f32.gmra.mrb[2].mxu1 %v116_v1  ;;  %467 = vmatprep.mubr.f32.mxu0 %v124_v2  ;;  %v322_v40 = vld [vmem:[#allocation2 + $0x248] sm:$0xff]  ;;  %v1816_v41 = vpack.c.bf16 %v370_v35, %v369_v31  ;;  %v141_v44 = vld [vmem:[%s2696_s0 + $0x120] sm:$0xff]  ;;  %v339_v49 = vld [vmem:[#allocation2 + $0x2d0] sm:$0xff] }
  0x75   :  { %612 = vmatprep.mubr.f32.mxu1 %v126_v3  ;;  %1775 = vmatpush3.bf16.msra.mxu0 %v1774_v4  ;;  %v354_v43 = vld [vmem:[#allocation2 + $0x348] sm:$0xff]  ;;  %v153_v47 = vld [vmem:[%s2696_s0 + $0x180] sm:$0xff]  ;;  %v1786_v48 = vpack.c.bf16 %v322_v40, %v321_v39  ;;  %v340_v50 = vld [vmem:[#allocation2 + $0x2d8] sm:$0xff] }
  0x76   :  { %1807 = vmatpush3.bf16.msra.mxu1 %v1806_v5  ;;  %1777 = vmatprep.subr.bf16.mxu0 %v1776_v6  ;;  %v1818_v51 = vpack.c.bf16 %v354_v43, %v353_v42  ;;  %v1788_v52 = vpack.c.bf16 %v340_v50, %v339_v49  ;;  %v371_v53 = vld [vmem:[#allocation2 + $0x3d0] sm:$0xff]  ;;  %v372_v54 = vld [vmem:[#allocation2 + $0x3d8] sm:$0xff]  ;;  %v150_v60 = vld [vmem:[%s2696_s0 + $0x168] sm:$0xff] }
  0x77   :  { %468 = vmatmul.mubr.f32.gmra.mrb[4].mxu0 %v123_v14  ;;  %1809 = vmatprep.subr.bf16.mxu1 %v1808_v10  ;;  %v323_v55 = vld [vmem:[#allocation2 + $0x250] sm:$0xff]  ;;  %v1820_v56 = vpack.c.bf16 %v372_v54, %v371_v53  ;;  %v324_v57 = vld [vmem:[#allocation2 + $0x258] sm:$0xff]  ;;  %v162_v0 = vld [vmem:[%s2696_s0 + $0x1c8] sm:$0xff] }
  0x78   :  { %613 = vmatmul.mubr.f32.gmra.mrb[4].mxu1 %v125_v17  ;;  %472 = vmatprep.mubr.f32.mxu0 %v133_v18  ;;  %v355_v58 = vld [vmem:[#allocation2 + $0x350] sm:$0xff]  ;;  %v356_v59 = vld [vmem:[#allocation2 + $0x358] sm:$0xff]  ;;  %v1790_v63 = vpack.c.bf16 %v324_v57, %v323_v55  ;;  %v341_v3 = vld [vmem:[#allocation2 + $0x2e0] sm:$0xff] }
  0x79   :  { %617 = vmatprep.mubr.f32.mxu1 %v135_v20  ;;  %1779 = vmatpush3.bf16.msra.mxu0 %v1778_v19  ;;  %v152_v61 = vld [vmem:[%s2696_s0 + $0x178] sm:$0xff]  ;;  %v159_v1 = vld [vmem:[%s2696_s0 + $0x1b0] sm:$0xff]  ;;  %v1822_v2 = vpack.c.bf16 %v356_v59, %v355_v58  ;;  %v342_v4 = vld [vmem:[#allocation2 + $0x2e8] sm:$0xff] }
  0x7a   :  { %1811 = vmatpush3.bf16.msra.mxu1 %v1810_v21  ;;  %1781 = vmatprep.subr.bf16.mxu0 %v1780_v22  ;;  %v160_v62 = vld [vmem:[%s2696_s0 + $0x1b8] sm:$0xff]  ;;  %v373_v5 = vld [vmem:[#allocation2 + $0x3e0] sm:$0xff]  ;;  %v374_v6 = vld [vmem:[#allocation2 + $0x3e8] sm:$0xff]  ;;  %v1792_v7 = vpack.c.bf16 %v342_v4, %v341_v3 }
  0x7b   :  { %473 = vmatmul.mubr.f32.gmra.mrb[6].mxu0 %v132_v25  ;;  %1813 = vmatprep.subr.bf16.mxu1 %v1812_v26  ;;  %v1824_v8 = vpack.c.bf16 %v374_v6, %v373_v5  ;;  %v325_v9 = vld [vmem:[#allocation2 + $0x260] sm:$0xff]  ;;  %v326_v10 = vld [vmem:[#allocation2 + $0x268] sm:$0xff]  ;;  %v171_v16 = vld [vmem:[%s2696_s0 + $0x210] sm:$0xff] }
  0x7c   :  { %618 = vmatmul.mubr.f32.gmra.mrb[6].mxu1 %v134_v32  ;;  %477 = vmatprep.mubr.f32.mxu0 %v142_v33  ;;  %v357_v11 = vld [vmem:[#allocation2 + $0x360] sm:$0xff]  ;;  %v1794_v14 = vpack.c.bf16 %v326_v10, %v325_v9  ;;  %v358_v15 = vld [vmem:[#allocation2 + $0x368] sm:$0xff]  ;;  %v168_v18 = vld [vmem:[%s2696_s0 + $0x1f8] sm:$0xff] }
  0x7d   :  { %622 = vmatprep.mubr.f32.mxu1 %v144_v36  ;;  %1783 = vmatpush3.bf16.msra.mxu0 %v1782_v34  ;;  %v161_v12 = vld [vmem:[%s2696_s0 + $0x1c0] sm:$0xff]  ;;  %v1826_v17 = vpack.c.bf16 %v358_v15, %v357_v11  ;;  %v170_v19 = vld [vmem:[%s2696_s0 + $0x208] sm:$0xff]  ;;  %v343_v21 = vld [vmem:[#allocation2 + $0x2f0] sm:$0xff] }
  0x7e   :  { %1815 = vmatpush3.bf16.msra.mxu1 %v1814_v37  ;;  %1785 = vmatprep.subr.bf16.mxu0 %v1784_v38  ;;  %v169_v13 = vld [vmem:[%s2696_s0 + $0x200] sm:$0xff]  ;;  %v178_v20 = vld [vmem:[%s2696_s0 + $0x248] sm:$0xff]  ;;  %v344_v22 = vld [vmem:[#allocation2 + $0x2f8] sm:$0xff] }
  0x7f   :  { %478 = vmatmul.mubr.f32.gmra.mrb[8].mxu0 %v141_v44  ;;  %1817 = vmatprep.subr.bf16.mxu1 %v1816_v41  ;;  %v375_v23 = vld [vmem:[#allocation2 + $0x3f0] sm:$0xff]  ;;  %v1796_v24 = vpack.c.bf16 %v344_v22, %v343_v21  ;;  %v376_v25 = vld [vmem:[#allocation2 + $0x3f8] sm:$0xff]  ;;  %v177_v34 = vld [vmem:[%s2696_s0 + $0x240] sm:$0xff] }
  0x80   :  { %623 = vmatmul.mubr.f32.gmra.mrb[8].mxu1 %v143_v45  ;;  %482 = vmatprep.mubr.f32.mxu0 %v151_v46  ;;  %v327_v26 = vld [vmem:[#allocation2 + $0x270] sm:$0xff]  ;;  %v328_v27 = vld [vmem:[#allocation2 + $0x278] sm:$0xff]  ;;  %v1828_v29 = vpack.c.bf16 %v376_v25, %v375_v23  ;;  %v377_v37 = vld [vmem:[#allocation2 + $0x400] sm:$0xff] }
  0x81   :  { %627 = vmatprep.mubr.f32.mxu1 %v153_v47  ;;  %1787 = vmatpush3.bf16.msra.mxu0 %v1786_v48  ;;  %v180_v28 = vld [vmem:[%s2696_s0 + $0x258] sm:$0xff]  ;;  %v1798_v30 = vpack.c.bf16 %v328_v27, %v327_v26  ;;  %v359_v31 = vld [vmem:[#allocation2 + $0x370] sm:$0xff]  ;;  %v378_v38 = vld [vmem:[#allocation2 + $0x408] sm:$0xff] }
  0x82   :  { %1819 = vmatpush3.bf16.msra.mxu1 %v1818_v51  ;;  %1789 = vmatprep.subr.bf16.mxu0 %v1788_v52  ;;  %v360_v32 = vld [vmem:[#allocation2 + $0x378] sm:$0xff]  ;;  %v179_v35 = vld [vmem:[%s2696_s0 + $0x250] sm:$0xff]  ;;  %v189_v39 = vld [vmem:[%s2696_s0 + $0x2a0] sm:$0xff]  ;;  %v2186_v40 = vpack.c.bf16 %v378_v38, %v377_v37 }
  0x83   :  { %483 = vmatmul.mubr.f32.gmra.mrb[10].mxu0 %v150_v60  ;;  %1821 = vmatprep.subr.bf16.mxu1 %v1820_v56  ;;  %v1830_v33 = vpack.c.bf16 %v360_v32, %v359_v31  ;;  %v187_v36 = vld [vmem:[%s2696_s0 + $0x290] sm:$0xff]  ;;  %v186_v41 = vld [vmem:[%s2696_s0 + $0x288] sm:$0xff]  ;;  %v188_v42 = vld [vmem:[%s2696_s0 + $0x298] sm:$0xff] }
  0x84   :  { %628 = vmatmul.mubr.f32.gmra.mrb[10].mxu1 %v152_v61  ;;  %487 = vmatprep.mubr.f32.mxu0 %v160_v62  ;;  %v196_v43 = vld [vmem:[%s2696_s0 + $0x2d8] sm:$0xff]  ;;  %v198_v44 = vld [vmem:[%s2696_s0 + $0x2e8] sm:$0xff]  ;;  %v195_v45 = vld [vmem:[%s2696_s0 + $0x2d0] sm:$0xff] }
  0x85   :  { %632 = vmatprep.mubr.f32.mxu1 %v162_v0  ;;  %1791 = vmatpush3.bf16.msra.mxu0 %v1790_v63  ;;  %v197_v46 = vld [vmem:[%s2696_s0 + $0x2e0] sm:$0xff]  ;;  %v207_v48 = vld [vmem:[%s2696_s0 + $0x330] sm:$0xff]  ;;  %v204_v49 = vld [vmem:[%s2696_s0 + $0x318] sm:$0xff] }
  0x86   :  { %1823 = vmatpush3.bf16.msra.mxu1 %v1822_v2  ;;  %1793 = vmatprep.subr.bf16.mxu0 %v1792_v7  ;;  %v205_v47 = vld [vmem:[%s2696_s0 + $0x320] sm:$0xff]  ;;  %v206_v50 = vld [vmem:[%s2696_s0 + $0x328] sm:$0xff]  ;;  %v216_v52 = vld [vmem:[%s2696_s0 + $0x378] sm:$0xff] }
  0x87   :  { %488 = vmatmul.mubr.f32.gmra.mrb[12].mxu0 %v159_v1  ;;  %1825 = vmatprep.subr.bf16.mxu1 %v1824_v8  ;;  %v214_v51 = vld [vmem:[%s2696_s0 + $0x368] sm:$0xff]  ;;  %v213_v53 = vld [vmem:[%s2696_s0 + $0x360] sm:$0xff]  ;;  %v215_v54 = vld [vmem:[%s2696_s0 + $0x370] sm:$0xff] }
  0x88   :  { %633 = vmatmul.mubr.f32.gmra.mrb[12].mxu1 %v161_v12  ;;  %492 = vmatprep.mubr.f32.mxu0 %v169_v13  ;;  %v223_v55 = vld [vmem:[%s2696_s0 + $0x3b0] sm:$0xff]  ;;  %v225_v56 = vld [vmem:[%s2696_s0 + $0x3c0] sm:$0xff]  ;;  %v222_v57 = vld [vmem:[%s2696_s0 + $0x3a8] sm:$0xff] }
  0x89   :  { %637 = vmatprep.mubr.f32.mxu1 %v171_v16  ;;  %1795 = vmatpush3.bf16.msra.mxu0 %v1794_v14  ;;  %v224_v58 = vld [vmem:[%s2696_s0 + $0x3b8] sm:$0xff]  ;;  %v234_v60 = vld [vmem:[%s2696_s0 + $0x408] sm:$0xff]  ;;  %v231_v61 = vld [vmem:[%s2696_s0 + $0x3f0] sm:$0xff] }
  0x8a   :  { %1827 = vmatpush3.bf16.msra.mxu1 %v1826_v17  ;;  %1797 = vmatprep.subr.bf16.mxu0 %v1796_v24  ;;  %v232_v59 = vld [vmem:[%s2696_s0 + $0x3f8] sm:$0xff]  ;;  %v233_v62 = vld [vmem:[%s2696_s0 + $0x400] sm:$0xff]  ;;  %v243_v0 = vld [vmem:[%s2696_s0 + $0x450] sm:$0xff] }
  0x8b   :  { %493 = vmatmul.mubr.f32.gmra.mrb[14].mxu0 %v168_v18  ;;  %1829 = vmatprep.subr.bf16.mxu1 %v1828_v29  ;;  %v241_v63 = vld [vmem:[%s2696_s0 + $0x440] sm:$0xff]  ;;  %v240_v1 = vld [vmem:[%s2696_s0 + $0x438] sm:$0xff]  ;;  %v242_v2 = vld [vmem:[%s2696_s0 + $0x448] sm:$0xff] }
  0x8c   :  { %638 = vmatmul.mubr.f32.gmra.mrb[14].mxu1 %v170_v19  ;;  %497 = vmatprep.mubr.f32.mxu0 %v178_v20  ;;  %v110_v3 = vld [vmem:[%s2696_s0 + $0x28] sm:$0xff]  ;;  %v112_v4 = vld [vmem:[%s2696_s0 + $0x38] sm:$0xff]  ;;  %v379_v5 = vld [vmem:[#allocation2 + $0x410] sm:$0xff] }
  0x8d   :  { %642 = vmatprep.mubr.f32.mxu1 %v180_v28  ;;  %1799 = vmatpush3.bf16.msra.mxu0 %v1798_v30  ;;  %v380_v6 = vld [vmem:[#allocation2 + $0x418] sm:$0xff]  ;;  %v109_v7 = vld [vmem:[%s2696_s0 + $0x20] sm:$0xff]  ;;  %v111_v8 = vld [vmem:[%s2696_s0 + $0x30] sm:$0xff] }
  0x8e   :  { %1831 = vmatpush3.bf16.msra.mxu1 %v1830_v33  ;;  %1833 = vmatprep.subr.bf16.mxu0 %v2186_v40  ;;  %v119_v9 = vld [vmem:[%s2696_s0 + $0x70] sm:$0xff]  ;;  %v1836_v10 = vpack.c.bf16 %v380_v6, %v379_v5  ;;  %v121_v11 = vld [vmem:[%s2696_s0 + $0x80] sm:$0xff]  ;;  %v382_v13 = vld [vmem:[#allocation2 + $0x428] sm:$0xff] }
  0x8f   :  { %498 = vmatmul.mubr.f32.gmra.mrb[16].mxu0 %v177_v34  ;;  %1864 = vmatprep.subr.bf16.mxu1 %v2186_v40  ;;  %v381_v12 = vld [vmem:[#allocation2 + $0x420] sm:$0xff]  ;;  %v118_v14 = vld [vmem:[%s2696_s0 + $0x68] sm:$0xff]  ;;  %v120_v15 = vld [vmem:[%s2696_s0 + $0x78] sm:$0xff] }
  0x90   :  { %643 = vmatmul.mubr.f32.gmra.mrb[16].mxu1 %v179_v35  ;;  %502 = vmatprep.mubr.f32.mxu0 %v187_v36  ;;  %v128_v16 = vld [vmem:[%s2696_s0 + $0xb8] sm:$0xff]  ;;  %v130_v17 = vld [vmem:[%s2696_s0 + $0xc8] sm:$0xff]  ;;  %v1840_v18 = vpack.c.bf16 %v382_v13, %v381_v12  ;;  %v383_v19 = vld [vmem:[#allocation2 + $0x430] sm:$0xff] }
  0x91   :  { %647 = vmatprep.mubr.f32.mxu1 %v189_v39  ;;  %v384_v20 = vld [vmem:[#allocation2 + $0x438] sm:$0xff]  ;;  %v127_v21 = vld [vmem:[%s2696_s0 + $0xb0] sm:$0xff]  ;;  %v129_v22 = vld [vmem:[%s2696_s0 + $0xc0] sm:$0xff] }
  0x92   :  { %v137_v23 = vld [vmem:[%s2696_s0 + $0x100] sm:$0xff]  ;;  %v139_v24 = vld [vmem:[%s2696_s0 + $0x110] sm:$0xff]  ;;  %v1844_v25 = vpack.c.bf16 %v384_v20, %v383_v19  ;;  %v386_v27 = vld [vmem:[#allocation2 + $0x448] sm:$0xff] }
  0x93   :  { %503 = vmatmul.mubr.f32.gmra.mrb[18].mxu0 %v186_v41  ;;  %v385_v26 = vld [vmem:[#allocation2 + $0x440] sm:$0xff]  ;;  %v136_v28 = vld [vmem:[%s2696_s0 + $0xf8] sm:$0xff]  ;;  %v138_v29 = vld [vmem:[%s2696_s0 + $0x108] sm:$0xff] }
  0x94   :  { %648 = vmatmul.mubr.f32.gmra.mrb[18].mxu1 %v188_v42  ;;  %507 = vmatprep.mubr.f32.mxu0 %v196_v43  ;;  %v146_v30 = vld [vmem:[%s2696_s0 + $0x148] sm:$0xff]  ;;  %v148_v31 = vld [vmem:[%s2696_s0 + $0x158] sm:$0xff]  ;;  %v1848_v32 = vpack.c.bf16 %v386_v27, %v385_v26  ;;  %v387_v33 = vld [vmem:[#allocation2 + $0x450] sm:$0xff] }
  0x95   :  { %652 = vmatprep.mubr.f32.mxu1 %v198_v44  ;;  %v388_v34 = vld [vmem:[#allocation2 + $0x458] sm:$0xff]  ;;  %v145_v35 = vld [vmem:[%s2696_s0 + $0x140] sm:$0xff]  ;;  %v147_v36 = vld [vmem:[%s2696_s0 + $0x150] sm:$0xff] }
  0x96   :  { %v155_v37 = vld [vmem:[%s2696_s0 + $0x190] sm:$0xff]  ;;  %v157_v38 = vld [vmem:[%s2696_s0 + $0x1a0] sm:$0xff]  ;;  %v1852_v39 = vpack.c.bf16 %v388_v34, %v387_v33  ;;  %v390_v41 = vld [vmem:[#allocation2 + $0x468] sm:$0xff] }
  0x97   :  { %508 = vmatmul.mubr.f32.gmra.mrb[20].mxu0 %v195_v45  ;;  %v154_v42 = vld [vmem:[%s2696_s0 + $0x188] sm:$0xff]  ;;  %v156_v43 = vld [vmem:[%s2696_s0 + $0x198] sm:$0xff]  ;;  %v211_v5 = vld [vmem:[%s2696_s0 + $0x350] sm:$0xff] }
  0x98   :  { %653 = vmatmul.mubr.f32.gmra.mrb[20].mxu1 %v197_v46  ;;  %512 = vmatprep.mubr.f32.mxu0 %v205_v47  ;;  %v164_v44 = vld [vmem:[%s2696_s0 + $0x1d8] sm:$0xff]  ;;  %v166_v45 = vld [vmem:[%s2696_s0 + $0x1e8] sm:$0xff]  ;;  %v391_v47 = vld [vmem:[#allocation2 + $0x470] sm:$0xff] }
  0x99   :  { %657 = vmatprep.mubr.f32.mxu1 %v207_v48  ;;  %v392_v48 = vld [vmem:[#allocation2 + $0x478] sm:$0xff]  ;;  %v227_v12 = vld [vmem:[%s2696_s0 + $0x3d0] sm:$0xff]  ;;  %v229_v13 = vld [vmem:[%s2696_s0 + $0x3e0] sm:$0xff] }
  0x9a   :  { %v208_v6 = vld [vmem:[%s2696_s0 + $0x338] sm:$0xff]  ;;  %v237_v19 = vld [vmem:[%s2696_s0 + $0x420] sm:$0xff]  ;;  %v122_v26 = vld [vmem:[%s2696_s0 + $0x88] sm:$0xff] }
  0x9b   :  { %513 = vmatmul.mubr.f32.gmra.mrb[22].mxu0 %v204_v49  ;;  %v163_v49 = vld [vmem:[%s2696_s0 + $0x1d0] sm:$0xff]  ;;  %v245_v20 = vld [vmem:[%s2696_s0 + $0x460] sm:$0xff]  ;;  %v194_v27 = vld [vmem:[%s2696_s0 + $0x2c8] sm:$0xff] }
  0x9c   :  { %658 = vmatmul.mubr.f32.gmra.mrb[22].mxu1 %v206_v50  ;;  %517 = vmatprep.mubr.f32.mxu0 %v214_v51  ;;  %v165_v50 = vld [vmem:[%s2696_s0 + $0x1e0] sm:$0xff]  ;;  %v158_v34 = vld [vmem:[%s2696_s0 + $0x1a8] sm:$0xff] }
  0x9d   :  { %662 = vmatprep.mubr.f32.mxu1 %v216_v52  ;;  %v173_v51 = vld [vmem:[%s2696_s0 + $0x220] sm:$0xff]  ;;  %v175_v52 = vld [vmem:[%s2696_s0 + $0x230] sm:$0xff] }
  0x9e   :  { %v221_v33 = vld [vmem:[%s2696_s0 + $0x3a0] sm:$0xff] }
  0x9f   :  { %518 = vmatmul.mubr.f32.gmra.mrb[24].mxu0 %v213_v53  ;;  %v1860_v53 = vpack.c.bf16 %v392_v48, %v391_v47 }
  0xa0   :  { %663 = vmatmul.mubr.f32.gmra.mrb[24].mxu1 %v215_v54  ;;  %522 = vmatprep.mubr.f32.mxu0 %v223_v55  ;;  %v172_v54 = vld [vmem:[%s2696_s0 + $0x218] sm:$0xff]  ;;  %v174_v55 = vld [vmem:[%s2696_s0 + $0x228] sm:$0xff] }
  0xa1   :  { %667 = vmatprep.mubr.f32.mxu1 %v225_v56  ;;  %v182_v56 = vld [vmem:[%s2696_s0 + $0x268] sm:$0xff] }
  0xa3   :  { %523 = vmatmul.mubr.f32.gmra.mrb[26].mxu0 %v222_v57  ;;  %v184_v57 = vld [vmem:[%s2696_s0 + $0x278] sm:$0xff] }
  0xa4   :  { %668 = vmatmul.mubr.f32.gmra.mrb[26].mxu1 %v224_v58  ;;  %527 = vmatprep.mubr.f32.mxu0 %v232_v59  ;;  %v181_v58 = vld [vmem:[%s2696_s0 + $0x260] sm:$0xff]  ;;  %v183_v59 = vld [vmem:[%s2696_s0 + $0x270] sm:$0xff] }
  0xa5   :  { %672 = vmatprep.mubr.f32.mxu1 %v234_v60  ;;  %v191_v60 = vld [vmem:[%s2696_s0 + $0x2b0] sm:$0xff] }
  0xa7   :  { %528 = vmatmul.mubr.f32.gmra.mrb[28].mxu0 %v231_v61  ;;  %v193_v61 = vld [vmem:[%s2696_s0 + $0x2c0] sm:$0xff] }
  0xa8   :  { %673 = vmatmul.mubr.f32.gmra.mrb[28].mxu1 %v233_v62  ;;  %532 = vmatprep.mubr.f32.mxu0 %v241_v63  ;;  %v190_v62 = vld [vmem:[%s2696_s0 + $0x2a8] sm:$0xff]  ;;  %v192_v63 = vld [vmem:[%s2696_s0 + $0x2b8] sm:$0xff] }
  0xa9   :  { %677 = vmatprep.mubr.f32.mxu1 %v243_v0  ;;  %v200_v0 = vld [vmem:[%s2696_s0 + $0x2f8] sm:$0xff] }
  0xab   :  { %533 = vmatmul.mubr.f32.gmra.mrb[30].mxu0 %v240_v1  ;;  %v202_v1 = vld [vmem:[%s2696_s0 + $0x308] sm:$0xff] }
  0xac   :  { %678 = vmatmul.mubr.f32.gmra.mrb[30].mxu1 %v242_v2  ;;  %747 = vmatprep.mubr.f32.mxu0 %v110_v3  ;;  %v199_v2 = vld [vmem:[%s2696_s0 + $0x2f0] sm:$0xff]  ;;  %v201_v3 = vld [vmem:[%s2696_s0 + $0x300] sm:$0xff] }
  0xad   :  { %892 = vmatprep.mubr.f32.mxu1 %v112_v4  ;;  %v209_v4 = vld [vmem:[%s2696_s0 + $0x340] sm:$0xff] }
  0xaf   :  { %748 = vmatmul.mubr.f32.vlgmr.msra.gmra.mrb[32].mxu0 %v109_v7  ;;  %v210_v7 = vld [vmem:[%s2696_s0 + $0x348] sm:$0xff] }
  0xb0   :  { %893 = vmatmul.mubr.f32.vlgmr.msra.gmra.mrb[32].mxu1 %v111_v8  ;;  %1835 = vmatpush3.bf16.msra.mxu0 %v2186_v40  ;;  %v218_v8 = vld [vmem:[%s2696_s0 + $0x388] sm:$0xff] }
  0xb1   :  { %1872 = vmatpush3.bf16.msra.mxu1 %v2186_v40  ;;  %752 = vmatprep.mubr.f32.mxu0 %v119_v9  ;;  %v389_v40 = vld [vmem:[#allocation2 + $0x460] sm:$0xff]  ;;  %v220_v9 = vld [vmem:[%s2696_s0 + $0x398] sm:$0xff] }
  0xb2   :  { %897 = vmatprep.mubr.f32.mxu1 %v121_v11  ;;  %1837 = vmatprep.subr.bf16.mxu0 %v1836_v10  ;;  %v1856_v46 = vpack.c.bf16 %v390_v41, %v389_v40  ;;  %v219_v11 = vld [vmem:[%s2696_s0 + $0x390] sm:$0xff] }
  0xb3   :  { %753 = vmatmul.mubr.f32.gmra.mrb[34].mxu0 %v118_v14  ;;  %1865 = vmatprep.subr.bf16.mxu1 %v1836_v10  ;;  %v226_v14 = vld [vmem:[%s2696_s0 + $0x3c8] sm:$0xff] }
  0xb4   :  { %898 = vmatmul.mubr.f32.gmra.mrb[34].mxu1 %v120_v15  ;;  %757 = vmatprep.mubr.f32.mxu0 %v128_v16  ;;  %v228_v15 = vld [vmem:[%s2696_s0 + $0x3d8] sm:$0xff] }
  0xb5   :  { %902 = vmatprep.mubr.f32.mxu1 %v130_v17  ;;  %1839 = vmatpush3.bf16.msra.mxu0 %v1836_v10  ;;  %v236_v16 = vld [vmem:[%s2696_s0 + $0x418] sm:$0xff]  ;;  %v238_v17 = vld [vmem:[%s2696_s0 + $0x428] sm:$0xff] }
  0xb6   :  { %1873 = vmatpush3.bf16.msra.mxu1 %v1836_v10  ;;  %1841 = vmatprep.subr.bf16.mxu0 %v1840_v18  ;;  %v217_v10 = vld [vmem:[%s2696_s0 + $0x380] sm:$0xff] }
  0xb7   :  { %758 = vmatmul.mubr.f32.gmra.mrb[36].mxu0 %v127_v21  ;;  %1866 = vmatprep.subr.bf16.mxu1 %v1840_v18  ;;  %v247_v21 = vld [vmem:[%s2696_s0 + $0x470] sm:$0xff] }
  0xb8   :  { %903 = vmatmul.mubr.f32.gmra.mrb[36].mxu1 %v129_v22  ;;  %762 = vmatprep.mubr.f32.mxu0 %v137_v23  ;;  %v244_v22 = vld [vmem:[%s2696_s0 + $0x458] sm:$0xff]  ;;  %v246_v23 = vld [vmem:[%s2696_s0 + $0x468] sm:$0xff] }
  0xb9   :  { %907 = vmatprep.mubr.f32.mxu1 %v139_v24  ;;  %1843 = vmatpush3.bf16.msra.mxu0 %v1840_v18  ;;  %v113_v24 = vld [vmem:[%s2696_s0 + $0x40] sm:$0xff] }
  0xba   :  { %1874 = vmatpush3.bf16.msra.mxu1 %v1840_v18  ;;  %1845 = vmatprep.subr.bf16.mxu0 %v1844_v25  ;;  %v235_v18 = vld [vmem:[%s2696_s0 + $0x410] sm:$0xff] }
  0xbb   :  { %763 = vmatmul.mubr.f32.gmra.mrb[38].mxu0 %v136_v28  ;;  %1867 = vmatprep.subr.bf16.mxu1 %v1844_v25  ;;  %v131_v28 = vld [vmem:[%s2696_s0 + $0xd0] sm:$0xff] }
  0xbc   :  { %908 = vmatmul.mubr.f32.gmra.mrb[38].mxu1 %v138_v29  ;;  %767 = vmatprep.mubr.f32.mxu0 %v146_v30  ;;  %v203_v29 = vld [vmem:[%s2696_s0 + $0x310] sm:$0xff]  ;;  %v140_v30 = vld [vmem:[%s2696_s0 + $0x118] sm:$0xff] }
  0xbd   :  { %912 = vmatprep.mubr.f32.mxu1 %v148_v31  ;;  %1847 = vmatpush3.bf16.msra.mxu0 %v1844_v25  ;;  %v212_v31 = vld [vmem:[%s2696_s0 + $0x358] sm:$0xff] }
  0xbe   :  { %1875 = vmatpush3.bf16.msra.mxu1 %v1844_v25  ;;  %1849 = vmatprep.subr.bf16.mxu0 %v1848_v32  ;;  %v185_v25 = vld [vmem:[%s2696_s0 + $0x280] sm:$0xff] }
  0xbf   :  { %768 = vmatmul.mubr.f32.gmra.mrb[40].mxu0 %v145_v35  ;;  %1868 = vmatprep.subr.bf16.mxu1 %v1848_v32  ;;  %v230_v35 = vld [vmem:[%s2696_s0 + $0x3e8] sm:$0xff] }
  0xc0   :  { %913 = vmatmul.mubr.f32.gmra.mrb[40].mxu1 %v147_v36  ;;  %772 = vmatprep.mubr.f32.mxu0 %v155_v37  ;;  %v167_v36 = vld [vmem:[%s2696_s0 + $0x1f0] sm:$0xff] }
  0xc1   :  { %917 = vmatprep.mubr.f32.mxu1 %v157_v38  ;;  %1851 = vmatpush3.bf16.msra.mxu0 %v1848_v32  ;;  %v239_v37 = vld [vmem:[%s2696_s0 + $0x430] sm:$0xff]  ;;  %v176_v38 = vld [vmem:[%s2696_s0 + $0x238] sm:$0xff] }
  0xc2   :  { %1876 = vmatpush3.bf16.msra.mxu1 %v1848_v32  ;;  %1853 = vmatprep.subr.bf16.mxu0 %v1852_v39  ;;  %v149_v32 = vld [vmem:[%s2696_s0 + $0x160] sm:$0xff] }
  0xc3   :  { %773 = vmatmul.mubr.f32.gmra.mrb[42].mxu0 %v154_v42  ;;  %1869 = vmatprep.subr.bf16.mxu1 %v1852_v39 }
  0xc4   :  { %918 = vmatmul.mubr.f32.gmra.mrb[42].mxu1 %v156_v43  ;;  %777 = vmatprep.mubr.f32.mxu0 %v164_v44 }
  0xc5   :  { %922 = vmatprep.mubr.f32.mxu1 %v166_v45  ;;  %1855 = vmatpush3.bf16.msra.mxu0 %v1852_v39 }
  0xc6   :  { %1877 = vmatpush3.bf16.msra.mxu1 %v1852_v39  ;;  %1857 = vmatprep.subr.bf16.mxu0 %v1856_v46  ;;  %v248_v39 = vld [vmem:[%s2696_s0 + $0x478] sm:$0xff] }
  0xc7   :  { %778 = vmatmul.mubr.f32.gmra.mrb[44].mxu0 %v163_v49  ;;  %1870 = vmatprep.subr.bf16.mxu1 %v1856_v46 }
  0xc8   :  { %923 = vmatmul.mubr.f32.gmra.mrb[44].mxu1 %v165_v50  ;;  %782 = vmatprep.mubr.f32.mxu0 %v173_v51 }
  0xc9   :  { %927 = vmatprep.mubr.f32.mxu1 %v175_v52  ;;  %1859 = vmatpush3.bf16.msra.mxu0 %v1856_v46 }
  0xca   :  { %1878 = vmatpush3.bf16.msra.mxu1 %v1856_v46  ;;  %1861 = vmatprep.subr.bf16.mxu0 %v1860_v53 }
  0xcb   :  { %783 = vmatmul.mubr.f32.gmra.mrb[46].mxu0 %v172_v54  ;;  %1871 = vmatprep.subr.bf16.mxu1 %v1860_v53 }
  0xcc   :  { %928 = vmatmul.mubr.f32.gmra.mrb[46].mxu1 %v174_v55  ;;  %787 = vmatprep.mubr.f32.mxu0 %v182_v56 }
  0xcd   :  { %932 = vmatprep.mubr.f32.mxu1 %v184_v57  ;;  %1863 = vmatpush3.bf16.msra.mxu0 %v1860_v53 }
  0xce   :  { %1879 = vmatpush3.bf16.msra.mxu1 %v1860_v53 }
  0xcf   :  { %788 = vmatmul.mubr.f32.gmra.mrb[48].mxu0 %v181_v58 }
  0xd0   :  { %933 = vmatmul.mubr.f32.gmra.mrb[48].mxu1 %v183_v59  ;;  %792 = vmatprep.mubr.f32.mxu0 %v191_v60 }
  0xd1   :  { %937 = vmatprep.mubr.f32.mxu1 %v193_v61 }
  0xd3   :  { %793 = vmatmul.mubr.f32.gmra.mrb[50].mxu0 %v190_v62 }
  0xd4   :  { %938 = vmatmul.mubr.f32.gmra.mrb[50].mxu1 %v192_v63  ;;  %797 = vmatprep.mubr.f32.mxu0 %v200_v0 }
  0xd5   :  { %942 = vmatprep.mubr.f32.mxu1 %v202_v1 }
  0xd7   :  { %798 = vmatmul.mubr.f32.gmra.mrb[52].mxu0 %v199_v2 }
  0xd8   :  { %943 = vmatmul.mubr.f32.gmra.mrb[52].mxu1 %v201_v3  ;;  %802 = vmatprep.mubr.f32.mxu0 %v209_v4 }
  0xd9   :  { %947 = vmatprep.mubr.f32.mxu1 %v211_v5 }
  0xdb   :  { %803 = vmatmul.mubr.f32.gmra.mrb[54].mxu0 %v208_v6 }
  0xdc   :  { %948 = vmatmul.mubr.f32.gmra.mrb[54].mxu1 %v210_v7  ;;  %807 = vmatprep.mubr.f32.mxu0 %v218_v8 }
  0xdd   :  { %952 = vmatprep.mubr.f32.mxu1 %v220_v9 }
  0xdf   :  { %808 = vmatmul.mubr.f32.gmra.mrb[56].mxu0 %v217_v10 }
  0xe0   :  { %953 = vmatmul.mubr.f32.gmra.mrb[56].mxu1 %v219_v11  ;;  %812 = vmatprep.mubr.f32.mxu0 %v227_v12 }
  0xe1   :  { %957 = vmatprep.mubr.f32.mxu1 %v229_v13 }
  0xe3   :  { %813 = vmatmul.mubr.f32.gmra.mrb[58].mxu0 %v226_v14 }
  0xe4   :  { %958 = vmatmul.mubr.f32.gmra.mrb[58].mxu1 %v228_v15  ;;  %817 = vmatprep.mubr.f32.mxu0 %v236_v16 }
  0xe5   :  { %962 = vmatprep.mubr.f32.mxu1 %v238_v17 }
  0xe7   :  { %818 = vmatmul.mubr.f32.gmra.mrb[60].mxu0 %v235_v18 }
  0xe8   :  { %963 = vmatmul.mubr.f32.gmra.mrb[60].mxu1 %v237_v19  ;;  %822 = vmatprep.mubr.f32.mxu0 %v245_v20 }
  0xe9   :  { %967 = vmatprep.mubr.f32.mxu1 %v247_v21 }
  0xeb   :  { %823 = vmatmul.mubr.f32.gmra.mrb[62].mxu0 %v244_v22 }
  0xec   :  { %968 = vmatmul.mubr.f32.gmra.mrb[62].mxu1 %v246_v23  ;;  %1680 = vmatprep.mubr.f32.mxu0 %v113_v24 }
  0xed   :  { %1692 = vmatprep.mubr.f32.mxu1 %v185_v25 }
  0xef   :  { %1681 = vmatmul.mubr.f32.vlgmr.msra.gmra.mrb[64].mxu0 %v122_v26 }
  0xf0   :  { %1693 = vmatmul.mubr.f32.vlgmr.msra.gmra.mrb[64].mxu1 %v194_v27  ;;  %1683 = vmatprep.mubr.f32.mxu0 %v131_v28 }
  0xf1   :  { %1695 = vmatprep.mubr.f32.mxu1 %v203_v29 }
  0xf3   :  { %1684 = vmatmul.mubr.f32.gmra.mrb[66].mxu0 %v140_v30 }
  0xf4   :  { %1696 = vmatmul.mubr.f32.gmra.mrb[66].mxu1 %v212_v31  ;;  %1686 = vmatprep.mubr.f32.mxu0 %v149_v32 }
  0xf5   :  { %1698 = vmatprep.mubr.f32.mxu1 %v221_v33 }
  0xf7   :  { %1687 = vmatmul.mubr.f32.gmra.mrb[68].mxu0 %v158_v34 }
  0xf8   :  { %1699 = vmatmul.mubr.f32.gmra.mrb[68].mxu1 %v230_v35  ;;  %1689 = vmatprep.mubr.f32.mxu0 %v167_v36 }
  0xf9   :  { %1701 = vmatprep.mubr.f32.mxu1 %v239_v37 }
  0xfb   :  { %1690 = vmatmul.mubr.f32.gmra.mrb[70].mxu0 %v176_v38 }
  0xfc   :  { %1702 = vmatmul.mubr.f32.gmra.mrb[70].mxu1 %v248_v39 }
 0x142   :  { %v1328_v40 = vpop.f32.mrb[0].mxu0 }
 0x143   :  { %v1408_v41 = vpop.f32.mrb[0].mxu1  ;;  %v1329_v42 = vpop.f32.mrb[1].mxu0 }
 0x144   :  { %v1330_v43 = vadd.f32 %v1329_v42, %v1328_v40  ;;  %v1409_v44 = vpop.f32.mrb[1].mxu1 }
 0x145   :  { %v1410_v45 = vadd.f32 %v1409_v44, %v1408_v41 }
 0x146   :  { %v1331_v46 = vpop.f32.mrb[2].mxu0 }
 0x147   :  { %v2510_v47 = vadd.f32 %v1410_v45, %v1330_v43  ;;  %v1411_v48 = vpop.f32.mrb[2].mxu1  ;;  %v1332_v49 = vpop.f32.mrb[3].mxu0 }
 0x148   :  { %v1333_v50 = vadd.f32 %v1332_v49, %v1331_v46  ;;  %v1412_v51 = vpop.f32.mrb[3].mxu1 }
 0x149   :  { %v1413_v52 = vadd.f32 %v1412_v51, %v1411_v48 }
 0x14a   :  { %v1334_v53 = vpop.f32.mrb[4].mxu0 }
 0x14b   :  { %v2512_v54 = vadd.f32 %v1413_v52, %v1333_v50  ;;  %v1414_v55 = vpop.f32.mrb[4].mxu1  ;;  %v1335_v56 = vpop.f32.mrb[5].mxu0 }
 0x14c   :  { %v1336_v57 = vadd.f32 %v1335_v56, %v1334_v53  ;;  %v1415_v58 = vpop.f32.mrb[5].mxu1 }
 0x14d   :  { %v1416_v59 = vadd.f32 %v1415_v58, %v1414_v55 }
 0x14e   :  { %v1337_v60 = vpop.f32.mrb[6].mxu0 }
 0x14f   :  { %v2514_v61 = vadd.f32 %v1416_v59, %v1336_v57  ;;  %v1417_v62 = vpop.f32.mrb[6].mxu1  ;;  %v1338_v63 = vpop.f32.mrb[7].mxu0 }
 0x150   :  { %v1339_v0 = vadd.f32 %v1338_v63, %v1337_v60  ;;  %v1418_v1 = vpop.f32.mrb[7].mxu1 }
 0x151   :  { %v1419_v2 = vadd.f32 %v1418_v1, %v1417_v62 }
 0x152   :  { %v1340_v3 = vpop.f32.mrb[8].mxu0 }
 0x153   :  { %v2516_v4 = vadd.f32 %v1419_v2, %v1339_v0  ;;  %v1420_v5 = vpop.f32.mrb[8].mxu1  ;;  %v1341_v6 = vpop.f32.mrb[9].mxu0 }
 0x154   :  { %v1342_v7 = vadd.f32 %v1341_v6, %v1340_v3  ;;  %v1421_v8 = vpop.f32.mrb[9].mxu1 }
 0x155   :  { %v1422_v9 = vadd.f32 %v1421_v8, %v1420_v5 }
 0x156   :  { %v1343_v10 = vpop.f32.mrb[10].mxu0 }
 0x157   :  { %v2518_v11 = vadd.f32 %v1422_v9, %v1342_v7  ;;  %v1423_v12 = vpop.f32.mrb[10].mxu1  ;;  %v1344_v13 = vpop.f32.mrb[11].mxu0 }
 0x158   :  { %v1345_v14 = vadd.f32 %v1344_v13, %v1343_v10  ;;  %v1424_v15 = vpop.f32.mrb[11].mxu1 }
 0x159   :  { %v1425_v16 = vadd.f32 %v1424_v15, %v1423_v12 }
 0x15a   :  { %v1346_v17 = vpop.f32.mrb[12].mxu0 }
 0x15b   :  { %v2520_v18 = vadd.f32 %v1425_v16, %v1345_v14  ;;  %v1426_v19 = vpop.f32.mrb[12].mxu1  ;;  %v1347_v20 = vpop.f32.mrb[13].mxu0 }
 0x15c   :  { %v1348_v21 = vadd.f32 %v1347_v20, %v1346_v17  ;;  %v1427_v22 = vpop.f32.mrb[13].mxu1 }
 0x15d   :  { %v1428_v23 = vadd.f32 %v1427_v22, %v1426_v19 }
 0x15e   :  { %v1349_v24 = vpop.f32.mrb[14].mxu0 }
 0x15f   :  { %v2522_v25 = vadd.f32 %v1428_v23, %v1348_v21  ;;  %v1429_v26 = vpop.f32.mrb[14].mxu1  ;;  %v1350_v27 = vpop.f32.mrb[15].mxu0 }
 0x160   :  { %v1351_v28 = vadd.f32 %v1350_v27, %v1349_v24  ;;  %v1430_v29 = vpop.f32.mrb[15].mxu1 }
 0x161   :  { %v1431_v30 = vadd.f32 %v1430_v29, %v1429_v26 }
 0x162   :  { %v1352_v31 = vpop.f32.mrb[16].mxu0 }
 0x163   :  { %v2524_v32 = vadd.f32 %v1431_v30, %v1351_v28  ;;  %v1432_v33 = vpop.f32.mrb[16].mxu1  ;;  %v1353_v34 = vpop.f32.mrb[17].mxu0 }
 0x164   :  { %v1354_v35 = vadd.f32 %v1353_v34, %v1352_v31  ;;  %v1433_v36 = vpop.f32.mrb[17].mxu1 }
 0x165   :  { %v1434_v37 = vadd.f32 %v1433_v36, %v1432_v33 }
 0x166   :  { %v1355_v38 = vpop.f32.mrb[18].mxu0 }
 0x167   :  { %v2526_v39 = vadd.f32 %v1434_v37, %v1354_v35  ;;  %v1435_v40 = vpop.f32.mrb[18].mxu1  ;;  %v1356_v41 = vpop.f32.mrb[19].mxu0 }
 0x168   :  { %v1357_v42 = vadd.f32 %v1356_v41, %v1355_v38  ;;  %v1436_v43 = vpop.f32.mrb[19].mxu1 }
 0x169   :  { %v1437_v44 = vadd.f32 %v1436_v43, %v1435_v40 }
 0x16a   :  { %v1358_v45 = vpop.f32.mrb[20].mxu0 }
 0x16b   :  { %v2528_v46 = vadd.f32 %v1437_v44, %v1357_v42  ;;  %v1438_v48 = vpop.f32.mrb[20].mxu1  ;;  %v1359_v49 = vpop.f32.mrb[21].mxu0 }
 0x16c   :  { %v1360_v50 = vadd.f32 %v1359_v49, %v1358_v45  ;;  %v1439_v51 = vpop.f32.mrb[21].mxu1 }
 0x16d   :  { %v1440_v52 = vadd.f32 %v1439_v51, %v1438_v48 }
 0x16e   :  { %v1361_v53 = vpop.f32.mrb[22].mxu0 }
 0x16f   :  { %v2530_v55 = vadd.f32 %v1440_v52, %v1360_v50  ;;  %v1441_v56 = vpop.f32.mrb[22].mxu1  ;;  %v1362_v57 = vpop.f32.mrb[23].mxu0 }
 0x170   :  { %v1363_v58 = vadd.f32 %v1362_v57, %v1361_v53  ;;  %v1442_v59 = vpop.f32.mrb[23].mxu1 }
 0x171   :  { %v1443_v60 = vadd.f32 %v1442_v59, %v1441_v56 }
 0x172   :  { %v1364_v62 = vpop.f32.mrb[24].mxu0 }
 0x173   :  { %v2532_v63 = vadd.f32 %v1443_v60, %v1363_v58  ;;  %v1444_v0 = vpop.f32.mrb[24].mxu1  ;;  %v1365_v1 = vpop.f32.mrb[25].mxu0 }
 0x174   :  { %v1366_v2 = vadd.f32 %v1365_v1, %v1364_v62  ;;  %v1445_v3 = vpop.f32.mrb[25].mxu1 }
 0x175   :  { %v1446_v5 = vadd.f32 %v1445_v3, %v1444_v0 }
 0x176   :  { %v1367_v6 = vpop.f32.mrb[26].mxu0 }
 0x177   :  { %v2534_v7 = vadd.f32 %v1446_v5, %v1366_v2  ;;  %v1447_v8 = vpop.f32.mrb[26].mxu1  ;;  %v1368_v9 = vpop.f32.mrb[27].mxu0 }
 0x178   :  { %v1369_v10 = vadd.f32 %v1368_v9, %v1367_v6  ;;  %v1448_v12 = vpop.f32.mrb[27].mxu1 }
 0x179   :  { %v1449_v13 = vadd.f32 %v1448_v12, %v1447_v8 }
 0x17a   :  { %v1370_v14 = vpop.f32.mrb[28].mxu0 }
 0x17b   :  { %v2536_v15 = vadd.f32 %v1449_v13, %v1369_v10  ;;  %v1450_v16 = vpop.f32.mrb[28].mxu1  ;;  %v1371_v17 = vpop.f32.mrb[29].mxu0 }
 0x17c   :  { %v1372_v19 = vadd.f32 %v1371_v17, %v1370_v14  ;;  %v1451_v20 = vpop.f32.mrb[29].mxu1 }
 0x17d   :  { %v1452_v21 = vadd.f32 %v1451_v20, %v1450_v16 }
 0x17e   :  { %v1373_v22 = vpop.f32.mrb[30].mxu0 }
 0x17f   :  { %v2538_v23 = vadd.f32 %v1452_v21, %v1372_v19  ;;  %v1453_v24 = vpop.f32.mrb[30].mxu1  ;;  %v1374_v26 = vpop.f32.mrb[31].mxu0 }
 0x180   :  { %v1375_v27 = vadd.f32 %v1374_v26, %v1373_v22  ;;  %v1454_v28 = vpop.f32.mrb[31].mxu1 }
 0x181   :  { %v1455_v29 = vadd.f32 %v1454_v28, %v1453_v24 }
 0x182   :  { %v1488_v30 = vpop.f32.mrb[32].mxu0 }
 0x183   :  { %v2540_v31 = vadd.f32 %v1455_v29, %v1375_v27  ;;  %v1568_v33 = vpop.f32.mrb[32].mxu1  ;;  %v1489_v34 = vpop.f32.mrb[33].mxu0 }
 0x184   :  { %v1490_v35 = vadd.f32 %v1489_v34, %v1488_v30  ;;  %v1569_v36 = vpop.f32.mrb[33].mxu1 }
 0x185   :  { %v1570_v37 = vadd.f32 %v1569_v36, %v1568_v33 }
 0x186   :  { %v750_v38 = vadd.f32 %v1490_v35, %v2510_v47  ;;  %v1491_v40 = vpop.f32.mrb[34].mxu0 }
 0x187   :  { %v1571_v41 = vpop.f32.mrb[34].mxu1  ;;  %v1492_v42 = vpop.f32.mrb[35].mxu0 }
 0x188   :  { %v1493_v43 = vadd.f32 %v1492_v42, %v1491_v40  ;;  %v1572_v44 = vpop.f32.mrb[35].mxu1  ;;  %v2543_v45 = vadd.f32 %v1570_v37, %v750_v38 }
 0x189   :  { %v1573_v48 = vadd.f32 %v1572_v44, %v1571_v41 }
 0x18a   :  { %v755_v49 = vadd.f32 %v1493_v43, %v2512_v54  ;;  %v1494_v50 = vpop.f32.mrb[36].mxu0 }
 0x18b   :  { %v1574_v51 = vpop.f32.mrb[36].mxu1  ;;  %v1495_v52 = vpop.f32.mrb[37].mxu0 }
 0x18c   :  { %v1496_v53 = vadd.f32 %v1495_v52, %v1494_v50  ;;  %v1575_v56 = vpop.f32.mrb[37].mxu1  ;;  %v2546_v57 = vadd.f32 %v1573_v48, %v755_v49 }
 0x18d   :  { %v1576_v58 = vadd.f32 %v1575_v56, %v1574_v51 }
 0x18e   :  { %v760_v47 = vadd.f32 %v1496_v53, %v2514_v61  ;;  %v1497_v59 = vpop.f32.mrb[38].mxu0 }
 0x18f   :  { %v1577_v60 = vpop.f32.mrb[38].mxu1  ;;  %v1498_v62 = vpop.f32.mrb[39].mxu0 }
 0x190   :  { %v1499_v0 = vadd.f32 %v1498_v62, %v1497_v59  ;;  %v1578_v1 = vpop.f32.mrb[39].mxu1  ;;  %v2549_v2 = vadd.f32 %v1576_v58, %v760_v47 }
 0x191   :  { %v1579_v3 = vadd.f32 %v1578_v1, %v1577_v60 }
 0x192   :  { %v765_v54 = vadd.f32 %v1499_v0, %v2516_v4  ;;  %v1500_v5 = vpop.f32.mrb[40].mxu0 }
 0x193   :  { %v1580_v6 = vpop.f32.mrb[40].mxu1  ;;  %v1501_v8 = vpop.f32.mrb[41].mxu0 }
 0x194   :  { %v1502_v9 = vadd.f32 %v1501_v8, %v1500_v5  ;;  %v1581_v10 = vpop.f32.mrb[41].mxu1  ;;  %v2552_v12 = vadd.f32 %v1579_v3, %v765_v54 }
 0x195   :  { %v1582_v13 = vadd.f32 %v1581_v10, %v1580_v6 }
 0x196   :  { %v770_v61 = vadd.f32 %v1502_v9, %v2518_v11  ;;  %v1503_v14 = vpop.f32.mrb[42].mxu0 }
 0x197   :  { %v1583_v16 = vpop.f32.mrb[42].mxu1  ;;  %v1504_v17 = vpop.f32.mrb[43].mxu0 }
 0x198   :  { %v1505_v19 = vadd.f32 %v1504_v17, %v1503_v14  ;;  %v1584_v20 = vpop.f32.mrb[43].mxu1  ;;  %v2555_v21 = vadd.f32 %v1582_v13, %v770_v61 }
 0x199   :  { %v1585_v22 = vadd.f32 %v1584_v20, %v1583_v16 }
 0x19a   :  { %v775_v4 = vadd.f32 %v1505_v19, %v2520_v18  ;;  %v1506_v24 = vpop.f32.mrb[44].mxu0 }
 0x19b   :  { %v1586_v26 = vpop.f32.mrb[44].mxu1  ;;  %v1507_v27 = vpop.f32.mrb[45].mxu0 }
 0x19c   :  { %v1508_v28 = vadd.f32 %v1507_v27, %v1506_v24  ;;  %v1587_v29 = vpop.f32.mrb[45].mxu1  ;;  %v2558_v30 = vadd.f32 %v1585_v22, %v775_v4 }
 0x19d   :  { %v1588_v33 = vadd.f32 %v1587_v29, %v1586_v26 }
 0x19e   :  { %v780_v11 = vadd.f32 %v1508_v28, %v2522_v25  ;;  %v1509_v34 = vpop.f32.mrb[46].mxu0 }
 0x19f   :  { %v1589_v35 = vpop.f32.mrb[46].mxu1  ;;  %v1510_v36 = vpop.f32.mrb[47].mxu0 }
 0x1a0   :  { %v1511_v37 = vadd.f32 %v1510_v36, %v1509_v34  ;;  %v1590_v38 = vpop.f32.mrb[47].mxu1  ;;  %v2561_v40 = vadd.f32 %v1588_v33, %v780_v11 }
 0x1a1   :  { %v1591_v41 = vadd.f32 %v1590_v38, %v1589_v35 }
 0x1a2   :  { %v785_v18 = vadd.f32 %v1511_v37, %v2524_v32  ;;  %v1512_v42 = vpop.f32.mrb[48].mxu0 }
 0x1a3   :  { %v1592_v43 = vpop.f32.mrb[48].mxu1  ;;  %v1513_v44 = vpop.f32.mrb[49].mxu0 }
 0x1a4   :  { %v1514_v48 = vadd.f32 %v1513_v44, %v1512_v42  ;;  %v1593_v49 = vpop.f32.mrb[49].mxu1  ;;  %v2564_v50 = vadd.f32 %v1591_v41, %v785_v18 }
 0x1a5   :  { %v1594_v51 = vadd.f32 %v1593_v49, %v1592_v43 }
 0x1a6   :  { %v790_v25 = vadd.f32 %v1514_v48, %v2526_v39  ;;  %v1515_v52 = vpop.f32.mrb[50].mxu0 }
 0x1a7   :  { %v1595_v53 = vpop.f32.mrb[50].mxu1  ;;  %v1516_v56 = vpop.f32.mrb[51].mxu0 }
 0x1a8   :  { %v1517_v58 = vadd.f32 %v1516_v56, %v1515_v52  ;;  %v1596_v47 = vpop.f32.mrb[51].mxu1  ;;  %v935_v59 = vadd.f32 %v1594_v51, %v790_v25 }
 0x1a9   :  { %v1597_v60 = vadd.f32 %v1596_v47, %v1595_v53 }
 0x1aa   :  { %v795_v62 = vadd.f32 %v1517_v58, %v2528_v46  ;;  %v1518_v32 = vpop.f32.mrb[52].mxu0 }
 0x1ab   :  { %v1598_v0 = vpop.f32.mrb[52].mxu1  ;;  %v1519_v1 = vpop.f32.mrb[53].mxu0 }
 0x1ac   :  { %v1520_v3 = vadd.f32 %v1519_v1, %v1518_v32  ;;  %v1599_v54 = vpop.f32.mrb[53].mxu1  ;;  %v940_v5 = vadd.f32 %v1597_v60, %v795_v62  ;;  %v2581_v62 = vld [vmem:[#allocation4] ss:$0 sm:$0xff] }
 0x1ad   :  { %v1600_v6 = vadd.f32 %v1599_v54, %v1598_v0  ;;  %v2586_v54 = vld [vmem:[#allocation6] ss:$0 sm:$0xff] }
 0x1ae   :  { %v800_v8 = vadd.f32 %v1520_v3, %v2530_v55  ;;  %v1521_v9 = vpop.f32.mrb[54].mxu0 }
 0x1af   :  { %v1601_v39 = vpop.f32.mrb[54].mxu1  ;;  %v1522_v10 = vpop.f32.mrb[55].mxu0 }
 0x1b0   :  { %v1523_v13 = vadd.f32 %v1522_v10, %v1521_v9  ;;  %v1602_v61 = vpop.f32.mrb[55].mxu1  ;;  %v945_v14 = vadd.f32 %v1600_v6, %v800_v8 }
 0x1b1   :  { %v1603_v16 = vadd.f32 %v1602_v61, %v1601_v39  ;;  %v2590_v39 = vld [vmem:[#allocation7] ss:$0 sm:$0xff] }
 0x1b2   :  { %v805_v17 = vadd.f32 %v1523_v13, %v2532_v63  ;;  %v1524_v19 = vpop.f32.mrb[56].mxu0 }
 0x1b3   :  { %v1604_v46 = vpop.f32.mrb[56].mxu1  ;;  %v1525_v20 = vpop.f32.mrb[57].mxu0 }
 0x1b4   :  { %v1526_v22 = vadd.f32 %v1525_v20, %v1524_v19  ;;  %v1605_v4 = vpop.f32.mrb[57].mxu1  ;;  %v950_v24 = vadd.f32 %v1603_v16, %v805_v17 }
 0x1b5   :  { %v1606_v26 = vadd.f32 %v1605_v4, %v1604_v46 }
 0x1b6   :  { %v810_v27 = vadd.f32 %v1526_v22, %v2534_v7  ;;  %v1527_v28 = vpop.f32.mrb[58].mxu0 }
 0x1b7   :  { %v1607_v55 = vpop.f32.mrb[58].mxu1  ;;  %v1528_v29 = vpop.f32.mrb[59].mxu0 }
 0x1b8   :  { %v1529_v33 = vadd.f32 %v1528_v29, %v1527_v28  ;;  %v1608_v11 = vpop.f32.mrb[59].mxu1  ;;  %v2571_v34 = vadd.f32 %v1606_v26, %v810_v27 }
 0x1b9   :  { %v1609_v35 = vadd.f32 %v1608_v11, %v1607_v55 }
 0x1ba   :  { %v815_v36 = vadd.f32 %v1529_v33, %v2536_v15  ;;  %v1530_v63 = vpop.f32.mrb[60].mxu0 }
 0x1bb   :  { %v1610_v37 = vpop.f32.mrb[60].mxu1  ;;  %v1531_v38 = vpop.f32.mrb[61].mxu0 }
 0x1bc   :  { %v1532_v41 = vadd.f32 %v1531_v38, %v1530_v63  ;;  %v1611_v18 = vpop.f32.mrb[61].mxu1  ;;  %v2574_v42 = vadd.f32 %v1609_v35, %v815_v36 }
 0x1bd   :  { %v1612_v43 = vadd.f32 %v1611_v18, %v1610_v37 }
 0x1be   :  { %v820_v7 = vadd.f32 %v1532_v41, %v2538_v23  ;;  %v1533_v44 = vpop.f32.mrb[62].mxu0 }
 0x1bf   :  { %v1613_v48 = vpop.f32.mrb[62].mxu1  ;;  %v1534_v49 = vpop.f32.mrb[63].mxu0 }
 0x1c0   :  { %v1535_v51 = vadd.f32 %v1534_v49, %v1533_v44  ;;  %v1614_v25 = vpop.f32.mrb[63].mxu1  ;;  %v2577_v52 = vadd.f32 %v1612_v43, %v820_v7 }
 0x1c1   :  { %v1615_v53 = vadd.f32 %v1614_v25, %v1613_v48 }
 0x1c2   :  { %v825_v15 = vadd.f32 %v1535_v51, %v2540_v31  ;;  %v1682_v56 = vpop.f32.mrb[64].mxu0 }
 0x1c3   :  { %v1045_v58 = vadd.f32 %v1682_v56, %v2546_v57  ;;  %v1694_v47 = vpop.f32.mrb[64].mxu1  ;;  %v1039_v60 = vpop.f32.mrb[65].mxu0 }
 0x1c4   :  { %v1085_v32 = vadd.f32 %v1694_v47, %v940_v5  ;;  %v1040_v23 = vadd.f32 %v1039_v60, %v2543_v45  ;;  %v1079_v0 = vpop.f32.mrb[65].mxu1  ;;  %v2584_v1 = vadd.f32 %v1615_v53, %v825_v15 }
 0x1c5   :  { %v1080_v3 = vadd.f32 %v1079_v0, %v935_v59  ;;  %v1177_v8 = vmul.f32 %v2581_v62, %v1045_v58 }
 0x1c6   :  { %v1685_v6 = vpop.f32.mrb[66].mxu0  ;;  %v1185_v10 = vmul.f32 %v2581_v62, %v1085_v32  ;;  %v1176_v5 = vmul.f32 %v2581_v62, %v1040_v23 }
 0x1c7   :  { %v1055_v31 = vadd.f32 %v1685_v6, %v2552_v12  ;;  %v1697_v9 = vpop.f32.mrb[66].mxu1  ;;  %v1049_v57 = vpop.f32.mrb[67].mxu0  ;;  %v1200_v59 = vadd.f32 %v2586_v54, %v1177_v8  ;;  %v1184_v16 = vmul.f32 %v2581_v62, %v1080_v3 }
 0x1c8   :  { %v1095_v45 = vadd.f32 %v1697_v9, %v950_v24  ;;  %v1050_v13 = vadd.f32 %v1049_v57, %v2549_v2  ;;  %v1089_v61 = vpop.f32.mrb[67].mxu1  ;;  %v1208_v19 = vadd.f32 %v2586_v54, %v1185_v10  ;;  %v1199_v12 = vadd.f32 %v2586_v54, %v1176_v5 }
 0x1c9   :  { %v1090_v17 = vadd.f32 %v1089_v61, %v945_v14  ;;  %vm1216_vm0 = vcmp.ge.f32.partialorder %v1200_v59, 0.0  ;;  %v1239_v20 = vmul.f32 %v2590_v39, %v1200_v59  ;;  %v1207_v22 = vadd.f32 %v2586_v54, %v1184_v16 }
 0x1ca   :  { %v1688_v46 = vpop.f32.mrb[68].mxu0  ;;  %v1179_v4 = vmul.f32 %v2581_v62, %v1055_v31  ;;  %vm1224_vm1 = vcmp.ge.f32.partialorder %v1208_v19, 0.0  ;;  %v1247_v26 = vmul.f32 %v2590_v39, %v1208_v19  ;;  %vm1215_vm2 = vcmp.ge.f32.partialorder %v1199_v12, 0.0 }
 0x1cb   :  { %v1700_v24 = vpop.f32.mrb[68].mxu1  ;;  %v1059_v2 = vpop.f32.mrb[69].mxu0  ;;  %v1238_v14 = vmul.f32 %v2590_v39, %v1199_v12  ;;  %v1255_v28 = vsel %vm1216_vm0, %v1200_v59, %v1239_v20  ;;  %vm1223_vm3 = vcmp.ge.f32.partialorder %v1207_v22, 0.0  ;;  %v1246_v55 = vmul.f32 %v2590_v39, %v1207_v22 }
 0x1cc   :  { %v1099_v27 = vpop.f32.mrb[69].mxu1  ;;  %v1202_v29 = vadd.f32 %v2586_v54, %v1179_v4  ;;  %1271 = vst [vmem:[%s2701_s5 + $0x8] sm:$0xff] %v1255_v28  ;;  %v1263_v33 = vsel %vm1224_vm1, %v1208_v19, %v1247_v26  ;;  %v1187_v35 = vmul.f32 %v2581_v62, %v1095_v45  ;;  %v1178_v36 = vmul.f32 %v2581_v62, %v1050_v13 }
 0x1cd   :  { %v1254_v11 = vsel %vm1215_vm2, %v1199_v12, %v1238_v14  ;;  %1279 = vst [vmem:[%s2701_s5 + $0x48] sm:$0xff] %v1263_v33  ;;  %v1262_v37 = vsel %vm1223_vm3, %v1207_v22, %v1246_v55  ;;  %v1065_v44 = vadd.f32 %v1688_v46, %v2558_v30  ;;  %v1105_v48 = vadd.f32 %v1700_v24, %v2574_v42 }
 0x1ce   :  { %v1691_v63 = vpop.f32.mrb[70].mxu0  ;;  %1270 = vst [vmem:[%s2701_s5] sm:$0xff] %v1254_v11  ;;  %vm1218_vm4 = vcmp.ge.f32.partialorder %v1202_v29, 0.0  ;;  %v1241_v38 = vmul.f32 %v2590_v39, %v1202_v29  ;;  %1278 = vst [vmem:[%s2701_s5 + $0x40] sm:$0xff] %v1262_v37  ;;  %v1210_v43 = vadd.f32 %v2586_v54, %v1187_v35  ;;  %v1201_v7 = vadd.f32 %v2586_v54, %v1178_v36 }
 0x1cf   :  { %v1703_v41 = vpop.f32.mrb[70].mxu1  ;;  %v1069_v18 = vpop.f32.mrb[71].mxu0  ;;  %v1186_v25 = vmul.f32 %v2581_v62, %v1090_v17  ;;  %v1060_v53 = vadd.f32 %v1059_v2, %v2555_v21  ;;  %v1100_v15 = vadd.f32 %v1099_v27, %v2571_v34  ;;  %v1075_v60 = vadd.f32 %v1691_v63, %v2564_v50 }
 0x1d0   :  { %v1109_v49 = vpop.f32.mrb[71].mxu1  ;;  %v1257_v51 = vsel %vm1218_vm4, %v1202_v29, %v1241_v38  ;;  %vm1226_vm5 = vcmp.ge.f32.partialorder %v1210_v43, 0.0  ;;  %v1249_v56 = vmul.f32 %v2590_v39, %v1210_v43  ;;  %vm1217_vm6 = vcmp.ge.f32.partialorder %v1201_v7, 0.0 }
 0x1d1   :  { %1273 = vst [vmem:[%s2701_s5 + $0x18] sm:$0xff] %v1257_v51  ;;  %v1240_v30 = vmul.f32 %v2590_v39, %v1201_v7  ;;  %v1209_v42 = vadd.f32 %v2586_v54, %v1186_v25  ;;  %v1181_v34 = vmul.f32 %v2581_v62, %v1065_v44  ;;  %v1189_v32 = vmul.f32 %v2581_v62, %v1105_v48 }
 0x1d2   :  { %v1265_v58 = vsel %vm1226_vm5, %v1210_v43, %v1249_v56  ;;  %v1180_v23 = vmul.f32 %v2581_v62, %v1060_v53  ;;  %v1188_v0 = vmul.f32 %v2581_v62, %v1100_v15  ;;  %v1115_v50 = vadd.f32 %v1703_v41, %v2584_v1 }
 0x1d3   :  { %v1256_v47 = vsel %vm1217_vm6, %v1201_v7, %v1240_v30  ;;  %1281 = vst [vmem:[%s2701_s5 + $0x58] sm:$0xff] %v1265_v58  ;;  %vm1225_vm7 = vcmp.ge.f32.partialorder %v1209_v42, 0.0  ;;  %v1248_v21 = vmul.f32 %v2590_v39, %v1209_v42  ;;  %v1204_v6 = vadd.f32 %v2586_v54, %v1181_v34 }
 0x1d4   :  { %1272 = vst [vmem:[%s2701_s5 + $0x10] sm:$0xff] %v1256_v47  ;;  %v1212_v8 = vadd.f32 %v2586_v54, %v1189_v32  ;;  %v1070_v31 = vadd.f32 %v1069_v18, %v2561_v40  ;;  %v1203_v9 = vadd.f32 %v2586_v54, %v1180_v23  ;;  %v1211_v57 = vadd.f32 %v2586_v54, %v1188_v0 }
 0x1d5   :  { %v1264_v3 = vsel %vm1225_vm7, %v1209_v42, %v1248_v21  ;;  %v1183_v10 = vmul.f32 %v2581_v62, %v1075_v60  ;;  %vm1220_vm8 = vcmp.ge.f32.partialorder %v1204_v6, 0.0  ;;  %v1243_v1 = vmul.f32 %v2590_v39, %v1204_v6 }
 0x1d6   :  { %1280 = vst [vmem:[%s2701_s5 + $0x50] sm:$0xff] %v1264_v3  ;;  %vm1228_vm9 = vcmp.ge.f32.partialorder %v1212_v8, 0.0  ;;  %v1251_v5 = vmul.f32 %v2590_v39, %v1212_v8  ;;  %vm1219_vm10 = vcmp.ge.f32.partialorder %v1203_v9, 0.0  ;;  %v1242_v45 = vmul.f32 %v2590_v39, %v1203_v9 }
 0x1d7   :  { %vm1227_vm11 = vcmp.ge.f32.partialorder %v1211_v57, 0.0  ;;  %v1250_v40 = vmul.f32 %v2590_v39, %v1211_v57  ;;  %v1259_v13 = vsel %vm1220_vm8, %v1204_v6, %v1243_v1  ;;  %v1206_v59 = vadd.f32 %v2586_v54, %v1183_v10 }
 0x1d8   :  { %v1267_v61 = vsel %vm1228_vm9, %v1212_v8, %v1251_v5  ;;  %v1191_v16 = vmul.f32 %v2581_v62, %v1115_v50  ;;  %1275 = vst [vmem:[%s2701_s5 + $0x28] sm:$0xff] %v1259_v13  ;;  %v1258_v17 = vsel %vm1219_vm10, %v1203_v9, %v1242_v45  ;;  %v1110_v12 = vadd.f32 %v1109_v49, %v2577_v52 }
 0x1d9   :  { %1283 = vst [vmem:[%s2701_s5 + $0x68] sm:$0xff] %v1267_v61  ;;  %v1266_v19 = vsel %vm1227_vm11, %v1211_v57, %v1250_v40  ;;  %1274 = vst [vmem:[%s2701_s5 + $0x20] sm:$0xff] %v1258_v17  ;;  %vm1222_vm12 = vcmp.ge.f32.partialorder %v1206_v59, 0.0  ;;  %v1245_v46 = vmul.f32 %v2590_v39, %v1206_v59  ;;  %v1182_v22 = vmul.f32 %v2581_v62, %v1070_v31 }
 0x1da   :  { %1282 = vst [vmem:[%s2701_s5 + $0x60] sm:$0xff] %v1266_v19  ;;  %v1214_v20 = vadd.f32 %v2586_v54, %v1191_v16  ;;  %v1190_v2 = vmul.f32 %v2581_v62, %v1110_v12 }
 0x1db   :  { %v1261_v4 = vsel %vm1222_vm12, %v1206_v59, %v1245_v46  ;;  %v1205_v52 = vadd.f32 %v2586_v54, %v1182_v22 }
 0x1dc   :  { %vm1230_vm13 = vcmp.ge.f32.partialorder %v1214_v20, 0.0  ;;  %v1253_v24 = vmul.f32 %v2590_v39, %v1214_v20  ;;  %1277 = vst [vmem:[%s2701_s5 + $0x38] sm:$0xff] %v1261_v4  ;;  %v1213_v27 = vadd.f32 %v2586_v54, %v1190_v2 }
 0x1dd   :  { %vm1221_vm14 = vcmp.ge.f32.partialorder %v1205_v52, 0.0  ;;  %v1244_v14 = vmul.f32 %v2590_v39, %v1205_v52 }
 0x1de   :  { %v1269_v26 = vsel %vm1230_vm13, %v1214_v20, %v1253_v24  ;;  %vm1229_vm15 = vcmp.ge.f32.partialorder %v1213_v27, 0.0  ;;  %v1252_v55 = vmul.f32 %v2590_v39, %v1213_v27 }
 0x1df   :  { %1285 = vst [vmem:[%s2701_s5 + $0x78] sm:$0xff] %v1269_v26  ;;  %v1260_v28 = vsel %vm1221_vm14, %v1205_v52, %v1244_v14 }
 0x1e0   :  { %1276 = vst [vmem:[%s2701_s5 + $0x30] sm:$0xff] %v1260_v28  ;;  %v1268_v29 = vsel %vm1229_vm15, %v1213_v27, %v1252_v55 }
 0x1e1   :  { %1284 = vst [vmem:[%s2701_s5 + $0x70] sm:$0xff] %v1268_v29 }
 0x1e2   :  { %1290 = vsyncpa [#allocation3], 1 }
 0x1e3   :  { %1291 = vsyncpa [#allocation5], 1 }
 0x1e4   :  { %1292 = vsyncpa [#allocation8], 1 }

// kernel: multihead_cnn_forward.6
= control target key start
LH: loop header
LB: loop body
LE: loop exit
PB: predicated region body
PF: predicated region fallthrough
CT: control target
= control target key end

     0   :  { %10 = vsyncpa [#allocation3], 0  ;;  %s854_s0 = inlined_call_operand.vmem [shape: f32[72,18], index: 0, kind: input, shape index: {}]   ;;  %s855_s1 = inlined_call_operand.hbm [shape: f32[18,256], index: 1, kind: input, shape index: {}]   ;;  %s856_s2 = inlined_call_operand.hbm [shape: f32[1,256], index: 2, kind: input, shape index: {}]   ;;  %s857_s3 = inlined_call_operand.hbm [shape: f32[1,256], index: 3, kind: input, shape index: {}]   ;;  %s858_s4 = inlined_call_operand.hbm [shape: f32[1,256], index: 4, kind: input, shape index: {}]   ;;  %s859_s5 = inlined_call_operand.vmem [shape: f32[72,256], index: 5, kind: output, shape index: {}]  }
   0x1   :  { %11 = vsyncpa [#allocation5], 0 }
   0x2   :  { %12 = vsyncpa [#allocation8], 0  ;;  %s606_s18 = smov [#allocation4]   ;;  %s607_s20 = smov [#allocation2]  }
   0x3   :  { %s33_s19 = sshll.u32 %s606_s18, 4  ;;  %s20_s21 = sshll.u32 %s607_s20, 4  ;;  %s34_s19 = int_to_ptr.vmem [resolvable:$true] %s33_s19  ;;  %s643_s21 = int_to_ptr.vmem [resolvable:$true] %s20_s21 }
   0x4   :  { %s512_s24 = scalar_lea.hbm %s856_s2, 32 }
   0x5   :  { %p513_p0 = scmp.ne.s32.totalorder %s856_s2, %s512_s24  ;;  %p516_p1 = scmp.lt.u32.totalorder %s512_s24, %s856_s2 }
   0x7   :  { %p518_p2 = pnand %p516_p1, %p513_p0 }
   0x9   :  { %521 = shalt.err (!%p518_p2)
}
   0xa   :  { %s522_s29 = scalar_lea.vmem %s34_s19, 32  ;;  %p527_p4 = scmp.lt.s32.totalorder %s34_s19, %s34_s19 }
   0xb   :  { %p523_p3 = scmp.ne.s32.totalorder %s34_s19, %s522_s29  ;;  %p528_p5 = scmp.lt.s32.totalorder %s522_s29, %s522_s29 }
   0xd   :  { %p529_p6 = por %p528_p5, %p527_p4 }
   0xf   :  { %p530_p7 = pnand %p529_p6, %p523_p3 }
  0x11   :  { %533 = shalt.err (!%p530_p7)
}
  0x12   :  { %36 = dma.hbm_to_vmem [thread:$0]  %s856_s2, 32, %s34_s19, [#allocation5]  }
  0x13   :  { %s534_s9 = scalar_lea.hbm %s855_s1, 768 }
  0x14   :  { %p535_p8 = scmp.ne.s32.totalorder %s855_s1, %s534_s9  ;;  %p538_p9 = scmp.lt.u32.totalorder %s534_s9, %s855_s1 }
  0x16   :  { %p540_p10 = pnand %p538_p9, %p535_p8 }
  0x18   :  { %543 = shalt.err (!%p540_p10)
}
  0x19   :  { %s544_s14 = scalar_lea.vmem %s643_s21, 768  ;;  %p549_p12 = scmp.lt.s32.totalorder %s643_s21, %s643_s21 }
  0x1a   :  { %p545_p11 = scmp.ne.s32.totalorder %s643_s21, %s544_s14  ;;  %p550_p13 = scmp.lt.s32.totalorder %s544_s14, %s544_s14 }
  0x1c   :  { %p551_p0 = por %p550_p13, %p549_p12 }
  0x1e   :  { %p552_p1 = pnand %p551_p0, %p545_p11 }
  0x20   :  { %555 = shalt.err (!%p552_p1)
}
  0x21   :  { %s608_s2 = smov 256   ;;  %s609_s15 = smov 16  }
  0x22   :  { %26 = dma.hbm_to_vmem [thread:$0]  %s855_s1, 768, %s643_s21, [#allocation3], %s608_s2, %s608_s2, %s609_s15  }
  0x23   :  { %s610_s18 = smov [#allocation6]   ;;  %s611_s20 = smov [#allocation7]  }
  0x24   :  { %s43_s19 = sshll.u32 %s610_s18, 4  ;;  %s53_s22 = sshll.u32 %s611_s20, 4  ;;  %s44_s19 = int_to_ptr.vmem [resolvable:$true] %s43_s19  ;;  %s54_s22 = int_to_ptr.vmem [resolvable:$true] %s53_s22 }
  0x25   :  { %s556_s25 = scalar_lea.hbm %s857_s3, 32 }
  0x26   :  { %p557_p2 = scmp.ne.s32.totalorder %s857_s3, %s556_s25  ;;  %p560_p3 = scmp.lt.u32.totalorder %s556_s25, %s857_s3 }
  0x28   :  { %p562_p4 = pnand %p560_p3, %p557_p2 }
  0x2a   :  { %565 = shalt.err (!%p562_p4)
}
  0x2b   :  { %s566_s1 = scalar_lea.vmem %s44_s19, 32  ;;  %p571_p6 = scmp.lt.s32.totalorder %s44_s19, %s44_s19 }
  0x2c   :  { %p567_p5 = scmp.ne.s32.totalorder %s44_s19, %s566_s1  ;;  %p572_p7 = scmp.lt.s32.totalorder %s566_s1, %s566_s1 }
  0x2e   :  { %p573_p8 = por %p572_p7, %p571_p6 }
  0x30   :  { %p574_p9 = pnand %p573_p8, %p567_p5 }
  0x32   :  { %577 = shalt.err (!%p574_p9)
}
  0x33   :  { %46 = dma.hbm_to_vmem [thread:$0]  %s857_s3, 32, %s44_s19, [#allocation5]  }
  0x34   :  { %s578_s8 = scalar_lea.hbm %s858_s4, 32 }
  0x35   :  { %p579_p10 = scmp.ne.s32.totalorder %s858_s4, %s578_s8  ;;  %p582_p11 = scmp.lt.u32.totalorder %s578_s8, %s858_s4 }
  0x37   :  { %p584_p12 = pnand %p582_p11, %p579_p10 }
  0x39   :  { %587 = shalt.err (!%p584_p12)
}
  0x3a   :  { %s588_s13 = scalar_lea.vmem %s54_s22, 32  ;;  %p593_p0 = scmp.lt.s32.totalorder %s54_s22, %s54_s22 }
  0x3b   :  { %p589_p13 = scmp.ne.s32.totalorder %s54_s22, %s588_s13  ;;  %p594_p1 = scmp.lt.s32.totalorder %s588_s13, %s588_s13 }
  0x3d   :  { %p595_p2 = por %p594_p1, %p593_p0 }
  0x3f   :  { %p596_p3 = pnand %p595_p2, %p589_p13 }
  0x41   :  { %599 = shalt.err (!%p596_p3)
}
  0x42   :  { %56 = dma.hbm_to_vmem [thread:$0]  %s858_s4, 32, %s54_s22, [#allocation8]  }
  0x43   :  { %600 = dma.done.wait [#allocation3], 768  }
  0x44   :  { %601 = vsyncadd [#allocation3], 4294966528 }
  0x45   :  { %602 = dma.done.wait [#allocation5], 64  }
  0x46   :  { %603 = vsyncadd [#allocation5], 4294967232 }
  0x47   :  { %604 = dma.done.wait [#allocation8], 32  }
  0x48   :  { %605 = vsyncadd [#allocation8], 4294967264  ;;  %v612_v0 = vmov 0.0   ;;  %v119_v1 = vld [vmem:[#allocation2 + $0x8] sm:$0xff]  ;;  %v121_v2 = vld [vmem:[#allocation2 + $0x18] sm:$0xff]  ;;  %vm152_vm0 = vcmask 1041408   ;;  %v337_v18 = vlaneseq }
  0x49   :  { %223 = vmatprep.mubr.f32.mxu0 %v612_v0  ;;  %253 = vmatprep.mubr.f32.mxu1 %v612_v0  ;;  %v118_v3 = vld [vmem:[#allocation2] sm:$0xff]  ;;  %v497_v4 = vpack.c.bf16 %v121_v2, %v119_v1  ;;  %v120_v5 = vld [vmem:[#allocation2 + $0x10] sm:$0xff]  ;;  %v123_v7 = vld [vmem:[#allocation2 + $0x28] sm:$0x3]  ;;  %vm124_vm1 = vcmask 146432  }
  0x4a   :  { %v499_v6 = vpack.c.bf16 %v120_v5, %v118_v3  ;;  %v122_v8 = vld [vmem:[#allocation2 + $0x20] sm:$0x3]  ;;  %v114_v10 = vld [vmem:[%s854_s0 + $0x28] sm:$0xff]  ;;  %v115_v12 = vld [vmem:[%s854_s0 + $0x30] sm:$0xff]  ;;  %v338_v19 = vshrl.u32 %v337_v18, 7 }
  0x4b   :  { %498 = vmatprep.subr.bf16.mxu0 %v497_v4  ;;  %501 = vmatprep.subr.bf16.mxu1 %v497_v4  ;;  %v109_v9 = vld [vmem:[%s854_s0] sm:$0xff]  ;;  %v110_v11 = vld [vmem:[%s854_s0 + $0x8] sm:$0xff]  ;;  %v111_v13 = vld [vmem:[%s854_s0 + $0x10] sm:$0xff] }
  0x4c   :  { %500 = vmatpush1.bf16.msra.mxu0 %v499_v6  ;;  %503 = vmatpush1.bf16.msra.mxu1 %v499_v6  ;;  %v116_v14 = vld [vmem:[%s854_s0 + $0x38] sm:$0xff]  ;;  %v117_v16 = vld [vmem:[%s854_s0 + $0x40] sm:$0xff]  ;;  %v339_v20 = vsub.s32 0, %v338_v19  ;;  %v335_v21 = vld [vmem:[#allocation4] sm:$0x3]  ;;  %v343_v22 = vsub.s32 1, %v338_v19 }
  0x4d   :  { %486 = vmatprep.subr.msk.mxu0 %vm152_vm0, %v123_v7  ;;  %502 = vmatprep.subr.msk.mxu1 %vm152_vm0, %v123_v7  ;;  %v112_v15 = vld [vmem:[%s854_s0 + $0x18] sm:$0xff]  ;;  %v113_v17 = vld [vmem:[%s854_s0 + $0x20] sm:$0xff]  ;;  %v365_v23 = vld [vmem:[#allocation6] sm:$0x3] }
  0x4e   :  { %v734_v24 = vrot.slane %v335_v21, %v339_v20  ;;  %v413_v26 = vld [vmem:[#allocation7] sm:$0x3]  ;;  %v736_v27 = vrot.slane %v335_v21, %v343_v22  ;;  %v738_v29 = vrot.slane %v365_v23, %v339_v20  ;;  %v740_v32 = vrot.slane %v365_v23, %v343_v22 }
  0x4f   :  { %v743_v34 = vrot.slane %v413_v26, %v339_v20  ;;  %v747_v37 = vrot.slane %v413_v26, %v343_v22 }
  0x50   :  { %487 = vmatpush1.msk.msra.mxu0 %vm152_vm0, %v122_v8  ;;  %504 = vmatpush1.msk.msra.mxu1 %vm152_vm0, %v122_v8 }
  0x51   :  { %488 = vmatmul.mubr.msk.f32.vlgmr.msra.gmra.mrb[0].mxu0 %vm124_vm1, %v109_v9  ;;  %493 = vmatmul.mubr.msk.f32.vlgmr.msra.gmra.mrb[0].mxu1 %vm124_vm1, %v114_v10 }
  0x52   :  { %229 = vmatprep.mubr.f32.mxu0 %v612_v0  ;;  %259 = vmatprep.mubr.f32.mxu1 %v612_v0 }
  0x55   :  { %489 = vmatmul.mubr.msk.f32.gmra.mrb[2].mxu0 %vm124_vm1, %v110_v11  ;;  %494 = vmatmul.mubr.msk.f32.gmra.mrb[2].mxu1 %vm124_vm1, %v115_v12 }
  0x56   :  { %235 = vmatprep.mubr.f32.mxu0 %v612_v0  ;;  %265 = vmatprep.mubr.f32.mxu1 %v612_v0 }
  0x59   :  { %490 = vmatmul.mubr.msk.f32.gmra.mrb[4].mxu0 %vm124_vm1, %v111_v13  ;;  %495 = vmatmul.mubr.msk.f32.gmra.mrb[4].mxu1 %vm124_vm1, %v116_v14 }
  0x5a   :  { %241 = vmatprep.mubr.f32.mxu0 %v612_v0  ;;  %271 = vmatprep.mubr.f32.mxu1 %v612_v0 }
  0x5d   :  { %491 = vmatmul.mubr.msk.f32.gmra.mrb[6].mxu0 %vm124_vm1, %v112_v15  ;;  %496 = vmatmul.mubr.msk.f32.gmra.mrb[6].mxu1 %vm124_vm1, %v117_v16 }
  0x5e   :  { %247 = vmatprep.mubr.f32.mxu0 %v612_v0 }
  0x61   :  { %492 = vmatmul.mubr.msk.f32.gmra.mrb[8].mxu0 %vm124_vm1, %v113_v17 }
 0x124   :  { %v225_v25 = vpop.f32.mrb[0].mxu0  ;;  %v255_v28 = vpop.f32.mrb[0].mxu1 }
 0x125   :  { %v227_v30 = vpop.f32.mrb[1].mxu0  ;;  %v257_v31 = vpop.f32.mrb[1].mxu1  ;;  %v347_v33 = vmul.f32 %v734_v24, %v225_v25  ;;  %v357_v35 = vmul.f32 %v734_v24, %v255_v28 }
 0x126   :  { %v348_v36 = vmul.f32 %v736_v27, %v227_v30  ;;  %v358_v38 = vmul.f32 %v736_v27, %v257_v31 }
 0x127   :  { %v377_v41 = vadd.f32 %v738_v29, %v347_v33  ;;  %v387_v42 = vadd.f32 %v738_v29, %v357_v35 }
 0x128   :  { %v231_v39 = vpop.f32.mrb[2].mxu0  ;;  %v261_v40 = vpop.f32.mrb[2].mxu1  ;;  %v378_v45 = vadd.f32 %v740_v32, %v348_v36  ;;  %v388_v46 = vadd.f32 %v740_v32, %v358_v38 }
 0x129   :  { %v233_v43 = vpop.f32.mrb[3].mxu0  ;;  %v263_v44 = vpop.f32.mrb[3].mxu1  ;;  %vm395_vm2 = vcmp.ge.f32.partialorder %v377_v41, 0.0  ;;  %v425_v47 = vmul.f32 %v743_v34, %v377_v41  ;;  %vm405_vm3 = vcmp.ge.f32.partialorder %v387_v42, 0.0  ;;  %v435_v48 = vmul.f32 %v743_v34, %v387_v42 }
 0x12a   :  { %vm396_vm4 = vcmp.ge.f32.partialorder %v378_v45, 0.0  ;;  %v426_v49 = vmul.f32 %v747_v37, %v378_v45  ;;  %vm406_vm5 = vcmp.ge.f32.partialorder %v388_v46, 0.0  ;;  %v436_v50 = vmul.f32 %v747_v37, %v388_v46 }
 0x12b   :  { %v443_v53 = vsel %vm395_vm2, %v377_v41, %v425_v47  ;;  %v453_v54 = vsel %vm405_vm3, %v387_v42, %v435_v48  ;;  %v349_v55 = vmul.f32 %v734_v24, %v231_v39  ;;  %v350_v56 = vmul.f32 %v736_v27, %v233_v43 }
 0x12c   :  { %v237_v51 = vpop.f32.mrb[4].mxu0  ;;  %v267_v52 = vpop.f32.mrb[4].mxu1  ;;  %461 = vst [vmem:[%s859_s5] sm:$0xff] %v443_v53  ;;  %v444_v59 = vsel %vm396_vm4, %v378_v45, %v426_v49  ;;  %471 = vst [vmem:[%s859_s5 + $0x50] sm:$0xff] %v453_v54  ;;  %v454_v60 = vsel %vm406_vm5, %v388_v46, %v436_v50  ;;  %v359_v61 = vmul.f32 %v734_v24, %v261_v40 }
 0x12d   :  { %v239_v57 = vpop.f32.mrb[5].mxu0  ;;  %v269_v58 = vpop.f32.mrb[5].mxu1  ;;  %v360_v62 = vmul.f32 %v736_v27, %v263_v44  ;;  %462 = vst [vmem:[%s859_s5 + $0x8] sm:$0xff] %v444_v59  ;;  %472 = vst [vmem:[%s859_s5 + $0x58] sm:$0xff] %v454_v60  ;;  %v379_v63 = vadd.f32 %v738_v29, %v349_v55  ;;  %v380_v0 = vadd.f32 %v740_v32, %v350_v56 }
 0x12e   :  { %v389_v1 = vadd.f32 %v738_v29, %v359_v61  ;;  %v351_v13 = vmul.f32 %v734_v24, %v237_v51  ;;  %v352_v14 = vmul.f32 %v736_v27, %v239_v57  ;;  %v361_v17 = vmul.f32 %v734_v24, %v267_v52 }
 0x12f   :  { %v390_v2 = vadd.f32 %v740_v32, %v360_v62  ;;  %vm397_vm6 = vcmp.ge.f32.partialorder %v379_v63, 0.0  ;;  %v427_v5 = vmul.f32 %v743_v34, %v379_v63  ;;  %vm398_vm7 = vcmp.ge.f32.partialorder %v380_v0, 0.0 }
 0x130   :  { %v243_v3 = vpop.f32.mrb[6].mxu0  ;;  %v273_v4 = vpop.f32.mrb[6].mxu1  ;;  %v428_v6 = vmul.f32 %v747_v37, %v380_v0  ;;  %vm407_vm8 = vcmp.ge.f32.partialorder %v389_v1, 0.0  ;;  %v437_v9 = vmul.f32 %v743_v34, %v389_v1  ;;  %v362_v18 = vmul.f32 %v736_v27, %v269_v58 }
 0x131   :  { %v245_v7 = vpop.f32.mrb[7].mxu0  ;;  %v275_v8 = vpop.f32.mrb[7].mxu1  ;;  %vm408_vm9 = vcmp.ge.f32.partialorder %v390_v2, 0.0  ;;  %v438_v10 = vmul.f32 %v747_v37, %v390_v2  ;;  %v445_v11 = vsel %vm397_vm6, %v379_v63, %v427_v5  ;;  %v381_v20 = vadd.f32 %v738_v29, %v351_v13 }
 0x132   :  { %v446_v12 = vsel %vm398_vm7, %v380_v0, %v428_v6  ;;  %463 = vst [vmem:[%s859_s5 + $0x10] sm:$0xff] %v445_v11  ;;  %v455_v15 = vsel %vm407_vm8, %v389_v1, %v437_v9  ;;  %v382_v21 = vadd.f32 %v740_v32, %v352_v14  ;;  %v391_v23 = vadd.f32 %v738_v29, %v361_v17 }
 0x133   :  { %464 = vst [vmem:[%s859_s5 + $0x18] sm:$0xff] %v446_v12  ;;  %v456_v16 = vsel %vm408_vm9, %v390_v2, %v438_v10  ;;  %473 = vst [vmem:[%s859_s5 + $0x60] sm:$0xff] %v455_v15  ;;  %v392_v25 = vadd.f32 %v740_v32, %v362_v18  ;;  %vm399_vm10 = vcmp.ge.f32.partialorder %v381_v20, 0.0  ;;  %v429_v26 = vmul.f32 %v743_v34, %v381_v20 }
 0x134   :  { %v249_v19 = vpop.f32.mrb[8].mxu0  ;;  %474 = vst [vmem:[%s859_s5 + $0x68] sm:$0xff] %v456_v16  ;;  %vm400_vm11 = vcmp.ge.f32.partialorder %v382_v21, 0.0  ;;  %v430_v28 = vmul.f32 %v747_v37, %v382_v21  ;;  %vm409_vm12 = vcmp.ge.f32.partialorder %v391_v23, 0.0  ;;  %v439_v30 = vmul.f32 %v743_v34, %v391_v23 }
 0x135   :  { %v251_v22 = vpop.f32.mrb[9].mxu0  ;;  %vm410_vm13 = vcmp.ge.f32.partialorder %v392_v25, 0.0  ;;  %v440_v31 = vmul.f32 %v747_v37, %v392_v25  ;;  %v447_v33 = vsel %vm399_vm10, %v381_v20, %v429_v26  ;;  %v353_v36 = vmul.f32 %v734_v24, %v243_v3 }
 0x136   :  { %v448_v35 = vsel %vm400_vm11, %v382_v21, %v430_v28  ;;  %v354_v38 = vmul.f32 %v736_v27, %v245_v7  ;;  %465 = vst [vmem:[%s859_s5 + $0x20] sm:$0xff] %v447_v33  ;;  %v457_v39 = vsel %vm409_vm12, %v391_v23, %v439_v30  ;;  %v363_v41 = vmul.f32 %v734_v24, %v273_v4 }
 0x137   :  { %466 = vst [vmem:[%s859_s5 + $0x28] sm:$0xff] %v448_v35  ;;  %v458_v40 = vsel %vm410_vm13, %v392_v25, %v440_v31  ;;  %v364_v42 = vmul.f32 %v736_v27, %v275_v8  ;;  %475 = vst [vmem:[%s859_s5 + $0x70] sm:$0xff] %v457_v39  ;;  %v383_v43 = vadd.f32 %v738_v29, %v353_v36 }
 0x138   :  { %476 = vst [vmem:[%s859_s5 + $0x78] sm:$0xff] %v458_v40  ;;  %v384_v44 = vadd.f32 %v740_v32, %v354_v38  ;;  %v393_v45 = vadd.f32 %v738_v29, %v363_v41  ;;  %v355_v53 = vmul.f32 %v734_v24, %v249_v19  ;;  %v356_v54 = vmul.f32 %v736_v27, %v251_v22 }
 0x139   :  { %v394_v46 = vadd.f32 %v740_v32, %v364_v42  ;;  %vm401_vm14 = vcmp.ge.f32.partialorder %v383_v43, 0.0  ;;  %v431_v47 = vmul.f32 %v743_v34, %v383_v43 }
 0x13a   :  { %vm402_vm15 = vcmp.ge.f32.partialorder %v384_v44, 0.0  ;;  %v432_v48 = vmul.f32 %v747_v37, %v384_v44  ;;  %vm411_vm0 = vcmp.ge.f32.partialorder %v393_v45, 0.0  ;;  %v441_v49 = vmul.f32 %v743_v34, %v393_v45 }
 0x13b   :  { %vm412_vm1 = vcmp.ge.f32.partialorder %v394_v46, 0.0  ;;  %v442_v50 = vmul.f32 %v747_v37, %v394_v46  ;;  %v449_v51 = vsel %vm401_vm14, %v383_v43, %v431_v47  ;;  %v385_v24 = vadd.f32 %v738_v29, %v355_v53 }
 0x13c   :  { %v450_v52 = vsel %vm402_vm15, %v384_v44, %v432_v48  ;;  %467 = vst [vmem:[%s859_s5 + $0x30] sm:$0xff] %v449_v51  ;;  %v459_v55 = vsel %vm411_vm0, %v393_v45, %v441_v49  ;;  %v386_v27 = vadd.f32 %v740_v32, %v356_v54 }
 0x13d   :  { %468 = vst [vmem:[%s859_s5 + $0x38] sm:$0xff] %v450_v52  ;;  %v460_v56 = vsel %vm412_vm1, %v394_v46, %v442_v50  ;;  %477 = vst [vmem:[%s859_s5 + $0x80] sm:$0xff] %v459_v55  ;;  %vm403_vm2 = vcmp.ge.f32.partialorder %v385_v24, 0.0  ;;  %v433_v57 = vmul.f32 %v743_v34, %v385_v24 }
 0x13e   :  { %478 = vst [vmem:[%s859_s5 + $0x88] sm:$0xff] %v460_v56  ;;  %vm404_vm3 = vcmp.ge.f32.partialorder %v386_v27, 0.0  ;;  %v434_v58 = vmul.f32 %v747_v37, %v386_v27 }
 0x13f   :  { %v451_v59 = vsel %vm403_vm2, %v385_v24, %v433_v57 }
 0x140   :  { %v452_v60 = vsel %vm404_vm3, %v386_v27, %v434_v58  ;;  %469 = vst [vmem:[%s859_s5 + $0x40] sm:$0xff] %v451_v59 }
 0x141   :  { %470 = vst [vmem:[%s859_s5 + $0x48] sm:$0xff] %v452_v60 }
 0x142   :  { %483 = vsyncpa [#allocation3], 1 }
 0x143   :  { %484 = vsyncpa [#allocation5], 1 }
 0x144   :  { %485 = vsyncpa [#allocation8], 1 }

// kernel: multihead_cnn_forward.11
= control target key start
LH: loop header
LB: loop body
LE: loop exit
PB: predicated region body
PF: predicated region fallthrough
CT: control target
= control target key end

     0   :  { %s680_s1 = inlined_call_operand.vmem [shape: bf16[512,128], index: 1, kind: input, shape index: {}]   ;;  %s681_s0 = inlined_call_operand.vmem [shape: bf16[8,512], index: 0, kind: input, shape index: {}]   ;;  %s682_s2 = inlined_call_operand.vmem [shape: f32[1,128], index: 2, kind: input, shape index: {}]   ;;  %s683_s3 = inlined_call_operand.vmem [shape: f32[1,128], index: 3, kind: input, shape index: {}]   ;;  %s684_s4 = inlined_call_operand.vmem [shape: f32[1,128], index: 4, kind: input, shape index: {}]   ;;  %s685_s5 = inlined_call_operand.vmem [shape: f32[8,128], index: 5, kind: output, shape index: {}]  }
   0x1   :  { %v500_v0 = vld [vmem:[%s680_s1 + $0x40] sm:$0xff]   ;;  %v504_v4 = vld [vmem:[%s680_s1 + $0x48] sm:$0xff]   ;;  %v508_v8 = vld [vmem:[%s680_s1 + $0x50] sm:$0xff]  }
   0x2   :  { %v501_v1 = vld [vmem:[%s680_s1 + $0xc0] sm:$0xff]   ;;  %455 = vmatprep.subr.bf16.mxu0 %v500_v0  ;;  %v505_v5 = vld [vmem:[%s680_s1 + $0xc8] sm:$0xff]   ;;  %v509_v9 = vld [vmem:[%s680_s1 + $0xd0] sm:$0xff]  }
   0x3   :  { %v502_v2 = vld [vmem:[%s680_s1] sm:$0xff]   ;;  %477 = vmatprep.subr.bf16.mxu1 %v501_v1  ;;  %v506_v6 = vld [vmem:[%s680_s1 + $0x8] sm:$0xff]   ;;  %v510_v10 = vld [vmem:[%s680_s1 + $0x10] sm:$0xff]  }
   0x4   :  { %v503_v3 = vld [vmem:[%s680_s1 + $0x80] sm:$0xff]   ;;  %456 = vmatpush3.bf16.msra.mxu0 %v502_v2  ;;  %v507_v7 = vld [vmem:[%s680_s1 + $0x88] sm:$0xff]   ;;  %v511_v11 = vld [vmem:[%s680_s1 + $0x90] sm:$0xff]  }
   0x5   :  { %478 = vmatpush3.bf16.msra.mxu1 %v503_v3  ;;  %457 = vmatprep.subr.bf16.mxu0 %v504_v4  ;;  %v512_v12 = vld [vmem:[%s680_s1 + $0x58] sm:$0xff]   ;;  %v516_v16 = vld [vmem:[%s680_s1 + $0x60] sm:$0xff]   ;;  %v520_v20 = vld [vmem:[%s680_s1 + $0x68] sm:$0xff]  }
   0x6   :  { %479 = vmatprep.subr.bf16.mxu1 %v505_v5  ;;  %v513_v13 = vld [vmem:[%s680_s1 + $0xd8] sm:$0xff]   ;;  %v517_v17 = vld [vmem:[%s680_s1 + $0xe0] sm:$0xff]   ;;  %v521_v21 = vld [vmem:[%s680_s1 + $0xe8] sm:$0xff]  }
   0x7   :  { %v514_v14 = vld [vmem:[%s680_s1 + $0x18] sm:$0xff]   ;;  %v518_v18 = vld [vmem:[%s680_s1 + $0x20] sm:$0xff]   ;;  %v522_v22 = vld [vmem:[%s680_s1 + $0x28] sm:$0xff]  }
   0x8   :  { %458 = vmatpush3.bf16.msra.mxu0 %v506_v6  ;;  %v515_v15 = vld [vmem:[%s680_s1 + $0x98] sm:$0xff]   ;;  %v519_v19 = vld [vmem:[%s680_s1 + $0xa0] sm:$0xff]   ;;  %v523_v23 = vld [vmem:[%s680_s1 + $0xa8] sm:$0xff]  }
   0x9   :  { %480 = vmatpush3.bf16.msra.mxu1 %v507_v7  ;;  %459 = vmatprep.subr.bf16.mxu0 %v508_v8  ;;  %v524_v24 = vld [vmem:[%s680_s1 + $0x70] sm:$0xff]   ;;  %v528_v28 = vld [vmem:[%s680_s1 + $0x78] sm:$0xff]   ;;  %v27_v32 = vld [vmem:[%s681_s0] sm:$0xff] }
   0xa   :  { %481 = vmatprep.subr.bf16.mxu1 %v509_v9  ;;  %v525_v25 = vld [vmem:[%s680_s1 + $0xf0] sm:$0xff]   ;;  %v529_v29 = vld [vmem:[%s680_s1 + $0xf8] sm:$0xff]   ;;  %v28_v33 = vld [vmem:[%s681_s0 + $0x8] sm:$0xff]  ;;  %v416_v34 = vcombine.low %v27_v32, %v27_v32  ;;  %v417_v35 = vcombine.high %v27_v32, %v27_v32 }
   0xb   :  { %v526_v26 = vld [vmem:[%s680_s1 + $0x30] sm:$0xff]   ;;  %v530_v30 = vld [vmem:[%s680_s1 + $0x38] sm:$0xff]   ;;  %v418_v36 = vcombine.low %v28_v33, %v28_v33  ;;  %v419_v37 = vcombine.high %v28_v33, %v28_v33  ;;  %v452_v49 = vld [vmem:[%s682_s2] ss:$0 sm:$0xff] }
   0xc   :  { %460 = vmatpush3.bf16.msra.mxu0 %v510_v10  ;;  %v527_v27 = vld [vmem:[%s680_s1 + $0xb0] sm:$0xff]   ;;  %v531_v31 = vld [vmem:[%s680_s1 + $0xb8] sm:$0xff]   ;;  %331 = vmatprep.mubr.bf16.mxu0 %v417_v35  ;;  %v453_v50 = vld [vmem:[%s683_s3] ss:$0 sm:$0xff] }
   0xd   :  { %482 = vmatpush3.bf16.msra.mxu1 %v511_v11  ;;  %461 = vmatprep.subr.bf16.mxu0 %v512_v12  ;;  %v454_v52 = vld [vmem:[%s684_s4] ss:$0 sm:$0xff] }
   0xe   :  { %483 = vmatprep.subr.bf16.mxu1 %v513_v13  ;;  %371 = vmatprep.mubr.bf16.mxu1 %v419_v37 }
  0x10   :  { %462 = vmatpush3.bf16.msra.mxu0 %v514_v14 }
  0x11   :  { %484 = vmatpush3.bf16.msra.mxu1 %v515_v15  ;;  %463 = vmatprep.subr.bf16.mxu0 %v516_v16 }
  0x12   :  { %485 = vmatprep.subr.bf16.mxu1 %v517_v17 }
  0x14   :  { %464 = vmatpush3.bf16.msra.mxu0 %v518_v18 }
  0x15   :  { %486 = vmatpush3.bf16.msra.mxu1 %v519_v19  ;;  %465 = vmatprep.subr.bf16.mxu0 %v520_v20 }
  0x16   :  { %487 = vmatprep.subr.bf16.mxu1 %v521_v21 }
  0x18   :  { %466 = vmatpush3.bf16.msra.mxu0 %v522_v22 }
  0x19   :  { %488 = vmatpush3.bf16.msra.mxu1 %v523_v23  ;;  %467 = vmatprep.subr.bf16.mxu0 %v524_v24 }
  0x1a   :  { %489 = vmatprep.subr.bf16.mxu1 %v525_v25 }
  0x1c   :  { %468 = vmatpush3.bf16.msra.mxu0 %v526_v26 }
  0x1d   :  { %490 = vmatpush3.bf16.msra.mxu1 %v527_v27  ;;  %469 = vmatprep.subr.bf16.mxu0 %v528_v28 }
  0x1e   :  { %491 = vmatprep.subr.bf16.mxu1 %v529_v29 }
  0x20   :  { %470 = vmatpush3.bf16.msra.mxu0 %v530_v30 }
  0x21   :  { %492 = vmatpush3.bf16.msra.mxu1 %v531_v31 }
  0x23   :  { %332 = vmatmul.mubr.bf16.vlgmr.msra.gmra.mrb[0].mxu0 %v416_v34 }
  0x24   :  { %372 = vmatmul.mubr.bf16.vlgmr.msra.gmra.mrb[0].mxu1 %v418_v36 }
  0xf6   :  { %v471_v38 = vpop.f32.mrb[0].mxu0 }
  0xf7   :  { %v493_v39 = vpop.f32.mrb[0].mxu1  ;;  %v472_v40 = vpop.f32.mrb[1].mxu0 }
  0xf8   :  { %v494_v41 = vpop.f32.mrb[1].mxu1  ;;  %v473_v42 = vadd.f32 %v472_v40, %v471_v38  ;;  %v474_v44 = vpop.f32.mrb[2].mxu0 }
  0xf9   :  { %v495_v43 = vadd.f32 %v494_v41, %v493_v39  ;;  %v496_v45 = vpop.f32.mrb[2].mxu1  ;;  %v475_v46 = vpop.f32.mrb[3].mxu0 }
  0xfa   :  { %v497_v47 = vpop.f32.mrb[3].mxu1 }
  0xfb   :  { %v374_v48 = vadd.f32 %v495_v43, %v473_v42 }
  0xfd   :  { %v392_v51 = vmul.f32 %v452_v49, %v374_v48 }
  0xff   :  { %v400_v53 = vadd.f32 %v453_v50, %v392_v51 }
 0x101   :  { %vm401_vm0 = vcmp.ge.f32.partialorder %v400_v53, 0.0  ;;  %v409_v54 = vmul.f32 %v454_v52, %v400_v53 }
 0x103   :  { %v410_v55 = vsel %vm401_vm0, %v400_v53, %v409_v54 }
 0x104   :  { %411 = vst [vmem:[%s685_s5] sm:$0xff] %v410_v55 }

// kernel: multihead_cnn_forward.7
= control target key start
LH: loop header
LB: loop body
LE: loop exit
PB: predicated region body
PF: predicated region fallthrough
CT: control target
= control target key end

     0   :  { %s4284_s1 = inlined_call_operand.vmem [shape: f32[2304,256], index: 1, kind: input, shape index: {}]   ;;  %s4285_s0 = inlined_call_operand.vmem [shape: f32[32,2304], index: 0, kind: input, shape index: {}]   ;;  %s4286_s2 = inlined_call_operand.vmem [shape: f32[1,256], index: 2, kind: input, shape index: {}]   ;;  %s4287_s3 = inlined_call_operand.vmem [shape: f32[1,256], index: 3, kind: input, shape index: {}]   ;;  %s4288_s4 = inlined_call_operand.vmem [shape: f32[1,256], index: 4, kind: input, shape index: {}]   ;;  %s4289_s5 = inlined_call_operand.vmem [shape: f32[32,256], index: 5, kind: output, shape index: {}]  }
   0x1   :  { %v113_v0 = vld [vmem:[%s4284_s1 + $0x8] sm:$0xff]  ;;  %v115_v1 = vld [vmem:[%s4284_s1 + $0x18] sm:$0xff]  ;;  %v112_v5 = vld [vmem:[%s4284_s1] sm:$0xff] }
   0x2   :  { %v369_v2 = vld [vmem:[%s4284_s1 + $0x808] sm:$0xff]  ;;  %v1604_v3 = vpack.c.bf16 %v115_v1, %v113_v0  ;;  %v371_v4 = vld [vmem:[%s4284_s1 + $0x818] sm:$0xff]  ;;  %v114_v6 = vld [vmem:[%s4284_s1 + $0x10] sm:$0xff] }
   0x3   :  { %v1860_v7 = vpack.c.bf16 %v371_v4, %v369_v2  ;;  %v1606_v8 = vpack.c.bf16 %v114_v6, %v112_v5  ;;  %v368_v9 = vld [vmem:[%s4284_s1 + $0x800] sm:$0xff]  ;;  %v370_v10 = vld [vmem:[%s4284_s1 + $0x810] sm:$0xff]  ;;  %v117_v11 = vld [vmem:[%s4284_s1 + $0x28] sm:$0xff] }
   0x4   :  { %1605 = vmatprep.subr.bf16.mxu1 %v1604_v3  ;;  %v1862_v12 = vpack.c.bf16 %v370_v10, %v368_v9  ;;  %v119_v13 = vld [vmem:[%s4284_s1 + $0x38] sm:$0xff]  ;;  %v373_v14 = vld [vmem:[%s4284_s1 + $0x828] sm:$0xff]  ;;  %v116_v18 = vld [vmem:[%s4284_s1 + $0x20] sm:$0xff] }
   0x5   :  { %v375_v15 = vld [vmem:[%s4284_s1 + $0x838] sm:$0xff]  ;;  %1861 = vmatprep.subr.bf16.mxu0 %v1860_v7  ;;  %1607 = vmatpush1.bf16.msra.mxu1 %v1606_v8  ;;  %v1608_v16 = vpack.c.bf16 %v119_v13, %v117_v11  ;;  %v118_v19 = vld [vmem:[%s4284_s1 + $0x30] sm:$0xff]  ;;  %v372_v20 = vld [vmem:[%s4284_s1 + $0x820] sm:$0xff] }
   0x6   :  { %v1864_v17 = vpack.c.bf16 %v375_v15, %v373_v14  ;;  %1863 = vmatpush1.bf16.msra.mxu0 %v1862_v12  ;;  %v1610_v21 = vpack.c.bf16 %v118_v19, %v116_v18  ;;  %v374_v22 = vld [vmem:[%s4284_s1 + $0x830] sm:$0xff]  ;;  %v121_v23 = vld [vmem:[%s4284_s1 + $0x48] sm:$0xff]  ;;  %v123_v24 = vld [vmem:[%s4284_s1 + $0x58] sm:$0xff] }
   0x7   :  { %1609 = vmatprep.subr.bf16.mxu1 %v1608_v16  ;;  %v1866_v25 = vpack.c.bf16 %v374_v22, %v372_v20  ;;  %v1612_v26 = vpack.c.bf16 %v123_v24, %v121_v23  ;;  %v377_v27 = vld [vmem:[%s4284_s1 + $0x848] sm:$0xff]  ;;  %v379_v28 = vld [vmem:[%s4284_s1 + $0x858] sm:$0xff]  ;;  %v120_v29 = vld [vmem:[%s4284_s1 + $0x40] sm:$0xff] }
   0x8   :  { %1865 = vmatprep.subr.bf16.mxu0 %v1864_v17  ;;  %v1868_v30 = vpack.c.bf16 %v379_v28, %v377_v27  ;;  %v122_v31 = vld [vmem:[%s4284_s1 + $0x50] sm:$0xff]  ;;  %v376_v32 = vld [vmem:[%s4284_s1 + $0x840] sm:$0xff]  ;;  %v125_v35 = vld [vmem:[%s4284_s1 + $0x68] sm:$0xff] }
   0x9   :  { %v378_v33 = vld [vmem:[%s4284_s1 + $0x850] sm:$0xff]  ;;  %1611 = vmatpush1.bf16.msra.mxu1 %v1610_v21  ;;  %v1614_v34 = vpack.c.bf16 %v122_v31, %v120_v29  ;;  %v127_v36 = vld [vmem:[%s4284_s1 + $0x78] sm:$0xff]  ;;  %v381_v37 = vld [vmem:[%s4284_s1 + $0x868] sm:$0xff] }
   0xa   :  { %1867 = vmatpush1.bf16.msra.mxu0 %v1866_v25  ;;  %1613 = vmatprep.subr.bf16.mxu1 %v1612_v26  ;;  %v1870_v38 = vpack.c.bf16 %v378_v33, %v376_v32  ;;  %v1616_v39 = vpack.c.bf16 %v127_v36, %v125_v35  ;;  %v383_v40 = vld [vmem:[%s4284_s1 + $0x878] sm:$0xff]  ;;  %v124_v41 = vld [vmem:[%s4284_s1 + $0x60] sm:$0xff]  ;;  %v126_v42 = vld [vmem:[%s4284_s1 + $0x70] sm:$0xff] }
   0xb   :  { %1869 = vmatprep.subr.bf16.mxu0 %v1868_v30  ;;  %v1872_v43 = vpack.c.bf16 %v383_v40, %v381_v37  ;;  %v380_v44 = vld [vmem:[%s4284_s1 + $0x860] sm:$0xff]  ;;  %v382_v45 = vld [vmem:[%s4284_s1 + $0x870] sm:$0xff]  ;;  %v129_v46 = vld [vmem:[%s4284_s1 + $0x88] sm:$0xff]  ;;  %v1618_v50 = vpack.c.bf16 %v126_v42, %v124_v41 }
   0xc   :  { %v131_v47 = vld [vmem:[%s4284_s1 + $0x98] sm:$0xff]  ;;  %v385_v48 = vld [vmem:[%s4284_s1 + $0x888] sm:$0xff]  ;;  %v1874_v51 = vpack.c.bf16 %v382_v45, %v380_v44  ;;  %v128_v53 = vld [vmem:[%s4284_s1 + $0x80] sm:$0xff] }
   0xd   :  { %v387_v49 = vld [vmem:[%s4284_s1 + $0x898] sm:$0xff]  ;;  %1615 = vmatpush1.bf16.msra.mxu1 %v1614_v34  ;;  %v1620_v52 = vpack.c.bf16 %v131_v47, %v129_v46  ;;  %v130_v54 = vld [vmem:[%s4284_s1 + $0x90] sm:$0xff]  ;;  %v384_v55 = vld [vmem:[%s4284_s1 + $0x880] sm:$0xff] }
   0xe   :  { %1871 = vmatpush1.bf16.msra.mxu0 %v1870_v38  ;;  %1617 = vmatprep.subr.bf16.mxu1 %v1616_v39  ;;  %v1876_v56 = vpack.c.bf16 %v387_v49, %v385_v48  ;;  %v386_v57 = vld [vmem:[%s4284_s1 + $0x890] sm:$0xff]  ;;  %v133_v58 = vld [vmem:[%s4284_s1 + $0xa8] sm:$0xff]  ;;  %v135_v59 = vld [vmem:[%s4284_s1 + $0xb8] sm:$0xff]  ;;  %v1622_v62 = vpack.c.bf16 %v130_v54, %v128_v53 }
   0xf   :  { %1873 = vmatprep.subr.bf16.mxu0 %v1872_v43  ;;  %v389_v60 = vld [vmem:[%s4284_s1 + $0x8a8] sm:$0xff]  ;;  %v391_v61 = vld [vmem:[%s4284_s1 + $0x8b8] sm:$0xff]  ;;  %v1878_v63 = vpack.c.bf16 %v386_v57, %v384_v55  ;;  %v1624_v0 = vpack.c.bf16 %v135_v59, %v133_v58  ;;  %v132_v1 = vld [vmem:[%s4284_s1 + $0xa0] sm:$0xff] }
  0x10   :  { %v134_v2 = vld [vmem:[%s4284_s1 + $0xb0] sm:$0xff]  ;;  %v388_v3 = vld [vmem:[%s4284_s1 + $0x8a0] sm:$0xff]  ;;  %v1880_v4 = vpack.c.bf16 %v391_v61, %v389_v60  ;;  %v137_v6 = vld [vmem:[%s4284_s1 + $0xc8] sm:$0xff] }
  0x11   :  { %1619 = vmatpush1.bf16.msra.mxu1 %v1618_v50  ;;  %v390_v5 = vld [vmem:[%s4284_s1 + $0x8b0] sm:$0xff]  ;;  %v139_v7 = vld [vmem:[%s4284_s1 + $0xd8] sm:$0xff]  ;;  %v393_v8 = vld [vmem:[%s4284_s1 + $0x8c8] sm:$0xff]  ;;  %v1626_v10 = vpack.c.bf16 %v134_v2, %v132_v1 }
  0x12   :  { %1875 = vmatpush1.bf16.msra.mxu0 %v1874_v51  ;;  %1621 = vmatprep.subr.bf16.mxu1 %v1620_v52  ;;  %v395_v9 = vld [vmem:[%s4284_s1 + $0x8d8] sm:$0xff]  ;;  %v1882_v11 = vpack.c.bf16 %v390_v5, %v388_v3  ;;  %v1628_v12 = vpack.c.bf16 %v139_v7, %v137_v6  ;;  %v136_v13 = vld [vmem:[%s4284_s1 + $0xc0] sm:$0xff]  ;;  %v138_v14 = vld [vmem:[%s4284_s1 + $0xd0] sm:$0xff] }
  0x13   :  { %1877 = vmatprep.subr.bf16.mxu0 %v1876_v56  ;;  %v392_v15 = vld [vmem:[%s4284_s1 + $0x8c0] sm:$0xff]  ;;  %v1884_v16 = vpack.c.bf16 %v395_v9, %v393_v8  ;;  %v394_v17 = vld [vmem:[%s4284_s1 + $0x8d0] sm:$0xff]  ;;  %v141_v18 = vld [vmem:[%s4284_s1 + $0xe8] sm:$0xff]  ;;  %v1630_v22 = vpack.c.bf16 %v138_v14, %v136_v13 }
  0x14   :  { %v143_v19 = vld [vmem:[%s4284_s1 + $0xf8] sm:$0xff]  ;;  %v397_v20 = vld [vmem:[%s4284_s1 + $0x8e8] sm:$0xff]  ;;  %v1886_v23 = vpack.c.bf16 %v394_v17, %v392_v15  ;;  %v140_v25 = vld [vmem:[%s4284_s1 + $0xe0] sm:$0xff] }
  0x15   :  { %1623 = vmatpush1.bf16.msra.mxu1 %v1622_v62  ;;  %v399_v21 = vld [vmem:[%s4284_s1 + $0x8f8] sm:$0xff]  ;;  %v1632_v24 = vpack.c.bf16 %v143_v19, %v141_v18  ;;  %v142_v26 = vld [vmem:[%s4284_s1 + $0xf0] sm:$0xff]  ;;  %v396_v27 = vld [vmem:[%s4284_s1 + $0x8e0] sm:$0xff] }
  0x16   :  { %1879 = vmatpush1.bf16.msra.mxu0 %v1878_v63  ;;  %1625 = vmatprep.subr.bf16.mxu1 %v1624_v0  ;;  %v1888_v28 = vpack.c.bf16 %v399_v21, %v397_v20  ;;  %v398_v29 = vld [vmem:[%s4284_s1 + $0x8f0] sm:$0xff]  ;;  %v145_v30 = vld [vmem:[%s4284_s1 + $0x108] sm:$0xff]  ;;  %v147_v31 = vld [vmem:[%s4284_s1 + $0x118] sm:$0xff]  ;;  %v1634_v34 = vpack.c.bf16 %v142_v26, %v140_v25 }
  0x17   :  { %1881 = vmatprep.subr.bf16.mxu0 %v1880_v4  ;;  %v401_v32 = vld [vmem:[%s4284_s1 + $0x908] sm:$0xff]  ;;  %v403_v33 = vld [vmem:[%s4284_s1 + $0x918] sm:$0xff]  ;;  %v1890_v35 = vpack.c.bf16 %v398_v29, %v396_v27  ;;  %v1636_v36 = vpack.c.bf16 %v147_v31, %v145_v30  ;;  %v144_v37 = vld [vmem:[%s4284_s1 + $0x100] sm:$0xff] }
  0x18   :  { %v146_v38 = vld [vmem:[%s4284_s1 + $0x110] sm:$0xff]  ;;  %v400_v39 = vld [vmem:[%s4284_s1 + $0x900] sm:$0xff]  ;;  %v1892_v40 = vpack.c.bf16 %v403_v33, %v401_v32  ;;  %v149_v42 = vld [vmem:[%s4284_s1 + $0x128] sm:$0xff] }
  0x19   :  { %1627 = vmatpush1.bf16.msra.mxu1 %v1626_v10  ;;  %v402_v41 = vld [vmem:[%s4284_s1 + $0x910] sm:$0xff]  ;;  %v151_v43 = vld [vmem:[%s4284_s1 + $0x138] sm:$0xff]  ;;  %v405_v44 = vld [vmem:[%s4284_s1 + $0x928] sm:$0xff]  ;;  %v1638_v46 = vpack.c.bf16 %v146_v38, %v144_v37 }
  0x1a   :  { %1883 = vmatpush1.bf16.msra.mxu0 %v1882_v11  ;;  %1629 = vmatprep.subr.bf16.mxu1 %v1628_v12  ;;  %v407_v45 = vld [vmem:[%s4284_s1 + $0x938] sm:$0xff]  ;;  %v1894_v47 = vpack.c.bf16 %v402_v41, %v400_v39  ;;  %v1640_v48 = vpack.c.bf16 %v151_v43, %v149_v42  ;;  %v148_v49 = vld [vmem:[%s4284_s1 + $0x120] sm:$0xff]  ;;  %v150_v50 = vld [vmem:[%s4284_s1 + $0x130] sm:$0xff] }
  0x1b   :  { %1885 = vmatprep.subr.bf16.mxu0 %v1884_v16  ;;  %v404_v51 = vld [vmem:[%s4284_s1 + $0x920] sm:$0xff]  ;;  %v1896_v52 = vpack.c.bf16 %v407_v45, %v405_v44  ;;  %v406_v53 = vld [vmem:[%s4284_s1 + $0x930] sm:$0xff]  ;;  %v153_v54 = vld [vmem:[%s4284_s1 + $0x148] sm:$0xff]  ;;  %v1642_v58 = vpack.c.bf16 %v150_v50, %v148_v49 }
  0x1c   :  { %v155_v55 = vld [vmem:[%s4284_s1 + $0x158] sm:$0xff]  ;;  %v409_v56 = vld [vmem:[%s4284_s1 + $0x948] sm:$0xff]  ;;  %v1898_v59 = vpack.c.bf16 %v406_v53, %v404_v51  ;;  %v152_v61 = vld [vmem:[%s4284_s1 + $0x140] sm:$0xff] }
  0x1d   :  { %1631 = vmatpush1.bf16.msra.mxu1 %v1630_v22  ;;  %v411_v57 = vld [vmem:[%s4284_s1 + $0x958] sm:$0xff]  ;;  %v1644_v60 = vpack.c.bf16 %v155_v55, %v153_v54  ;;  %v154_v62 = vld [vmem:[%s4284_s1 + $0x150] sm:$0xff]  ;;  %v408_v63 = vld [vmem:[%s4284_s1 + $0x940] sm:$0xff] }
  0x1e   :  { %1887 = vmatpush1.bf16.msra.mxu0 %v1886_v23  ;;  %1633 = vmatprep.subr.bf16.mxu1 %v1632_v24  ;;  %v1900_v0 = vpack.c.bf16 %v411_v57, %v409_v56  ;;  %v410_v1 = vld [vmem:[%s4284_s1 + $0x950] sm:$0xff]  ;;  %v157_v2 = vld [vmem:[%s4284_s1 + $0x168] sm:$0xff]  ;;  %v159_v3 = vld [vmem:[%s4284_s1 + $0x178] sm:$0xff]  ;;  %v1646_v6 = vpack.c.bf16 %v154_v62, %v152_v61 }
  0x1f   :  { %1889 = vmatprep.subr.bf16.mxu0 %v1888_v28  ;;  %v413_v4 = vld [vmem:[%s4284_s1 + $0x968] sm:$0xff]  ;;  %v415_v5 = vld [vmem:[%s4284_s1 + $0x978] sm:$0xff]  ;;  %v156_v7 = vld [vmem:[%s4284_s1 + $0x160] sm:$0xff]  ;;  %v1902_v8 = vpack.c.bf16 %v410_v1, %v408_v63  ;;  %v1648_v9 = vpack.c.bf16 %v159_v3, %v157_v2 }
  0x20   :  { %v158_v10 = vld [vmem:[%s4284_s1 + $0x170] sm:$0xff]  ;;  %v412_v11 = vld [vmem:[%s4284_s1 + $0x960] sm:$0xff]  ;;  %v1904_v13 = vpack.c.bf16 %v415_v5, %v413_v4  ;;  %v161_v14 = vld [vmem:[%s4284_s1 + $0x188] sm:$0xff] }
  0x21   :  { %1635 = vmatpush1.bf16.msra.mxu1 %v1634_v34  ;;  %v414_v12 = vld [vmem:[%s4284_s1 + $0x970] sm:$0xff]  ;;  %v163_v15 = vld [vmem:[%s4284_s1 + $0x198] sm:$0xff]  ;;  %v41_v16 = vld [vmem:[%s4285_s0 + $0x8] sm:$0xff]  ;;  %v1650_v20 = vpack.c.bf16 %v158_v10, %v156_v7 }
  0x22   :  { %1891 = vmatpush1.bf16.msra.mxu0 %v1890_v35  ;;  %1637 = vmatprep.subr.bf16.mxu1 %v1636_v36  ;;  %v417_v17 = vld [vmem:[%s4284_s1 + $0x988] sm:$0xff]  ;;  %v419_v18 = vld [vmem:[%s4284_s1 + $0x998] sm:$0xff]  ;;  %v1906_v21 = vpack.c.bf16 %v414_v12, %v412_v11  ;;  %v1652_v22 = vpack.c.bf16 %v163_v15, %v161_v14  ;;  %v160_v23 = vld [vmem:[%s4284_s1 + $0x180] sm:$0xff] }
  0x23   :  { %1893 = vmatprep.subr.bf16.mxu0 %v1892_v40  ;;  %752 = vmatprep.mubr.f32.mxu1 %v41_v16  ;;  %v49_v19 = vld [vmem:[%s4285_s0 + $0x48] sm:$0xff]  ;;  %v162_v24 = vld [vmem:[%s4284_s1 + $0x190] sm:$0xff]  ;;  %v416_v25 = vld [vmem:[%s4284_s1 + $0x980] sm:$0xff]  ;;  %v1908_v26 = vpack.c.bf16 %v419_v18, %v417_v17 }
  0x24   :  { %1108 = vmatprep.mubr.f32.mxu0 %v49_v19  ;;  %v418_v27 = vld [vmem:[%s4284_s1 + $0x990] sm:$0xff]  ;;  %v165_v28 = vld [vmem:[%s4284_s1 + $0x1a8] sm:$0xff]  ;;  %v167_v29 = vld [vmem:[%s4284_s1 + $0x1b8] sm:$0xff]  ;;  %v1654_v32 = vpack.c.bf16 %v162_v24, %v160_v23 }
  0x25   :  { %1639 = vmatpush1.bf16.msra.mxu1 %v1638_v46  ;;  %v421_v30 = vld [vmem:[%s4284_s1 + $0x9a8] sm:$0xff]  ;;  %v423_v31 = vld [vmem:[%s4284_s1 + $0x9b8] sm:$0xff]  ;;  %v1910_v33 = vpack.c.bf16 %v418_v27, %v416_v25  ;;  %v1656_v34 = vpack.c.bf16 %v167_v29, %v165_v28  ;;  %v164_v35 = vld [vmem:[%s4284_s1 + $0x1a0] sm:$0xff] }
  0x26   :  { %1895 = vmatpush1.bf16.msra.mxu0 %v1894_v47  ;;  %1641 = vmatprep.subr.bf16.mxu1 %v1640_v48  ;;  %v166_v36 = vld [vmem:[%s4284_s1 + $0x1b0] sm:$0xff]  ;;  %v420_v37 = vld [vmem:[%s4284_s1 + $0x9a0] sm:$0xff]  ;;  %v1912_v38 = vpack.c.bf16 %v423_v31, %v421_v30  ;;  %v169_v40 = vld [vmem:[%s4284_s1 + $0x1c8] sm:$0xff] }
  0x27   :  { %1897 = vmatprep.subr.bf16.mxu0 %v1896_v52  ;;  %v422_v39 = vld [vmem:[%s4284_s1 + $0x9b0] sm:$0xff]  ;;  %v171_v41 = vld [vmem:[%s4284_s1 + $0x1d8] sm:$0xff]  ;;  %v425_v42 = vld [vmem:[%s4284_s1 + $0x9c8] sm:$0xff]  ;;  %v1658_v44 = vpack.c.bf16 %v166_v36, %v164_v35 }
  0x28   :  { %v427_v43 = vld [vmem:[%s4284_s1 + $0x9d8] sm:$0xff]  ;;  %v1914_v45 = vpack.c.bf16 %v422_v39, %v420_v37  ;;  %v1660_v46 = vpack.c.bf16 %v171_v41, %v169_v40  ;;  %v168_v47 = vld [vmem:[%s4284_s1 + $0x1c0] sm:$0xff]  ;;  %v170_v48 = vld [vmem:[%s4284_s1 + $0x1d0] sm:$0xff] }
  0x29   :  { %1643 = vmatpush1.bf16.msra.mxu1 %v1642_v58  ;;  %v424_v49 = vld [vmem:[%s4284_s1 + $0x9c0] sm:$0xff]  ;;  %v1916_v50 = vpack.c.bf16 %v427_v43, %v425_v42  ;;  %v426_v51 = vld [vmem:[%s4284_s1 + $0x9d0] sm:$0xff]  ;;  %v173_v52 = vld [vmem:[%s4284_s1 + $0x1e8] sm:$0xff]  ;;  %v1662_v56 = vpack.c.bf16 %v170_v48, %v168_v47 }
  0x2a   :  { %1899 = vmatpush1.bf16.msra.mxu0 %v1898_v59  ;;  %1645 = vmatprep.subr.bf16.mxu1 %v1644_v60  ;;  %v175_v53 = vld [vmem:[%s4284_s1 + $0x1f8] sm:$0xff]  ;;  %v429_v54 = vld [vmem:[%s4284_s1 + $0x9e8] sm:$0xff]  ;;  %v1918_v57 = vpack.c.bf16 %v426_v51, %v424_v49  ;;  %v172_v59 = vld [vmem:[%s4284_s1 + $0x1e0] sm:$0xff] }
  0x2b   :  { %1901 = vmatprep.subr.bf16.mxu0 %v1900_v0  ;;  %v431_v55 = vld [vmem:[%s4284_s1 + $0x9f8] sm:$0xff]  ;;  %v1664_v58 = vpack.c.bf16 %v175_v53, %v173_v52  ;;  %v174_v60 = vld [vmem:[%s4284_s1 + $0x1f0] sm:$0xff]  ;;  %v428_v61 = vld [vmem:[%s4284_s1 + $0x9e0] sm:$0xff] }
  0x2c   :  { %v1920_v62 = vpack.c.bf16 %v431_v55, %v429_v54  ;;  %v430_v63 = vld [vmem:[%s4284_s1 + $0x9f0] sm:$0xff]  ;;  %v177_v0 = vld [vmem:[%s4284_s1 + $0x208] sm:$0xff]  ;;  %v179_v1 = vld [vmem:[%s4284_s1 + $0x218] sm:$0xff]  ;;  %v1666_v4 = vpack.c.bf16 %v174_v60, %v172_v59 }
  0x2d   :  { %1647 = vmatpush1.bf16.msra.mxu1 %v1646_v6  ;;  %v433_v2 = vld [vmem:[%s4284_s1 + $0xa08] sm:$0xff]  ;;  %v435_v3 = vld [vmem:[%s4284_s1 + $0xa18] sm:$0xff]  ;;  %v1922_v5 = vpack.c.bf16 %v430_v63, %v428_v61  ;;  %v1668_v6 = vpack.c.bf16 %v179_v1, %v177_v0  ;;  %v176_v7 = vld [vmem:[%s4284_s1 + $0x200] sm:$0xff] }
  0x2e   :  { %1903 = vmatpush1.bf16.msra.mxu0 %v1902_v8  ;;  %1649 = vmatprep.subr.bf16.mxu1 %v1648_v9  ;;  %v178_v8 = vld [vmem:[%s4284_s1 + $0x210] sm:$0xff]  ;;  %v432_v9 = vld [vmem:[%s4284_s1 + $0xa00] sm:$0xff]  ;;  %v1924_v10 = vpack.c.bf16 %v435_v3, %v433_v2  ;;  %v181_v12 = vld [vmem:[%s4284_s1 + $0x228] sm:$0xff] }
  0x2f   :  { %1905 = vmatprep.subr.bf16.mxu0 %v1904_v13  ;;  %v434_v11 = vld [vmem:[%s4284_s1 + $0xa10] sm:$0xff]  ;;  %v183_v13 = vld [vmem:[%s4284_s1 + $0x238] sm:$0xff]  ;;  %v437_v14 = vld [vmem:[%s4284_s1 + $0xa28] sm:$0xff]  ;;  %v1670_v17 = vpack.c.bf16 %v178_v8, %v176_v7 }
  0x30   :  { %v439_v15 = vld [vmem:[%s4284_s1 + $0xa38] sm:$0xff]  ;;  %v40_v16 = vld [vmem:[%s4285_s0] sm:$0xff]  ;;  %v1926_v19 = vpack.c.bf16 %v434_v11, %v432_v9  ;;  %v438_v25 = vld [vmem:[%s4284_s1 + $0xa30] sm:$0xff] }
  0x31   :  { %1651 = vmatpush1.bf16.msra.mxu1 %v1650_v20  ;;  %v48_v18 = vld [vmem:[%s4285_s0 + $0x40] sm:$0xff]  ;;  %v1672_v20 = vpack.c.bf16 %v183_v13, %v181_v12  ;;  %v1928_v24 = vpack.c.bf16 %v439_v15, %v437_v14  ;;  %v187_v27 = vld [vmem:[%s4284_s1 + $0x258] sm:$0xff]  ;;  %v441_v28 = vld [vmem:[%s4284_s1 + $0xa48] sm:$0xff] }
  0x32   :  { %1907 = vmatpush1.bf16.msra.mxu0 %v1906_v21  ;;  %1653 = vmatprep.subr.bf16.mxu1 %v1652_v22  ;;  %v180_v21 = vld [vmem:[%s4284_s1 + $0x220] sm:$0xff]  ;;  %v182_v22 = vld [vmem:[%s4284_s1 + $0x230] sm:$0xff]  ;;  %v443_v29 = vld [vmem:[%s4284_s1 + $0xa58] sm:$0xff] }
  0x33   :  { %1909 = vmatprep.subr.bf16.mxu0 %v1908_v26  ;;  %v436_v23 = vld [vmem:[%s4284_s1 + $0xa20] sm:$0xff]  ;;  %v185_v26 = vld [vmem:[%s4284_s1 + $0x248] sm:$0xff]  ;;  %v1674_v30 = vpack.c.bf16 %v182_v22, %v180_v21  ;;  %v1932_v36 = vpack.c.bf16 %v443_v29, %v441_v28  ;;  %v442_v37 = vld [vmem:[%s4284_s1 + $0xa50] sm:$0xff] }
  0x34   :  { %v1930_v31 = vpack.c.bf16 %v438_v25, %v436_v23  ;;  %v440_v35 = vld [vmem:[%s4284_s1 + $0xa40] sm:$0xff]  ;;  %v191_v39 = vld [vmem:[%s4284_s1 + $0x278] sm:$0xff]  ;;  %v445_v40 = vld [vmem:[%s4284_s1 + $0xa68] sm:$0xff] }
  0x35   :  { %1655 = vmatpush1.bf16.msra.mxu1 %v1654_v32  ;;  %v1676_v32 = vpack.c.bf16 %v187_v27, %v185_v26  ;;  %v447_v41 = vld [vmem:[%s4284_s1 + $0xa78] sm:$0xff]  ;;  %v1934_v43 = vpack.c.bf16 %v442_v37, %v440_v35  ;;  %v444_v47 = vld [vmem:[%s4284_s1 + $0xa60] sm:$0xff]  ;;  %v446_v49 = vld [vmem:[%s4284_s1 + $0xa70] sm:$0xff] }
  0x36   :  { %1911 = vmatpush1.bf16.msra.mxu0 %v1910_v33  ;;  %1657 = vmatprep.subr.bf16.mxu1 %v1656_v34  ;;  %v184_v33 = vld [vmem:[%s4284_s1 + $0x240] sm:$0xff]  ;;  %v186_v34 = vld [vmem:[%s4284_s1 + $0x250] sm:$0xff]  ;;  %v1936_v48 = vpack.c.bf16 %v447_v41, %v445_v40  ;;  %v195_v51 = vld [vmem:[%s4284_s1 + $0x298] sm:$0xff] }
  0x37   :  { %1913 = vmatprep.subr.bf16.mxu0 %v1912_v38  ;;  %v189_v38 = vld [vmem:[%s4284_s1 + $0x268] sm:$0xff]  ;;  %v1678_v42 = vpack.c.bf16 %v186_v34, %v184_v33  ;;  %v451_v53 = vld [vmem:[%s4284_s1 + $0xa98] sm:$0xff]  ;;  %v192_v55 = vld [vmem:[%s4284_s1 + $0x280] sm:$0xff] }
  0x38   :  { %v449_v52 = vld [vmem:[%s4284_s1 + $0xa88] sm:$0xff]  ;;  %v448_v59 = vld [vmem:[%s4284_s1 + $0xa80] sm:$0xff]  ;;  %v450_v60 = vld [vmem:[%s4284_s1 + $0xa90] sm:$0xff] }
  0x39   :  { %1659 = vmatpush1.bf16.msra.mxu1 %v1658_v44  ;;  %v1680_v44 = vpack.c.bf16 %v191_v39, %v189_v38  ;;  %v1940_v61 = vpack.c.bf16 %v451_v53, %v449_v52  ;;  %v199_v63 = vld [vmem:[%s4284_s1 + $0x2b8] sm:$0xff]  ;;  %v453_v1 = vld [vmem:[%s4284_s1 + $0xaa8] sm:$0xff]  ;;  %v58_v7 = vld [vmem:[%s4285_s0 + $0x90] sm:$0xff]  ;;  %v1942_v8 = vpack.c.bf16 %v450_v60, %v448_v59 }
  0x3a   :  { %1915 = vmatpush1.bf16.msra.mxu0 %v1914_v45  ;;  %1661 = vmatprep.subr.bf16.mxu1 %v1660_v46  ;;  %v188_v45 = vld [vmem:[%s4284_s1 + $0x260] sm:$0xff]  ;;  %v190_v46 = vld [vmem:[%s4284_s1 + $0x270] sm:$0xff]  ;;  %v59_v0 = vld [vmem:[%s4285_s0 + $0x98] sm:$0xff] }
  0x3b   :  { %1917 = vmatprep.subr.bf16.mxu0 %v1916_v50  ;;  %v193_v50 = vld [vmem:[%s4284_s1 + $0x288] sm:$0xff]  ;;  %v1682_v54 = vpack.c.bf16 %v190_v46, %v188_v45  ;;  %v455_v2 = vld [vmem:[%s4284_s1 + $0xab8] sm:$0xff]  ;;  %v454_v11 = vld [vmem:[%s4284_s1 + $0xab0] sm:$0xff] }
  0x3c   :  { %v67_v3 = vld [vmem:[%s4285_s0 + $0xd8] sm:$0xff]  ;;  %v66_v12 = vld [vmem:[%s4285_s0 + $0xd0] sm:$0xff]  ;;  %v1944_v13 = vpack.c.bf16 %v455_v2, %v453_v1  ;;  %v201_v14 = vld [vmem:[%s4284_s1 + $0x2c8] sm:$0xff] }
  0x3d   :  { %1663 = vmatpush1.bf16.msra.mxu1 %v1662_v56  ;;  %v1938_v56 = vpack.c.bf16 %v446_v49, %v444_v47  ;;  %v203_v15 = vld [vmem:[%s4284_s1 + $0x2d8] sm:$0xff]  ;;  %v200_v21 = vld [vmem:[%s4284_s1 + $0x2c0] sm:$0xff]  ;;  %v202_v22 = vld [vmem:[%s4284_s1 + $0x2d0] sm:$0xff] }
  0x3e   :  { %1919 = vmatpush1.bf16.msra.mxu0 %v1918_v57  ;;  %1665 = vmatprep.subr.bf16.mxu1 %v1664_v58  ;;  %v1684_v57 = vpack.c.bf16 %v195_v51, %v193_v50  ;;  %v194_v58 = vld [vmem:[%s4284_s1 + $0x290] sm:$0xff]  ;;  %v76_v23 = vld [vmem:[%s4285_s0 + $0x120] sm:$0xff]  ;;  %v1692_v25 = vpack.c.bf16 %v203_v15, %v201_v14  ;;  %v461_v33 = vld [vmem:[%s4284_s1 + $0xae8] sm:$0xff] }
  0x3f   :  { %1921 = vmatprep.subr.bf16.mxu0 %v1920_v62  ;;  %v197_v62 = vld [vmem:[%s4284_s1 + $0x2a8] sm:$0xff]  ;;  %v456_v26 = vld [vmem:[%s4284_s1 + $0xac0] sm:$0xff]  ;;  %v458_v27 = vld [vmem:[%s4284_s1 + $0xad0] sm:$0xff] }
  0x40   :  { %v1688_v9 = vpack.c.bf16 %v199_v63, %v197_v62  ;;  %v84_v28 = vld [vmem:[%s4285_s0 + $0x160] sm:$0xff]  ;;  %v463_v34 = vld [vmem:[%s4284_s1 + $0xaf8] sm:$0xff]  ;;  %v206_v38 = vld [vmem:[%s4284_s1 + $0x2f0] sm:$0xff]  ;;  %v1950_v40 = vpack.c.bf16 %v458_v27, %v456_v26 }
  0x41   :  { %1667 = vmatpush1.bf16.msra.mxu1 %v1666_v4  ;;  %v1686_v4 = vpack.c.bf16 %v194_v58, %v192_v55  ;;  %v103_v35 = vld [vmem:[%s4285_s0 + $0x1f8] sm:$0xff]  ;;  %v204_v37 = vld [vmem:[%s4284_s1 + $0x2e0] sm:$0xff]  ;;  %v94_v39 = vld [vmem:[%s4285_s0 + $0x1b0] sm:$0xff]  ;;  %v1952_v45 = vpack.c.bf16 %v463_v34, %v461_v33 }
  0x42   :  { %1923 = vmatpush1.bf16.msra.mxu0 %v1922_v5  ;;  %1669 = vmatprep.subr.bf16.mxu1 %v1668_v6  ;;  %v196_v5 = vld [vmem:[%s4284_s1 + $0x2a0] sm:$0xff]  ;;  %v198_v6 = vld [vmem:[%s4284_s1 + $0x2b0] sm:$0xff]  ;;  %v209_v46 = vld [vmem:[%s4284_s1 + $0x308] sm:$0xff]  ;;  %v1698_v52 = vpack.c.bf16 %v206_v38, %v204_v37 }
  0x43   :  { %1925 = vmatprep.subr.bf16.mxu0 %v1924_v10  ;;  %v452_v10 = vld [vmem:[%s4284_s1 + $0xaa0] sm:$0xff]  ;;  %v211_v47 = vld [vmem:[%s4284_s1 + $0x318] sm:$0xff]  ;;  %v465_v49 = vld [vmem:[%s4284_s1 + $0xb08] sm:$0xff] }
  0x44   :  { %753 = vmatmul.mubr.f32.vlgmr.msra.gmra.mrb[0].mxu1 %v40_v16  ;;  %v77_v16 = vld [vmem:[%s4285_s0 + $0x128] sm:$0xff]  ;;  %v467_v50 = vld [vmem:[%s4284_s1 + $0xb18] sm:$0xff]  ;;  %v208_v55 = vld [vmem:[%s4284_s1 + $0x300] sm:$0xff] }
  0x45   :  { %1671 = vmatpush1.bf16.msra.mxu1 %v1670_v17  ;;  %1109 = vmatmul.mubr.f32.vlgmr.msra.gmra.mrb[0].mxu0 %v48_v18  ;;  %v457_v17 = vld [vmem:[%s4284_s1 + $0xac8] sm:$0xff]  ;;  %v459_v18 = vld [vmem:[%s4284_s1 + $0xad8] sm:$0xff]  ;;  %v1956_v58 = vpack.c.bf16 %v467_v50, %v465_v49  ;;  %v466_v59 = vld [vmem:[%s4284_s1 + $0xb10] sm:$0xff] }
  0x46   :  { %1927 = vmatpush1.bf16.msra.mxu0 %v1926_v19  ;;  %1673 = vmatprep.subr.bf16.mxu1 %v1672_v20  ;;  %v85_v19 = vld [vmem:[%s4285_s0 + $0x168] sm:$0xff]  ;;  %v1690_v20 = vpack.c.bf16 %v198_v6, %v196_v5  ;;  %v1948_v29 = vpack.c.bf16 %v459_v18, %v457_v17  ;;  %v51_v51 = vld [vmem:[%s4285_s0 + $0x58] sm:$0xff]  ;;  %v468_v5 = vld [vmem:[%s4284_s1 + $0xb20] sm:$0xff] }
  0x47   :  { %1929 = vmatprep.subr.bf16.mxu0 %v1928_v24  ;;  %758 = vmatprep.mubr.f32.mxu1 %v59_v0  ;;  %v1946_v24 = vpack.c.bf16 %v454_v11, %v452_v10  ;;  %v213_v60 = vld [vmem:[%s4284_s1 + $0x328] sm:$0xff]  ;;  %v471_v63 = vld [vmem:[%s4284_s1 + $0xb38] sm:$0xff]  ;;  %v216_v15 = vld [vmem:[%s4284_s1 + $0x340] sm:$0xff] }
  0x48   :  { %1114 = vmatprep.mubr.f32.mxu0 %v67_v3  ;;  %759 = vmatmul.mubr.f32.gmra.mrb[2].mxu1 %v58_v7  ;;  %v469_v62 = vld [vmem:[%s4284_s1 + $0xb28] sm:$0xff]  ;;  %v212_v3 = vld [vmem:[%s4284_s1 + $0x320] sm:$0xff]  ;;  %v470_v7 = vld [vmem:[%s4284_s1 + $0xb30] sm:$0xff] }
  0x49   :  { %1675 = vmatpush1.bf16.msra.mxu1 %v1674_v30  ;;  %1115 = vmatmul.mubr.f32.gmra.mrb[2].mxu0 %v66_v12  ;;  %v205_v30 = vld [vmem:[%s4284_s1 + $0x2e8] sm:$0xff]  ;;  %v1960_v6 = vpack.c.bf16 %v471_v63, %v469_v62  ;;  %v475_v11 = vld [vmem:[%s4284_s1 + $0xb58] sm:$0xff]  ;;  %v472_v17 = vld [vmem:[%s4284_s1 + $0xb40] sm:$0xff] }
  0x4a   :  { %1931 = vmatpush1.bf16.msra.mxu0 %v1930_v31  ;;  %1677 = vmatprep.subr.bf16.mxu1 %v1676_v32  ;;  %v207_v31 = vld [vmem:[%s4284_s1 + $0x2f8] sm:$0xff]  ;;  %v473_v10 = vld [vmem:[%s4284_s1 + $0xb48] sm:$0xff]  ;;  %v220_v27 = vld [vmem:[%s4284_s1 + $0x360] sm:$0xff] }
  0x4b   :  { %1933 = vmatprep.subr.bf16.mxu0 %v1932_v36  ;;  %764 = vmatprep.mubr.f32.mxu1 %v77_v16  ;;  %v95_v32 = vld [vmem:[%s4285_s0 + $0x1b8] sm:$0xff]  ;;  %v1694_v36 = vpack.c.bf16 %v202_v22, %v200_v21  ;;  %v1696_v41 = vpack.c.bf16 %v207_v31, %v205_v30  ;;  %v218_v16 = vld [vmem:[%s4284_s1 + $0x350] sm:$0xff]  ;;  %v1964_v18 = vpack.c.bf16 %v475_v11, %v473_v10  ;;  %v477_v22 = vld [vmem:[%s4284_s1 + $0xb68] sm:$0xff] }
  0x4c   :  { %1120 = vmatprep.mubr.f32.mxu0 %v85_v19  ;;  %765 = vmatmul.mubr.f32.gmra.mrb[4].mxu1 %v76_v23  ;;  %v474_v19 = vld [vmem:[%s4284_s1 + $0xb50] sm:$0xff]  ;;  %v223_v21 = vld [vmem:[%s4284_s1 + $0x378] sm:$0xff]  ;;  %v481_v34 = vld [vmem:[%s4284_s1 + $0xb88] sm:$0xff] }
  0x4d   :  { %1679 = vmatpush1.bf16.msra.mxu1 %v1678_v42  ;;  %1121 = vmatmul.mubr.f32.gmra.mrb[4].mxu0 %v84_v28  ;;  %v460_v42 = vld [vmem:[%s4284_s1 + $0xae0] sm:$0xff]  ;;  %v479_v23 = vld [vmem:[%s4284_s1 + $0xb78] sm:$0xff]  ;;  %v222_v28 = vld [vmem:[%s4284_s1 + $0x370] sm:$0xff] }
  0x4e   :  { %1935 = vmatpush1.bf16.msra.mxu0 %v1934_v43  ;;  %1681 = vmatprep.subr.bf16.mxu1 %v1680_v44  ;;  %v462_v43 = vld [vmem:[%s4284_s1 + $0xaf0] sm:$0xff]  ;;  %v1968_v30 = vpack.c.bf16 %v479_v23, %v477_v22  ;;  %v227_v33 = vld [vmem:[%s4284_s1 + $0x398] sm:$0xff]  ;;  %v232_v63 = vld [vmem:[%s4284_s1 + $0x3c0] sm:$0xff] }
  0x4f   :  { %1937 = vmatprep.subr.bf16.mxu0 %v1936_v48  ;;  %770 = vmatprep.mubr.f32.mxu1 %v95_v32  ;;  %v102_v44 = vld [vmem:[%s4285_s0 + $0x1f0] sm:$0xff]  ;;  %v43_v48 = vld [vmem:[%s4285_s0 + $0x18] sm:$0xff]  ;;  %v1954_v53 = vpack.c.bf16 %v462_v43, %v460_v42  ;;  %v225_v32 = vld [vmem:[%s4284_s1 + $0x388] sm:$0xff] }
  0x50   :  { %1126 = vmatprep.mubr.f32.mxu0 %v103_v35  ;;  %771 = vmatmul.mubr.f32.gmra.mrb[6].mxu1 %v94_v39  ;;  %v478_v31 = vld [vmem:[%s4284_s1 + $0xb70] sm:$0xff]  ;;  %v483_v35 = vld [vmem:[%s4284_s1 + $0xb98] sm:$0xff]  ;;  %v1716_v38 = vpack.c.bf16 %v227_v33, %v225_v32  ;;  %v224_v39 = vld [vmem:[%s4284_s1 + $0x380] sm:$0xff] }
  0x51   :  { %1683 = vmatpush1.bf16.msra.mxu1 %v1682_v54  ;;  %1127 = vmatmul.mubr.f32.gmra.mrb[6].mxu0 %v102_v44  ;;  %v1700_v54 = vpack.c.bf16 %v211_v47, %v209_v46  ;;  %v1972_v42 = vpack.c.bf16 %v483_v35, %v481_v34  ;;  %v482_v43 = vld [vmem:[%s4284_s1 + $0xb90] sm:$0xff]  ;;  %v229_v44 = vld [vmem:[%s4284_s1 + $0x3a8] sm:$0xff]  ;;  %v487_v47 = vld [vmem:[%s4284_s1 + $0xbb8] sm:$0xff] }
  0x52   :  { %1939 = vmatpush1.bf16.msra.mxu0 %v1938_v56  ;;  %1685 = vmatprep.subr.bf16.mxu1 %v1684_v57  ;;  %v210_v56 = vld [vmem:[%s4284_s1 + $0x310] sm:$0xff]  ;;  %v464_v57 = vld [vmem:[%s4284_s1 + $0xb00] sm:$0xff]  ;;  %v485_v46 = vld [vmem:[%s4284_s1 + $0xba8] sm:$0xff] }
  0x53   :  { %1941 = vmatprep.subr.bf16.mxu0 %v1940_v61  ;;  %841 = vmatprep.mubr.f32.mxu1 %v43_v48  ;;  %v215_v61 = vld [vmem:[%s4284_s1 + $0x338] sm:$0xff]  ;;  %v1702_v0 = vpack.c.bf16 %v210_v56, %v208_v55  ;;  %v1958_v1 = vpack.c.bf16 %v466_v59, %v464_v57  ;;  %v486_v55 = vld [vmem:[%s4284_s1 + $0xbb0] sm:$0xff]  ;;  %v233_v56 = vld [vmem:[%s4284_s1 + $0x3c8] sm:$0xff] }
  0x54   :  { %1197 = vmatprep.mubr.f32.mxu0 %v51_v51  ;;  %v1704_v2 = vpack.c.bf16 %v215_v61, %v213_v60  ;;  %v228_v51 = vld [vmem:[%s4284_s1 + $0x3a0] sm:$0xff]  ;;  %v235_v57 = vld [vmem:[%s4284_s1 + $0x3d8] sm:$0xff]  ;;  %v42_v32 = vld [vmem:[%s4285_s0 + $0x10] sm:$0xff] }
  0x55   :  { %1687 = vmatpush1.bf16.msra.mxu1 %v1686_v4  ;;  %v214_v4 = vld [vmem:[%s4284_s1 + $0x330] sm:$0xff]  ;;  %v491_v59 = vld [vmem:[%s4284_s1 + $0xbd8] sm:$0xff]  ;;  %v1724_v62 = vpack.c.bf16 %v235_v57, %v233_v56  ;;  %v236_v11 = vld [vmem:[%s4284_s1 + $0x3e0] sm:$0xff] }
  0x56   :  { %1943 = vmatpush1.bf16.msra.mxu0 %v1942_v8  ;;  %1689 = vmatprep.subr.bf16.mxu1 %v1688_v9  ;;  %v217_v8 = vld [vmem:[%s4284_s1 + $0x348] sm:$0xff]  ;;  %v219_v9 = vld [vmem:[%s4284_s1 + $0x358] sm:$0xff]  ;;  %v1706_v12 = vpack.c.bf16 %v214_v4, %v212_v3  ;;  %v490_v3 = vld [vmem:[%s4284_s1 + $0xbd0] sm:$0xff] }
  0x57   :  { %1945 = vmatprep.subr.bf16.mxu0 %v1944_v13  ;;  %v1962_v13 = vpack.c.bf16 %v470_v7, %v468_v5  ;;  %v1708_v14 = vpack.c.bf16 %v219_v9, %v217_v8  ;;  %v237_v4 = vld [vmem:[%s4284_s1 + $0x3e8] sm:$0xff]  ;;  %v239_v5 = vld [vmem:[%s4284_s1 + $0x3f8] sm:$0xff]  ;;  %v240_v23 = vld [vmem:[%s4284_s1 + $0x400] sm:$0xff] }
  0x58   :  { %v495_v7 = vld [vmem:[%s4284_s1 + $0xbf8] sm:$0xff]  ;;  %v1728_v10 = vpack.c.bf16 %v239_v5, %v237_v4  ;;  %v50_v34 = vld [vmem:[%s4285_s0 + $0x50] sm:$0xff] }
  0x59   :  { %1691 = vmatpush1.bf16.msra.mxu1 %v1690_v20  ;;  %v221_v20 = vld [vmem:[%s4284_s1 + $0x368] sm:$0xff]  ;;  %v506_v57 = vld [vmem:[%s4284_s1 + $0xc50] sm:$0xff] }
  0x5a   :  { %1947 = vmatpush1.bf16.msra.mxu0 %v1946_v24  ;;  %1693 = vmatprep.subr.bf16.mxu1 %v1692_v25  ;;  %v1710_v24 = vpack.c.bf16 %v218_v16, %v216_v15  ;;  %v1966_v25 = vpack.c.bf16 %v474_v19, %v472_v17  ;;  %v1712_v26 = vpack.c.bf16 %v223_v21, %v221_v20  ;;  %v494_v15 = vld [vmem:[%s4284_s1 + $0xbf0] sm:$0xff]  ;;  %v241_v16 = vld [vmem:[%s4284_s1 + $0x408] sm:$0xff]  ;;  %v243_v17 = vld [vmem:[%s4284_s1 + $0x418] sm:$0xff] }
  0x5b   :  { %1949 = vmatprep.subr.bf16.mxu0 %v1948_v29  ;;  %v476_v29 = vld [vmem:[%s4284_s1 + $0xb60] sm:$0xff]  ;;  %v499_v19 = vld [vmem:[%s4284_s1 + $0xc18] sm:$0xff]  ;;  %v1732_v22 = vpack.c.bf16 %v243_v17, %v241_v16  ;;  %v254_v5 = vld [vmem:[%s4284_s1 + $0x470] sm:$0xff] }
  0x5c   :  { %v1970_v37 = vpack.c.bf16 %v478_v31, %v476_v29  ;;  %v247_v29 = vld [vmem:[%s4284_s1 + $0x438] sm:$0xff]  ;;  %v256_v16 = vld [vmem:[%s4284_s1 + $0x480] sm:$0xff]  ;;  %v105_v17 = vld [vmem:[%s4285_s0 + $0x208] sm:$0xff] }
  0x5d   :  { %1695 = vmatpush1.bf16.msra.mxu1 %v1694_v36  ;;  %v1714_v36 = vpack.c.bf16 %v222_v28, %v220_v27  ;;  %v498_v27 = vld [vmem:[%s4284_s1 + $0xc10] sm:$0xff]  ;;  %v245_v28 = vld [vmem:[%s4284_s1 + $0x428] sm:$0xff]  ;;  %v503_v31 = vld [vmem:[%s4284_s1 + $0xc38] sm:$0xff] }
  0x5e   :  { %1951 = vmatpush1.bf16.msra.mxu0 %v1950_v40  ;;  %1697 = vmatprep.subr.bf16.mxu1 %v1696_v41  ;;  %v226_v40 = vld [vmem:[%s4284_s1 + $0x390] sm:$0xff]  ;;  %v480_v41 = vld [vmem:[%s4284_s1 + $0xb80] sm:$0xff] }
  0x5f   :  { %1953 = vmatprep.subr.bf16.mxu0 %v1952_v45  ;;  %v231_v45 = vld [vmem:[%s4284_s1 + $0x3b8] sm:$0xff]  ;;  %v1718_v48 = vpack.c.bf16 %v226_v40, %v224_v39  ;;  %v1974_v49 = vpack.c.bf16 %v482_v43, %v480_v41  ;;  %v500_v39 = vld [vmem:[%s4284_s1 + $0xc20] sm:$0xff]  ;;  %v502_v41 = vld [vmem:[%s4284_s1 + $0xc30] sm:$0xff] }
  0x60   :  { %v1720_v50 = vpack.c.bf16 %v231_v45, %v229_v44  ;;  %v251_v43 = vld [vmem:[%s4284_s1 + $0x458] sm:$0xff]  ;;  %v505_v44 = vld [vmem:[%s4284_s1 + $0xc48] sm:$0xff] }
  0x61   :  { %1699 = vmatpush1.bf16.msra.mxu1 %v1698_v52  ;;  %v230_v52 = vld [vmem:[%s4284_s1 + $0x3b0] sm:$0xff]  ;;  %v507_v45 = vld [vmem:[%s4284_s1 + $0xc58] sm:$0xff] }
  0x62   :  { %1955 = vmatpush1.bf16.msra.mxu0 %v1954_v53  ;;  %1701 = vmatprep.subr.bf16.mxu1 %v1700_v54  ;;  %v484_v53 = vld [vmem:[%s4284_s1 + $0xba0] sm:$0xff]  ;;  %v1976_v54 = vpack.c.bf16 %v487_v47, %v485_v46  ;;  %v1722_v60 = vpack.c.bf16 %v230_v52, %v228_v51  ;;  %v61_v46 = vld [vmem:[%s4285_s0 + $0xa8] sm:$0xff]  ;;  %v1994_v51 = vpack.c.bf16 %v502_v41, %v500_v39  ;;  %v518_v39 = vld [vmem:[%s4284_s1 + $0xcb0] sm:$0xff] }
  0x63   :  { %1957 = vmatprep.subr.bf16.mxu0 %v1956_v58  ;;  %v489_v58 = vld [vmem:[%s4284_s1 + $0xbc8] sm:$0xff]  ;;  %v1978_v61 = vpack.c.bf16 %v486_v55, %v484_v53  ;;  %v250_v53 = vld [vmem:[%s4284_s1 + $0x450] sm:$0xff]  ;;  %v68_v55 = vld [vmem:[%s4285_s0 + $0xe0] sm:$0xff]  ;;  %v1996_v56 = vpack.c.bf16 %v507_v45, %v505_v44 }
  0x64   :  { %v267_v41 = vld [vmem:[%s4284_s1 + $0x4d8] sm:$0xff] }
  0x65   :  { %1703 = vmatpush1.bf16.msra.mxu1 %v1702_v0  ;;  %v234_v0 = vld [vmem:[%s4284_s1 + $0x3d0] sm:$0xff] }
  0x66   :  { %1959 = vmatpush1.bf16.msra.mxu0 %v1958_v1  ;;  %1705 = vmatprep.subr.bf16.mxu1 %v1704_v2  ;;  %v488_v1 = vld [vmem:[%s4284_s1 + $0xbc0] sm:$0xff]  ;;  %v1980_v2 = vpack.c.bf16 %v491_v59, %v489_v58  ;;  %v1726_v8 = vpack.c.bf16 %v234_v0, %v232_v63  ;;  %v253_v58 = vld [vmem:[%s4284_s1 + $0x468] sm:$0xff]  ;;  %v255_v59 = vld [vmem:[%s4284_s1 + $0x478] sm:$0xff] }
  0x67   :  { %1961 = vmatprep.subr.bf16.mxu0 %v1960_v6  ;;  %v493_v6 = vld [vmem:[%s4284_s1 + $0xbe8] sm:$0xff]  ;;  %v1982_v9 = vpack.c.bf16 %v490_v3, %v488_v1  ;;  %v252_v0 = vld [vmem:[%s4284_s1 + $0x460] sm:$0xff]  ;;  %v87_v1 = vld [vmem:[%s4285_s0 + $0x178] sm:$0xff]  ;;  %v1744_v4 = vpack.c.bf16 %v255_v59, %v253_v58 }
  0x68   :  { %v268_v59 = vld [vmem:[%s4284_s1 + $0x4e0] sm:$0xff] }
  0x69   :  { %1707 = vmatpush1.bf16.msra.mxu1 %v1706_v12  ;;  %v238_v12 = vld [vmem:[%s4284_s1 + $0x3f0] sm:$0xff] }
  0x6a   :  { %1963 = vmatpush1.bf16.msra.mxu0 %v1962_v13  ;;  %1709 = vmatprep.subr.bf16.mxu1 %v1708_v14  ;;  %v492_v13 = vld [vmem:[%s4284_s1 + $0xbe0] sm:$0xff]  ;;  %v1984_v14 = vpack.c.bf16 %v495_v7, %v493_v6  ;;  %v1730_v20 = vpack.c.bf16 %v238_v12, %v236_v11  ;;  %v86_v7 = vld [vmem:[%s4285_s0 + $0x170] sm:$0xff]  ;;  %v259_v11 = vld [vmem:[%s4284_s1 + $0x498] sm:$0xff] }
  0x6b   :  { %1965 = vmatprep.subr.bf16.mxu0 %v1964_v18  ;;  %v497_v18 = vld [vmem:[%s4284_s1 + $0xc08] sm:$0xff]  ;;  %v1986_v21 = vpack.c.bf16 %v494_v15, %v492_v13  ;;  %v508_v6 = vld [vmem:[%s4284_s1 + $0xc60] sm:$0xff]  ;;  %v515_v13 = vld [vmem:[%s4284_s1 + $0xc98] sm:$0xff]  ;;  %v1746_v15 = vpack.c.bf16 %v254_v5, %v252_v0 }
  0x6c   :  { %v513_v12 = vld [vmem:[%s4284_s1 + $0xc88] sm:$0xff] }
  0x6d   :  { %1711 = vmatpush1.bf16.msra.mxu1 %v1710_v24  ;;  %v242_v24 = vld [vmem:[%s4284_s1 + $0x410] sm:$0xff]  ;;  %v273_v0 = vld [vmem:[%s4284_s1 + $0x508] sm:$0xff] }
  0x6e   :  { %1967 = vmatpush1.bf16.msra.mxu0 %v1966_v25  ;;  %1713 = vmatprep.subr.bf16.mxu1 %v1712_v26  ;;  %v496_v25 = vld [vmem:[%s4284_s1 + $0xc00] sm:$0xff]  ;;  %v1988_v26 = vpack.c.bf16 %v499_v19, %v497_v18  ;;  %v1734_v33 = vpack.c.bf16 %v242_v24, %v240_v23  ;;  %v2004_v24 = vpack.c.bf16 %v515_v13, %v513_v12  ;;  %v277_v12 = vld [vmem:[%s4284_s1 + $0x528] sm:$0xff]  ;;  %v279_v13 = vld [vmem:[%s4284_s1 + $0x538] sm:$0xff] }
  0x6f   :  { %1969 = vmatprep.subr.bf16.mxu0 %v1968_v30  ;;  %v501_v30 = vld [vmem:[%s4284_s1 + $0xc28] sm:$0xff]  ;;  %v1990_v35 = vpack.c.bf16 %v498_v27, %v496_v25  ;;  %v96_v18 = vld [vmem:[%s4285_s0 + $0x1c0] sm:$0xff]  ;;  %v514_v25 = vld [vmem:[%s4284_s1 + $0xc90] sm:$0xff] }
  0x70   :  { %v1992_v40 = vpack.c.bf16 %v503_v31, %v501_v30  ;;  %v104_v23 = vld [vmem:[%s4285_s0 + $0x200] sm:$0xff]  ;;  %v263_v27 = vld [vmem:[%s4284_s1 + $0x4b8] sm:$0xff]  ;;  %v45_v30 = vld [vmem:[%s4285_s0 + $0x28] sm:$0xff] }
  0x71   :  { %1715 = vmatpush1.bf16.msra.mxu1 %v1714_v36  ;;  %v1736_v36 = vpack.c.bf16 %v247_v29, %v245_v28  ;;  %v517_v28 = vld [vmem:[%s4284_s1 + $0xca8] sm:$0xff]  ;;  %v519_v29 = vld [vmem:[%s4284_s1 + $0xcb8] sm:$0xff] }
  0x72   :  { %1971 = vmatpush1.bf16.msra.mxu0 %v1970_v37  ;;  %1717 = vmatprep.subr.bf16.mxu1 %v1716_v38  ;;  %v244_v37 = vld [vmem:[%s4284_s1 + $0x420] sm:$0xff]  ;;  %v246_v38 = vld [vmem:[%s4284_s1 + $0x430] sm:$0xff] }
  0x73   :  { %1973 = vmatprep.subr.bf16.mxu0 %v1972_v42  ;;  %v249_v42 = vld [vmem:[%s4284_s1 + $0x448] sm:$0xff]  ;;  %v1738_v47 = vpack.c.bf16 %v246_v38, %v244_v37  ;;  %v516_v37 = vld [vmem:[%s4284_s1 + $0xca0] sm:$0xff]  ;;  %v2008_v38 = vpack.c.bf16 %v519_v29, %v517_v28 }
  0x74   :  { %v1740_v52 = vpack.c.bf16 %v251_v43, %v249_v42  ;;  %v521_v42 = vld [vmem:[%s4284_s1 + $0xcc8] sm:$0xff]  ;;  %v523_v43 = vld [vmem:[%s4284_s1 + $0xcd8] sm:$0xff]  ;;  %v2010_v45 = vpack.c.bf16 %v518_v39, %v516_v37 }
  0x75   :  { %1719 = vmatpush1.bf16.msra.mxu1 %v1718_v48  ;;  %v248_v48 = vld [vmem:[%s4284_s1 + $0x440] sm:$0xff]  ;;  %v287_v37 = vld [vmem:[%s4284_s1 + $0x578] sm:$0xff] }
  0x76   :  { %1975 = vmatpush1.bf16.msra.mxu0 %v1974_v49  ;;  %1721 = vmatprep.subr.bf16.mxu1 %v1720_v50  ;;  %v69_v49 = vld [vmem:[%s4285_s0 + $0xe8] sm:$0xff]  ;;  %v60_v50 = vld [vmem:[%s4285_s0 + $0xa0] sm:$0xff]  ;;  %v1742_v63 = vpack.c.bf16 %v250_v53, %v248_v48  ;;  %v266_v48 = vld [vmem:[%s4284_s1 + $0x4d0] sm:$0xff] }
  0x77   :  { %1977 = vmatprep.subr.bf16.mxu0 %v1976_v54  ;;  %v504_v54 = vld [vmem:[%s4284_s1 + $0xc40] sm:$0xff]  ;;  %v271_v53 = vld [vmem:[%s4284_s1 + $0x4f8] sm:$0xff] }
  0x78   :  { %v1998_v3 = vpack.c.bf16 %v506_v57, %v504_v54  ;;  %v525_v54 = vld [vmem:[%s4284_s1 + $0xce8] sm:$0xff]  ;;  %v543_v39 = vld [vmem:[%s4284_s1 + $0xd78] sm:$0xff] }
  0x79   :  { %1723 = vmatpush1.bf16.msra.mxu1 %v1722_v60  ;;  %v509_v60 = vld [vmem:[%s4284_s1 + $0xc68] sm:$0xff] }
  0x7a   :  { %1979 = vmatpush1.bf16.msra.mxu0 %v1978_v61  ;;  %1725 = vmatprep.subr.bf16.mxu1 %v1724_v62  ;;  %v511_v61 = vld [vmem:[%s4284_s1 + $0xc78] sm:$0xff] }
  0x7b   :  { %1981 = vmatprep.subr.bf16.mxu0 %v1980_v2  ;;  %v79_v62 = vld [vmem:[%s4285_s0 + $0x138] sm:$0xff]  ;;  %v78_v2 = vld [vmem:[%s4285_s0 + $0x130] sm:$0xff] }
  0x7d   :  { %1727 = vmatpush1.bf16.msra.mxu1 %v1726_v8  ;;  %v2000_v8 = vpack.c.bf16 %v511_v61, %v509_v60  ;;  %v270_v60 = vld [vmem:[%s4284_s1 + $0x4f0] sm:$0xff]  ;;  %v524_v61 = vld [vmem:[%s4284_s1 + $0xce0] sm:$0xff] }
  0x7e   :  { %1983 = vmatpush1.bf16.msra.mxu0 %v1982_v9  ;;  %1729 = vmatprep.subr.bf16.mxu1 %v1728_v10  ;;  %v510_v9 = vld [vmem:[%s4284_s1 + $0xc70] sm:$0xff]  ;;  %v257_v10 = vld [vmem:[%s4284_s1 + $0x488] sm:$0xff] }
  0x7f   :  { %1985 = vmatprep.subr.bf16.mxu0 %v1984_v14  ;;  %v97_v14 = vld [vmem:[%s4285_s0 + $0x1c8] sm:$0xff]  ;;  %v2002_v19 = vpack.c.bf16 %v510_v9, %v508_v6  ;;  %v528_v9 = vld [vmem:[%s4284_s1 + $0xd00] sm:$0xff] }
  0x81   :  { %1731 = vmatpush1.bf16.msra.mxu1 %v1730_v20  ;;  %v1748_v20 = vpack.c.bf16 %v259_v11, %v257_v10  ;;  %v530_v11 = vld [vmem:[%s4284_s1 + $0xd10] sm:$0xff] }
  0x82   :  { %1987 = vmatpush1.bf16.msra.mxu0 %v1986_v21  ;;  %1733 = vmatprep.subr.bf16.mxu1 %v1732_v22  ;;  %v258_v21 = vld [vmem:[%s4284_s1 + $0x490] sm:$0xff]  ;;  %v512_v22 = vld [vmem:[%s4284_s1 + $0xc80] sm:$0xff] }
  0x83   :  { %1989 = vmatprep.subr.bf16.mxu0 %v1988_v26  ;;  %v261_v26 = vld [vmem:[%s4284_s1 + $0x4a8] sm:$0xff]  ;;  %v1750_v31 = vpack.c.bf16 %v258_v21, %v256_v16  ;;  %v532_v21 = vld [vmem:[%s4284_s1 + $0xd20] sm:$0xff] }
  0x84   :  { %842 = vmatmul.mubr.f32.vlgmr.msra.gmra.mrb[0].mxu1 %v42_v32  ;;  %v53_v32 = vld [vmem:[%s4285_s0 + $0x68] sm:$0xff] }
  0x85   :  { %1735 = vmatpush1.bf16.msra.mxu1 %v1734_v33  ;;  %1198 = vmatmul.mubr.f32.vlgmr.msra.gmra.mrb[0].mxu0 %v50_v34  ;;  %v2006_v33 = vpack.c.bf16 %v514_v25, %v512_v22  ;;  %v1752_v34 = vpack.c.bf16 %v263_v27, %v261_v26  ;;  %v283_v25 = vld [vmem:[%s4284_s1 + $0x558] sm:$0xff]  ;;  %v537_v26 = vld [vmem:[%s4284_s1 + $0xd48] sm:$0xff] }
  0x86   :  { %1991 = vmatpush1.bf16.msra.mxu0 %v1990_v35  ;;  %1737 = vmatprep.subr.bf16.mxu1 %v1736_v36  ;;  %v260_v35 = vld [vmem:[%s4284_s1 + $0x4a0] sm:$0xff]  ;;  %v262_v36 = vld [vmem:[%s4284_s1 + $0x4b0] sm:$0xff]  ;;  %v539_v27 = vld [vmem:[%s4284_s1 + $0xd58] sm:$0xff] }
  0x87   :  { %1993 = vmatprep.subr.bf16.mxu0 %v1992_v40  ;;  %847 = vmatprep.mubr.f32.mxu1 %v61_v46  ;;  %v265_v40 = vld [vmem:[%s4284_s1 + $0x4c8] sm:$0xff]  ;;  %v1754_v44 = vpack.c.bf16 %v262_v36, %v260_v35  ;;  %v538_v35 = vld [vmem:[%s4284_s1 + $0xd50] sm:$0xff] }
  0x88   :  { %1203 = vmatprep.mubr.f32.mxu0 %v69_v49  ;;  %848 = vmatmul.mubr.f32.gmra.mrb[2].mxu1 %v60_v50  ;;  %v1756_v46 = vpack.c.bf16 %v267_v41, %v265_v40  ;;  %v520_v49 = vld [vmem:[%s4284_s1 + $0xcc0] sm:$0xff]  ;;  %v2012_v50 = vpack.c.bf16 %v523_v43, %v521_v42  ;;  %v285_v36 = vld [vmem:[%s4284_s1 + $0x568] sm:$0xff] }
  0x89   :  { %1739 = vmatpush1.bf16.msra.mxu1 %v1738_v47  ;;  %1204 = vmatmul.mubr.f32.gmra.mrb[2].mxu0 %v68_v55  ;;  %v264_v47 = vld [vmem:[%s4284_s1 + $0x4c0] sm:$0xff]  ;;  %v527_v55 = vld [vmem:[%s4284_s1 + $0xcf8] sm:$0xff]  ;;  %v1776_v42 = vpack.c.bf16 %v287_v37, %v285_v36 }
  0x8a   :  { %1995 = vmatpush1.bf16.msra.mxu0 %v1994_v51  ;;  %1741 = vmatprep.subr.bf16.mxu1 %v1740_v52  ;;  %v522_v51 = vld [vmem:[%s4284_s1 + $0xcd0] sm:$0xff]  ;;  %v269_v52 = vld [vmem:[%s4284_s1 + $0x4e8] sm:$0xff]  ;;  %v284_v43 = vld [vmem:[%s4284_s1 + $0x560] sm:$0xff] }
  0x8b   :  { %1997 = vmatprep.subr.bf16.mxu0 %v1996_v56  ;;  %853 = vmatprep.mubr.f32.mxu1 %v79_v62  ;;  %v1758_v56 = vpack.c.bf16 %v266_v48, %v264_v47  ;;  %v2014_v57 = vpack.c.bf16 %v522_v51, %v520_v49  ;;  %v1760_v58 = vpack.c.bf16 %v271_v53, %v269_v52  ;;  %v542_v47 = vld [vmem:[%s4284_s1 + $0xd70] sm:$0xff]  ;;  %v289_v48 = vld [vmem:[%s4284_s1 + $0x588] sm:$0xff]  ;;  %v291_v49 = vld [vmem:[%s4284_s1 + $0x598] sm:$0xff] }
  0x8c   :  { %1209 = vmatprep.mubr.f32.mxu0 %v87_v1  ;;  %854 = vmatmul.mubr.f32.gmra.mrb[4].mxu1 %v78_v2  ;;  %v2016_v62 = vpack.c.bf16 %v527_v55, %v525_v54  ;;  %v275_v1 = vld [vmem:[%s4284_s1 + $0x518] sm:$0xff]  ;;  %v529_v2 = vld [vmem:[%s4284_s1 + $0xd08] sm:$0xff]  ;;  %v1780_v54 = vpack.c.bf16 %v291_v49, %v289_v48  ;;  %v288_v55 = vld [vmem:[%s4284_s1 + $0x580] sm:$0xff] }
  0x8d   :  { %1743 = vmatpush1.bf16.msra.mxu1 %v1742_v63  ;;  %1210 = vmatmul.mubr.f32.gmra.mrb[4].mxu0 %v86_v7  ;;  %v526_v63 = vld [vmem:[%s4284_s1 + $0xcf0] sm:$0xff]  ;;  %v1764_v6 = vpack.c.bf16 %v275_v1, %v273_v0  ;;  %v272_v7 = vld [vmem:[%s4284_s1 + $0x500] sm:$0xff]  ;;  %v547_v51 = vld [vmem:[%s4284_s1 + $0xd98] sm:$0xff] }
  0x8e   :  { %1999 = vmatpush1.bf16.msra.mxu0 %v1998_v3  ;;  %1745 = vmatprep.subr.bf16.mxu1 %v1744_v4  ;;  %v531_v3 = vld [vmem:[%s4284_s1 + $0xd18] sm:$0xff]  ;;  %v1762_v4 = vpack.c.bf16 %v270_v60, %v268_v59  ;;  %v2018_v5 = vpack.c.bf16 %v526_v63, %v524_v61  ;;  %v546_v59 = vld [vmem:[%s4284_s1 + $0xd90] sm:$0xff]  ;;  %v293_v60 = vld [vmem:[%s4284_s1 + $0x5a8] sm:$0xff] }
  0x8f   :  { %2001 = vmatprep.subr.bf16.mxu0 %v2000_v8  ;;  %859 = vmatprep.mubr.f32.mxu1 %v97_v14  ;;  %v274_v8 = vld [vmem:[%s4284_s1 + $0x510] sm:$0xff]  ;;  %v2020_v10 = vpack.c.bf16 %v531_v3, %v529_v2  ;;  %v533_v14 = vld [vmem:[%s4284_s1 + $0xd28] sm:$0xff]  ;;  %v295_v61 = vld [vmem:[%s4284_s1 + $0x5b8] sm:$0xff] }
  0x90   :  { %1215 = vmatprep.mubr.f32.mxu0 %v105_v17  ;;  %860 = vmatmul.mubr.f32.gmra.mrb[6].mxu1 %v96_v18  ;;  %v1766_v16 = vpack.c.bf16 %v274_v8, %v272_v7  ;;  %v2022_v17 = vpack.c.bf16 %v530_v11, %v528_v9  ;;  %v1768_v18 = vpack.c.bf16 %v279_v13, %v277_v12  ;;  %v551_v63 = vld [vmem:[%s4284_s1 + $0xdb8] sm:$0xff]  ;;  %v292_v3 = vld [vmem:[%s4284_s1 + $0x5a0] sm:$0xff]  ;;  %v550_v7 = vld [vmem:[%s4284_s1 + $0xdb0] sm:$0xff] }
  0x91   :  { %1747 = vmatpush1.bf16.msra.mxu1 %v1746_v15  ;;  %1216 = vmatmul.mubr.f32.gmra.mrb[6].mxu0 %v104_v23  ;;  %v535_v15 = vld [vmem:[%s4284_s1 + $0xd38] sm:$0xff]  ;;  %v534_v23 = vld [vmem:[%s4284_s1 + $0xd30] sm:$0xff]  ;;  %v1784_v2 = vpack.c.bf16 %v295_v61, %v293_v60  ;;  %v297_v8 = vld [vmem:[%s4284_s1 + $0x5c8] sm:$0xff] }
  0x92   :  { %2003 = vmatpush1.bf16.msra.mxu0 %v2002_v19  ;;  %1749 = vmatprep.subr.bf16.mxu1 %v1748_v20  ;;  %v276_v19 = vld [vmem:[%s4284_s1 + $0x520] sm:$0xff]  ;;  %v278_v20 = vld [vmem:[%s4284_s1 + $0x530] sm:$0xff]  ;;  %v2024_v22 = vpack.c.bf16 %v535_v15, %v533_v14  ;;  %v2026_v29 = vpack.c.bf16 %v534_v23, %v532_v21  ;;  %v299_v9 = vld [vmem:[%s4284_s1 + $0x5d8] sm:$0xff] }
  0x93   :  { %2005 = vmatprep.subr.bf16.mxu0 %v2004_v24  ;;  %930 = vmatprep.mubr.f32.mxu1 %v45_v30  ;;  %v281_v24 = vld [vmem:[%s4284_s1 + $0x548] sm:$0xff]  ;;  %v1770_v28 = vpack.c.bf16 %v278_v20, %v276_v19  ;;  %v555_v11 = vld [vmem:[%s4284_s1 + $0xdd8] sm:$0xff]  ;;  %v1788_v14 = vpack.c.bf16 %v299_v9, %v297_v8  ;;  %v296_v15 = vld [vmem:[%s4284_s1 + $0x5c0] sm:$0xff] }
  0x94   :  { %1286 = vmatprep.mubr.f32.mxu0 %v53_v32  ;;  %v1772_v30 = vpack.c.bf16 %v283_v25, %v281_v24  ;;  %v282_v32 = vld [vmem:[%s4284_s1 + $0x550] sm:$0xff]  ;;  %v301_v20 = vld [vmem:[%s4284_s1 + $0x5e8] sm:$0xff]  ;;  %v303_v21 = vld [vmem:[%s4284_s1 + $0x5f8] sm:$0xff] }
  0x95   :  { %1751 = vmatpush1.bf16.msra.mxu1 %v1750_v31  ;;  %v280_v31 = vld [vmem:[%s4284_s1 + $0x540] sm:$0xff]  ;;  %v554_v19 = vld [vmem:[%s4284_s1 + $0xdd0] sm:$0xff]  ;;  %v559_v23 = vld [vmem:[%s4284_s1 + $0xdf8] sm:$0xff] }
  0x96   :  { %2007 = vmatpush1.bf16.msra.mxu0 %v2006_v33  ;;  %1753 = vmatprep.subr.bf16.mxu1 %v1752_v34  ;;  %v536_v33 = vld [vmem:[%s4284_s1 + $0xd40] sm:$0xff]  ;;  %v2028_v34 = vpack.c.bf16 %v539_v27, %v537_v26  ;;  %v1774_v40 = vpack.c.bf16 %v282_v32, %v280_v31  ;;  %v1792_v26 = vpack.c.bf16 %v303_v21, %v301_v20  ;;  %v558_v31 = vld [vmem:[%s4284_s1 + $0xdf0] sm:$0xff]  ;;  %v305_v32 = vld [vmem:[%s4284_s1 + $0x608] sm:$0xff] }
  0x97   :  { %2009 = vmatprep.subr.bf16.mxu0 %v2008_v38  ;;  %v541_v38 = vld [vmem:[%s4284_s1 + $0xd68] sm:$0xff]  ;;  %v2030_v41 = vpack.c.bf16 %v538_v35, %v536_v33  ;;  %v300_v27 = vld [vmem:[%s4284_s1 + $0x5e0] sm:$0xff]  ;;  %v307_v33 = vld [vmem:[%s4284_s1 + $0x618] sm:$0xff] }
  0x98   :  { %v563_v35 = vld [vmem:[%s4284_s1 + $0xe18] sm:$0xff]  ;;  %v44_v48 = vld [vmem:[%s4285_s0 + $0x20] sm:$0xff]  ;;  %v569_v60 = vld [vmem:[%s4284_s1 + $0xe48] sm:$0xff] }
  0x99   :  { %1755 = vmatpush1.bf16.msra.mxu1 %v1754_v44  ;;  %v286_v44 = vld [vmem:[%s4284_s1 + $0x570] sm:$0xff]  ;;  %v571_v61 = vld [vmem:[%s4284_s1 + $0xe58] sm:$0xff] }
  0x9a   :  { %2011 = vmatpush1.bf16.msra.mxu0 %v2010_v45  ;;  %1757 = vmatprep.subr.bf16.mxu1 %v1756_v46  ;;  %v540_v45 = vld [vmem:[%s4284_s1 + $0xd60] sm:$0xff]  ;;  %v2032_v46 = vpack.c.bf16 %v543_v39, %v541_v38  ;;  %v1778_v52 = vpack.c.bf16 %v286_v44, %v284_v43  ;;  %v1796_v38 = vpack.c.bf16 %v307_v33, %v305_v32  ;;  %v562_v43 = vld [vmem:[%s4284_s1 + $0xe10] sm:$0xff]  ;;  %v309_v44 = vld [vmem:[%s4284_s1 + $0x628] sm:$0xff] }
  0x9b   :  { %2013 = vmatprep.subr.bf16.mxu0 %v2012_v50  ;;  %v545_v50 = vld [vmem:[%s4284_s1 + $0xd88] sm:$0xff]  ;;  %v2034_v53 = vpack.c.bf16 %v542_v47, %v540_v45  ;;  %v304_v39 = vld [vmem:[%s4284_s1 + $0x600] sm:$0xff]  ;;  %v311_v45 = vld [vmem:[%s4284_s1 + $0x638] sm:$0xff]  ;;  %v2060_v8 = vpack.c.bf16 %v571_v61, %v569_v60 }
  0x9c   :  { %v567_v47 = vld [vmem:[%s4284_s1 + $0xe38] sm:$0xff]  ;;  %v570_v9 = vld [vmem:[%s4284_s1 + $0xe50] sm:$0xff]  ;;  %v320_v32 = vld [vmem:[%s4284_s1 + $0x680] sm:$0xff] }
  0x9d   :  { %1759 = vmatpush1.bf16.msra.mxu1 %v1758_v56  ;;  %v290_v56 = vld [vmem:[%s4284_s1 + $0x590] sm:$0xff]  ;;  %v107_v33 = vld [vmem:[%s4285_s0 + $0x218] sm:$0xff] }
  0x9e   :  { %2015 = vmatpush1.bf16.msra.mxu0 %v2014_v57  ;;  %1761 = vmatprep.subr.bf16.mxu1 %v1760_v58  ;;  %v544_v57 = vld [vmem:[%s4284_s1 + $0xd80] sm:$0xff]  ;;  %v2036_v58 = vpack.c.bf16 %v547_v51, %v545_v50  ;;  %v1782_v0 = vpack.c.bf16 %v290_v56, %v288_v55  ;;  %v318_v21 = vld [vmem:[%s4284_s1 + $0x670] sm:$0xff] }
  0x9f   :  { %2017 = vmatprep.subr.bf16.mxu0 %v2016_v62  ;;  %v549_v62 = vld [vmem:[%s4284_s1 + $0xda8] sm:$0xff]  ;;  %v2038_v1 = vpack.c.bf16 %v546_v59, %v544_v57  ;;  %v52_v50 = vld [vmem:[%s4285_s0 + $0x60] sm:$0xff]  ;;  %v566_v57 = vld [vmem:[%s4284_s1 + $0xe30] sm:$0xff] }
  0xa0   :  { %v564_v55 = vld [vmem:[%s4284_s1 + $0xe20] sm:$0xff]  ;;  %v315_v59 = vld [vmem:[%s4284_s1 + $0x658] sm:$0xff] }
  0xa1   :  { %1763 = vmatpush1.bf16.msra.mxu1 %v1762_v4  ;;  %v294_v4 = vld [vmem:[%s4284_s1 + $0x5b0] sm:$0xff] }
  0xa2   :  { %2019 = vmatpush1.bf16.msra.mxu0 %v2018_v5  ;;  %1765 = vmatprep.subr.bf16.mxu1 %v1764_v6  ;;  %v548_v5 = vld [vmem:[%s4284_s1 + $0xda0] sm:$0xff]  ;;  %v2040_v6 = vpack.c.bf16 %v551_v63, %v549_v62  ;;  %v1786_v12 = vpack.c.bf16 %v294_v4, %v292_v3  ;;  %v63_v62 = vld [vmem:[%s4285_s0 + $0xb8] sm:$0xff]  ;;  %v2058_v3 = vpack.c.bf16 %v566_v57, %v564_v55  ;;  %v582_v55 = vld [vmem:[%s4284_s1 + $0xeb0] sm:$0xff] }
  0xa3   :  { %2021 = vmatprep.subr.bf16.mxu0 %v2020_v10  ;;  %v553_v10 = vld [vmem:[%s4284_s1 + $0xdc8] sm:$0xff]  ;;  %v2042_v13 = vpack.c.bf16 %v550_v7, %v548_v5  ;;  %v314_v5 = vld [vmem:[%s4284_s1 + $0x650] sm:$0xff]  ;;  %v331_v57 = vld [vmem:[%s4284_s1 + $0x6d8] sm:$0xff] }
  0xa4   :  { %v70_v7 = vld [vmem:[%s4285_s0 + $0xf0] sm:$0xff] }
  0xa5   :  { %1767 = vmatpush1.bf16.msra.mxu1 %v1766_v16  ;;  %v298_v16 = vld [vmem:[%s4284_s1 + $0x5d0] sm:$0xff] }
  0xa6   :  { %2023 = vmatpush1.bf16.msra.mxu0 %v2022_v17  ;;  %1769 = vmatprep.subr.bf16.mxu1 %v1768_v18  ;;  %v552_v17 = vld [vmem:[%s4284_s1 + $0xdc0] sm:$0xff]  ;;  %v2044_v18 = vpack.c.bf16 %v555_v11, %v553_v10  ;;  %v1790_v24 = vpack.c.bf16 %v298_v16, %v296_v15  ;;  %v317_v10 = vld [vmem:[%s4284_s1 + $0x668] sm:$0xff]  ;;  %v319_v11 = vld [vmem:[%s4284_s1 + $0x678] sm:$0xff] }
  0xa7   :  { %2025 = vmatprep.subr.bf16.mxu0 %v2024_v22  ;;  %v557_v22 = vld [vmem:[%s4284_s1 + $0xde8] sm:$0xff]  ;;  %v2046_v25 = vpack.c.bf16 %v554_v19, %v552_v17  ;;  %v316_v16 = vld [vmem:[%s4284_s1 + $0x660] sm:$0xff]  ;;  %v1808_v20 = vpack.c.bf16 %v319_v11, %v317_v10 }
  0xa8   :  { %v89_v17 = vld [vmem:[%s4285_s0 + $0x188] sm:$0xff]  ;;  %v332_v11 = vld [vmem:[%s4284_s1 + $0x6e0] sm:$0xff] }
  0xa9   :  { %1771 = vmatpush1.bf16.msra.mxu1 %v1770_v28  ;;  %v302_v28 = vld [vmem:[%s4284_s1 + $0x5f0] sm:$0xff] }
  0xaa   :  { %2027 = vmatpush1.bf16.msra.mxu0 %v2026_v29  ;;  %1773 = vmatprep.subr.bf16.mxu1 %v1772_v30  ;;  %v556_v29 = vld [vmem:[%s4284_s1 + $0xde0] sm:$0xff]  ;;  %v2048_v30 = vpack.c.bf16 %v559_v23, %v557_v22  ;;  %v1794_v36 = vpack.c.bf16 %v302_v28, %v300_v27  ;;  %v323_v27 = vld [vmem:[%s4284_s1 + $0x698] sm:$0xff]  ;;  %v577_v28 = vld [vmem:[%s4284_s1 + $0xe88] sm:$0xff] }
  0xab   :  { %2029 = vmatprep.subr.bf16.mxu0 %v2028_v34  ;;  %v561_v34 = vld [vmem:[%s4284_s1 + $0xe08] sm:$0xff]  ;;  %v2050_v37 = vpack.c.bf16 %v558_v31, %v556_v29  ;;  %v572_v22 = vld [vmem:[%s4284_s1 + $0xe60] sm:$0xff]  ;;  %v579_v29 = vld [vmem:[%s4284_s1 + $0xe98] sm:$0xff]  ;;  %v1810_v31 = vpack.c.bf16 %v318_v21, %v316_v16 }
  0xac   :  { %v88_v23 = vld [vmem:[%s4285_s0 + $0x180] sm:$0xff]  ;;  %v337_v16 = vld [vmem:[%s4284_s1 + $0x708] sm:$0xff] }
  0xad   :  { %1775 = vmatpush1.bf16.msra.mxu1 %v1774_v40  ;;  %v306_v40 = vld [vmem:[%s4284_s1 + $0x610] sm:$0xff] }
  0xae   :  { %2031 = vmatpush1.bf16.msra.mxu0 %v2030_v41  ;;  %1777 = vmatprep.subr.bf16.mxu1 %v1776_v42  ;;  %v560_v41 = vld [vmem:[%s4284_s1 + $0xe00] sm:$0xff]  ;;  %v2052_v42 = vpack.c.bf16 %v563_v35, %v561_v34  ;;  %v1798_v49 = vpack.c.bf16 %v306_v40, %v304_v39  ;;  %v98_v34 = vld [vmem:[%s4285_s0 + $0x1d0] sm:$0xff]  ;;  %v2068_v40 = vpack.c.bf16 %v579_v29, %v577_v28  ;;  %v341_v28 = vld [vmem:[%s4284_s1 + $0x728] sm:$0xff] }
  0xaf   :  { %2033 = vmatprep.subr.bf16.mxu0 %v2032_v46  ;;  %v565_v46 = vld [vmem:[%s4284_s1 + $0xe28] sm:$0xff]  ;;  %v2054_v51 = vpack.c.bf16 %v562_v43, %v560_v41  ;;  %v106_v39 = vld [vmem:[%s4285_s0 + $0x210] sm:$0xff]  ;;  %v327_v43 = vld [vmem:[%s4284_s1 + $0x6b8] sm:$0xff] }
  0xb0   :  { %v2056_v56 = vpack.c.bf16 %v567_v47, %v565_v46  ;;  %v578_v41 = vld [vmem:[%s4284_s1 + $0xe90] sm:$0xff]  ;;  %v47_v46 = vld [vmem:[%s4285_s0 + $0x38] sm:$0xff] }
  0xb1   :  { %1779 = vmatpush1.bf16.msra.mxu1 %v1778_v52  ;;  %v1800_v52 = vpack.c.bf16 %v311_v45, %v309_v44  ;;  %v581_v44 = vld [vmem:[%s4284_s1 + $0xea8] sm:$0xff]  ;;  %v583_v45 = vld [vmem:[%s4284_s1 + $0xeb8] sm:$0xff] }
  0xb2   :  { %2035 = vmatpush1.bf16.msra.mxu0 %v2034_v53  ;;  %1781 = vmatprep.subr.bf16.mxu1 %v1780_v54  ;;  %v308_v53 = vld [vmem:[%s4284_s1 + $0x620] sm:$0xff]  ;;  %v310_v54 = vld [vmem:[%s4284_s1 + $0x630] sm:$0xff]  ;;  %v343_v29 = vld [vmem:[%s4284_s1 + $0x738] sm:$0xff] }
  0xb3   :  { %2037 = vmatprep.subr.bf16.mxu0 %v2036_v58  ;;  %v313_v58 = vld [vmem:[%s4284_s1 + $0x648] sm:$0xff]  ;;  %v1802_v63 = vpack.c.bf16 %v310_v54, %v308_v53  ;;  %v580_v53 = vld [vmem:[%s4284_s1 + $0xea0] sm:$0xff]  ;;  %v2072_v54 = vpack.c.bf16 %v583_v45, %v581_v44 }
  0xb4   :  { %v1804_v4 = vpack.c.bf16 %v315_v59, %v313_v58  ;;  %v585_v58 = vld [vmem:[%s4284_s1 + $0xec8] sm:$0xff]  ;;  %v587_v59 = vld [vmem:[%s4284_s1 + $0xed8] sm:$0xff]  ;;  %v2074_v61 = vpack.c.bf16 %v582_v55, %v580_v53 }
  0xb5   :  { %1783 = vmatpush1.bf16.msra.mxu1 %v1782_v0  ;;  %v312_v0 = vld [vmem:[%s4284_s1 + $0x640] sm:$0xff]  ;;  %v351_v53 = vld [vmem:[%s4284_s1 + $0x778] sm:$0xff] }
  0xb6   :  { %2039 = vmatpush1.bf16.msra.mxu0 %v2038_v1  ;;  %1785 = vmatprep.subr.bf16.mxu1 %v1784_v2  ;;  %v71_v1 = vld [vmem:[%s4285_s0 + $0xf8] sm:$0xff]  ;;  %v62_v2 = vld [vmem:[%s4285_s0 + $0xb0] sm:$0xff]  ;;  %v1806_v15 = vpack.c.bf16 %v314_v5, %v312_v0 }
  0xb7   :  { %2041 = vmatprep.subr.bf16.mxu0 %v2040_v6  ;;  %v568_v6 = vld [vmem:[%s4284_s1 + $0xe40] sm:$0xff]  ;;  %v330_v0 = vld [vmem:[%s4284_s1 + $0x6d0] sm:$0xff]  ;;  %v335_v5 = vld [vmem:[%s4284_s1 + $0x6f8] sm:$0xff] }
  0xb8   :  { %v2062_v19 = vpack.c.bf16 %v570_v9, %v568_v6  ;;  %v589_v6 = vld [vmem:[%s4284_s1 + $0xee8] sm:$0xff]  ;;  %v607_v55 = vld [vmem:[%s4284_s1 + $0xf78] sm:$0xff] }
  0xb9   :  { %1787 = vmatpush1.bf16.msra.mxu1 %v1786_v12  ;;  %v573_v12 = vld [vmem:[%s4284_s1 + $0xe68] sm:$0xff] }
  0xba   :  { %2043 = vmatpush1.bf16.msra.mxu0 %v2042_v13  ;;  %1789 = vmatprep.subr.bf16.mxu1 %v1788_v14  ;;  %v575_v13 = vld [vmem:[%s4284_s1 + $0xe78] sm:$0xff]  ;;  %v81_v14 = vld [vmem:[%s4285_s0 + $0x148] sm:$0xff] }
  0xbb   :  { %2045 = vmatprep.subr.bf16.mxu0 %v2044_v18  ;;  %v80_v18 = vld [vmem:[%s4285_s0 + $0x140] sm:$0xff] }
  0xbd   :  { %1791 = vmatpush1.bf16.msra.mxu1 %v1790_v24  ;;  %v2064_v24 = vpack.c.bf16 %v575_v13, %v573_v12  ;;  %v334_v12 = vld [vmem:[%s4284_s1 + $0x6f0] sm:$0xff]  ;;  %v588_v13 = vld [vmem:[%s4284_s1 + $0xee0] sm:$0xff] }
  0xbe   :  { %2047 = vmatpush1.bf16.msra.mxu0 %v2046_v25  ;;  %1793 = vmatprep.subr.bf16.mxu1 %v1792_v26  ;;  %v574_v25 = vld [vmem:[%s4284_s1 + $0xe70] sm:$0xff]  ;;  %v321_v26 = vld [vmem:[%s4284_s1 + $0x688] sm:$0xff] }
  0xbf   :  { %2049 = vmatprep.subr.bf16.mxu0 %v2048_v30  ;;  %v99_v30 = vld [vmem:[%s4285_s0 + $0x1d8] sm:$0xff]  ;;  %v2066_v35 = vpack.c.bf16 %v574_v25, %v572_v22  ;;  %v592_v25 = vld [vmem:[%s4284_s1 + $0xf00] sm:$0xff] }
  0xc1   :  { %1795 = vmatpush1.bf16.msra.mxu1 %v1794_v36  ;;  %v1812_v36 = vpack.c.bf16 %v323_v27, %v321_v26  ;;  %v594_v27 = vld [vmem:[%s4284_s1 + $0xf10] sm:$0xff] }
  0xc2   :  { %2051 = vmatpush1.bf16.msra.mxu0 %v2050_v37  ;;  %1797 = vmatprep.subr.bf16.mxu1 %v1796_v38  ;;  %v322_v37 = vld [vmem:[%s4284_s1 + $0x690] sm:$0xff]  ;;  %v576_v38 = vld [vmem:[%s4284_s1 + $0xe80] sm:$0xff] }
  0xc3   :  { %2053 = vmatprep.subr.bf16.mxu0 %v2052_v42  ;;  %v325_v42 = vld [vmem:[%s4284_s1 + $0x6a8] sm:$0xff]  ;;  %v1814_v47 = vpack.c.bf16 %v322_v37, %v320_v32  ;;  %v596_v37 = vld [vmem:[%s4284_s1 + $0xf20] sm:$0xff] }
  0xc4   :  { %931 = vmatmul.mubr.f32.vlgmr.msra.gmra.mrb[0].mxu1 %v44_v48  ;;  %v55_v48 = vld [vmem:[%s4285_s0 + $0x78] sm:$0xff] }
  0xc5   :  { %1799 = vmatpush1.bf16.msra.mxu1 %v1798_v49  ;;  %1287 = vmatmul.mubr.f32.vlgmr.msra.gmra.mrb[0].mxu0 %v52_v50  ;;  %v2070_v49 = vpack.c.bf16 %v578_v41, %v576_v38  ;;  %v1816_v50 = vpack.c.bf16 %v327_v43, %v325_v42  ;;  %v347_v41 = vld [vmem:[%s4284_s1 + $0x758] sm:$0xff]  ;;  %v601_v42 = vld [vmem:[%s4284_s1 + $0xf48] sm:$0xff] }
  0xc6   :  { %2055 = vmatpush1.bf16.msra.mxu0 %v2054_v51  ;;  %1801 = vmatprep.subr.bf16.mxu1 %v1800_v52  ;;  %v324_v51 = vld [vmem:[%s4284_s1 + $0x6a0] sm:$0xff]  ;;  %v326_v52 = vld [vmem:[%s4284_s1 + $0x6b0] sm:$0xff]  ;;  %v603_v43 = vld [vmem:[%s4284_s1 + $0xf58] sm:$0xff] }
  0xc7   :  { %2057 = vmatprep.subr.bf16.mxu0 %v2056_v56  ;;  %936 = vmatprep.mubr.f32.mxu1 %v63_v62  ;;  %v329_v56 = vld [vmem:[%s4284_s1 + $0x6c8] sm:$0xff]  ;;  %v1818_v60 = vpack.c.bf16 %v326_v52, %v324_v51  ;;  %v602_v51 = vld [vmem:[%s4284_s1 + $0xf50] sm:$0xff] }
  0xc8   :  { %1292 = vmatprep.mubr.f32.mxu0 %v71_v1  ;;  %937 = vmatmul.mubr.f32.gmra.mrb[2].mxu1 %v62_v2  ;;  %v1820_v62 = vpack.c.bf16 %v331_v57, %v329_v56  ;;  %v584_v1 = vld [vmem:[%s4284_s1 + $0xec0] sm:$0xff]  ;;  %v2076_v2 = vpack.c.bf16 %v587_v59, %v585_v58  ;;  %v349_v52 = vld [vmem:[%s4284_s1 + $0x768] sm:$0xff] }
  0xc9   :  { %1803 = vmatpush1.bf16.msra.mxu1 %v1802_v63  ;;  %1293 = vmatmul.mubr.f32.gmra.mrb[2].mxu0 %v70_v7  ;;  %v328_v63 = vld [vmem:[%s4284_s1 + $0x6c0] sm:$0xff]  ;;  %v591_v7 = vld [vmem:[%s4284_s1 + $0xef8] sm:$0xff]  ;;  %v1840_v58 = vpack.c.bf16 %v351_v53, %v349_v52 }
  0xca   :  { %2059 = vmatpush1.bf16.msra.mxu0 %v2058_v3  ;;  %1805 = vmatprep.subr.bf16.mxu1 %v1804_v4  ;;  %v586_v3 = vld [vmem:[%s4284_s1 + $0xed0] sm:$0xff]  ;;  %v333_v4 = vld [vmem:[%s4284_s1 + $0x6e8] sm:$0xff]  ;;  %v348_v59 = vld [vmem:[%s4284_s1 + $0x760] sm:$0xff] }
  0xcb   :  { %2061 = vmatprep.subr.bf16.mxu0 %v2060_v8  ;;  %942 = vmatprep.mubr.f32.mxu1 %v81_v14  ;;  %v1822_v8 = vpack.c.bf16 %v330_v0, %v328_v63  ;;  %v2078_v9 = vpack.c.bf16 %v586_v3, %v584_v1  ;;  %v1824_v10 = vpack.c.bf16 %v335_v5, %v333_v4  ;;  %v606_v63 = vld [vmem:[%s4284_s1 + $0xf70] sm:$0xff]  ;;  %v353_v0 = vld [vmem:[%s4284_s1 + $0x788] sm:$0xff]  ;;  %v355_v1 = vld [vmem:[%s4284_s1 + $0x798] sm:$0xff] }
  0xcc   :  { %1298 = vmatprep.mubr.f32.mxu0 %v89_v17  ;;  %943 = vmatmul.mubr.f32.gmra.mrb[4].mxu1 %v80_v18  ;;  %v2080_v14 = vpack.c.bf16 %v591_v7, %v589_v6  ;;  %v339_v17 = vld [vmem:[%s4284_s1 + $0x718] sm:$0xff]  ;;  %v593_v18 = vld [vmem:[%s4284_s1 + $0xf08] sm:$0xff]  ;;  %v1844_v6 = vpack.c.bf16 %v355_v1, %v353_v0  ;;  %v352_v7 = vld [vmem:[%s4284_s1 + $0x780] sm:$0xff] }
  0xcd   :  { %1807 = vmatpush1.bf16.msra.mxu1 %v1806_v15  ;;  %1299 = vmatmul.mubr.f32.gmra.mrb[4].mxu0 %v88_v23  ;;  %v590_v15 = vld [vmem:[%s4284_s1 + $0xef0] sm:$0xff]  ;;  %v1828_v22 = vpack.c.bf16 %v339_v17, %v337_v16  ;;  %v336_v23 = vld [vmem:[%s4284_s1 + $0x700] sm:$0xff]  ;;  %v611_v3 = vld [vmem:[%s4284_s1 + $0xf98] sm:$0xff] }
  0xce   :  { %2063 = vmatpush1.bf16.msra.mxu0 %v2062_v19  ;;  %1809 = vmatprep.subr.bf16.mxu1 %v1808_v20  ;;  %v595_v19 = vld [vmem:[%s4284_s1 + $0xf18] sm:$0xff]  ;;  %v1826_v20 = vpack.c.bf16 %v334_v12, %v332_v11  ;;  %v2082_v21 = vpack.c.bf16 %v590_v15, %v588_v13  ;;  %v610_v11 = vld [vmem:[%s4284_s1 + $0xf90] sm:$0xff]  ;;  %v357_v12 = vld [vmem:[%s4284_s1 + $0x7a8] sm:$0xff] }
  0xcf   :  { %2065 = vmatprep.subr.bf16.mxu0 %v2064_v24  ;;  %948 = vmatprep.mubr.f32.mxu1 %v99_v30  ;;  %v338_v24 = vld [vmem:[%s4284_s1 + $0x710] sm:$0xff]  ;;  %v2084_v26 = vpack.c.bf16 %v595_v19, %v593_v18  ;;  %v597_v30 = vld [vmem:[%s4284_s1 + $0xf28] sm:$0xff]  ;;  %v359_v13 = vld [vmem:[%s4284_s1 + $0x7b8] sm:$0xff] }
  0xd0   :  { %1304 = vmatprep.mubr.f32.mxu0 %v107_v33  ;;  %949 = vmatmul.mubr.f32.gmra.mrb[6].mxu1 %v98_v34  ;;  %v1830_v32 = vpack.c.bf16 %v338_v24, %v336_v23  ;;  %v2086_v33 = vpack.c.bf16 %v594_v27, %v592_v25  ;;  %v1832_v34 = vpack.c.bf16 %v343_v29, %v341_v28  ;;  %v615_v15 = vld [vmem:[%s4284_s1 + $0xfb8] sm:$0xff]  ;;  %v356_v19 = vld [vmem:[%s4284_s1 + $0x7a0] sm:$0xff]  ;;  %v614_v23 = vld [vmem:[%s4284_s1 + $0xfb0] sm:$0xff] }
  0xd1   :  { %1811 = vmatpush1.bf16.msra.mxu1 %v1810_v31  ;;  %1305 = vmatmul.mubr.f32.gmra.mrb[6].mxu0 %v106_v39  ;;  %v599_v31 = vld [vmem:[%s4284_s1 + $0xf38] sm:$0xff]  ;;  %v598_v39 = vld [vmem:[%s4284_s1 + $0xf30] sm:$0xff]  ;;  %v1848_v18 = vpack.c.bf16 %v359_v13, %v357_v12  ;;  %v361_v24 = vld [vmem:[%s4284_s1 + $0x7c8] sm:$0xff] }
  0xd2   :  { %2067 = vmatpush1.bf16.msra.mxu0 %v2066_v35  ;;  %1813 = vmatprep.subr.bf16.mxu1 %v1812_v36  ;;  %v340_v35 = vld [vmem:[%s4284_s1 + $0x720] sm:$0xff]  ;;  %v342_v36 = vld [vmem:[%s4284_s1 + $0x730] sm:$0xff]  ;;  %v2088_v38 = vpack.c.bf16 %v599_v31, %v597_v30  ;;  %v2090_v45 = vpack.c.bf16 %v598_v39, %v596_v37  ;;  %v363_v25 = vld [vmem:[%s4284_s1 + $0x7d8] sm:$0xff] }
  0xd3   :  { %2069 = vmatprep.subr.bf16.mxu0 %v2068_v40  ;;  %1019 = vmatprep.mubr.f32.mxu1 %v47_v46  ;;  %v345_v40 = vld [vmem:[%s4284_s1 + $0x748] sm:$0xff]  ;;  %v1834_v44 = vpack.c.bf16 %v342_v36, %v340_v35  ;;  %v619_v27 = vld [vmem:[%s4284_s1 + $0xfd8] sm:$0xff]  ;;  %v1852_v30 = vpack.c.bf16 %v363_v25, %v361_v24  ;;  %v360_v31 = vld [vmem:[%s4284_s1 + $0x7c0] sm:$0xff] }
  0xd4   :  { %1375 = vmatprep.mubr.f32.mxu0 %v55_v48  ;;  %v1836_v46 = vpack.c.bf16 %v347_v41, %v345_v40  ;;  %v346_v48 = vld [vmem:[%s4284_s1 + $0x750] sm:$0xff]  ;;  %v365_v36 = vld [vmem:[%s4284_s1 + $0x7e8] sm:$0xff]  ;;  %v367_v37 = vld [vmem:[%s4284_s1 + $0x7f8] sm:$0xff] }
  0xd5   :  { %1815 = vmatpush1.bf16.msra.mxu1 %v1814_v47  ;;  %v344_v47 = vld [vmem:[%s4284_s1 + $0x740] sm:$0xff]  ;;  %v618_v35 = vld [vmem:[%s4284_s1 + $0xfd0] sm:$0xff]  ;;  %v623_v39 = vld [vmem:[%s4284_s1 + $0xff8] sm:$0xff] }
  0xd6   :  { %2071 = vmatpush1.bf16.msra.mxu0 %v2070_v49  ;;  %1817 = vmatprep.subr.bf16.mxu1 %v1816_v50  ;;  %v600_v49 = vld [vmem:[%s4284_s1 + $0xf40] sm:$0xff]  ;;  %v2092_v50 = vpack.c.bf16 %v603_v43, %v601_v42  ;;  %v1838_v56 = vpack.c.bf16 %v346_v48, %v344_v47  ;;  %v1856_v42 = vpack.c.bf16 %v367_v37, %v365_v36  ;;  %v622_v47 = vld [vmem:[%s4284_s1 + $0xff0] sm:$0xff]  ;;  %v625_v48 = vld [vmem:[%s4284_s1 + $0x1008] sm:$0xff] }
  0xd7   :  { %2073 = vmatprep.subr.bf16.mxu0 %v2072_v54  ;;  %v605_v54 = vld [vmem:[%s4284_s1 + $0xf68] sm:$0xff]  ;;  %v2094_v57 = vpack.c.bf16 %v602_v51, %v600_v49  ;;  %v364_v43 = vld [vmem:[%s4284_s1 + $0x7e0] sm:$0xff]  ;;  %v627_v49 = vld [vmem:[%s4284_s1 + $0x1018] sm:$0xff] }
  0xd8   :  { %v2116_v52 = vpack.c.bf16 %v627_v49, %v625_v48  ;;  %v624_v53 = vld [vmem:[%s4284_s1 + $0x1000] sm:$0xff]  ;;  %v73_v0 = vld [vmem:[%s4285_s0 + $0x108] sm:$0xff]  ;;  %v639_v12 = vld [vmem:[%s4284_s1 + $0x1078] sm:$0xff] }
  0xd9   :  { %1819 = vmatpush1.bf16.msra.mxu1 %v1818_v60  ;;  %v350_v60 = vld [vmem:[%s4284_s1 + $0x770] sm:$0xff]  ;;  %v633_v1 = vld [vmem:[%s4284_s1 + $0x1048] sm:$0xff]  ;;  %v108_v25 = vld [vmem:[%s4285_s0 + $0x220] sm:$0xff] }
  0xda   :  { %2075 = vmatpush1.bf16.msra.mxu0 %v2074_v61  ;;  %1821 = vmatprep.subr.bf16.mxu1 %v1820_v62  ;;  %v604_v61 = vld [vmem:[%s4284_s1 + $0xf60] sm:$0xff]  ;;  %v2096_v62 = vpack.c.bf16 %v607_v55, %v605_v54  ;;  %v1842_v4 = vpack.c.bf16 %v350_v60, %v348_v59  ;;  %v626_v54 = vld [vmem:[%s4284_s1 + $0x1010] sm:$0xff]  ;;  %v629_v55 = vld [vmem:[%s4284_s1 + $0x1028] sm:$0xff] }
  0xdb   :  { %2077 = vmatprep.subr.bf16.mxu0 %v2076_v2  ;;  %v609_v2 = vld [vmem:[%s4284_s1 + $0xf88] sm:$0xff]  ;;  %v2098_v5 = vpack.c.bf16 %v606_v63, %v604_v61  ;;  %v54_v59 = vld [vmem:[%s4285_s0 + $0x70] sm:$0xff]  ;;  %v628_v60 = vld [vmem:[%s4284_s1 + $0x1020] sm:$0xff] }
  0xdc   :  { %v630_v61 = vld [vmem:[%s4284_s1 + $0x1030] sm:$0xff]  ;;  %v649_v37 = vld [vmem:[%s4284_s1 + $0x10c8] sm:$0xff] }
  0xdd   :  { %1823 = vmatpush1.bf16.msra.mxu1 %v1822_v8  ;;  %v354_v8 = vld [vmem:[%s4284_s1 + $0x790] sm:$0xff]  ;;  %v657_v49 = vld [vmem:[%s4284_s1 + $0x1108] sm:$0xff] }
  0xde   :  { %2079 = vmatpush1.bf16.msra.mxu0 %v2078_v9  ;;  %1825 = vmatprep.subr.bf16.mxu1 %v1824_v10  ;;  %v608_v9 = vld [vmem:[%s4284_s1 + $0xf80] sm:$0xff]  ;;  %v2100_v10 = vpack.c.bf16 %v611_v3, %v609_v2  ;;  %v1846_v16 = vpack.c.bf16 %v354_v8, %v352_v7  ;;  %v635_v2 = vld [vmem:[%s4284_s1 + $0x1058] sm:$0xff]  ;;  %v634_v7 = vld [vmem:[%s4284_s1 + $0x1050] sm:$0xff] }
  0xdf   :  { %2081 = vmatprep.subr.bf16.mxu0 %v2080_v14  ;;  %v613_v14 = vld [vmem:[%s4284_s1 + $0xfa8] sm:$0xff]  ;;  %v2102_v17 = vpack.c.bf16 %v610_v11, %v608_v9  ;;  %v64_v3 = vld [vmem:[%s4285_s0 + $0xc0] sm:$0xff]  ;;  %v83_v8 = vld [vmem:[%s4285_s0 + $0x158] sm:$0xff]  ;;  %v2124_v9 = vpack.c.bf16 %v635_v2, %v633_v1 }
  0xe0   :  { %v637_v11 = vld [vmem:[%s4284_s1 + $0x1068] sm:$0xff]  ;;  %v82_v13 = vld [vmem:[%s4285_s0 + $0x150] sm:$0xff]  ;;  %v664_v1 = vld [vmem:[%s4284_s1 + $0x1140] sm:$0xff] }
  0xe1   :  { %1827 = vmatpush1.bf16.msra.mxu1 %v1826_v20  ;;  %v358_v20 = vld [vmem:[%s4284_s1 + $0x7b0] sm:$0xff] }
  0xe2   :  { %2083 = vmatpush1.bf16.msra.mxu0 %v2082_v21  ;;  %1829 = vmatprep.subr.bf16.mxu1 %v1828_v22  ;;  %v612_v21 = vld [vmem:[%s4284_s1 + $0xfa0] sm:$0xff]  ;;  %v2104_v22 = vpack.c.bf16 %v615_v15, %v613_v14  ;;  %v1850_v28 = vpack.c.bf16 %v358_v20, %v356_v19  ;;  %v90_v15 = vld [vmem:[%s4285_s0 + $0x190] sm:$0xff]  ;;  %v2128_v19 = vpack.c.bf16 %v639_v12, %v637_v11  ;;  %v641_v20 = vld [vmem:[%s4284_s1 + $0x1088] sm:$0xff] }
  0xe3   :  { %2085 = vmatprep.subr.bf16.mxu0 %v2084_v26  ;;  %v617_v26 = vld [vmem:[%s4284_s1 + $0xfc8] sm:$0xff]  ;;  %v2106_v29 = vpack.c.bf16 %v614_v23, %v612_v21  ;;  %v643_v21 = vld [vmem:[%s4284_s1 + $0x1098] sm:$0xff]  ;;  %v100_v23 = vld [vmem:[%s4285_s0 + $0x1e0] sm:$0xff] }
  0xe4   :  { %v646_v36 = vld [vmem:[%s4284_s1 + $0x10b0] sm:$0xff] }
  0xe5   :  { %1831 = vmatpush1.bf16.msra.mxu1 %v1830_v32  ;;  %v362_v32 = vld [vmem:[%s4284_s1 + $0x7d0] sm:$0xff] }
  0xe6   :  { %2087 = vmatpush1.bf16.msra.mxu0 %v2086_v33  ;;  %1833 = vmatprep.subr.bf16.mxu1 %v1832_v34  ;;  %v616_v33 = vld [vmem:[%s4284_s1 + $0xfc0] sm:$0xff]  ;;  %v2108_v34 = vpack.c.bf16 %v619_v27, %v617_v26  ;;  %v1854_v40 = vpack.c.bf16 %v362_v32, %v360_v31  ;;  %v2132_v26 = vpack.c.bf16 %v643_v21, %v641_v20  ;;  %v57_v31 = vld [vmem:[%s4285_s0 + $0x88] sm:$0xff]  ;;  %v654_v48 = vld [vmem:[%s4284_s1 + $0x10f0] sm:$0xff] }
  0xe7   :  { %2089 = vmatprep.subr.bf16.mxu0 %v2088_v38  ;;  %v621_v38 = vld [vmem:[%s4284_s1 + $0xfe8] sm:$0xff]  ;;  %v2110_v41 = vpack.c.bf16 %v618_v35, %v616_v33  ;;  %v640_v27 = vld [vmem:[%s4284_s1 + $0x1080] sm:$0xff]  ;;  %v666_v2 = vld [vmem:[%s4284_s1 + $0x1150] sm:$0xff] }
  0xe8   :  { %v93_v33 = vld [vmem:[%s4285_s0 + $0x1a8] sm:$0xff]  ;;  %v644_v35 = vld [vmem:[%s4284_s1 + $0x10a0] sm:$0xff]  ;;  %v678_v20 = vld [vmem:[%s4284_s1 + $0x11b0] sm:$0xff] }
  0xe9   :  { %1835 = vmatpush1.bf16.msra.mxu1 %v1834_v44  ;;  %v366_v44 = vld [vmem:[%s4284_s1 + $0x7f0] sm:$0xff]  ;;  %v681_v21 = vld [vmem:[%s4284_s1 + $0x11c8] sm:$0xff] }
  0xea   :  { %2091 = vmatpush1.bf16.msra.mxu0 %v2090_v45  ;;  %1837 = vmatprep.subr.bf16.mxu1 %v1836_v46  ;;  %v620_v45 = vld [vmem:[%s4284_s1 + $0xfe0] sm:$0xff]  ;;  %v2112_v46 = vpack.c.bf16 %v623_v39, %v621_v38  ;;  %v651_v38 = vld [vmem:[%s4284_s1 + $0x10d8] sm:$0xff]  ;;  %v2138_v39 = vpack.c.bf16 %v646_v36, %v644_v35 }
  0xeb   :  { %2093 = vmatprep.subr.bf16.mxu0 %v2092_v50  ;;  %v1858_v50 = vpack.c.bf16 %v366_v44, %v364_v43  ;;  %v2114_v51 = vpack.c.bf16 %v622_v47, %v620_v45  ;;  %v653_v43 = vld [vmem:[%s4284_s1 + $0x10e8] sm:$0xff]  ;;  %v655_v44 = vld [vmem:[%s4284_s1 + $0x10f8] sm:$0xff]  ;;  %v652_v47 = vld [vmem:[%s4284_s1 + $0x10e0] sm:$0xff] }
  0xec   :  { %v56_v35 = vld [vmem:[%s4285_s0 + $0x80] sm:$0xff]  ;;  %v111_v36 = vld [vmem:[%s4285_s0 + $0x238] sm:$0xff] }
  0xed   :  { %1839 = vmatpush1.bf16.msra.mxu1 %v1838_v56  ;;  %v631_v56 = vld [vmem:[%s4284_s1 + $0x1038] sm:$0xff] }
  0xee   :  { %2095 = vmatpush1.bf16.msra.mxu0 %v2094_v57  ;;  %1841 = vmatprep.subr.bf16.mxu1 %v1840_v58  ;;  %v46_v57 = vld [vmem:[%s4285_s0 + $0x30] sm:$0xff]  ;;  %v2118_v58 = vpack.c.bf16 %v626_v54, %v624_v53  ;;  %v2120_v63 = vpack.c.bf16 %v631_v56, %v629_v55  ;;  %v656_v53 = vld [vmem:[%s4284_s1 + $0x1100] sm:$0xff]  ;;  %v661_v55 = vld [vmem:[%s4284_s1 + $0x1128] sm:$0xff] }
  0xef   :  { %2097 = vmatprep.subr.bf16.mxu0 %v2096_v62  ;;  %v65_v62 = vld [vmem:[%s4285_s0 + $0xc8] sm:$0xff]  ;;  %v658_v54 = vld [vmem:[%s4284_s1 + $0x1110] sm:$0xff]  ;;  %v663_v56 = vld [vmem:[%s4284_s1 + $0x1138] sm:$0xff] }
  0xf1   :  { %1843 = vmatpush1.bf16.msra.mxu1 %v1842_v4  ;;  %v2122_v4 = vpack.c.bf16 %v630_v61, %v628_v60  ;;  %v662_v60 = vld [vmem:[%s4284_s1 + $0x1130] sm:$0xff]  ;;  %v665_v61 = vld [vmem:[%s4284_s1 + $0x1148] sm:$0xff] }
  0xf2   :  { %2099 = vmatpush1.bf16.msra.mxu0 %v2098_v5  ;;  %1845 = vmatprep.subr.bf16.mxu1 %v1844_v6  ;;  %v72_v5 = vld [vmem:[%s4285_s0 + $0x100] sm:$0xff] }
  0xf3   :  { %2101 = vmatprep.subr.bf16.mxu0 %v2100_v10  ;;  %v632_v6 = vld [vmem:[%s4284_s1 + $0x1040] sm:$0xff]  ;;  %v91_v10 = vld [vmem:[%s4285_s0 + $0x198] sm:$0xff] }
  0xf4   :  { %v2126_v14 = vpack.c.bf16 %v634_v7, %v632_v6  ;;  %v668_v7 = vld [vmem:[%s4284_s1 + $0x1160] sm:$0xff] }
  0xf5   :  { %1847 = vmatpush1.bf16.msra.mxu1 %v1846_v16  ;;  %v636_v16 = vld [vmem:[%s4284_s1 + $0x1060] sm:$0xff] }
  0xf6   :  { %2103 = vmatpush1.bf16.msra.mxu0 %v2102_v17  ;;  %1849 = vmatprep.subr.bf16.mxu1 %v1848_v18  ;;  %v638_v17 = vld [vmem:[%s4284_s1 + $0x1070] sm:$0xff]  ;;  %v101_v18 = vld [vmem:[%s4285_s0 + $0x1e8] sm:$0xff] }
  0xf7   :  { %2105 = vmatprep.subr.bf16.mxu0 %v2104_v22  ;;  %v109_v22 = vld [vmem:[%s4285_s0 + $0x228] sm:$0xff]  ;;  %v2130_v24 = vpack.c.bf16 %v638_v17, %v636_v16  ;;  %v679_v16 = vld [vmem:[%s4284_s1 + $0x11b8] sm:$0xff] }
  0xf9   :  { %1851 = vmatpush1.bf16.msra.mxu1 %v1850_v28  ;;  %v642_v28 = vld [vmem:[%s4284_s1 + $0x1090] sm:$0xff] }
  0xfa   :  { %2107 = vmatpush1.bf16.msra.mxu0 %v2106_v29  ;;  %1853 = vmatprep.subr.bf16.mxu1 %v1852_v30  ;;  %v645_v29 = vld [vmem:[%s4284_s1 + $0x10a8] sm:$0xff]  ;;  %v647_v30 = vld [vmem:[%s4284_s1 + $0x10b8] sm:$0xff]  ;;  %v2134_v32 = vpack.c.bf16 %v642_v28, %v640_v27 }
  0xfb   :  { %2109 = vmatprep.subr.bf16.mxu0 %v2108_v34  ;;  %v2136_v34 = vpack.c.bf16 %v647_v30, %v645_v29  ;;  %v685_v27 = vld [vmem:[%s4284_s1 + $0x11e8] sm:$0xff]  ;;  %v687_v28 = vld [vmem:[%s4284_s1 + $0x11f8] sm:$0xff] }
  0xfc   :  { %v2176_v30 = vpack.c.bf16 %v687_v28, %v685_v27 }
  0xfd   :  { %1855 = vmatpush1.bf16.msra.mxu1 %v1854_v40  ;;  %v2140_v40 = vpack.c.bf16 %v651_v38, %v649_v37  ;;  %v75_v37 = vld [vmem:[%s4285_s0 + $0x118] sm:$0xff]  ;;  %v110_v38 = vld [vmem:[%s4285_s0 + $0x230] sm:$0xff] }
  0xfe   :  { %2111 = vmatpush1.bf16.msra.mxu0 %v2110_v41  ;;  %1857 = vmatprep.subr.bf16.mxu1 %v1856_v42  ;;  %v648_v41 = vld [vmem:[%s4284_s1 + $0x10c0] sm:$0xff]  ;;  %v650_v42 = vld [vmem:[%s4284_s1 + $0x10d0] sm:$0xff] }
  0xff   :  { %2113 = vmatprep.subr.bf16.mxu0 %v2112_v46  ;;  %v2142_v45 = vpack.c.bf16 %v650_v42, %v648_v41  ;;  %v2144_v46 = vpack.c.bf16 %v655_v44, %v653_v43 }
 0x101   :  { %1859 = vmatpush1.bf16.msra.mxu1 %v1858_v50  ;;  %v659_v50 = vld [vmem:[%s4284_s1 + $0x1118] sm:$0xff] }
 0x102   :  { %2115 = vmatpush1.bf16.msra.mxu0 %v2114_v51  ;;  %2180 = vmatprep.subr.bf16.mxu1 %v2116_v52  ;;  %v2146_v51 = vpack.c.bf16 %v654_v48, %v652_v47 }
 0x103   :  { %2117 = vmatprep.subr.bf16.mxu0 %v2116_v52  ;;  %v2148_v52 = vpack.c.bf16 %v659_v50, %v657_v49 }
 0x104   :  { %1020 = vmatmul.mubr.f32.vlgmr.msra.gmra.mrb[0].mxu1 %v46_v57  ;;  %v2150_v57 = vpack.c.bf16 %v658_v54, %v656_v53 }
 0x105   :  { %1376 = vmatmul.mubr.f32.vlgmr.msra.gmra.mrb[0].mxu0 %v54_v59  ;;  %2196 = vmatpush1.bf16.msra.mxu1 %v2118_v58  ;;  %v660_v59 = vld [vmem:[%s4284_s1 + $0x1120] sm:$0xff] }
 0x106   :  { %2119 = vmatpush1.bf16.msra.mxu0 %v2118_v58  ;;  %1025 = vmatprep.mubr.f32.mxu1 %v65_v62  ;;  %v2152_v58 = vpack.c.bf16 %v663_v56, %v661_v55  ;;  %v667_v62 = vld [vmem:[%s4284_s1 + $0x1158] sm:$0xff]  ;;  %v1518_v56 = vlaneseq }
 0x107   :  { %1381 = vmatprep.mubr.f32.mxu0 %v73_v0  ;;  %2121 = vmatprep.subr.bf16.mxu0 %v2120_v63  ;;  %v2156_v0 = vpack.c.bf16 %v667_v62, %v665_v61  ;;  %v1536_v61 = vld [vmem:[%s4287_s3] sm:$0x3] }
 0x108   :  { %1026 = vmatmul.mubr.f32.gmra.mrb[2].mxu1 %v64_v3  ;;  %2181 = vmatprep.subr.bf16.mxu1 %v2120_v63  ;;  %v2154_v63 = vpack.c.bf16 %v662_v60, %v660_v59  ;;  %v669_v3 = vld [vmem:[%s4284_s1 + $0x1168] sm:$0xff]  ;;  %v1516_v59 = vld [vmem:[%s4286_s2] sm:$0x3] }
 0x109   :  { %1382 = vmatmul.mubr.f32.gmra.mrb[2].mxu0 %v72_v5  ;;  %2197 = vmatpush1.bf16.msra.mxu1 %v2122_v4  ;;  %v2158_v5 = vpack.c.bf16 %v666_v2, %v664_v1  ;;  %v1564_v1 = vld [vmem:[%s4288_s4] sm:$0x3] }
 0x10a   :  { %2123 = vmatpush1.bf16.msra.mxu0 %v2122_v4  ;;  %1031 = vmatprep.mubr.f32.mxu1 %v83_v8  ;;  %v671_v4 = vld [vmem:[%s4284_s1 + $0x1178] sm:$0xff]  ;;  %v670_v8 = vld [vmem:[%s4284_s1 + $0x1170] sm:$0xff] }
 0x10b   :  { %1387 = vmatprep.mubr.f32.mxu0 %v91_v10  ;;  %2125 = vmatprep.subr.bf16.mxu0 %v2124_v9  ;;  %v2160_v6 = vpack.c.bf16 %v671_v4, %v669_v3  ;;  %v675_v10 = vld [vmem:[%s4284_s1 + $0x1198] sm:$0xff]  ;;  %v2162_v11 = vpack.c.bf16 %v670_v8, %v668_v7 }
 0x10c   :  { %1032 = vmatmul.mubr.f32.gmra.mrb[4].mxu1 %v82_v13  ;;  %2182 = vmatprep.subr.bf16.mxu1 %v2124_v9  ;;  %v673_v9 = vld [vmem:[%s4284_s1 + $0x1188] sm:$0xff]  ;;  %v672_v13 = vld [vmem:[%s4284_s1 + $0x1180] sm:$0xff] }
 0x10d   :  { %1388 = vmatmul.mubr.f32.gmra.mrb[4].mxu0 %v90_v15  ;;  %2198 = vmatpush1.bf16.msra.mxu1 %v2126_v14  ;;  %v2164_v12 = vpack.c.bf16 %v675_v10, %v673_v9  ;;  %v677_v15 = vld [vmem:[%s4284_s1 + $0x11a8] sm:$0xff] }
 0x10e   :  { %2127 = vmatpush1.bf16.msra.mxu0 %v2126_v14  ;;  %1037 = vmatprep.mubr.f32.mxu1 %v101_v18  ;;  %v674_v14 = vld [vmem:[%s4284_s1 + $0x1190] sm:$0xff]  ;;  %v2168_v18 = vpack.c.bf16 %v679_v16, %v677_v15 }
 0x10f   :  { %1393 = vmatprep.mubr.f32.mxu0 %v109_v22  ;;  %2129 = vmatprep.subr.bf16.mxu0 %v2128_v19  ;;  %v2166_v17 = vpack.c.bf16 %v674_v14, %v672_v13  ;;  %v683_v22 = vld [vmem:[%s4284_s1 + $0x11d8] sm:$0xff] }
 0x110   :  { %1038 = vmatmul.mubr.f32.gmra.mrb[6].mxu1 %v100_v23  ;;  %2183 = vmatprep.subr.bf16.mxu1 %v2128_v19  ;;  %v676_v19 = vld [vmem:[%s4284_s1 + $0x11a0] sm:$0xff] }
 0x111   :  { %1394 = vmatmul.mubr.f32.gmra.mrb[6].mxu0 %v108_v25  ;;  %2199 = vmatpush1.bf16.msra.mxu1 %v2130_v24  ;;  %v2170_v23 = vpack.c.bf16 %v678_v20, %v676_v19  ;;  %v680_v25 = vld [vmem:[%s4284_s1 + $0x11c0] sm:$0xff] }
 0x112   :  { %2131 = vmatpush1.bf16.msra.mxu0 %v2130_v24  ;;  %2184 = vmatprep.subr.bf16.mxu1 %v2132_v26  ;;  %v2172_v24 = vpack.c.bf16 %v683_v22, %v681_v21 }
 0x113   :  { %2133 = vmatprep.subr.bf16.mxu0 %v2132_v26  ;;  %1464 = vmatprep.mubr.f32.mxu0 %v57_v31  ;;  %v682_v26 = vld [vmem:[%s4284_s1 + $0x11d0] sm:$0xff]  ;;  %v684_v31 = vld [vmem:[%s4284_s1 + $0x11e0] sm:$0xff] }
 0x114   :  { %1476 = vmatprep.mubr.f32.mxu1 %v93_v33  ;;  %v2174_v29 = vpack.c.bf16 %v682_v26, %v680_v25 }
 0x115   :  { %2200 = vmatpush1.bf16.msra.mxu1 %v2134_v32 }
 0x116   :  { %2135 = vmatpush1.bf16.msra.mxu0 %v2134_v32  ;;  %2185 = vmatprep.subr.bf16.mxu1 %v2136_v34  ;;  %v686_v32 = vld [vmem:[%s4284_s1 + $0x11f0] sm:$0xff] }
 0x117   :  { %2137 = vmatprep.subr.bf16.mxu0 %v2136_v34  ;;  %v2178_v33 = vpack.c.bf16 %v686_v32, %v684_v31  ;;  %v92_v34 = vld [vmem:[%s4285_s0 + $0x1a0] sm:$0xff] }
 0x119   :  { %2201 = vmatpush1.bf16.msra.mxu1 %v2138_v39 }
 0x11a   :  { %2139 = vmatpush1.bf16.msra.mxu0 %v2138_v39  ;;  %2186 = vmatprep.subr.bf16.mxu1 %v2140_v40  ;;  %v74_v39 = vld [vmem:[%s4285_s0 + $0x110] sm:$0xff] }
 0x11b   :  { %2141 = vmatprep.subr.bf16.mxu0 %v2140_v40 }
 0x11d   :  { %2202 = vmatpush1.bf16.msra.mxu1 %v2142_v45 }
 0x11e   :  { %2143 = vmatpush1.bf16.msra.mxu0 %v2142_v45  ;;  %2187 = vmatprep.subr.bf16.mxu1 %v2144_v46 }
 0x11f   :  { %2145 = vmatprep.subr.bf16.mxu0 %v2144_v46 }
 0x121   :  { %2203 = vmatpush1.bf16.msra.mxu1 %v2146_v51 }
 0x122   :  { %2147 = vmatpush1.bf16.msra.mxu0 %v2146_v51  ;;  %2188 = vmatprep.subr.bf16.mxu1 %v2148_v52 }
 0x123   :  { %2149 = vmatprep.subr.bf16.mxu0 %v2148_v52 }
 0x125   :  { %2204 = vmatpush1.bf16.msra.mxu1 %v2150_v57 }
 0x126   :  { %2151 = vmatpush1.bf16.msra.mxu0 %v2150_v57  ;;  %2189 = vmatprep.subr.bf16.mxu1 %v2152_v58  ;;  %v1519_v57 = vshrl.u32 %v1518_v56, 7 }
 0x127   :  { %2153 = vmatprep.subr.bf16.mxu0 %v2152_v58 }
 0x128   :  { %v1520_v58 = vsub.s32 0, %v1519_v57  ;;  %v1524_v60 = vsub.s32 1, %v1519_v57 }
 0x129   :  { %2205 = vmatpush1.bf16.msra.mxu1 %v2154_v63 }
 0x12a   :  { %2155 = vmatpush1.bf16.msra.mxu0 %v2154_v63  ;;  %2190 = vmatprep.subr.bf16.mxu1 %v2156_v0  ;;  %v1541_v8 = vrot.slane %v1536_v61, %v1520_v58  ;;  %v1569_v10 = vrot.slane %v1564_v1, %v1520_v58  ;;  %v1573_v14 = vrot.slane %v1564_v1, %v1524_v60 }
 0x12b   :  { %2157 = vmatprep.subr.bf16.mxu0 %v2156_v0  ;;  %v1521_v0 = vrot.slane %v1516_v59, %v1520_v58 }
 0x12d   :  { %2206 = vmatpush1.bf16.msra.mxu1 %v2158_v5 }
 0x12e   :  { %2159 = vmatpush1.bf16.msra.mxu0 %v2158_v5  ;;  %2191 = vmatprep.subr.bf16.mxu1 %v2160_v6 }
 0x12f   :  { %2161 = vmatprep.subr.bf16.mxu0 %v2160_v6  ;;  %v1525_v6 = vrot.slane %v1516_v59, %v1524_v60 }
 0x131   :  { %2207 = vmatpush1.bf16.msra.mxu1 %v2162_v11 }
 0x132   :  { %2163 = vmatpush1.bf16.msra.mxu0 %v2162_v11  ;;  %2192 = vmatprep.subr.bf16.mxu1 %v2164_v12  ;;  %v1545_v11 = vrot.slane %v1536_v61, %v1524_v60 }
 0x133   :  { %2165 = vmatprep.subr.bf16.mxu0 %v2164_v12 }
 0x135   :  { %2208 = vmatpush1.bf16.msra.mxu1 %v2166_v17 }
 0x136   :  { %2167 = vmatpush1.bf16.msra.mxu0 %v2166_v17  ;;  %2193 = vmatprep.subr.bf16.mxu1 %v2168_v18 }
 0x137   :  { %2169 = vmatprep.subr.bf16.mxu0 %v2168_v18 }
 0x139   :  { %2209 = vmatpush1.bf16.msra.mxu1 %v2170_v23 }
 0x13a   :  { %2171 = vmatpush1.bf16.msra.mxu0 %v2170_v23  ;;  %2194 = vmatprep.subr.bf16.mxu1 %v2172_v24 }
 0x13b   :  { %2173 = vmatprep.subr.bf16.mxu0 %v2172_v24 }
 0x13d   :  { %2210 = vmatpush1.bf16.msra.mxu1 %v2174_v29 }
 0x13e   :  { %2175 = vmatpush1.bf16.msra.mxu0 %v2174_v29  ;;  %2195 = vmatprep.subr.bf16.mxu1 %v2176_v30 }
 0x13f   :  { %2177 = vmatprep.subr.bf16.mxu0 %v2176_v30 }
 0x141   :  { %2211 = vmatpush1.bf16.msra.mxu1 %v2178_v33 }
 0x142   :  { %2179 = vmatpush1.bf16.msra.mxu0 %v2178_v33 }
 0x144   :  { %1477 = vmatmul.mubr.f32.vlgmr.msra.gmra.mrb[8].mxu1 %v92_v34 }
 0x145   :  { %1465 = vmatmul.mubr.f32.vlgmr.msra.gmra.mrb[0].mxu0 %v56_v35  ;;  %1482 = vmatprep.mubr.f32.mxu1 %v111_v36 }
 0x146   :  { %1470 = vmatprep.mubr.f32.mxu0 %v75_v37 }
 0x148   :  { %1483 = vmatmul.mubr.f32.gmra.mrb[10].mxu1 %v110_v38 }
 0x149   :  { %1471 = vmatmul.mubr.f32.gmra.mrb[2].mxu0 %v74_v39 }
 0x1d7   :  { %v1021_v40 = vpop.f32.mrb[0].mxu1 }
 0x1d8   :  { %v1023_v41 = vpop.f32.mrb[1].mxu1 }
 0x1db   :  { %v1027_v42 = vpop.f32.mrb[2].mxu1 }
 0x1dc   :  { %v1029_v43 = vpop.f32.mrb[3].mxu1 }
 0x1df   :  { %v1033_v44 = vpop.f32.mrb[4].mxu1 }
 0x1e0   :  { %v1389_v45 = vpop.f32.mrb[4].mxu0  ;;  %v1035_v46 = vpop.f32.mrb[5].mxu1 }
 0x1e1   :  { %v2216_v47 = vadd.f32 %v1389_v45, %v1033_v44  ;;  %v1391_v48 = vpop.f32.mrb[5].mxu0 }
 0x1e2   :  { %v2218_v49 = vadd.f32 %v1391_v48, %v1035_v46 }
 0x1e3   :  { %v1039_v50 = vpop.f32.mrb[6].mxu1 }
 0x1e4   :  { %v1395_v51 = vpop.f32.mrb[6].mxu0  ;;  %v1041_v52 = vpop.f32.mrb[7].mxu1 }
 0x1e5   :  { %v2220_v53 = vadd.f32 %v1395_v51, %v1039_v50  ;;  %v1397_v54 = vpop.f32.mrb[7].mxu0 }
 0x1e6   :  { %v2222_v55 = vadd.f32 %v1397_v54, %v1041_v52 }
 0x217   :  { %v1478_v62 = vpop.f32.mrb[8].mxu1 }
 0x218   :  { %v1466_v63 = vpop.f32.mrb[0].mxu0  ;;  %v2217_v2 = vadd.f32 %v2216_v47, %v1478_v62  ;;  %v1480_v3 = vpop.f32.mrb[9].mxu1 }
 0x219   :  { %v2212_v4 = vadd.f32 %v1466_v63, %v1021_v40  ;;  %v1468_v5 = vpop.f32.mrb[1].mxu0  ;;  %v2219_v7 = vadd.f32 %v2218_v49, %v1480_v3 }
 0x21a   :  { %v2213_v9 = vadd.f32 %v1468_v5, %v1023_v41  ;;  %v1532_v13 = vmul.f32 %v2217_v2, %v1521_v0 }
 0x21b   :  { %v1484_v12 = vpop.f32.mrb[10].mxu1  ;;  %v1528_v18 = vmul.f32 %v2212_v4, %v1521_v0  ;;  %v1533_v19 = vmul.f32 %v2219_v7, %v1525_v6 }
 0x21c   :  { %v1472_v15 = vpop.f32.mrb[2].mxu0  ;;  %v2221_v16 = vadd.f32 %v2220_v53, %v1484_v12  ;;  %v1486_v17 = vpop.f32.mrb[11].mxu1  ;;  %v1552_v23 = vadd.f32 %v1541_v8, %v1532_v13  ;;  %v1529_v24 = vmul.f32 %v2213_v9, %v1525_v6 }
 0x21d   :  { %v2214_v20 = vadd.f32 %v1472_v15, %v1027_v42  ;;  %v1474_v21 = vpop.f32.mrb[3].mxu0  ;;  %v2223_v22 = vadd.f32 %v2222_v55, %v1486_v17  ;;  %v1548_v26 = vadd.f32 %v1541_v8, %v1528_v18  ;;  %v1553_v27 = vadd.f32 %v1545_v11, %v1533_v19 }
 0x21e   :  { %v2215_v25 = vadd.f32 %v1474_v21, %v1029_v43  ;;  %vm1560_vm0 = vcmp.ge.f32.partialorder %v1552_v23, 0.0  ;;  %v1580_v28 = vmul.f32 %v1569_v10, %v1552_v23  ;;  %v1549_v29 = vadd.f32 %v1545_v11, %v1529_v24 }
 0x21f   :  { %v1534_v30 = vmul.f32 %v2221_v16, %v1521_v0  ;;  %vm1556_vm1 = vcmp.ge.f32.partialorder %v1548_v26, 0.0  ;;  %v1576_v31 = vmul.f32 %v1569_v10, %v1548_v26  ;;  %vm1561_vm2 = vcmp.ge.f32.partialorder %v1553_v27, 0.0 }
 0x220   :  { %v1581_v32 = vmul.f32 %v1573_v14, %v1553_v27  ;;  %v1588_v33 = vsel %vm1560_vm0, %v1552_v23, %v1580_v28  ;;  %vm1557_vm3 = vcmp.ge.f32.partialorder %v1549_v29, 0.0  ;;  %v1577_v34 = vmul.f32 %v1573_v14, %v1549_v29 }
 0x221   :  { %v1530_v35 = vmul.f32 %v2214_v20, %v1521_v0  ;;  %v1584_v36 = vsel %vm1556_vm1, %v1548_v26, %v1576_v31  ;;  %1596 = vst [vmem:[%s4289_s5 + $0x20] sm:$0xff] %v1588_v33  ;;  %v1554_v38 = vadd.f32 %v1541_v8, %v1534_v30  ;;  %v1535_v41 = vmul.f32 %v2223_v22, %v1525_v6 }
 0x222   :  { %v1589_v37 = vsel %vm1561_vm2, %v1553_v27, %v1581_v32  ;;  %1592 = vst [vmem:[%s4289_s5] sm:$0xff] %v1584_v36  ;;  %v1585_v39 = vsel %vm1557_vm3, %v1549_v29, %v1577_v34  ;;  %v1531_v43 = vmul.f32 %v2215_v25, %v1525_v6 }
 0x223   :  { %1597 = vst [vmem:[%s4289_s5 + $0x28] sm:$0xff] %v1589_v37  ;;  %v1550_v40 = vadd.f32 %v1541_v8, %v1530_v35  ;;  %1593 = vst [vmem:[%s4289_s5 + $0x8] sm:$0xff] %v1585_v39  ;;  %vm1562_vm4 = vcmp.ge.f32.partialorder %v1554_v38, 0.0  ;;  %v1582_v42 = vmul.f32 %v1569_v10, %v1554_v38  ;;  %v1555_v45 = vadd.f32 %v1545_v11, %v1535_v41 }
 0x224   :  { %v1551_v47 = vadd.f32 %v1545_v11, %v1531_v43 }
 0x225   :  { %vm1558_vm5 = vcmp.ge.f32.partialorder %v1550_v40, 0.0  ;;  %v1578_v44 = vmul.f32 %v1569_v10, %v1550_v40  ;;  %v1590_v46 = vsel %vm1562_vm4, %v1554_v38, %v1582_v42  ;;  %vm1563_vm6 = vcmp.ge.f32.partialorder %v1555_v45, 0.0 }
 0x226   :  { %1598 = vst [vmem:[%s4289_s5 + $0x30] sm:$0xff] %v1590_v46  ;;  %v1583_v49 = vmul.f32 %v1573_v14, %v1555_v45  ;;  %vm1559_vm7 = vcmp.ge.f32.partialorder %v1551_v47, 0.0  ;;  %v1579_v50 = vmul.f32 %v1573_v14, %v1551_v47 }
 0x227   :  { %v1586_v48 = vsel %vm1558_vm5, %v1550_v40, %v1578_v44 }
 0x228   :  { %1594 = vst [vmem:[%s4289_s5 + $0x10] sm:$0xff] %v1586_v48  ;;  %v1591_v51 = vsel %vm1563_vm6, %v1555_v45, %v1583_v49  ;;  %v1587_v52 = vsel %vm1559_vm7, %v1551_v47, %v1579_v50 }
 0x229   :  { %1599 = vst [vmem:[%s4289_s5 + $0x38] sm:$0xff] %v1591_v51  ;;  %1595 = vst [vmem:[%s4289_s5 + $0x18] sm:$0xff] %v1587_v52 }

// kernel: multihead_cnn_forward.10
= control target key start
LH: loop header
LB: loop body
LE: loop exit
PB: predicated region body
PF: predicated region fallthrough
CT: control target
= control target key end

     0   :  { %s12334_s18 = smov 0   ;;  %s12336_s19 = smov 0   ;;  %s14566_s0 = inlined_call_operand.vmem [shape: bf16[8,5120], index: 0, kind: input, shape index: {}]   ;;  %s14567_s1 = inlined_call_operand.vmem [shape: bf16[5120,512], index: 1, kind: input, shape index: {}]   ;;  %s14568_s2 = inlined_call_operand.vmem [shape: f32[1,512], index: 2, kind: input, shape index: {}]   ;;  %s14569_s3 = inlined_call_operand.vmem [shape: f32[1,512], index: 3, kind: input, shape index: {}]   ;;  %s14570_s4 = inlined_call_operand.vmem [shape: f32[1,512], index: 4, kind: input, shape index: {}]   ;;  %s14571_s5 = inlined_call_operand.vmem [shape: f32[8,512], index: 5, kind: output, shape index: {}]  }
   0x1   :  { %s12338_s20 = smov 0   ;;  %s12340_s21 = smov 0  }
   0x2   :  { %s12342_s22 = smov 0  }
   0x3 LB: > { %s27_s23 = sadd.s32 1, %s12297_s21  ;;  %p69_p1 = scmp.ne.s32.totalorder %s12289_s19, %s12285_s18  ;;  %s12301_s22 = sphi %s12342_s22, %s15_s22   ;;  %s12297_s21 = sphi %s12340_s21, %s14575_s21   ;;  %s12293_s20 = sphi %s12338_s20, %s14574_s20   ;;  %s12289_s19 = sphi %s12336_s19, %s14573_s19   ;;  %s12285_s18 = sphi %s12334_s18, %s14572_s18  }
   0x4   : > { %p29_p0 = scmp.ge.s32.totalorder %s27_s23, 2  ;;  %p70_p2 = scmp.eq.s32.totalorder %s12301_s22, 0 }
   0x5   : > { %s62_s25 = sadd.s32 1, %s12289_s19  ;;  %p10528_p5 = scmp.ge.s32.totalorder %s12301_s22, 2 }
   0x6   : > { %s14577_s23 = smov (%p29_p0, %s27_s23), 0  ;;  %p71_p3 = por %p70_p2, %p69_p1 }
   0x7   : > { %s58_s24 = ssub.s32 %s12297_s21, %s14577_s23  ;;  %208 = sbr.rel (%p10528_p5) target bundleno = 338 (0x152), region = 20 }
   0x8   : > { %p60_p4 = scmp.eq.s32.totalorder %s58_s24, 0 }
   0xa   : > { %s12369_s26 = scalar_select %p60_p4, %s12289_s19, %s62_s25  }
   0xe   : > { %211 = sbr.rel (!%p71_p3) target bundleno = 338 (0x152), region = 24  ;;  %s213_s27 = sand.u32 (%p71_p3), 1, %s12289_s19  }
   0xf   : > { %s11219_s28 = sshll.u32 (%p71_p3), %s12297_s21, 3  ;;  %s11220_s29 = smul.u32 (%p71_p3), 5120, %s213_s27 }
  0x10   : > { %s12377_s7 = scalar_lea.vmem (%p71_p3), %s14567_s1, %s11219_s28 }
  0x11   : > { %v1530_v0 = vld [vmem:[%s12377_s7] sm:$0xff] (%p71_p3)  ;;  %v1532_v1 = vld [vmem:[%s12377_s7 + $0x10] sm:$0xff] (%p71_p3)  ;;  %s12385_s8 = scalar_lea.vmem (%p71_p3), [#allocation2], %s11220_s29 }
  0x12   : > { %v1534_v2 = vld [vmem:[%s12377_s7 + $0x20] sm:$0xff] (%p71_p3)  ;;  %v1536_v3 = vld [vmem:[%s12377_s7 + $0x30] sm:$0xff] (%p71_p3)  ;;  %1531 = vst [vmem:[%s12385_s8] sm:$0xff] (%p71_p3), %v1530_v0  ;;  %1533 = vst [vmem:[%s12385_s8 + $0x8] sm:$0xff] (%p71_p3), %v1532_v1 }
  0x13   : > { %v1538_v4 = vld [vmem:[%s12377_s7 + $0x40] sm:$0xff] (%p71_p3)  ;;  %v1540_v5 = vld [vmem:[%s12377_s7 + $0x50] sm:$0xff] (%p71_p3)  ;;  %1535 = vst [vmem:[%s12385_s8 + $0x10] sm:$0xff] (%p71_p3), %v1534_v2  ;;  %1537 = vst [vmem:[%s12385_s8 + $0x18] sm:$0xff] (%p71_p3), %v1536_v3 }
  0x14   : > { %1539 = vst [vmem:[%s12385_s8 + $0x20] sm:$0xff] (%p71_p3), %v1538_v4  ;;  %1541 = vst [vmem:[%s12385_s8 + $0x28] sm:$0xff] (%p71_p3), %v1540_v5  ;;  %v1542_v6 = vld [vmem:[%s12377_s7 + $0x60] sm:$0xff] (%p71_p3)  ;;  %v1544_v7 = vld [vmem:[%s12377_s7 + $0x70] sm:$0xff] (%p71_p3) }
  0x15   : > { %v1546_v8 = vld [vmem:[%s12377_s7 + $0x80] sm:$0xff]  ;;  %1543 = vst [vmem:[%s12385_s8 + $0x30] sm:$0xff] %v1542_v6  ;;  %1545 = vst [vmem:[%s12385_s8 + $0x38] sm:$0xff] %v1544_v7  ;;  %v1548_v9 = vld [vmem:[%s12377_s7 + $0x90] sm:$0xff] }
  0x16   : > { %1547 = vst [vmem:[%s12385_s8 + $0x40] sm:$0xff] %v1546_v8  ;;  %v1550_v10 = vld [vmem:[%s12377_s7 + $0xa0] sm:$0xff]  ;;  %v1552_v11 = vld [vmem:[%s12377_s7 + $0xb0] sm:$0xff]  ;;  %1549 = vst [vmem:[%s12385_s8 + $0x48] sm:$0xff] %v1548_v9 }
  0x17   : > { %1551 = vst [vmem:[%s12385_s8 + $0x50] sm:$0xff] %v1550_v10  ;;  %1553 = vst [vmem:[%s12385_s8 + $0x58] sm:$0xff] %v1552_v11  ;;  %v1554_v12 = vld [vmem:[%s12377_s7 + $0xc0] sm:$0xff]  ;;  %v1556_v13 = vld [vmem:[%s12377_s7 + $0xd0] sm:$0xff] }
  0x18   : > { %v1558_v14 = vld [vmem:[%s12377_s7 + $0xe0] sm:$0xff]  ;;  %1555 = vst [vmem:[%s12385_s8 + $0x60] sm:$0xff] %v1554_v12  ;;  %1557 = vst [vmem:[%s12385_s8 + $0x68] sm:$0xff] %v1556_v13  ;;  %v1560_v15 = vld [vmem:[%s12377_s7 + $0xf0] sm:$0xff] }
  0x19   : > { %1559 = vst [vmem:[%s12385_s8 + $0x70] sm:$0xff] %v1558_v14  ;;  %v1562_v16 = vld [vmem:[%s12377_s7 + $0x100] sm:$0xff]  ;;  %v1564_v17 = vld [vmem:[%s12377_s7 + $0x110] sm:$0xff]  ;;  %1561 = vst [vmem:[%s12385_s8 + $0x78] sm:$0xff] %v1560_v15 }
  0x1a   : > { %1563 = vst [vmem:[%s12385_s8 + $0x80] sm:$0xff] %v1562_v16  ;;  %1565 = vst [vmem:[%s12385_s8 + $0x88] sm:$0xff] %v1564_v17  ;;  %v1566_v18 = vld [vmem:[%s12377_s7 + $0x120] sm:$0xff]  ;;  %v1568_v19 = vld [vmem:[%s12377_s7 + $0x130] sm:$0xff] }
  0x1b   : > { %v1570_v20 = vld [vmem:[%s12377_s7 + $0x140] sm:$0xff]  ;;  %1567 = vst [vmem:[%s12385_s8 + $0x90] sm:$0xff] %v1566_v18  ;;  %1569 = vst [vmem:[%s12385_s8 + $0x98] sm:$0xff] %v1568_v19  ;;  %v1572_v21 = vld [vmem:[%s12377_s7 + $0x150] sm:$0xff] }
  0x1c   : > { %1571 = vst [vmem:[%s12385_s8 + $0xa0] sm:$0xff] %v1570_v20  ;;  %v1574_v22 = vld [vmem:[%s12377_s7 + $0x160] sm:$0xff]  ;;  %v1576_v23 = vld [vmem:[%s12377_s7 + $0x170] sm:$0xff]  ;;  %1573 = vst [vmem:[%s12385_s8 + $0xa8] sm:$0xff] %v1572_v21 }
  0x1d   : > { %1575 = vst [vmem:[%s12385_s8 + $0xb0] sm:$0xff] %v1574_v22  ;;  %1577 = vst [vmem:[%s12385_s8 + $0xb8] sm:$0xff] %v1576_v23  ;;  %v1578_v24 = vld [vmem:[%s12377_s7 + $0x180] sm:$0xff]  ;;  %v1580_v25 = vld [vmem:[%s12377_s7 + $0x190] sm:$0xff] }
  0x1e   : > { %v1582_v26 = vld [vmem:[%s12377_s7 + $0x1a0] sm:$0xff]  ;;  %1579 = vst [vmem:[%s12385_s8 + $0xc0] sm:$0xff] %v1578_v24  ;;  %1581 = vst [vmem:[%s12385_s8 + $0xc8] sm:$0xff] %v1580_v25  ;;  %v1584_v27 = vld [vmem:[%s12377_s7 + $0x1b0] sm:$0xff] }
  0x1f   : > { %1583 = vst [vmem:[%s12385_s8 + $0xd0] sm:$0xff] %v1582_v26  ;;  %v1586_v28 = vld [vmem:[%s12377_s7 + $0x1c0] sm:$0xff]  ;;  %v1588_v29 = vld [vmem:[%s12377_s7 + $0x1d0] sm:$0xff]  ;;  %1585 = vst [vmem:[%s12385_s8 + $0xd8] sm:$0xff] %v1584_v27 }
  0x20   : > { %1587 = vst [vmem:[%s12385_s8 + $0xe0] sm:$0xff] %v1586_v28  ;;  %1589 = vst [vmem:[%s12385_s8 + $0xe8] sm:$0xff] %v1588_v29  ;;  %v1590_v30 = vld [vmem:[%s12377_s7 + $0x1e0] sm:$0xff]  ;;  %v1592_v31 = vld [vmem:[%s12377_s7 + $0x1f0] sm:$0xff] }
  0x21   : > { %v1594_v32 = vld [vmem:[%s12377_s7 + $0x200] sm:$0xff]  ;;  %1591 = vst [vmem:[%s12385_s8 + $0xf0] sm:$0xff] %v1590_v30  ;;  %1593 = vst [vmem:[%s12385_s8 + $0xf8] sm:$0xff] %v1592_v31  ;;  %v1596_v33 = vld [vmem:[%s12377_s7 + $0x210] sm:$0xff] }
  0x22   : > { %1595 = vst [vmem:[%s12385_s8 + $0x100] sm:$0xff] %v1594_v32  ;;  %v1598_v34 = vld [vmem:[%s12377_s7 + $0x220] sm:$0xff]  ;;  %v1600_v35 = vld [vmem:[%s12377_s7 + $0x230] sm:$0xff]  ;;  %1597 = vst [vmem:[%s12385_s8 + $0x108] sm:$0xff] %v1596_v33 }
  0x23   : > { %1599 = vst [vmem:[%s12385_s8 + $0x110] sm:$0xff] %v1598_v34  ;;  %1601 = vst [vmem:[%s12385_s8 + $0x118] sm:$0xff] %v1600_v35  ;;  %v1602_v36 = vld [vmem:[%s12377_s7 + $0x240] sm:$0xff]  ;;  %v1604_v37 = vld [vmem:[%s12377_s7 + $0x250] sm:$0xff] }
  0x24   : > { %v1606_v38 = vld [vmem:[%s12377_s7 + $0x260] sm:$0xff]  ;;  %1603 = vst [vmem:[%s12385_s8 + $0x120] sm:$0xff] %v1602_v36  ;;  %1605 = vst [vmem:[%s12385_s8 + $0x128] sm:$0xff] %v1604_v37  ;;  %v1608_v39 = vld [vmem:[%s12377_s7 + $0x270] sm:$0xff] }
  0x25   : > { %1607 = vst [vmem:[%s12385_s8 + $0x130] sm:$0xff] %v1606_v38  ;;  %v1610_v40 = vld [vmem:[%s12377_s7 + $0x280] sm:$0xff]  ;;  %v1612_v41 = vld [vmem:[%s12377_s7 + $0x290] sm:$0xff]  ;;  %1609 = vst [vmem:[%s12385_s8 + $0x138] sm:$0xff] %v1608_v39 }
  0x26   : > { %1611 = vst [vmem:[%s12385_s8 + $0x140] sm:$0xff] %v1610_v40  ;;  %1613 = vst [vmem:[%s12385_s8 + $0x148] sm:$0xff] %v1612_v41  ;;  %v1614_v42 = vld [vmem:[%s12377_s7 + $0x2a0] sm:$0xff]  ;;  %v1616_v43 = vld [vmem:[%s12377_s7 + $0x2b0] sm:$0xff] }
  0x27   : > { %v1618_v44 = vld [vmem:[%s12377_s7 + $0x2c0] sm:$0xff]  ;;  %1615 = vst [vmem:[%s12385_s8 + $0x150] sm:$0xff] %v1614_v42  ;;  %1617 = vst [vmem:[%s12385_s8 + $0x158] sm:$0xff] %v1616_v43  ;;  %v1620_v45 = vld [vmem:[%s12377_s7 + $0x2d0] sm:$0xff] }
  0x28   : > { %1619 = vst [vmem:[%s12385_s8 + $0x160] sm:$0xff] %v1618_v44  ;;  %v1622_v46 = vld [vmem:[%s12377_s7 + $0x2e0] sm:$0xff]  ;;  %v1624_v47 = vld [vmem:[%s12377_s7 + $0x2f0] sm:$0xff]  ;;  %1621 = vst [vmem:[%s12385_s8 + $0x168] sm:$0xff] %v1620_v45 }
  0x29   : > { %1623 = vst [vmem:[%s12385_s8 + $0x170] sm:$0xff] %v1622_v46  ;;  %1625 = vst [vmem:[%s12385_s8 + $0x178] sm:$0xff] %v1624_v47  ;;  %v1626_v48 = vld [vmem:[%s12377_s7 + $0x300] sm:$0xff]  ;;  %v1628_v49 = vld [vmem:[%s12377_s7 + $0x310] sm:$0xff] }
  0x2a   : > { %v1630_v50 = vld [vmem:[%s12377_s7 + $0x320] sm:$0xff]  ;;  %1627 = vst [vmem:[%s12385_s8 + $0x180] sm:$0xff] %v1626_v48  ;;  %1629 = vst [vmem:[%s12385_s8 + $0x188] sm:$0xff] %v1628_v49  ;;  %v1632_v51 = vld [vmem:[%s12377_s7 + $0x330] sm:$0xff] }
  0x2b   : > { %1631 = vst [vmem:[%s12385_s8 + $0x190] sm:$0xff] %v1630_v50  ;;  %v1634_v52 = vld [vmem:[%s12377_s7 + $0x340] sm:$0xff]  ;;  %v1636_v53 = vld [vmem:[%s12377_s7 + $0x350] sm:$0xff]  ;;  %1633 = vst [vmem:[%s12385_s8 + $0x198] sm:$0xff] %v1632_v51 }
  0x2c   : > { %1635 = vst [vmem:[%s12385_s8 + $0x1a0] sm:$0xff] %v1634_v52  ;;  %1637 = vst [vmem:[%s12385_s8 + $0x1a8] sm:$0xff] %v1636_v53  ;;  %v1638_v54 = vld [vmem:[%s12377_s7 + $0x360] sm:$0xff]  ;;  %v1640_v55 = vld [vmem:[%s12377_s7 + $0x370] sm:$0xff] }
  0x2d   : > { %v1642_v56 = vld [vmem:[%s12377_s7 + $0x380] sm:$0xff]  ;;  %1639 = vst [vmem:[%s12385_s8 + $0x1b0] sm:$0xff] %v1638_v54  ;;  %1641 = vst [vmem:[%s12385_s8 + $0x1b8] sm:$0xff] %v1640_v55  ;;  %v1644_v57 = vld [vmem:[%s12377_s7 + $0x390] sm:$0xff] }
  0x2e   : > { %1643 = vst [vmem:[%s12385_s8 + $0x1c0] sm:$0xff] %v1642_v56  ;;  %v1646_v58 = vld [vmem:[%s12377_s7 + $0x3a0] sm:$0xff]  ;;  %v1648_v59 = vld [vmem:[%s12377_s7 + $0x3b0] sm:$0xff]  ;;  %1645 = vst [vmem:[%s12385_s8 + $0x1c8] sm:$0xff] %v1644_v57 }
  0x2f   : > { %1647 = vst [vmem:[%s12385_s8 + $0x1d0] sm:$0xff] %v1646_v58  ;;  %1649 = vst [vmem:[%s12385_s8 + $0x1d8] sm:$0xff] %v1648_v59  ;;  %v1650_v60 = vld [vmem:[%s12377_s7 + $0x3c0] sm:$0xff]  ;;  %v1652_v61 = vld [vmem:[%s12377_s7 + $0x3d0] sm:$0xff] }
  0x30   : > { %v1654_v62 = vld [vmem:[%s12377_s7 + $0x3e0] sm:$0xff]  ;;  %1651 = vst [vmem:[%s12385_s8 + $0x1e0] sm:$0xff] %v1650_v60  ;;  %1653 = vst [vmem:[%s12385_s8 + $0x1e8] sm:$0xff] %v1652_v61  ;;  %v1656_v63 = vld [vmem:[%s12377_s7 + $0x3f0] sm:$0xff] }
  0x31   : > { %1655 = vst [vmem:[%s12385_s8 + $0x1f0] sm:$0xff] %v1654_v62  ;;  %v1658_v0 = vld [vmem:[%s12377_s7 + $0x400] sm:$0xff]  ;;  %v1660_v1 = vld [vmem:[%s12377_s7 + $0x410] sm:$0xff]  ;;  %1657 = vst [vmem:[%s12385_s8 + $0x1f8] sm:$0xff] %v1656_v63 }
  0x32   : > { %1659 = vst [vmem:[%s12385_s8 + $0x200] sm:$0xff] %v1658_v0  ;;  %1661 = vst [vmem:[%s12385_s8 + $0x208] sm:$0xff] %v1660_v1  ;;  %v1662_v2 = vld [vmem:[%s12377_s7 + $0x420] sm:$0xff]  ;;  %v1664_v3 = vld [vmem:[%s12377_s7 + $0x430] sm:$0xff] }
  0x33   : > { %v1666_v4 = vld [vmem:[%s12377_s7 + $0x440] sm:$0xff]  ;;  %1663 = vst [vmem:[%s12385_s8 + $0x210] sm:$0xff] %v1662_v2  ;;  %1665 = vst [vmem:[%s12385_s8 + $0x218] sm:$0xff] %v1664_v3  ;;  %v1668_v5 = vld [vmem:[%s12377_s7 + $0x450] sm:$0xff] }
  0x34   : > { %1667 = vst [vmem:[%s12385_s8 + $0x220] sm:$0xff] %v1666_v4  ;;  %v1670_v6 = vld [vmem:[%s12377_s7 + $0x460] sm:$0xff]  ;;  %v1672_v7 = vld [vmem:[%s12377_s7 + $0x470] sm:$0xff]  ;;  %1669 = vst [vmem:[%s12385_s8 + $0x228] sm:$0xff] %v1668_v5 }
  0x35   : > { %1671 = vst [vmem:[%s12385_s8 + $0x230] sm:$0xff] %v1670_v6  ;;  %1673 = vst [vmem:[%s12385_s8 + $0x238] sm:$0xff] %v1672_v7  ;;  %v1674_v8 = vld [vmem:[%s12377_s7 + $0x480] sm:$0xff]  ;;  %v1676_v9 = vld [vmem:[%s12377_s7 + $0x490] sm:$0xff] }
  0x36   : > { %v1678_v10 = vld [vmem:[%s12377_s7 + $0x4a0] sm:$0xff]  ;;  %1675 = vst [vmem:[%s12385_s8 + $0x240] sm:$0xff] %v1674_v8  ;;  %1677 = vst [vmem:[%s12385_s8 + $0x248] sm:$0xff] %v1676_v9  ;;  %v1680_v11 = vld [vmem:[%s12377_s7 + $0x4b0] sm:$0xff] }
  0x37   : > { %1679 = vst [vmem:[%s12385_s8 + $0x250] sm:$0xff] %v1678_v10  ;;  %v1682_v12 = vld [vmem:[%s12377_s7 + $0x4c0] sm:$0xff]  ;;  %v1684_v13 = vld [vmem:[%s12377_s7 + $0x4d0] sm:$0xff]  ;;  %1681 = vst [vmem:[%s12385_s8 + $0x258] sm:$0xff] %v1680_v11 }
  0x38   : > { %1683 = vst [vmem:[%s12385_s8 + $0x260] sm:$0xff] %v1682_v12  ;;  %1685 = vst [vmem:[%s12385_s8 + $0x268] sm:$0xff] %v1684_v13  ;;  %v1686_v14 = vld [vmem:[%s12377_s7 + $0x4e0] sm:$0xff]  ;;  %v1688_v15 = vld [vmem:[%s12377_s7 + $0x4f0] sm:$0xff] }
  0x39   : > { %v1690_v16 = vld [vmem:[%s12377_s7 + $0x500] sm:$0xff]  ;;  %1687 = vst [vmem:[%s12385_s8 + $0x270] sm:$0xff] %v1686_v14  ;;  %1689 = vst [vmem:[%s12385_s8 + $0x278] sm:$0xff] %v1688_v15  ;;  %v1692_v17 = vld [vmem:[%s12377_s7 + $0x510] sm:$0xff] }
  0x3a   : > { %1691 = vst [vmem:[%s12385_s8 + $0x280] sm:$0xff] %v1690_v16  ;;  %v1694_v18 = vld [vmem:[%s12377_s7 + $0x520] sm:$0xff]  ;;  %v1696_v19 = vld [vmem:[%s12377_s7 + $0x530] sm:$0xff]  ;;  %1693 = vst [vmem:[%s12385_s8 + $0x288] sm:$0xff] %v1692_v17 }
  0x3b   : > { %1695 = vst [vmem:[%s12385_s8 + $0x290] sm:$0xff] %v1694_v18  ;;  %1697 = vst [vmem:[%s12385_s8 + $0x298] sm:$0xff] %v1696_v19  ;;  %v1698_v20 = vld [vmem:[%s12377_s7 + $0x540] sm:$0xff]  ;;  %v1700_v21 = vld [vmem:[%s12377_s7 + $0x550] sm:$0xff] }
  0x3c   : > { %v1702_v22 = vld [vmem:[%s12377_s7 + $0x560] sm:$0xff]  ;;  %1699 = vst [vmem:[%s12385_s8 + $0x2a0] sm:$0xff] %v1698_v20  ;;  %1701 = vst [vmem:[%s12385_s8 + $0x2a8] sm:$0xff] %v1700_v21  ;;  %v1704_v23 = vld [vmem:[%s12377_s7 + $0x570] sm:$0xff] }
  0x3d   : > { %1703 = vst [vmem:[%s12385_s8 + $0x2b0] sm:$0xff] %v1702_v22  ;;  %v1706_v24 = vld [vmem:[%s12377_s7 + $0x580] sm:$0xff]  ;;  %v1708_v25 = vld [vmem:[%s12377_s7 + $0x590] sm:$0xff]  ;;  %1705 = vst [vmem:[%s12385_s8 + $0x2b8] sm:$0xff] %v1704_v23 }
  0x3e   : > { %1707 = vst [vmem:[%s12385_s8 + $0x2c0] sm:$0xff] %v1706_v24  ;;  %1709 = vst [vmem:[%s12385_s8 + $0x2c8] sm:$0xff] %v1708_v25  ;;  %v1710_v26 = vld [vmem:[%s12377_s7 + $0x5a0] sm:$0xff]  ;;  %v1712_v27 = vld [vmem:[%s12377_s7 + $0x5b0] sm:$0xff] }
  0x3f   : > { %v1714_v28 = vld [vmem:[%s12377_s7 + $0x5c0] sm:$0xff]  ;;  %1711 = vst [vmem:[%s12385_s8 + $0x2d0] sm:$0xff] %v1710_v26  ;;  %1713 = vst [vmem:[%s12385_s8 + $0x2d8] sm:$0xff] %v1712_v27  ;;  %v1716_v29 = vld [vmem:[%s12377_s7 + $0x5d0] sm:$0xff] }
  0x40   : > { %1715 = vst [vmem:[%s12385_s8 + $0x2e0] sm:$0xff] %v1714_v28  ;;  %v1718_v30 = vld [vmem:[%s12377_s7 + $0x5e0] sm:$0xff]  ;;  %v1720_v31 = vld [vmem:[%s12377_s7 + $0x5f0] sm:$0xff]  ;;  %1717 = vst [vmem:[%s12385_s8 + $0x2e8] sm:$0xff] %v1716_v29 }
  0x41   : > { %1719 = vst [vmem:[%s12385_s8 + $0x2f0] sm:$0xff] %v1718_v30  ;;  %1721 = vst [vmem:[%s12385_s8 + $0x2f8] sm:$0xff] %v1720_v31  ;;  %v1722_v32 = vld [vmem:[%s12377_s7 + $0x600] sm:$0xff]  ;;  %v1724_v33 = vld [vmem:[%s12377_s7 + $0x610] sm:$0xff] }
  0x42   : > { %v1726_v34 = vld [vmem:[%s12377_s7 + $0x620] sm:$0xff]  ;;  %1723 = vst [vmem:[%s12385_s8 + $0x300] sm:$0xff] %v1722_v32  ;;  %1725 = vst [vmem:[%s12385_s8 + $0x308] sm:$0xff] %v1724_v33  ;;  %v1728_v35 = vld [vmem:[%s12377_s7 + $0x630] sm:$0xff] }
  0x43   : > { %1727 = vst [vmem:[%s12385_s8 + $0x310] sm:$0xff] %v1726_v34  ;;  %v1730_v36 = vld [vmem:[%s12377_s7 + $0x640] sm:$0xff]  ;;  %v1732_v37 = vld [vmem:[%s12377_s7 + $0x650] sm:$0xff]  ;;  %1729 = vst [vmem:[%s12385_s8 + $0x318] sm:$0xff] %v1728_v35 }
  0x44   : > { %1731 = vst [vmem:[%s12385_s8 + $0x320] sm:$0xff] %v1730_v36  ;;  %1733 = vst [vmem:[%s12385_s8 + $0x328] sm:$0xff] %v1732_v37  ;;  %v1734_v38 = vld [vmem:[%s12377_s7 + $0x660] sm:$0xff]  ;;  %v1736_v39 = vld [vmem:[%s12377_s7 + $0x670] sm:$0xff] }
  0x45   : > { %v1738_v40 = vld [vmem:[%s12377_s7 + $0x680] sm:$0xff]  ;;  %1735 = vst [vmem:[%s12385_s8 + $0x330] sm:$0xff] %v1734_v38  ;;  %1737 = vst [vmem:[%s12385_s8 + $0x338] sm:$0xff] %v1736_v39  ;;  %v1740_v41 = vld [vmem:[%s12377_s7 + $0x690] sm:$0xff] }
  0x46   : > { %1739 = vst [vmem:[%s12385_s8 + $0x340] sm:$0xff] %v1738_v40  ;;  %v1742_v42 = vld [vmem:[%s12377_s7 + $0x6a0] sm:$0xff]  ;;  %v1744_v43 = vld [vmem:[%s12377_s7 + $0x6b0] sm:$0xff]  ;;  %1741 = vst [vmem:[%s12385_s8 + $0x348] sm:$0xff] %v1740_v41 }
  0x47   : > { %1743 = vst [vmem:[%s12385_s8 + $0x350] sm:$0xff] %v1742_v42  ;;  %1745 = vst [vmem:[%s12385_s8 + $0x358] sm:$0xff] %v1744_v43  ;;  %v1746_v44 = vld [vmem:[%s12377_s7 + $0x6c0] sm:$0xff]  ;;  %v1748_v45 = vld [vmem:[%s12377_s7 + $0x6d0] sm:$0xff] }
  0x48   : > { %v1750_v46 = vld [vmem:[%s12377_s7 + $0x6e0] sm:$0xff]  ;;  %1747 = vst [vmem:[%s12385_s8 + $0x360] sm:$0xff] %v1746_v44  ;;  %1749 = vst [vmem:[%s12385_s8 + $0x368] sm:$0xff] %v1748_v45  ;;  %v1752_v47 = vld [vmem:[%s12377_s7 + $0x6f0] sm:$0xff] }
  0x49   : > { %1751 = vst [vmem:[%s12385_s8 + $0x370] sm:$0xff] %v1750_v46  ;;  %v1754_v48 = vld [vmem:[%s12377_s7 + $0x700] sm:$0xff]  ;;  %v1756_v49 = vld [vmem:[%s12377_s7 + $0x710] sm:$0xff]  ;;  %1753 = vst [vmem:[%s12385_s8 + $0x378] sm:$0xff] %v1752_v47 }
  0x4a   : > { %1755 = vst [vmem:[%s12385_s8 + $0x380] sm:$0xff] %v1754_v48  ;;  %1757 = vst [vmem:[%s12385_s8 + $0x388] sm:$0xff] %v1756_v49  ;;  %v1758_v50 = vld [vmem:[%s12377_s7 + $0x720] sm:$0xff]  ;;  %v1760_v51 = vld [vmem:[%s12377_s7 + $0x730] sm:$0xff] }
  0x4b   : > { %v1762_v52 = vld [vmem:[%s12377_s7 + $0x740] sm:$0xff]  ;;  %1759 = vst [vmem:[%s12385_s8 + $0x390] sm:$0xff] %v1758_v50  ;;  %1761 = vst [vmem:[%s12385_s8 + $0x398] sm:$0xff] %v1760_v51  ;;  %v1764_v53 = vld [vmem:[%s12377_s7 + $0x750] sm:$0xff] }
  0x4c   : > { %1763 = vst [vmem:[%s12385_s8 + $0x3a0] sm:$0xff] %v1762_v52  ;;  %v1766_v54 = vld [vmem:[%s12377_s7 + $0x760] sm:$0xff]  ;;  %v1768_v55 = vld [vmem:[%s12377_s7 + $0x770] sm:$0xff]  ;;  %1765 = vst [vmem:[%s12385_s8 + $0x3a8] sm:$0xff] %v1764_v53 }
  0x4d   : > { %1767 = vst [vmem:[%s12385_s8 + $0x3b0] sm:$0xff] %v1766_v54  ;;  %1769 = vst [vmem:[%s12385_s8 + $0x3b8] sm:$0xff] %v1768_v55  ;;  %v1770_v56 = vld [vmem:[%s12377_s7 + $0x780] sm:$0xff]  ;;  %v1772_v57 = vld [vmem:[%s12377_s7 + $0x790] sm:$0xff] }
  0x4e   : > { %v1774_v58 = vld [vmem:[%s12377_s7 + $0x7a0] sm:$0xff]  ;;  %1771 = vst [vmem:[%s12385_s8 + $0x3c0] sm:$0xff] %v1770_v56  ;;  %1773 = vst [vmem:[%s12385_s8 + $0x3c8] sm:$0xff] %v1772_v57  ;;  %v1776_v59 = vld [vmem:[%s12377_s7 + $0x7b0] sm:$0xff] }
  0x4f   : > { %1775 = vst [vmem:[%s12385_s8 + $0x3d0] sm:$0xff] %v1774_v58  ;;  %v1778_v60 = vld [vmem:[%s12377_s7 + $0x7c0] sm:$0xff]  ;;  %v1780_v61 = vld [vmem:[%s12377_s7 + $0x7d0] sm:$0xff]  ;;  %1777 = vst [vmem:[%s12385_s8 + $0x3d8] sm:$0xff] %v1776_v59 }
  0x50   : > { %1779 = vst [vmem:[%s12385_s8 + $0x3e0] sm:$0xff] %v1778_v60  ;;  %1781 = vst [vmem:[%s12385_s8 + $0x3e8] sm:$0xff] %v1780_v61  ;;  %v1782_v62 = vld [vmem:[%s12377_s7 + $0x7e0] sm:$0xff]  ;;  %v1784_v63 = vld [vmem:[%s12377_s7 + $0x7f0] sm:$0xff] }
  0x51   : > { %v1786_v0 = vld [vmem:[%s12377_s7 + $0x800] sm:$0xff]  ;;  %1783 = vst [vmem:[%s12385_s8 + $0x3f0] sm:$0xff] %v1782_v62  ;;  %1785 = vst [vmem:[%s12385_s8 + $0x3f8] sm:$0xff] %v1784_v63  ;;  %v1788_v1 = vld [vmem:[%s12377_s7 + $0x810] sm:$0xff] }
  0x52   : > { %1787 = vst [vmem:[%s12385_s8 + $0x400] sm:$0xff] %v1786_v0  ;;  %v1790_v2 = vld [vmem:[%s12377_s7 + $0x820] sm:$0xff]  ;;  %v1792_v3 = vld [vmem:[%s12377_s7 + $0x830] sm:$0xff]  ;;  %1789 = vst [vmem:[%s12385_s8 + $0x408] sm:$0xff] %v1788_v1 }
  0x53   : > { %1791 = vst [vmem:[%s12385_s8 + $0x410] sm:$0xff] %v1790_v2  ;;  %1793 = vst [vmem:[%s12385_s8 + $0x418] sm:$0xff] %v1792_v3  ;;  %v1794_v4 = vld [vmem:[%s12377_s7 + $0x840] sm:$0xff]  ;;  %v1796_v5 = vld [vmem:[%s12377_s7 + $0x850] sm:$0xff] }
  0x54   : > { %v1798_v6 = vld [vmem:[%s12377_s7 + $0x860] sm:$0xff]  ;;  %1795 = vst [vmem:[%s12385_s8 + $0x420] sm:$0xff] %v1794_v4  ;;  %1797 = vst [vmem:[%s12385_s8 + $0x428] sm:$0xff] %v1796_v5  ;;  %v1800_v7 = vld [vmem:[%s12377_s7 + $0x870] sm:$0xff] }
  0x55   : > { %1799 = vst [vmem:[%s12385_s8 + $0x430] sm:$0xff] %v1798_v6  ;;  %v1802_v8 = vld [vmem:[%s12377_s7 + $0x880] sm:$0xff]  ;;  %v1804_v9 = vld [vmem:[%s12377_s7 + $0x890] sm:$0xff]  ;;  %1801 = vst [vmem:[%s12385_s8 + $0x438] sm:$0xff] %v1800_v7 }
  0x56   : > { %1803 = vst [vmem:[%s12385_s8 + $0x440] sm:$0xff] %v1802_v8  ;;  %1805 = vst [vmem:[%s12385_s8 + $0x448] sm:$0xff] %v1804_v9  ;;  %v1806_v10 = vld [vmem:[%s12377_s7 + $0x8a0] sm:$0xff]  ;;  %v1808_v11 = vld [vmem:[%s12377_s7 + $0x8b0] sm:$0xff] }
  0x57   : > { %v1810_v12 = vld [vmem:[%s12377_s7 + $0x8c0] sm:$0xff]  ;;  %1807 = vst [vmem:[%s12385_s8 + $0x450] sm:$0xff] %v1806_v10  ;;  %1809 = vst [vmem:[%s12385_s8 + $0x458] sm:$0xff] %v1808_v11  ;;  %v1812_v13 = vld [vmem:[%s12377_s7 + $0x8d0] sm:$0xff] }
  0x58   : > { %1811 = vst [vmem:[%s12385_s8 + $0x460] sm:$0xff] %v1810_v12  ;;  %v1814_v14 = vld [vmem:[%s12377_s7 + $0x8e0] sm:$0xff]  ;;  %v1816_v15 = vld [vmem:[%s12377_s7 + $0x8f0] sm:$0xff]  ;;  %1813 = vst [vmem:[%s12385_s8 + $0x468] sm:$0xff] %v1812_v13 }
  0x59   : > { %1815 = vst [vmem:[%s12385_s8 + $0x470] sm:$0xff] %v1814_v14  ;;  %1817 = vst [vmem:[%s12385_s8 + $0x478] sm:$0xff] %v1816_v15  ;;  %v1818_v16 = vld [vmem:[%s12377_s7 + $0x900] sm:$0xff]  ;;  %v1820_v17 = vld [vmem:[%s12377_s7 + $0x910] sm:$0xff] }
  0x5a   : > { %v1822_v18 = vld [vmem:[%s12377_s7 + $0x920] sm:$0xff]  ;;  %1819 = vst [vmem:[%s12385_s8 + $0x480] sm:$0xff] %v1818_v16  ;;  %1821 = vst [vmem:[%s12385_s8 + $0x488] sm:$0xff] %v1820_v17  ;;  %v1824_v19 = vld [vmem:[%s12377_s7 + $0x930] sm:$0xff] }
  0x5b   : > { %1823 = vst [vmem:[%s12385_s8 + $0x490] sm:$0xff] %v1822_v18  ;;  %v1826_v20 = vld [vmem:[%s12377_s7 + $0x940] sm:$0xff]  ;;  %v1828_v21 = vld [vmem:[%s12377_s7 + $0x950] sm:$0xff]  ;;  %1825 = vst [vmem:[%s12385_s8 + $0x498] sm:$0xff] %v1824_v19 }
  0x5c   : > { %1827 = vst [vmem:[%s12385_s8 + $0x4a0] sm:$0xff] %v1826_v20  ;;  %1829 = vst [vmem:[%s12385_s8 + $0x4a8] sm:$0xff] %v1828_v21  ;;  %v1830_v22 = vld [vmem:[%s12377_s7 + $0x960] sm:$0xff]  ;;  %v1832_v23 = vld [vmem:[%s12377_s7 + $0x970] sm:$0xff] }
  0x5d   : > { %v1834_v24 = vld [vmem:[%s12377_s7 + $0x980] sm:$0xff]  ;;  %1831 = vst [vmem:[%s12385_s8 + $0x4b0] sm:$0xff] %v1830_v22  ;;  %1833 = vst [vmem:[%s12385_s8 + $0x4b8] sm:$0xff] %v1832_v23  ;;  %v1836_v25 = vld [vmem:[%s12377_s7 + $0x990] sm:$0xff] }
  0x5e   : > { %1835 = vst [vmem:[%s12385_s8 + $0x4c0] sm:$0xff] %v1834_v24  ;;  %v1838_v26 = vld [vmem:[%s12377_s7 + $0x9a0] sm:$0xff]  ;;  %v1840_v27 = vld [vmem:[%s12377_s7 + $0x9b0] sm:$0xff]  ;;  %1837 = vst [vmem:[%s12385_s8 + $0x4c8] sm:$0xff] %v1836_v25 }
  0x5f   : > { %1839 = vst [vmem:[%s12385_s8 + $0x4d0] sm:$0xff] %v1838_v26  ;;  %1841 = vst [vmem:[%s12385_s8 + $0x4d8] sm:$0xff] %v1840_v27  ;;  %v1842_v28 = vld [vmem:[%s12377_s7 + $0x9c0] sm:$0xff]  ;;  %v1844_v29 = vld [vmem:[%s12377_s7 + $0x9d0] sm:$0xff] }
  0x60   : > { %v1846_v30 = vld [vmem:[%s12377_s7 + $0x9e0] sm:$0xff]  ;;  %1843 = vst [vmem:[%s12385_s8 + $0x4e0] sm:$0xff] %v1842_v28  ;;  %1845 = vst [vmem:[%s12385_s8 + $0x4e8] sm:$0xff] %v1844_v29  ;;  %v1848_v31 = vld [vmem:[%s12377_s7 + $0x9f0] sm:$0xff] }
  0x61   : > { %1847 = vst [vmem:[%s12385_s8 + $0x4f0] sm:$0xff] %v1846_v30  ;;  %v1850_v32 = vld [vmem:[%s12377_s7 + $0xa00] sm:$0xff]  ;;  %v1852_v33 = vld [vmem:[%s12377_s7 + $0xa10] sm:$0xff]  ;;  %1849 = vst [vmem:[%s12385_s8 + $0x4f8] sm:$0xff] %v1848_v31 }
  0x62   : > { %1851 = vst [vmem:[%s12385_s8 + $0x500] sm:$0xff] %v1850_v32  ;;  %1853 = vst [vmem:[%s12385_s8 + $0x508] sm:$0xff] %v1852_v33  ;;  %v1854_v34 = vld [vmem:[%s12377_s7 + $0xa20] sm:$0xff]  ;;  %v1856_v35 = vld [vmem:[%s12377_s7 + $0xa30] sm:$0xff] }
  0x63   : > { %v1858_v36 = vld [vmem:[%s12377_s7 + $0xa40] sm:$0xff]  ;;  %1855 = vst [vmem:[%s12385_s8 + $0x510] sm:$0xff] %v1854_v34  ;;  %1857 = vst [vmem:[%s12385_s8 + $0x518] sm:$0xff] %v1856_v35  ;;  %v1860_v37 = vld [vmem:[%s12377_s7 + $0xa50] sm:$0xff] }
  0x64   : > { %1859 = vst [vmem:[%s12385_s8 + $0x520] sm:$0xff] %v1858_v36  ;;  %v1862_v38 = vld [vmem:[%s12377_s7 + $0xa60] sm:$0xff]  ;;  %v1864_v39 = vld [vmem:[%s12377_s7 + $0xa70] sm:$0xff]  ;;  %1861 = vst [vmem:[%s12385_s8 + $0x528] sm:$0xff] %v1860_v37 }
  0x65   : > { %1863 = vst [vmem:[%s12385_s8 + $0x530] sm:$0xff] %v1862_v38  ;;  %1865 = vst [vmem:[%s12385_s8 + $0x538] sm:$0xff] %v1864_v39  ;;  %v1866_v40 = vld [vmem:[%s12377_s7 + $0xa80] sm:$0xff]  ;;  %v1868_v41 = vld [vmem:[%s12377_s7 + $0xa90] sm:$0xff] }
  0x66   : > { %v1870_v42 = vld [vmem:[%s12377_s7 + $0xaa0] sm:$0xff]  ;;  %1867 = vst [vmem:[%s12385_s8 + $0x540] sm:$0xff] %v1866_v40  ;;  %1869 = vst [vmem:[%s12385_s8 + $0x548] sm:$0xff] %v1868_v41  ;;  %v1872_v43 = vld [vmem:[%s12377_s7 + $0xab0] sm:$0xff] }
  0x67   : > { %1871 = vst [vmem:[%s12385_s8 + $0x550] sm:$0xff] %v1870_v42  ;;  %v1874_v44 = vld [vmem:[%s12377_s7 + $0xac0] sm:$0xff]  ;;  %v1876_v45 = vld [vmem:[%s12377_s7 + $0xad0] sm:$0xff]  ;;  %1873 = vst [vmem:[%s12385_s8 + $0x558] sm:$0xff] %v1872_v43 }
  0x68   : > { %1875 = vst [vmem:[%s12385_s8 + $0x560] sm:$0xff] %v1874_v44  ;;  %1877 = vst [vmem:[%s12385_s8 + $0x568] sm:$0xff] %v1876_v45  ;;  %v1878_v46 = vld [vmem:[%s12377_s7 + $0xae0] sm:$0xff]  ;;  %v1880_v47 = vld [vmem:[%s12377_s7 + $0xaf0] sm:$0xff] }
  0x69   : > { %v1882_v48 = vld [vmem:[%s12377_s7 + $0xb00] sm:$0xff]  ;;  %1879 = vst [vmem:[%s12385_s8 + $0x570] sm:$0xff] %v1878_v46  ;;  %1881 = vst [vmem:[%s12385_s8 + $0x578] sm:$0xff] %v1880_v47  ;;  %v1884_v49 = vld [vmem:[%s12377_s7 + $0xb10] sm:$0xff] }
  0x6a   : > { %1883 = vst [vmem:[%s12385_s8 + $0x580] sm:$0xff] %v1882_v48  ;;  %v1886_v50 = vld [vmem:[%s12377_s7 + $0xb20] sm:$0xff]  ;;  %v1888_v51 = vld [vmem:[%s12377_s7 + $0xb30] sm:$0xff]  ;;  %1885 = vst [vmem:[%s12385_s8 + $0x588] sm:$0xff] %v1884_v49 }
  0x6b   : > { %1887 = vst [vmem:[%s12385_s8 + $0x590] sm:$0xff] %v1886_v50  ;;  %1889 = vst [vmem:[%s12385_s8 + $0x598] sm:$0xff] %v1888_v51  ;;  %v1890_v52 = vld [vmem:[%s12377_s7 + $0xb40] sm:$0xff]  ;;  %v1892_v53 = vld [vmem:[%s12377_s7 + $0xb50] sm:$0xff] }
  0x6c   : > { %v1894_v54 = vld [vmem:[%s12377_s7 + $0xb60] sm:$0xff]  ;;  %1891 = vst [vmem:[%s12385_s8 + $0x5a0] sm:$0xff] %v1890_v52  ;;  %1893 = vst [vmem:[%s12385_s8 + $0x5a8] sm:$0xff] %v1892_v53  ;;  %v1896_v55 = vld [vmem:[%s12377_s7 + $0xb70] sm:$0xff] }
  0x6d   : > { %1895 = vst [vmem:[%s12385_s8 + $0x5b0] sm:$0xff] %v1894_v54  ;;  %v1898_v56 = vld [vmem:[%s12377_s7 + $0xb80] sm:$0xff]  ;;  %v1900_v57 = vld [vmem:[%s12377_s7 + $0xb90] sm:$0xff]  ;;  %1897 = vst [vmem:[%s12385_s8 + $0x5b8] sm:$0xff] %v1896_v55 }
  0x6e   : > { %1899 = vst [vmem:[%s12385_s8 + $0x5c0] sm:$0xff] %v1898_v56  ;;  %1901 = vst [vmem:[%s12385_s8 + $0x5c8] sm:$0xff] %v1900_v57  ;;  %v1902_v58 = vld [vmem:[%s12377_s7 + $0xba0] sm:$0xff]  ;;  %v1904_v59 = vld [vmem:[%s12377_s7 + $0xbb0] sm:$0xff] }
  0x6f   : > { %v1906_v60 = vld [vmem:[%s12377_s7 + $0xbc0] sm:$0xff]  ;;  %1903 = vst [vmem:[%s12385_s8 + $0x5d0] sm:$0xff] %v1902_v58  ;;  %1905 = vst [vmem:[%s12385_s8 + $0x5d8] sm:$0xff] %v1904_v59  ;;  %v1908_v61 = vld [vmem:[%s12377_s7 + $0xbd0] sm:$0xff] }
  0x70   : > { %1907 = vst [vmem:[%s12385_s8 + $0x5e0] sm:$0xff] %v1906_v60  ;;  %v1910_v62 = vld [vmem:[%s12377_s7 + $0xbe0] sm:$0xff]  ;;  %v1912_v63 = vld [vmem:[%s12377_s7 + $0xbf0] sm:$0xff]  ;;  %1909 = vst [vmem:[%s12385_s8 + $0x5e8] sm:$0xff] %v1908_v61 }
  0x71   : > { %1911 = vst [vmem:[%s12385_s8 + $0x5f0] sm:$0xff] %v1910_v62  ;;  %1913 = vst [vmem:[%s12385_s8 + $0x5f8] sm:$0xff] %v1912_v63  ;;  %v1914_v0 = vld [vmem:[%s12377_s7 + $0xc00] sm:$0xff]  ;;  %v1916_v1 = vld [vmem:[%s12377_s7 + $0xc10] sm:$0xff] }
  0x72   : > { %v1918_v2 = vld [vmem:[%s12377_s7 + $0xc20] sm:$0xff]  ;;  %1915 = vst [vmem:[%s12385_s8 + $0x600] sm:$0xff] %v1914_v0  ;;  %1917 = vst [vmem:[%s12385_s8 + $0x608] sm:$0xff] %v1916_v1  ;;  %v1920_v3 = vld [vmem:[%s12377_s7 + $0xc30] sm:$0xff] }
  0x73   : > { %1919 = vst [vmem:[%s12385_s8 + $0x610] sm:$0xff] %v1918_v2  ;;  %v1922_v4 = vld [vmem:[%s12377_s7 + $0xc40] sm:$0xff]  ;;  %v1924_v5 = vld [vmem:[%s12377_s7 + $0xc50] sm:$0xff]  ;;  %1921 = vst [vmem:[%s12385_s8 + $0x618] sm:$0xff] %v1920_v3 }
  0x74   : > { %1923 = vst [vmem:[%s12385_s8 + $0x620] sm:$0xff] %v1922_v4  ;;  %1925 = vst [vmem:[%s12385_s8 + $0x628] sm:$0xff] %v1924_v5  ;;  %v1926_v6 = vld [vmem:[%s12377_s7 + $0xc60] sm:$0xff]  ;;  %v1928_v7 = vld [vmem:[%s12377_s7 + $0xc70] sm:$0xff] }
  0x75   : > { %v1930_v8 = vld [vmem:[%s12377_s7 + $0xc80] sm:$0xff]  ;;  %1927 = vst [vmem:[%s12385_s8 + $0x630] sm:$0xff] %v1926_v6  ;;  %1929 = vst [vmem:[%s12385_s8 + $0x638] sm:$0xff] %v1928_v7  ;;  %v1932_v9 = vld [vmem:[%s12377_s7 + $0xc90] sm:$0xff] }
  0x76   : > { %1931 = vst [vmem:[%s12385_s8 + $0x640] sm:$0xff] %v1930_v8  ;;  %v1934_v10 = vld [vmem:[%s12377_s7 + $0xca0] sm:$0xff]  ;;  %v1936_v11 = vld [vmem:[%s12377_s7 + $0xcb0] sm:$0xff]  ;;  %1933 = vst [vmem:[%s12385_s8 + $0x648] sm:$0xff] %v1932_v9 }
  0x77   : > { %1935 = vst [vmem:[%s12385_s8 + $0x650] sm:$0xff] %v1934_v10  ;;  %1937 = vst [vmem:[%s12385_s8 + $0x658] sm:$0xff] %v1936_v11  ;;  %v1938_v12 = vld [vmem:[%s12377_s7 + $0xcc0] sm:$0xff]  ;;  %v1940_v13 = vld [vmem:[%s12377_s7 + $0xcd0] sm:$0xff] }
  0x78   : > { %v1942_v14 = vld [vmem:[%s12377_s7 + $0xce0] sm:$0xff]  ;;  %1939 = vst [vmem:[%s12385_s8 + $0x660] sm:$0xff] %v1938_v12  ;;  %1941 = vst [vmem:[%s12385_s8 + $0x668] sm:$0xff] %v1940_v13  ;;  %v1944_v15 = vld [vmem:[%s12377_s7 + $0xcf0] sm:$0xff] }
  0x79   : > { %1943 = vst [vmem:[%s12385_s8 + $0x670] sm:$0xff] %v1942_v14  ;;  %v1946_v16 = vld [vmem:[%s12377_s7 + $0xd00] sm:$0xff]  ;;  %v1948_v17 = vld [vmem:[%s12377_s7 + $0xd10] sm:$0xff]  ;;  %1945 = vst [vmem:[%s12385_s8 + $0x678] sm:$0xff] %v1944_v15 }
  0x7a   : > { %1947 = vst [vmem:[%s12385_s8 + $0x680] sm:$0xff] %v1946_v16  ;;  %1949 = vst [vmem:[%s12385_s8 + $0x688] sm:$0xff] %v1948_v17  ;;  %v1950_v18 = vld [vmem:[%s12377_s7 + $0xd20] sm:$0xff]  ;;  %v1952_v19 = vld [vmem:[%s12377_s7 + $0xd30] sm:$0xff] }
  0x7b   : > { %v1954_v20 = vld [vmem:[%s12377_s7 + $0xd40] sm:$0xff]  ;;  %1951 = vst [vmem:[%s12385_s8 + $0x690] sm:$0xff] %v1950_v18  ;;  %1953 = vst [vmem:[%s12385_s8 + $0x698] sm:$0xff] %v1952_v19  ;;  %v1956_v21 = vld [vmem:[%s12377_s7 + $0xd50] sm:$0xff] }
  0x7c   : > { %1955 = vst [vmem:[%s12385_s8 + $0x6a0] sm:$0xff] %v1954_v20  ;;  %v1958_v22 = vld [vmem:[%s12377_s7 + $0xd60] sm:$0xff]  ;;  %v1960_v23 = vld [vmem:[%s12377_s7 + $0xd70] sm:$0xff]  ;;  %1957 = vst [vmem:[%s12385_s8 + $0x6a8] sm:$0xff] %v1956_v21 }
  0x7d   : > { %1959 = vst [vmem:[%s12385_s8 + $0x6b0] sm:$0xff] %v1958_v22  ;;  %1961 = vst [vmem:[%s12385_s8 + $0x6b8] sm:$0xff] %v1960_v23  ;;  %v1962_v24 = vld [vmem:[%s12377_s7 + $0xd80] sm:$0xff]  ;;  %v1964_v25 = vld [vmem:[%s12377_s7 + $0xd90] sm:$0xff] }
  0x7e   : > { %v1966_v26 = vld [vmem:[%s12377_s7 + $0xda0] sm:$0xff]  ;;  %1963 = vst [vmem:[%s12385_s8 + $0x6c0] sm:$0xff] %v1962_v24  ;;  %1965 = vst [vmem:[%s12385_s8 + $0x6c8] sm:$0xff] %v1964_v25  ;;  %v1968_v27 = vld [vmem:[%s12377_s7 + $0xdb0] sm:$0xff] }
  0x7f   : > { %1967 = vst [vmem:[%s12385_s8 + $0x6d0] sm:$0xff] %v1966_v26  ;;  %v1970_v28 = vld [vmem:[%s12377_s7 + $0xdc0] sm:$0xff]  ;;  %v1972_v29 = vld [vmem:[%s12377_s7 + $0xdd0] sm:$0xff]  ;;  %1969 = vst [vmem:[%s12385_s8 + $0x6d8] sm:$0xff] %v1968_v27 }
  0x80   : > { %1971 = vst [vmem:[%s12385_s8 + $0x6e0] sm:$0xff] %v1970_v28  ;;  %1973 = vst [vmem:[%s12385_s8 + $0x6e8] sm:$0xff] %v1972_v29  ;;  %v1974_v30 = vld [vmem:[%s12377_s7 + $0xde0] sm:$0xff]  ;;  %v1976_v31 = vld [vmem:[%s12377_s7 + $0xdf0] sm:$0xff] }
  0x81   : > { %v1978_v32 = vld [vmem:[%s12377_s7 + $0xe00] sm:$0xff]  ;;  %1975 = vst [vmem:[%s12385_s8 + $0x6f0] sm:$0xff] %v1974_v30  ;;  %1977 = vst [vmem:[%s12385_s8 + $0x6f8] sm:$0xff] %v1976_v31  ;;  %v1980_v33 = vld [vmem:[%s12377_s7 + $0xe10] sm:$0xff] }
  0x82   : > { %1979 = vst [vmem:[%s12385_s8 + $0x700] sm:$0xff] %v1978_v32  ;;  %v1982_v34 = vld [vmem:[%s12377_s7 + $0xe20] sm:$0xff]  ;;  %v1984_v35 = vld [vmem:[%s12377_s7 + $0xe30] sm:$0xff]  ;;  %1981 = vst [vmem:[%s12385_s8 + $0x708] sm:$0xff] %v1980_v33 }
  0x83   : > { %1983 = vst [vmem:[%s12385_s8 + $0x710] sm:$0xff] %v1982_v34  ;;  %1985 = vst [vmem:[%s12385_s8 + $0x718] sm:$0xff] %v1984_v35  ;;  %v1986_v36 = vld [vmem:[%s12377_s7 + $0xe40] sm:$0xff]  ;;  %v1988_v37 = vld [vmem:[%s12377_s7 + $0xe50] sm:$0xff] }
  0x84   : > { %v1990_v38 = vld [vmem:[%s12377_s7 + $0xe60] sm:$0xff]  ;;  %1987 = vst [vmem:[%s12385_s8 + $0x720] sm:$0xff] %v1986_v36  ;;  %1989 = vst [vmem:[%s12385_s8 + $0x728] sm:$0xff] %v1988_v37  ;;  %v1992_v39 = vld [vmem:[%s12377_s7 + $0xe70] sm:$0xff] }
  0x85   : > { %1991 = vst [vmem:[%s12385_s8 + $0x730] sm:$0xff] %v1990_v38  ;;  %v1994_v40 = vld [vmem:[%s12377_s7 + $0xe80] sm:$0xff]  ;;  %v1996_v41 = vld [vmem:[%s12377_s7 + $0xe90] sm:$0xff]  ;;  %1993 = vst [vmem:[%s12385_s8 + $0x738] sm:$0xff] %v1992_v39 }
  0x86   : > { %1995 = vst [vmem:[%s12385_s8 + $0x740] sm:$0xff] %v1994_v40  ;;  %1997 = vst [vmem:[%s12385_s8 + $0x748] sm:$0xff] %v1996_v41  ;;  %v1998_v42 = vld [vmem:[%s12377_s7 + $0xea0] sm:$0xff]  ;;  %v2000_v43 = vld [vmem:[%s12377_s7 + $0xeb0] sm:$0xff] }
  0x87   : > { %v2002_v44 = vld [vmem:[%s12377_s7 + $0xec0] sm:$0xff]  ;;  %1999 = vst [vmem:[%s12385_s8 + $0x750] sm:$0xff] %v1998_v42  ;;  %2001 = vst [vmem:[%s12385_s8 + $0x758] sm:$0xff] %v2000_v43  ;;  %v2004_v45 = vld [vmem:[%s12377_s7 + $0xed0] sm:$0xff] }
  0x88   : > { %2003 = vst [vmem:[%s12385_s8 + $0x760] sm:$0xff] %v2002_v44  ;;  %v2006_v46 = vld [vmem:[%s12377_s7 + $0xee0] sm:$0xff]  ;;  %v2008_v47 = vld [vmem:[%s12377_s7 + $0xef0] sm:$0xff]  ;;  %2005 = vst [vmem:[%s12385_s8 + $0x768] sm:$0xff] %v2004_v45 }
  0x89   : > { %2007 = vst [vmem:[%s12385_s8 + $0x770] sm:$0xff] %v2006_v46  ;;  %2009 = vst [vmem:[%s12385_s8 + $0x778] sm:$0xff] %v2008_v47  ;;  %v2010_v48 = vld [vmem:[%s12377_s7 + $0xf00] sm:$0xff]  ;;  %v2012_v49 = vld [vmem:[%s12377_s7 + $0xf10] sm:$0xff] }
  0x8a   : > { %v2014_v50 = vld [vmem:[%s12377_s7 + $0xf20] sm:$0xff]  ;;  %2011 = vst [vmem:[%s12385_s8 + $0x780] sm:$0xff] %v2010_v48  ;;  %2013 = vst [vmem:[%s12385_s8 + $0x788] sm:$0xff] %v2012_v49  ;;  %v2016_v51 = vld [vmem:[%s12377_s7 + $0xf30] sm:$0xff] }
  0x8b   : > { %2015 = vst [vmem:[%s12385_s8 + $0x790] sm:$0xff] %v2014_v50  ;;  %v2018_v52 = vld [vmem:[%s12377_s7 + $0xf40] sm:$0xff]  ;;  %v2020_v53 = vld [vmem:[%s12377_s7 + $0xf50] sm:$0xff]  ;;  %2017 = vst [vmem:[%s12385_s8 + $0x798] sm:$0xff] %v2016_v51 }
  0x8c   : > { %2019 = vst [vmem:[%s12385_s8 + $0x7a0] sm:$0xff] %v2018_v52  ;;  %2021 = vst [vmem:[%s12385_s8 + $0x7a8] sm:$0xff] %v2020_v53  ;;  %v2022_v54 = vld [vmem:[%s12377_s7 + $0xf60] sm:$0xff]  ;;  %v2024_v55 = vld [vmem:[%s12377_s7 + $0xf70] sm:$0xff] }
  0x8d   : > { %v2026_v56 = vld [vmem:[%s12377_s7 + $0xf80] sm:$0xff]  ;;  %2023 = vst [vmem:[%s12385_s8 + $0x7b0] sm:$0xff] %v2022_v54  ;;  %2025 = vst [vmem:[%s12385_s8 + $0x7b8] sm:$0xff] %v2024_v55  ;;  %v2028_v57 = vld [vmem:[%s12377_s7 + $0xf90] sm:$0xff] }
  0x8e   : > { %2027 = vst [vmem:[%s12385_s8 + $0x7c0] sm:$0xff] %v2026_v56  ;;  %v2030_v58 = vld [vmem:[%s12377_s7 + $0xfa0] sm:$0xff]  ;;  %v2032_v59 = vld [vmem:[%s12377_s7 + $0xfb0] sm:$0xff]  ;;  %2029 = vst [vmem:[%s12385_s8 + $0x7c8] sm:$0xff] %v2028_v57 }
  0x8f   : > { %2031 = vst [vmem:[%s12385_s8 + $0x7d0] sm:$0xff] %v2030_v58  ;;  %2033 = vst [vmem:[%s12385_s8 + $0x7d8] sm:$0xff] %v2032_v59  ;;  %v2034_v60 = vld [vmem:[%s12377_s7 + $0xfc0] sm:$0xff]  ;;  %v2036_v61 = vld [vmem:[%s12377_s7 + $0xfd0] sm:$0xff] }
  0x90   : > { %v2038_v62 = vld [vmem:[%s12377_s7 + $0xfe0] sm:$0xff]  ;;  %2035 = vst [vmem:[%s12385_s8 + $0x7e0] sm:$0xff] %v2034_v60  ;;  %2037 = vst [vmem:[%s12385_s8 + $0x7e8] sm:$0xff] %v2036_v61  ;;  %v2040_v63 = vld [vmem:[%s12377_s7 + $0xff0] sm:$0xff] }
  0x91   : > { %2039 = vst [vmem:[%s12385_s8 + $0x7f0] sm:$0xff] %v2038_v62  ;;  %v2042_v0 = vld [vmem:[%s12377_s7 + $0x1000] sm:$0xff]  ;;  %v2044_v1 = vld [vmem:[%s12377_s7 + $0x1010] sm:$0xff]  ;;  %2041 = vst [vmem:[%s12385_s8 + $0x7f8] sm:$0xff] %v2040_v63 }
  0x92   : > { %2043 = vst [vmem:[%s12385_s8 + $0x800] sm:$0xff] %v2042_v0  ;;  %2045 = vst [vmem:[%s12385_s8 + $0x808] sm:$0xff] %v2044_v1  ;;  %v2046_v2 = vld [vmem:[%s12377_s7 + $0x1020] sm:$0xff]  ;;  %v2048_v3 = vld [vmem:[%s12377_s7 + $0x1030] sm:$0xff] }
  0x93   : > { %v2050_v4 = vld [vmem:[%s12377_s7 + $0x1040] sm:$0xff]  ;;  %2047 = vst [vmem:[%s12385_s8 + $0x810] sm:$0xff] %v2046_v2  ;;  %2049 = vst [vmem:[%s12385_s8 + $0x818] sm:$0xff] %v2048_v3  ;;  %v2052_v5 = vld [vmem:[%s12377_s7 + $0x1050] sm:$0xff] }
  0x94   : > { %2051 = vst [vmem:[%s12385_s8 + $0x820] sm:$0xff] %v2050_v4  ;;  %v2054_v6 = vld [vmem:[%s12377_s7 + $0x1060] sm:$0xff]  ;;  %v2056_v7 = vld [vmem:[%s12377_s7 + $0x1070] sm:$0xff]  ;;  %2053 = vst [vmem:[%s12385_s8 + $0x828] sm:$0xff] %v2052_v5 }
  0x95   : > { %2055 = vst [vmem:[%s12385_s8 + $0x830] sm:$0xff] %v2054_v6  ;;  %2057 = vst [vmem:[%s12385_s8 + $0x838] sm:$0xff] %v2056_v7  ;;  %v2058_v8 = vld [vmem:[%s12377_s7 + $0x1080] sm:$0xff]  ;;  %v2060_v9 = vld [vmem:[%s12377_s7 + $0x1090] sm:$0xff] }
  0x96   : > { %v2062_v10 = vld [vmem:[%s12377_s7 + $0x10a0] sm:$0xff]  ;;  %2059 = vst [vmem:[%s12385_s8 + $0x840] sm:$0xff] %v2058_v8  ;;  %2061 = vst [vmem:[%s12385_s8 + $0x848] sm:$0xff] %v2060_v9  ;;  %v2064_v11 = vld [vmem:[%s12377_s7 + $0x10b0] sm:$0xff] }
  0x97   : > { %2063 = vst [vmem:[%s12385_s8 + $0x850] sm:$0xff] %v2062_v10  ;;  %v2066_v12 = vld [vmem:[%s12377_s7 + $0x10c0] sm:$0xff]  ;;  %v2068_v13 = vld [vmem:[%s12377_s7 + $0x10d0] sm:$0xff]  ;;  %2065 = vst [vmem:[%s12385_s8 + $0x858] sm:$0xff] %v2064_v11 }
  0x98   : > { %2067 = vst [vmem:[%s12385_s8 + $0x860] sm:$0xff] %v2066_v12  ;;  %2069 = vst [vmem:[%s12385_s8 + $0x868] sm:$0xff] %v2068_v13  ;;  %v2070_v14 = vld [vmem:[%s12377_s7 + $0x10e0] sm:$0xff]  ;;  %v2072_v15 = vld [vmem:[%s12377_s7 + $0x10f0] sm:$0xff] }
  0x99   : > { %v2074_v16 = vld [vmem:[%s12377_s7 + $0x1100] sm:$0xff]  ;;  %2071 = vst [vmem:[%s12385_s8 + $0x870] sm:$0xff] %v2070_v14  ;;  %2073 = vst [vmem:[%s12385_s8 + $0x878] sm:$0xff] %v2072_v15  ;;  %v2076_v17 = vld [vmem:[%s12377_s7 + $0x1110] sm:$0xff] }
  0x9a   : > { %2075 = vst [vmem:[%s12385_s8 + $0x880] sm:$0xff] %v2074_v16  ;;  %v2078_v18 = vld [vmem:[%s12377_s7 + $0x1120] sm:$0xff]  ;;  %v2080_v19 = vld [vmem:[%s12377_s7 + $0x1130] sm:$0xff]  ;;  %2077 = vst [vmem:[%s12385_s8 + $0x888] sm:$0xff] %v2076_v17 }
  0x9b   : > { %2079 = vst [vmem:[%s12385_s8 + $0x890] sm:$0xff] %v2078_v18  ;;  %2081 = vst [vmem:[%s12385_s8 + $0x898] sm:$0xff] %v2080_v19  ;;  %v2082_v20 = vld [vmem:[%s12377_s7 + $0x1140] sm:$0xff]  ;;  %v2084_v21 = vld [vmem:[%s12377_s7 + $0x1150] sm:$0xff] }
  0x9c   : > { %v2086_v22 = vld [vmem:[%s12377_s7 + $0x1160] sm:$0xff]  ;;  %2083 = vst [vmem:[%s12385_s8 + $0x8a0] sm:$0xff] %v2082_v20  ;;  %2085 = vst [vmem:[%s12385_s8 + $0x8a8] sm:$0xff] %v2084_v21  ;;  %v2088_v23 = vld [vmem:[%s12377_s7 + $0x1170] sm:$0xff] }
  0x9d   : > { %2087 = vst [vmem:[%s12385_s8 + $0x8b0] sm:$0xff] %v2086_v22  ;;  %v2090_v24 = vld [vmem:[%s12377_s7 + $0x1180] sm:$0xff]  ;;  %v2092_v25 = vld [vmem:[%s12377_s7 + $0x1190] sm:$0xff]  ;;  %2089 = vst [vmem:[%s12385_s8 + $0x8b8] sm:$0xff] %v2088_v23 }
  0x9e   : > { %2091 = vst [vmem:[%s12385_s8 + $0x8c0] sm:$0xff] %v2090_v24  ;;  %2093 = vst [vmem:[%s12385_s8 + $0x8c8] sm:$0xff] %v2092_v25  ;;  %v2094_v26 = vld [vmem:[%s12377_s7 + $0x11a0] sm:$0xff]  ;;  %v2096_v27 = vld [vmem:[%s12377_s7 + $0x11b0] sm:$0xff] }
  0x9f   : > { %v2098_v28 = vld [vmem:[%s12377_s7 + $0x11c0] sm:$0xff]  ;;  %2095 = vst [vmem:[%s12385_s8 + $0x8d0] sm:$0xff] %v2094_v26  ;;  %2097 = vst [vmem:[%s12385_s8 + $0x8d8] sm:$0xff] %v2096_v27  ;;  %v2100_v29 = vld [vmem:[%s12377_s7 + $0x11d0] sm:$0xff] }
  0xa0   : > { %2099 = vst [vmem:[%s12385_s8 + $0x8e0] sm:$0xff] %v2098_v28  ;;  %v2102_v30 = vld [vmem:[%s12377_s7 + $0x11e0] sm:$0xff]  ;;  %v2104_v31 = vld [vmem:[%s12377_s7 + $0x11f0] sm:$0xff]  ;;  %2101 = vst [vmem:[%s12385_s8 + $0x8e8] sm:$0xff] %v2100_v29 }
  0xa1   : > { %2103 = vst [vmem:[%s12385_s8 + $0x8f0] sm:$0xff] %v2102_v30  ;;  %2105 = vst [vmem:[%s12385_s8 + $0x8f8] sm:$0xff] %v2104_v31  ;;  %v2106_v32 = vld [vmem:[%s12377_s7 + $0x1200] sm:$0xff]  ;;  %v2108_v33 = vld [vmem:[%s12377_s7 + $0x1210] sm:$0xff] }
  0xa2   : > { %v2110_v34 = vld [vmem:[%s12377_s7 + $0x1220] sm:$0xff]  ;;  %2107 = vst [vmem:[%s12385_s8 + $0x900] sm:$0xff] %v2106_v32  ;;  %2109 = vst [vmem:[%s12385_s8 + $0x908] sm:$0xff] %v2108_v33  ;;  %v2112_v35 = vld [vmem:[%s12377_s7 + $0x1230] sm:$0xff] }
  0xa3   : > { %2111 = vst [vmem:[%s12385_s8 + $0x910] sm:$0xff] %v2110_v34  ;;  %v2114_v36 = vld [vmem:[%s12377_s7 + $0x1240] sm:$0xff]  ;;  %v2116_v37 = vld [vmem:[%s12377_s7 + $0x1250] sm:$0xff]  ;;  %2113 = vst [vmem:[%s12385_s8 + $0x918] sm:$0xff] %v2112_v35 }
  0xa4   : > { %2115 = vst [vmem:[%s12385_s8 + $0x920] sm:$0xff] %v2114_v36  ;;  %2117 = vst [vmem:[%s12385_s8 + $0x928] sm:$0xff] %v2116_v37  ;;  %v2118_v38 = vld [vmem:[%s12377_s7 + $0x1260] sm:$0xff]  ;;  %v2120_v39 = vld [vmem:[%s12377_s7 + $0x1270] sm:$0xff] }
  0xa5   : > { %v2122_v40 = vld [vmem:[%s12377_s7 + $0x1280] sm:$0xff]  ;;  %2119 = vst [vmem:[%s12385_s8 + $0x930] sm:$0xff] %v2118_v38  ;;  %2121 = vst [vmem:[%s12385_s8 + $0x938] sm:$0xff] %v2120_v39  ;;  %v2124_v41 = vld [vmem:[%s12377_s7 + $0x1290] sm:$0xff] }
  0xa6   : > { %2123 = vst [vmem:[%s12385_s8 + $0x940] sm:$0xff] %v2122_v40  ;;  %v2126_v42 = vld [vmem:[%s12377_s7 + $0x12a0] sm:$0xff]  ;;  %v2128_v43 = vld [vmem:[%s12377_s7 + $0x12b0] sm:$0xff]  ;;  %2125 = vst [vmem:[%s12385_s8 + $0x948] sm:$0xff] %v2124_v41 }
  0xa7   : > { %2127 = vst [vmem:[%s12385_s8 + $0x950] sm:$0xff] %v2126_v42  ;;  %2129 = vst [vmem:[%s12385_s8 + $0x958] sm:$0xff] %v2128_v43  ;;  %v2130_v44 = vld [vmem:[%s12377_s7 + $0x12c0] sm:$0xff]  ;;  %v2132_v45 = vld [vmem:[%s12377_s7 + $0x12d0] sm:$0xff] }
  0xa8   : > { %v2134_v46 = vld [vmem:[%s12377_s7 + $0x12e0] sm:$0xff]  ;;  %2131 = vst [vmem:[%s12385_s8 + $0x960] sm:$0xff] %v2130_v44  ;;  %2133 = vst [vmem:[%s12385_s8 + $0x968] sm:$0xff] %v2132_v45  ;;  %v2136_v47 = vld [vmem:[%s12377_s7 + $0x12f0] sm:$0xff] }
  0xa9   : > { %2135 = vst [vmem:[%s12385_s8 + $0x970] sm:$0xff] %v2134_v46  ;;  %v2138_v48 = vld [vmem:[%s12377_s7 + $0x1300] sm:$0xff]  ;;  %v2140_v49 = vld [vmem:[%s12377_s7 + $0x1310] sm:$0xff]  ;;  %2137 = vst [vmem:[%s12385_s8 + $0x978] sm:$0xff] %v2136_v47 }
  0xaa   : > { %2139 = vst [vmem:[%s12385_s8 + $0x980] sm:$0xff] %v2138_v48  ;;  %2141 = vst [vmem:[%s12385_s8 + $0x988] sm:$0xff] %v2140_v49  ;;  %v2142_v50 = vld [vmem:[%s12377_s7 + $0x1320] sm:$0xff]  ;;  %v2144_v51 = vld [vmem:[%s12377_s7 + $0x1330] sm:$0xff] }
  0xab   : > { %v2146_v52 = vld [vmem:[%s12377_s7 + $0x1340] sm:$0xff]  ;;  %2143 = vst [vmem:[%s12385_s8 + $0x990] sm:$0xff] %v2142_v50  ;;  %2145 = vst [vmem:[%s12385_s8 + $0x998] sm:$0xff] %v2144_v51  ;;  %v2148_v53 = vld [vmem:[%s12377_s7 + $0x1350] sm:$0xff] }
  0xac   : > { %2147 = vst [vmem:[%s12385_s8 + $0x9a0] sm:$0xff] %v2146_v52  ;;  %v2150_v54 = vld [vmem:[%s12377_s7 + $0x1360] sm:$0xff]  ;;  %v2152_v55 = vld [vmem:[%s12377_s7 + $0x1370] sm:$0xff]  ;;  %2149 = vst [vmem:[%s12385_s8 + $0x9a8] sm:$0xff] %v2148_v53 }
  0xad   : > { %2151 = vst [vmem:[%s12385_s8 + $0x9b0] sm:$0xff] %v2150_v54  ;;  %2153 = vst [vmem:[%s12385_s8 + $0x9b8] sm:$0xff] %v2152_v55  ;;  %v2154_v56 = vld [vmem:[%s12377_s7 + $0x1380] sm:$0xff]  ;;  %v2156_v57 = vld [vmem:[%s12377_s7 + $0x1390] sm:$0xff] }
  0xae   : > { %v2158_v58 = vld [vmem:[%s12377_s7 + $0x13a0] sm:$0xff]  ;;  %2155 = vst [vmem:[%s12385_s8 + $0x9c0] sm:$0xff] %v2154_v56  ;;  %2157 = vst [vmem:[%s12385_s8 + $0x9c8] sm:$0xff] %v2156_v57  ;;  %v2160_v59 = vld [vmem:[%s12377_s7 + $0x13b0] sm:$0xff] }
  0xaf   : > { %2159 = vst [vmem:[%s12385_s8 + $0x9d0] sm:$0xff] %v2158_v58  ;;  %v2162_v60 = vld [vmem:[%s12377_s7 + $0x13c0] sm:$0xff]  ;;  %v2164_v61 = vld [vmem:[%s12377_s7 + $0x13d0] sm:$0xff]  ;;  %2161 = vst [vmem:[%s12385_s8 + $0x9d8] sm:$0xff] %v2160_v59 }
  0xb0   : > { %2163 = vst [vmem:[%s12385_s8 + $0x9e0] sm:$0xff] %v2162_v60  ;;  %2165 = vst [vmem:[%s12385_s8 + $0x9e8] sm:$0xff] %v2164_v61  ;;  %v2166_v62 = vld [vmem:[%s12377_s7 + $0x13e0] sm:$0xff]  ;;  %v2168_v63 = vld [vmem:[%s12377_s7 + $0x13f0] sm:$0xff] }
  0xb1   : > { %v2170_v0 = vld [vmem:[%s12377_s7 + $0x1400] sm:$0xff]  ;;  %2167 = vst [vmem:[%s12385_s8 + $0x9f0] sm:$0xff] %v2166_v62  ;;  %2169 = vst [vmem:[%s12385_s8 + $0x9f8] sm:$0xff] %v2168_v63  ;;  %v2172_v1 = vld [vmem:[%s12377_s7 + $0x1410] sm:$0xff] }
  0xb2   : > { %2171 = vst [vmem:[%s12385_s8 + $0xa00] sm:$0xff] %v2170_v0  ;;  %v2174_v2 = vld [vmem:[%s12377_s7 + $0x1420] sm:$0xff]  ;;  %v2176_v3 = vld [vmem:[%s12377_s7 + $0x1430] sm:$0xff]  ;;  %2173 = vst [vmem:[%s12385_s8 + $0xa08] sm:$0xff] %v2172_v1 }
  0xb3   : > { %2175 = vst [vmem:[%s12385_s8 + $0xa10] sm:$0xff] %v2174_v2  ;;  %2177 = vst [vmem:[%s12385_s8 + $0xa18] sm:$0xff] %v2176_v3  ;;  %v2178_v4 = vld [vmem:[%s12377_s7 + $0x1440] sm:$0xff]  ;;  %v2180_v5 = vld [vmem:[%s12377_s7 + $0x1450] sm:$0xff] }
  0xb4   : > { %v2182_v6 = vld [vmem:[%s12377_s7 + $0x1460] sm:$0xff]  ;;  %2179 = vst [vmem:[%s12385_s8 + $0xa20] sm:$0xff] %v2178_v4  ;;  %2181 = vst [vmem:[%s12385_s8 + $0xa28] sm:$0xff] %v2180_v5  ;;  %v2184_v7 = vld [vmem:[%s12377_s7 + $0x1470] sm:$0xff] }
  0xb5   : > { %2183 = vst [vmem:[%s12385_s8 + $0xa30] sm:$0xff] %v2182_v6  ;;  %v2186_v8 = vld [vmem:[%s12377_s7 + $0x1480] sm:$0xff]  ;;  %v2188_v9 = vld [vmem:[%s12377_s7 + $0x1490] sm:$0xff]  ;;  %2185 = vst [vmem:[%s12385_s8 + $0xa38] sm:$0xff] %v2184_v7 }
  0xb6   : > { %2187 = vst [vmem:[%s12385_s8 + $0xa40] sm:$0xff] %v2186_v8  ;;  %2189 = vst [vmem:[%s12385_s8 + $0xa48] sm:$0xff] %v2188_v9  ;;  %v2190_v10 = vld [vmem:[%s12377_s7 + $0x14a0] sm:$0xff]  ;;  %v2192_v11 = vld [vmem:[%s12377_s7 + $0x14b0] sm:$0xff] }
  0xb7   : > { %v2194_v12 = vld [vmem:[%s12377_s7 + $0x14c0] sm:$0xff]  ;;  %2191 = vst [vmem:[%s12385_s8 + $0xa50] sm:$0xff] %v2190_v10  ;;  %2193 = vst [vmem:[%s12385_s8 + $0xa58] sm:$0xff] %v2192_v11  ;;  %v2196_v13 = vld [vmem:[%s12377_s7 + $0x14d0] sm:$0xff] }
  0xb8   : > { %2195 = vst [vmem:[%s12385_s8 + $0xa60] sm:$0xff] %v2194_v12  ;;  %v2198_v14 = vld [vmem:[%s12377_s7 + $0x14e0] sm:$0xff]  ;;  %v2200_v15 = vld [vmem:[%s12377_s7 + $0x14f0] sm:$0xff]  ;;  %2197 = vst [vmem:[%s12385_s8 + $0xa68] sm:$0xff] %v2196_v13 }
  0xb9   : > { %2199 = vst [vmem:[%s12385_s8 + $0xa70] sm:$0xff] %v2198_v14  ;;  %2201 = vst [vmem:[%s12385_s8 + $0xa78] sm:$0xff] %v2200_v15  ;;  %v2202_v16 = vld [vmem:[%s12377_s7 + $0x1500] sm:$0xff]  ;;  %v2204_v17 = vld [vmem:[%s12377_s7 + $0x1510] sm:$0xff] }
  0xba   : > { %v2206_v18 = vld [vmem:[%s12377_s7 + $0x1520] sm:$0xff]  ;;  %2203 = vst [vmem:[%s12385_s8 + $0xa80] sm:$0xff] %v2202_v16  ;;  %2205 = vst [vmem:[%s12385_s8 + $0xa88] sm:$0xff] %v2204_v17  ;;  %v2208_v19 = vld [vmem:[%s12377_s7 + $0x1530] sm:$0xff] }
  0xbb   : > { %2207 = vst [vmem:[%s12385_s8 + $0xa90] sm:$0xff] %v2206_v18  ;;  %v2210_v20 = vld [vmem:[%s12377_s7 + $0x1540] sm:$0xff]  ;;  %v2212_v21 = vld [vmem:[%s12377_s7 + $0x1550] sm:$0xff]  ;;  %2209 = vst [vmem:[%s12385_s8 + $0xa98] sm:$0xff] %v2208_v19 }
  0xbc   : > { %2211 = vst [vmem:[%s12385_s8 + $0xaa0] sm:$0xff] %v2210_v20  ;;  %2213 = vst [vmem:[%s12385_s8 + $0xaa8] sm:$0xff] %v2212_v21  ;;  %v2214_v22 = vld [vmem:[%s12377_s7 + $0x1560] sm:$0xff]  ;;  %v2216_v23 = vld [vmem:[%s12377_s7 + $0x1570] sm:$0xff] }
  0xbd   : > { %v2218_v24 = vld [vmem:[%s12377_s7 + $0x1580] sm:$0xff]  ;;  %2215 = vst [vmem:[%s12385_s8 + $0xab0] sm:$0xff] %v2214_v22  ;;  %2217 = vst [vmem:[%s12385_s8 + $0xab8] sm:$0xff] %v2216_v23  ;;  %v2220_v25 = vld [vmem:[%s12377_s7 + $0x1590] sm:$0xff] }
  0xbe   : > { %2219 = vst [vmem:[%s12385_s8 + $0xac0] sm:$0xff] %v2218_v24  ;;  %v2222_v26 = vld [vmem:[%s12377_s7 + $0x15a0] sm:$0xff]  ;;  %v2224_v27 = vld [vmem:[%s12377_s7 + $0x15b0] sm:$0xff]  ;;  %2221 = vst [vmem:[%s12385_s8 + $0xac8] sm:$0xff] %v2220_v25 }
  0xbf   : > { %2223 = vst [vmem:[%s12385_s8 + $0xad0] sm:$0xff] %v2222_v26  ;;  %2225 = vst [vmem:[%s12385_s8 + $0xad8] sm:$0xff] %v2224_v27  ;;  %v2226_v28 = vld [vmem:[%s12377_s7 + $0x15c0] sm:$0xff]  ;;  %v2228_v29 = vld [vmem:[%s12377_s7 + $0x15d0] sm:$0xff] }
  0xc0   : > { %v2230_v30 = vld [vmem:[%s12377_s7 + $0x15e0] sm:$0xff]  ;;  %2227 = vst [vmem:[%s12385_s8 + $0xae0] sm:$0xff] %v2226_v28  ;;  %2229 = vst [vmem:[%s12385_s8 + $0xae8] sm:$0xff] %v2228_v29  ;;  %v2232_v31 = vld [vmem:[%s12377_s7 + $0x15f0] sm:$0xff] }
  0xc1   : > { %2231 = vst [vmem:[%s12385_s8 + $0xaf0] sm:$0xff] %v2230_v30  ;;  %v2234_v32 = vld [vmem:[%s12377_s7 + $0x1600] sm:$0xff]  ;;  %v2236_v33 = vld [vmem:[%s12377_s7 + $0x1610] sm:$0xff]  ;;  %2233 = vst [vmem:[%s12385_s8 + $0xaf8] sm:$0xff] %v2232_v31 }
  0xc2   : > { %2235 = vst [vmem:[%s12385_s8 + $0xb00] sm:$0xff] %v2234_v32  ;;  %2237 = vst [vmem:[%s12385_s8 + $0xb08] sm:$0xff] %v2236_v33  ;;  %v2238_v34 = vld [vmem:[%s12377_s7 + $0x1620] sm:$0xff]  ;;  %v2240_v35 = vld [vmem:[%s12377_s7 + $0x1630] sm:$0xff] }
  0xc3   : > { %v2242_v36 = vld [vmem:[%s12377_s7 + $0x1640] sm:$0xff]  ;;  %2239 = vst [vmem:[%s12385_s8 + $0xb10] sm:$0xff] %v2238_v34  ;;  %2241 = vst [vmem:[%s12385_s8 + $0xb18] sm:$0xff] %v2240_v35  ;;  %v2244_v37 = vld [vmem:[%s12377_s7 + $0x1650] sm:$0xff] }
  0xc4   : > { %2243 = vst [vmem:[%s12385_s8 + $0xb20] sm:$0xff] %v2242_v36  ;;  %v2246_v38 = vld [vmem:[%s12377_s7 + $0x1660] sm:$0xff]  ;;  %v2248_v39 = vld [vmem:[%s12377_s7 + $0x1670] sm:$0xff]  ;;  %2245 = vst [vmem:[%s12385_s8 + $0xb28] sm:$0xff] %v2244_v37 }
  0xc5   : > { %2247 = vst [vmem:[%s12385_s8 + $0xb30] sm:$0xff] %v2246_v38  ;;  %2249 = vst [vmem:[%s12385_s8 + $0xb38] sm:$0xff] %v2248_v39  ;;  %v2250_v40 = vld [vmem:[%s12377_s7 + $0x1680] sm:$0xff]  ;;  %v2252_v41 = vld [vmem:[%s12377_s7 + $0x1690] sm:$0xff] }
  0xc6   : > { %v2254_v42 = vld [vmem:[%s12377_s7 + $0x16a0] sm:$0xff]  ;;  %2251 = vst [vmem:[%s12385_s8 + $0xb40] sm:$0xff] %v2250_v40  ;;  %2253 = vst [vmem:[%s12385_s8 + $0xb48] sm:$0xff] %v2252_v41  ;;  %v2256_v43 = vld [vmem:[%s12377_s7 + $0x16b0] sm:$0xff] }
  0xc7   : > { %2255 = vst [vmem:[%s12385_s8 + $0xb50] sm:$0xff] %v2254_v42  ;;  %v2258_v44 = vld [vmem:[%s12377_s7 + $0x16c0] sm:$0xff]  ;;  %v2260_v45 = vld [vmem:[%s12377_s7 + $0x16d0] sm:$0xff]  ;;  %2257 = vst [vmem:[%s12385_s8 + $0xb58] sm:$0xff] %v2256_v43 }
  0xc8   : > { %2259 = vst [vmem:[%s12385_s8 + $0xb60] sm:$0xff] %v2258_v44  ;;  %2261 = vst [vmem:[%s12385_s8 + $0xb68] sm:$0xff] %v2260_v45  ;;  %v2262_v46 = vld [vmem:[%s12377_s7 + $0x16e0] sm:$0xff]  ;;  %v2264_v47 = vld [vmem:[%s12377_s7 + $0x16f0] sm:$0xff] }
  0xc9   : > { %v2266_v48 = vld [vmem:[%s12377_s7 + $0x1700] sm:$0xff]  ;;  %2263 = vst [vmem:[%s12385_s8 + $0xb70] sm:$0xff] %v2262_v46  ;;  %2265 = vst [vmem:[%s12385_s8 + $0xb78] sm:$0xff] %v2264_v47  ;;  %v2268_v49 = vld [vmem:[%s12377_s7 + $0x1710] sm:$0xff] }
  0xca   : > { %2267 = vst [vmem:[%s12385_s8 + $0xb80] sm:$0xff] %v2266_v48  ;;  %v2270_v50 = vld [vmem:[%s12377_s7 + $0x1720] sm:$0xff]  ;;  %v2272_v51 = vld [vmem:[%s12377_s7 + $0x1730] sm:$0xff]  ;;  %2269 = vst [vmem:[%s12385_s8 + $0xb88] sm:$0xff] %v2268_v49 }
  0xcb   : > { %2271 = vst [vmem:[%s12385_s8 + $0xb90] sm:$0xff] %v2270_v50  ;;  %2273 = vst [vmem:[%s12385_s8 + $0xb98] sm:$0xff] %v2272_v51  ;;  %v2274_v52 = vld [vmem:[%s12377_s7 + $0x1740] sm:$0xff]  ;;  %v2276_v53 = vld [vmem:[%s12377_s7 + $0x1750] sm:$0xff] }
  0xcc   : > { %v2278_v54 = vld [vmem:[%s12377_s7 + $0x1760] sm:$0xff]  ;;  %2275 = vst [vmem:[%s12385_s8 + $0xba0] sm:$0xff] %v2274_v52  ;;  %2277 = vst [vmem:[%s12385_s8 + $0xba8] sm:$0xff] %v2276_v53  ;;  %v2280_v55 = vld [vmem:[%s12377_s7 + $0x1770] sm:$0xff] }
  0xcd   : > { %2279 = vst [vmem:[%s12385_s8 + $0xbb0] sm:$0xff] %v2278_v54  ;;  %v2282_v56 = vld [vmem:[%s12377_s7 + $0x1780] sm:$0xff]  ;;  %v2284_v57 = vld [vmem:[%s12377_s7 + $0x1790] sm:$0xff]  ;;  %2281 = vst [vmem:[%s12385_s8 + $0xbb8] sm:$0xff] %v2280_v55 }
  0xce   : > { %2283 = vst [vmem:[%s12385_s8 + $0xbc0] sm:$0xff] %v2282_v56  ;;  %2285 = vst [vmem:[%s12385_s8 + $0xbc8] sm:$0xff] %v2284_v57  ;;  %v2286_v58 = vld [vmem:[%s12377_s7 + $0x17a0] sm:$0xff]  ;;  %v2288_v59 = vld [vmem:[%s12377_s7 + $0x17b0] sm:$0xff] }
  0xcf   : > { %v2290_v60 = vld [vmem:[%s12377_s7 + $0x17c0] sm:$0xff]  ;;  %2287 = vst [vmem:[%s12385_s8 + $0xbd0] sm:$0xff] %v2286_v58  ;;  %2289 = vst [vmem:[%s12385_s8 + $0xbd8] sm:$0xff] %v2288_v59  ;;  %v2292_v61 = vld [vmem:[%s12377_s7 + $0x17d0] sm:$0xff] }
  0xd0   : > { %2291 = vst [vmem:[%s12385_s8 + $0xbe0] sm:$0xff] %v2290_v60  ;;  %v2294_v62 = vld [vmem:[%s12377_s7 + $0x17e0] sm:$0xff]  ;;  %v2296_v63 = vld [vmem:[%s12377_s7 + $0x17f0] sm:$0xff]  ;;  %2293 = vst [vmem:[%s12385_s8 + $0xbe8] sm:$0xff] %v2292_v61 }
  0xd1   : > { %2295 = vst [vmem:[%s12385_s8 + $0xbf0] sm:$0xff] %v2294_v62  ;;  %2297 = vst [vmem:[%s12385_s8 + $0xbf8] sm:$0xff] %v2296_v63  ;;  %v2298_v0 = vld [vmem:[%s12377_s7 + $0x1800] sm:$0xff]  ;;  %v2300_v1 = vld [vmem:[%s12377_s7 + $0x1810] sm:$0xff] }
  0xd2   : > { %v2302_v2 = vld [vmem:[%s12377_s7 + $0x1820] sm:$0xff]  ;;  %2299 = vst [vmem:[%s12385_s8 + $0xc00] sm:$0xff] %v2298_v0  ;;  %2301 = vst [vmem:[%s12385_s8 + $0xc08] sm:$0xff] %v2300_v1  ;;  %v2304_v3 = vld [vmem:[%s12377_s7 + $0x1830] sm:$0xff] }
  0xd3   : > { %2303 = vst [vmem:[%s12385_s8 + $0xc10] sm:$0xff] %v2302_v2  ;;  %v2306_v4 = vld [vmem:[%s12377_s7 + $0x1840] sm:$0xff]  ;;  %v2308_v5 = vld [vmem:[%s12377_s7 + $0x1850] sm:$0xff]  ;;  %2305 = vst [vmem:[%s12385_s8 + $0xc18] sm:$0xff] %v2304_v3 }
  0xd4   : > { %2307 = vst [vmem:[%s12385_s8 + $0xc20] sm:$0xff] %v2306_v4  ;;  %2309 = vst [vmem:[%s12385_s8 + $0xc28] sm:$0xff] %v2308_v5  ;;  %v2310_v6 = vld [vmem:[%s12377_s7 + $0x1860] sm:$0xff]  ;;  %v2312_v7 = vld [vmem:[%s12377_s7 + $0x1870] sm:$0xff] }
  0xd5   : > { %v2314_v8 = vld [vmem:[%s12377_s7 + $0x1880] sm:$0xff]  ;;  %2311 = vst [vmem:[%s12385_s8 + $0xc30] sm:$0xff] %v2310_v6  ;;  %2313 = vst [vmem:[%s12385_s8 + $0xc38] sm:$0xff] %v2312_v7  ;;  %v2316_v9 = vld [vmem:[%s12377_s7 + $0x1890] sm:$0xff] }
  0xd6   : > { %2315 = vst [vmem:[%s12385_s8 + $0xc40] sm:$0xff] %v2314_v8  ;;  %v2318_v10 = vld [vmem:[%s12377_s7 + $0x18a0] sm:$0xff]  ;;  %v2320_v11 = vld [vmem:[%s12377_s7 + $0x18b0] sm:$0xff]  ;;  %2317 = vst [vmem:[%s12385_s8 + $0xc48] sm:$0xff] %v2316_v9 }
  0xd7   : > { %2319 = vst [vmem:[%s12385_s8 + $0xc50] sm:$0xff] %v2318_v10  ;;  %2321 = vst [vmem:[%s12385_s8 + $0xc58] sm:$0xff] %v2320_v11  ;;  %v2322_v12 = vld [vmem:[%s12377_s7 + $0x18c0] sm:$0xff]  ;;  %v2324_v13 = vld [vmem:[%s12377_s7 + $0x18d0] sm:$0xff] }
  0xd8   : > { %v2326_v14 = vld [vmem:[%s12377_s7 + $0x18e0] sm:$0xff]  ;;  %2323 = vst [vmem:[%s12385_s8 + $0xc60] sm:$0xff] %v2322_v12  ;;  %2325 = vst [vmem:[%s12385_s8 + $0xc68] sm:$0xff] %v2324_v13  ;;  %v2328_v15 = vld [vmem:[%s12377_s7 + $0x18f0] sm:$0xff] }
  0xd9   : > { %2327 = vst [vmem:[%s12385_s8 + $0xc70] sm:$0xff] %v2326_v14  ;;  %v2330_v16 = vld [vmem:[%s12377_s7 + $0x1900] sm:$0xff]  ;;  %v2332_v17 = vld [vmem:[%s12377_s7 + $0x1910] sm:$0xff]  ;;  %2329 = vst [vmem:[%s12385_s8 + $0xc78] sm:$0xff] %v2328_v15 }
  0xda   : > { %2331 = vst [vmem:[%s12385_s8 + $0xc80] sm:$0xff] %v2330_v16  ;;  %2333 = vst [vmem:[%s12385_s8 + $0xc88] sm:$0xff] %v2332_v17  ;;  %v2334_v18 = vld [vmem:[%s12377_s7 + $0x1920] sm:$0xff]  ;;  %v2336_v19 = vld [vmem:[%s12377_s7 + $0x1930] sm:$0xff] }
  0xdb   : > { %v2338_v20 = vld [vmem:[%s12377_s7 + $0x1940] sm:$0xff]  ;;  %2335 = vst [vmem:[%s12385_s8 + $0xc90] sm:$0xff] %v2334_v18  ;;  %2337 = vst [vmem:[%s12385_s8 + $0xc98] sm:$0xff] %v2336_v19  ;;  %v2340_v21 = vld [vmem:[%s12377_s7 + $0x1950] sm:$0xff] }
  0xdc   : > { %2339 = vst [vmem:[%s12385_s8 + $0xca0] sm:$0xff] %v2338_v20  ;;  %v2342_v22 = vld [vmem:[%s12377_s7 + $0x1960] sm:$0xff]  ;;  %v2344_v23 = vld [vmem:[%s12377_s7 + $0x1970] sm:$0xff]  ;;  %2341 = vst [vmem:[%s12385_s8 + $0xca8] sm:$0xff] %v2340_v21 }
  0xdd   : > { %2343 = vst [vmem:[%s12385_s8 + $0xcb0] sm:$0xff] %v2342_v22  ;;  %2345 = vst [vmem:[%s12385_s8 + $0xcb8] sm:$0xff] %v2344_v23  ;;  %v2346_v24 = vld [vmem:[%s12377_s7 + $0x1980] sm:$0xff]  ;;  %v2348_v25 = vld [vmem:[%s12377_s7 + $0x1990] sm:$0xff] }
  0xde   : > { %v2350_v26 = vld [vmem:[%s12377_s7 + $0x19a0] sm:$0xff]  ;;  %2347 = vst [vmem:[%s12385_s8 + $0xcc0] sm:$0xff] %v2346_v24  ;;  %2349 = vst [vmem:[%s12385_s8 + $0xcc8] sm:$0xff] %v2348_v25  ;;  %v2352_v27 = vld [vmem:[%s12377_s7 + $0x19b0] sm:$0xff] }
  0xdf   : > { %2351 = vst [vmem:[%s12385_s8 + $0xcd0] sm:$0xff] %v2350_v26  ;;  %v2354_v28 = vld [vmem:[%s12377_s7 + $0x19c0] sm:$0xff]  ;;  %v2356_v29 = vld [vmem:[%s12377_s7 + $0x19d0] sm:$0xff]  ;;  %2353 = vst [vmem:[%s12385_s8 + $0xcd8] sm:$0xff] %v2352_v27 }
  0xe0   : > { %2355 = vst [vmem:[%s12385_s8 + $0xce0] sm:$0xff] %v2354_v28  ;;  %2357 = vst [vmem:[%s12385_s8 + $0xce8] sm:$0xff] %v2356_v29  ;;  %v2358_v30 = vld [vmem:[%s12377_s7 + $0x19e0] sm:$0xff]  ;;  %v2360_v31 = vld [vmem:[%s12377_s7 + $0x19f0] sm:$0xff] }
  0xe1   : > { %v2362_v32 = vld [vmem:[%s12377_s7 + $0x1a00] sm:$0xff]  ;;  %2359 = vst [vmem:[%s12385_s8 + $0xcf0] sm:$0xff] %v2358_v30  ;;  %2361 = vst [vmem:[%s12385_s8 + $0xcf8] sm:$0xff] %v2360_v31  ;;  %v2364_v33 = vld [vmem:[%s12377_s7 + $0x1a10] sm:$0xff] }
  0xe2   : > { %2363 = vst [vmem:[%s12385_s8 + $0xd00] sm:$0xff] %v2362_v32  ;;  %v2366_v34 = vld [vmem:[%s12377_s7 + $0x1a20] sm:$0xff]  ;;  %v2368_v35 = vld [vmem:[%s12377_s7 + $0x1a30] sm:$0xff]  ;;  %2365 = vst [vmem:[%s12385_s8 + $0xd08] sm:$0xff] %v2364_v33 }
  0xe3   : > { %2367 = vst [vmem:[%s12385_s8 + $0xd10] sm:$0xff] %v2366_v34  ;;  %2369 = vst [vmem:[%s12385_s8 + $0xd18] sm:$0xff] %v2368_v35  ;;  %v2370_v36 = vld [vmem:[%s12377_s7 + $0x1a40] sm:$0xff]  ;;  %v2372_v37 = vld [vmem:[%s12377_s7 + $0x1a50] sm:$0xff] }
  0xe4   : > { %v2374_v38 = vld [vmem:[%s12377_s7 + $0x1a60] sm:$0xff]  ;;  %2371 = vst [vmem:[%s12385_s8 + $0xd20] sm:$0xff] %v2370_v36  ;;  %2373 = vst [vmem:[%s12385_s8 + $0xd28] sm:$0xff] %v2372_v37  ;;  %v2376_v39 = vld [vmem:[%s12377_s7 + $0x1a70] sm:$0xff] }
  0xe5   : > { %2375 = vst [vmem:[%s12385_s8 + $0xd30] sm:$0xff] %v2374_v38  ;;  %v2378_v40 = vld [vmem:[%s12377_s7 + $0x1a80] sm:$0xff]  ;;  %v2380_v41 = vld [vmem:[%s12377_s7 + $0x1a90] sm:$0xff]  ;;  %2377 = vst [vmem:[%s12385_s8 + $0xd38] sm:$0xff] %v2376_v39 }
  0xe6   : > { %2379 = vst [vmem:[%s12385_s8 + $0xd40] sm:$0xff] %v2378_v40  ;;  %2381 = vst [vmem:[%s12385_s8 + $0xd48] sm:$0xff] %v2380_v41  ;;  %v2382_v42 = vld [vmem:[%s12377_s7 + $0x1aa0] sm:$0xff]  ;;  %v2384_v43 = vld [vmem:[%s12377_s7 + $0x1ab0] sm:$0xff] }
  0xe7   : > { %v2386_v44 = vld [vmem:[%s12377_s7 + $0x1ac0] sm:$0xff]  ;;  %2383 = vst [vmem:[%s12385_s8 + $0xd50] sm:$0xff] %v2382_v42  ;;  %2385 = vst [vmem:[%s12385_s8 + $0xd58] sm:$0xff] %v2384_v43  ;;  %v2388_v45 = vld [vmem:[%s12377_s7 + $0x1ad0] sm:$0xff] }
  0xe8   : > { %2387 = vst [vmem:[%s12385_s8 + $0xd60] sm:$0xff] %v2386_v44  ;;  %v2390_v46 = vld [vmem:[%s12377_s7 + $0x1ae0] sm:$0xff]  ;;  %v2392_v47 = vld [vmem:[%s12377_s7 + $0x1af0] sm:$0xff]  ;;  %2389 = vst [vmem:[%s12385_s8 + $0xd68] sm:$0xff] %v2388_v45 }
  0xe9   : > { %2391 = vst [vmem:[%s12385_s8 + $0xd70] sm:$0xff] %v2390_v46  ;;  %2393 = vst [vmem:[%s12385_s8 + $0xd78] sm:$0xff] %v2392_v47  ;;  %v2394_v48 = vld [vmem:[%s12377_s7 + $0x1b00] sm:$0xff]  ;;  %v2396_v49 = vld [vmem:[%s12377_s7 + $0x1b10] sm:$0xff] }
  0xea   : > { %v2398_v50 = vld [vmem:[%s12377_s7 + $0x1b20] sm:$0xff]  ;;  %2395 = vst [vmem:[%s12385_s8 + $0xd80] sm:$0xff] %v2394_v48  ;;  %2397 = vst [vmem:[%s12385_s8 + $0xd88] sm:$0xff] %v2396_v49  ;;  %v2400_v51 = vld [vmem:[%s12377_s7 + $0x1b30] sm:$0xff] }
  0xeb   : > { %2399 = vst [vmem:[%s12385_s8 + $0xd90] sm:$0xff] %v2398_v50  ;;  %v2402_v52 = vld [vmem:[%s12377_s7 + $0x1b40] sm:$0xff]  ;;  %v2404_v53 = vld [vmem:[%s12377_s7 + $0x1b50] sm:$0xff]  ;;  %2401 = vst [vmem:[%s12385_s8 + $0xd98] sm:$0xff] %v2400_v51 }
  0xec   : > { %2403 = vst [vmem:[%s12385_s8 + $0xda0] sm:$0xff] %v2402_v52  ;;  %2405 = vst [vmem:[%s12385_s8 + $0xda8] sm:$0xff] %v2404_v53  ;;  %v2406_v54 = vld [vmem:[%s12377_s7 + $0x1b60] sm:$0xff]  ;;  %v2408_v55 = vld [vmem:[%s12377_s7 + $0x1b70] sm:$0xff] }
  0xed   : > { %v2410_v56 = vld [vmem:[%s12377_s7 + $0x1b80] sm:$0xff]  ;;  %2407 = vst [vmem:[%s12385_s8 + $0xdb0] sm:$0xff] %v2406_v54  ;;  %2409 = vst [vmem:[%s12385_s8 + $0xdb8] sm:$0xff] %v2408_v55  ;;  %v2412_v57 = vld [vmem:[%s12377_s7 + $0x1b90] sm:$0xff] }
  0xee   : > { %2411 = vst [vmem:[%s12385_s8 + $0xdc0] sm:$0xff] %v2410_v56  ;;  %v2414_v58 = vld [vmem:[%s12377_s7 + $0x1ba0] sm:$0xff]  ;;  %v2416_v59 = vld [vmem:[%s12377_s7 + $0x1bb0] sm:$0xff]  ;;  %2413 = vst [vmem:[%s12385_s8 + $0xdc8] sm:$0xff] %v2412_v57 }
  0xef   : > { %2415 = vst [vmem:[%s12385_s8 + $0xdd0] sm:$0xff] %v2414_v58  ;;  %2417 = vst [vmem:[%s12385_s8 + $0xdd8] sm:$0xff] %v2416_v59  ;;  %v2418_v60 = vld [vmem:[%s12377_s7 + $0x1bc0] sm:$0xff]  ;;  %v2420_v61 = vld [vmem:[%s12377_s7 + $0x1bd0] sm:$0xff] }
  0xf0   : > { %v2422_v62 = vld [vmem:[%s12377_s7 + $0x1be0] sm:$0xff]  ;;  %2419 = vst [vmem:[%s12385_s8 + $0xde0] sm:$0xff] %v2418_v60  ;;  %2421 = vst [vmem:[%s12385_s8 + $0xde8] sm:$0xff] %v2420_v61  ;;  %v2424_v63 = vld [vmem:[%s12377_s7 + $0x1bf0] sm:$0xff] }
  0xf1   : > { %2423 = vst [vmem:[%s12385_s8 + $0xdf0] sm:$0xff] %v2422_v62  ;;  %v2426_v0 = vld [vmem:[%s12377_s7 + $0x1c00] sm:$0xff]  ;;  %v2428_v1 = vld [vmem:[%s12377_s7 + $0x1c10] sm:$0xff]  ;;  %2425 = vst [vmem:[%s12385_s8 + $0xdf8] sm:$0xff] %v2424_v63 }
  0xf2   : > { %2427 = vst [vmem:[%s12385_s8 + $0xe00] sm:$0xff] %v2426_v0  ;;  %2429 = vst [vmem:[%s12385_s8 + $0xe08] sm:$0xff] %v2428_v1  ;;  %v2430_v2 = vld [vmem:[%s12377_s7 + $0x1c20] sm:$0xff]  ;;  %v2432_v3 = vld [vmem:[%s12377_s7 + $0x1c30] sm:$0xff] }
  0xf3   : > { %v2434_v4 = vld [vmem:[%s12377_s7 + $0x1c40] sm:$0xff]  ;;  %2431 = vst [vmem:[%s12385_s8 + $0xe10] sm:$0xff] %v2430_v2  ;;  %2433 = vst [vmem:[%s12385_s8 + $0xe18] sm:$0xff] %v2432_v3  ;;  %v2436_v5 = vld [vmem:[%s12377_s7 + $0x1c50] sm:$0xff] }
  0xf4   : > { %2435 = vst [vmem:[%s12385_s8 + $0xe20] sm:$0xff] %v2434_v4  ;;  %v2438_v6 = vld [vmem:[%s12377_s7 + $0x1c60] sm:$0xff]  ;;  %v2440_v7 = vld [vmem:[%s12377_s7 + $0x1c70] sm:$0xff]  ;;  %2437 = vst [vmem:[%s12385_s8 + $0xe28] sm:$0xff] %v2436_v5 }
  0xf5   : > { %2439 = vst [vmem:[%s12385_s8 + $0xe30] sm:$0xff] %v2438_v6  ;;  %2441 = vst [vmem:[%s12385_s8 + $0xe38] sm:$0xff] %v2440_v7  ;;  %v2442_v8 = vld [vmem:[%s12377_s7 + $0x1c80] sm:$0xff]  ;;  %v2444_v9 = vld [vmem:[%s12377_s7 + $0x1c90] sm:$0xff] }
  0xf6   : > { %v2446_v10 = vld [vmem:[%s12377_s7 + $0x1ca0] sm:$0xff]  ;;  %2443 = vst [vmem:[%s12385_s8 + $0xe40] sm:$0xff] %v2442_v8  ;;  %2445 = vst [vmem:[%s12385_s8 + $0xe48] sm:$0xff] %v2444_v9  ;;  %v2448_v11 = vld [vmem:[%s12377_s7 + $0x1cb0] sm:$0xff] }
  0xf7   : > { %2447 = vst [vmem:[%s12385_s8 + $0xe50] sm:$0xff] %v2446_v10  ;;  %v2450_v12 = vld [vmem:[%s12377_s7 + $0x1cc0] sm:$0xff]  ;;  %v2452_v13 = vld [vmem:[%s12377_s7 + $0x1cd0] sm:$0xff]  ;;  %2449 = vst [vmem:[%s12385_s8 + $0xe58] sm:$0xff] %v2448_v11 }
  0xf8   : > { %2451 = vst [vmem:[%s12385_s8 + $0xe60] sm:$0xff] %v2450_v12  ;;  %2453 = vst [vmem:[%s12385_s8 + $0xe68] sm:$0xff] %v2452_v13  ;;  %v2454_v14 = vld [vmem:[%s12377_s7 + $0x1ce0] sm:$0xff]  ;;  %v2456_v15 = vld [vmem:[%s12377_s7 + $0x1cf0] sm:$0xff] }
  0xf9   : > { %v2458_v16 = vld [vmem:[%s12377_s7 + $0x1d00] sm:$0xff]  ;;  %2455 = vst [vmem:[%s12385_s8 + $0xe70] sm:$0xff] %v2454_v14  ;;  %2457 = vst [vmem:[%s12385_s8 + $0xe78] sm:$0xff] %v2456_v15  ;;  %v2460_v17 = vld [vmem:[%s12377_s7 + $0x1d10] sm:$0xff] }
  0xfa   : > { %2459 = vst [vmem:[%s12385_s8 + $0xe80] sm:$0xff] %v2458_v16  ;;  %v2462_v18 = vld [vmem:[%s12377_s7 + $0x1d20] sm:$0xff]  ;;  %v2464_v19 = vld [vmem:[%s12377_s7 + $0x1d30] sm:$0xff]  ;;  %2461 = vst [vmem:[%s12385_s8 + $0xe88] sm:$0xff] %v2460_v17 }
  0xfb   : > { %2463 = vst [vmem:[%s12385_s8 + $0xe90] sm:$0xff] %v2462_v18  ;;  %2465 = vst [vmem:[%s12385_s8 + $0xe98] sm:$0xff] %v2464_v19  ;;  %v2466_v20 = vld [vmem:[%s12377_s7 + $0x1d40] sm:$0xff]  ;;  %v2468_v21 = vld [vmem:[%s12377_s7 + $0x1d50] sm:$0xff] }
  0xfc   : > { %v2470_v22 = vld [vmem:[%s12377_s7 + $0x1d60] sm:$0xff]  ;;  %2467 = vst [vmem:[%s12385_s8 + $0xea0] sm:$0xff] %v2466_v20  ;;  %2469 = vst [vmem:[%s12385_s8 + $0xea8] sm:$0xff] %v2468_v21  ;;  %v2472_v23 = vld [vmem:[%s12377_s7 + $0x1d70] sm:$0xff] }
  0xfd   : > { %2471 = vst [vmem:[%s12385_s8 + $0xeb0] sm:$0xff] %v2470_v22  ;;  %v2474_v24 = vld [vmem:[%s12377_s7 + $0x1d80] sm:$0xff]  ;;  %v2476_v25 = vld [vmem:[%s12377_s7 + $0x1d90] sm:$0xff]  ;;  %2473 = vst [vmem:[%s12385_s8 + $0xeb8] sm:$0xff] %v2472_v23 }
  0xfe   : > { %2475 = vst [vmem:[%s12385_s8 + $0xec0] sm:$0xff] %v2474_v24  ;;  %2477 = vst [vmem:[%s12385_s8 + $0xec8] sm:$0xff] %v2476_v25  ;;  %v2478_v26 = vld [vmem:[%s12377_s7 + $0x1da0] sm:$0xff]  ;;  %v2480_v27 = vld [vmem:[%s12377_s7 + $0x1db0] sm:$0xff] }
  0xff   : > { %v2482_v28 = vld [vmem:[%s12377_s7 + $0x1dc0] sm:$0xff]  ;;  %2479 = vst [vmem:[%s12385_s8 + $0xed0] sm:$0xff] %v2478_v26  ;;  %2481 = vst [vmem:[%s12385_s8 + $0xed8] sm:$0xff] %v2480_v27  ;;  %v2484_v29 = vld [vmem:[%s12377_s7 + $0x1dd0] sm:$0xff] }
 0x100   : > { %2483 = vst [vmem:[%s12385_s8 + $0xee0] sm:$0xff] %v2482_v28  ;;  %v2486_v30 = vld [vmem:[%s12377_s7 + $0x1de0] sm:$0xff]  ;;  %v2488_v31 = vld [vmem:[%s12377_s7 + $0x1df0] sm:$0xff]  ;;  %2485 = vst [vmem:[%s12385_s8 + $0xee8] sm:$0xff] %v2484_v29 }
 0x101   : > { %2487 = vst [vmem:[%s12385_s8 + $0xef0] sm:$0xff] %v2486_v30  ;;  %2489 = vst [vmem:[%s12385_s8 + $0xef8] sm:$0xff] %v2488_v31  ;;  %v2490_v32 = vld [vmem:[%s12377_s7 + $0x1e00] sm:$0xff]  ;;  %v2492_v33 = vld [vmem:[%s12377_s7 + $0x1e10] sm:$0xff] }
 0x102   : > { %v2494_v34 = vld [vmem:[%s12377_s7 + $0x1e20] sm:$0xff]  ;;  %2491 = vst [vmem:[%s12385_s8 + $0xf00] sm:$0xff] %v2490_v32  ;;  %2493 = vst [vmem:[%s12385_s8 + $0xf08] sm:$0xff] %v2492_v33  ;;  %v2496_v35 = vld [vmem:[%s12377_s7 + $0x1e30] sm:$0xff] }
 0x103   : > { %2495 = vst [vmem:[%s12385_s8 + $0xf10] sm:$0xff] %v2494_v34  ;;  %v2498_v36 = vld [vmem:[%s12377_s7 + $0x1e40] sm:$0xff]  ;;  %v2500_v37 = vld [vmem:[%s12377_s7 + $0x1e50] sm:$0xff]  ;;  %2497 = vst [vmem:[%s12385_s8 + $0xf18] sm:$0xff] %v2496_v35 }
 0x104   : > { %2499 = vst [vmem:[%s12385_s8 + $0xf20] sm:$0xff] %v2498_v36  ;;  %2501 = vst [vmem:[%s12385_s8 + $0xf28] sm:$0xff] %v2500_v37  ;;  %v2502_v38 = vld [vmem:[%s12377_s7 + $0x1e60] sm:$0xff]  ;;  %v2504_v39 = vld [vmem:[%s12377_s7 + $0x1e70] sm:$0xff] }
 0x105   : > { %v2506_v40 = vld [vmem:[%s12377_s7 + $0x1e80] sm:$0xff]  ;;  %2503 = vst [vmem:[%s12385_s8 + $0xf30] sm:$0xff] %v2502_v38  ;;  %2505 = vst [vmem:[%s12385_s8 + $0xf38] sm:$0xff] %v2504_v39  ;;  %v2508_v41 = vld [vmem:[%s12377_s7 + $0x1e90] sm:$0xff] }
 0x106   : > { %2507 = vst [vmem:[%s12385_s8 + $0xf40] sm:$0xff] %v2506_v40  ;;  %v2510_v42 = vld [vmem:[%s12377_s7 + $0x1ea0] sm:$0xff]  ;;  %v2512_v43 = vld [vmem:[%s12377_s7 + $0x1eb0] sm:$0xff]  ;;  %2509 = vst [vmem:[%s12385_s8 + $0xf48] sm:$0xff] %v2508_v41 }
 0x107   : > { %2511 = vst [vmem:[%s12385_s8 + $0xf50] sm:$0xff] %v2510_v42  ;;  %2513 = vst [vmem:[%s12385_s8 + $0xf58] sm:$0xff] %v2512_v43  ;;  %v2514_v44 = vld [vmem:[%s12377_s7 + $0x1ec0] sm:$0xff]  ;;  %v2516_v45 = vld [vmem:[%s12377_s7 + $0x1ed0] sm:$0xff] }
 0x108   : > { %v2518_v46 = vld [vmem:[%s12377_s7 + $0x1ee0] sm:$0xff]  ;;  %2515 = vst [vmem:[%s12385_s8 + $0xf60] sm:$0xff] %v2514_v44  ;;  %2517 = vst [vmem:[%s12385_s8 + $0xf68] sm:$0xff] %v2516_v45  ;;  %v2520_v47 = vld [vmem:[%s12377_s7 + $0x1ef0] sm:$0xff] }
 0x109   : > { %2519 = vst [vmem:[%s12385_s8 + $0xf70] sm:$0xff] %v2518_v46  ;;  %v2522_v48 = vld [vmem:[%s12377_s7 + $0x1f00] sm:$0xff]  ;;  %v2524_v49 = vld [vmem:[%s12377_s7 + $0x1f10] sm:$0xff]  ;;  %2521 = vst [vmem:[%s12385_s8 + $0xf78] sm:$0xff] %v2520_v47 }
 0x10a   : > { %2523 = vst [vmem:[%s12385_s8 + $0xf80] sm:$0xff] %v2522_v48  ;;  %2525 = vst [vmem:[%s12385_s8 + $0xf88] sm:$0xff] %v2524_v49  ;;  %v2526_v50 = vld [vmem:[%s12377_s7 + $0x1f20] sm:$0xff]  ;;  %v2528_v51 = vld [vmem:[%s12377_s7 + $0x1f30] sm:$0xff] }
 0x10b   : > { %v2530_v52 = vld [vmem:[%s12377_s7 + $0x1f40] sm:$0xff]  ;;  %2527 = vst [vmem:[%s12385_s8 + $0xf90] sm:$0xff] %v2526_v50  ;;  %2529 = vst [vmem:[%s12385_s8 + $0xf98] sm:$0xff] %v2528_v51  ;;  %v2532_v53 = vld [vmem:[%s12377_s7 + $0x1f50] sm:$0xff] }
 0x10c   : > { %2531 = vst [vmem:[%s12385_s8 + $0xfa0] sm:$0xff] %v2530_v52  ;;  %v2534_v54 = vld [vmem:[%s12377_s7 + $0x1f60] sm:$0xff]  ;;  %v2536_v55 = vld [vmem:[%s12377_s7 + $0x1f70] sm:$0xff]  ;;  %2533 = vst [vmem:[%s12385_s8 + $0xfa8] sm:$0xff] %v2532_v53 }
 0x10d   : > { %2535 = vst [vmem:[%s12385_s8 + $0xfb0] sm:$0xff] %v2534_v54  ;;  %2537 = vst [vmem:[%s12385_s8 + $0xfb8] sm:$0xff] %v2536_v55  ;;  %v2538_v56 = vld [vmem:[%s12377_s7 + $0x1f80] sm:$0xff]  ;;  %v2540_v57 = vld [vmem:[%s12377_s7 + $0x1f90] sm:$0xff] }
 0x10e   : > { %v2542_v58 = vld [vmem:[%s12377_s7 + $0x1fa0] sm:$0xff]  ;;  %2539 = vst [vmem:[%s12385_s8 + $0xfc0] sm:$0xff] %v2538_v56  ;;  %2541 = vst [vmem:[%s12385_s8 + $0xfc8] sm:$0xff] %v2540_v57  ;;  %v2544_v59 = vld [vmem:[%s12377_s7 + $0x1fb0] sm:$0xff] }
 0x10f   : > { %2543 = vst [vmem:[%s12385_s8 + $0xfd0] sm:$0xff] %v2542_v58  ;;  %v2546_v60 = vld [vmem:[%s12377_s7 + $0x1fc0] sm:$0xff]  ;;  %v2548_v61 = vld [vmem:[%s12377_s7 + $0x1fd0] sm:$0xff]  ;;  %2545 = vst [vmem:[%s12385_s8 + $0xfd8] sm:$0xff] %v2544_v59 }
 0x110   : > { %2547 = vst [vmem:[%s12385_s8 + $0xfe0] sm:$0xff] %v2546_v60  ;;  %2549 = vst [vmem:[%s12385_s8 + $0xfe8] sm:$0xff] %v2548_v61  ;;  %v2550_v62 = vld [vmem:[%s12377_s7 + $0x1fe0] sm:$0xff]  ;;  %v2552_v63 = vld [vmem:[%s12377_s7 + $0x1ff0] sm:$0xff] }
 0x111   : > { %v2554_v0 = vld [vmem:[%s12377_s7 + $0x2000] sm:$0xff]  ;;  %2551 = vst [vmem:[%s12385_s8 + $0xff0] sm:$0xff] %v2550_v62  ;;  %2553 = vst [vmem:[%s12385_s8 + $0xff8] sm:$0xff] %v2552_v63  ;;  %v2556_v1 = vld [vmem:[%s12377_s7 + $0x2010] sm:$0xff] }
 0x112   : > { %2555 = vst [vmem:[%s12385_s8 + $0x1000] sm:$0xff] %v2554_v0  ;;  %v2558_v2 = vld [vmem:[%s12377_s7 + $0x2020] sm:$0xff]  ;;  %v2560_v3 = vld [vmem:[%s12377_s7 + $0x2030] sm:$0xff]  ;;  %2557 = vst [vmem:[%s12385_s8 + $0x1008] sm:$0xff] %v2556_v1 }
 0x113   : > { %2559 = vst [vmem:[%s12385_s8 + $0x1010] sm:$0xff] %v2558_v2  ;;  %2561 = vst [vmem:[%s12385_s8 + $0x1018] sm:$0xff] %v2560_v3  ;;  %v2562_v4 = vld [vmem:[%s12377_s7 + $0x2040] sm:$0xff]  ;;  %v2564_v5 = vld [vmem:[%s12377_s7 + $0x2050] sm:$0xff] }
 0x114   : > { %v2566_v6 = vld [vmem:[%s12377_s7 + $0x2060] sm:$0xff]  ;;  %2563 = vst [vmem:[%s12385_s8 + $0x1020] sm:$0xff] %v2562_v4  ;;  %2565 = vst [vmem:[%s12385_s8 + $0x1028] sm:$0xff] %v2564_v5  ;;  %v2568_v7 = vld [vmem:[%s12377_s7 + $0x2070] sm:$0xff] }
 0x115   : > { %2567 = vst [vmem:[%s12385_s8 + $0x1030] sm:$0xff] %v2566_v6  ;;  %v2570_v8 = vld [vmem:[%s12377_s7 + $0x2080] sm:$0xff]  ;;  %v2572_v9 = vld [vmem:[%s12377_s7 + $0x2090] sm:$0xff]  ;;  %2569 = vst [vmem:[%s12385_s8 + $0x1038] sm:$0xff] %v2568_v7 }
 0x116   : > { %2571 = vst [vmem:[%s12385_s8 + $0x1040] sm:$0xff] %v2570_v8  ;;  %2573 = vst [vmem:[%s12385_s8 + $0x1048] sm:$0xff] %v2572_v9  ;;  %v2574_v10 = vld [vmem:[%s12377_s7 + $0x20a0] sm:$0xff]  ;;  %v2576_v11 = vld [vmem:[%s12377_s7 + $0x20b0] sm:$0xff] }
 0x117   : > { %v2578_v12 = vld [vmem:[%s12377_s7 + $0x20c0] sm:$0xff]  ;;  %2575 = vst [vmem:[%s12385_s8 + $0x1050] sm:$0xff] %v2574_v10  ;;  %2577 = vst [vmem:[%s12385_s8 + $0x1058] sm:$0xff] %v2576_v11  ;;  %v2580_v13 = vld [vmem:[%s12377_s7 + $0x20d0] sm:$0xff] }
 0x118   : > { %2579 = vst [vmem:[%s12385_s8 + $0x1060] sm:$0xff] %v2578_v12  ;;  %v2582_v14 = vld [vmem:[%s12377_s7 + $0x20e0] sm:$0xff]  ;;  %v2584_v15 = vld [vmem:[%s12377_s7 + $0x20f0] sm:$0xff]  ;;  %2581 = vst [vmem:[%s12385_s8 + $0x1068] sm:$0xff] %v2580_v13 }
 0x119   : > { %2583 = vst [vmem:[%s12385_s8 + $0x1070] sm:$0xff] %v2582_v14  ;;  %2585 = vst [vmem:[%s12385_s8 + $0x1078] sm:$0xff] %v2584_v15  ;;  %v2586_v16 = vld [vmem:[%s12377_s7 + $0x2100] sm:$0xff]  ;;  %v2588_v17 = vld [vmem:[%s12377_s7 + $0x2110] sm:$0xff] }
 0x11a   : > { %v2590_v18 = vld [vmem:[%s12377_s7 + $0x2120] sm:$0xff]  ;;  %2587 = vst [vmem:[%s12385_s8 + $0x1080] sm:$0xff] %v2586_v16  ;;  %2589 = vst [vmem:[%s12385_s8 + $0x1088] sm:$0xff] %v2588_v17  ;;  %v2592_v19 = vld [vmem:[%s12377_s7 + $0x2130] sm:$0xff] }
 0x11b   : > { %2591 = vst [vmem:[%s12385_s8 + $0x1090] sm:$0xff] %v2590_v18  ;;  %v2594_v20 = vld [vmem:[%s12377_s7 + $0x2140] sm:$0xff]  ;;  %v2596_v21 = vld [vmem:[%s12377_s7 + $0x2150] sm:$0xff]  ;;  %2593 = vst [vmem:[%s12385_s8 + $0x1098] sm:$0xff] %v2592_v19 }
 0x11c   : > { %2595 = vst [vmem:[%s12385_s8 + $0x10a0] sm:$0xff] %v2594_v20  ;;  %2597 = vst [vmem:[%s12385_s8 + $0x10a8] sm:$0xff] %v2596_v21  ;;  %v2598_v22 = vld [vmem:[%s12377_s7 + $0x2160] sm:$0xff]  ;;  %v2600_v23 = vld [vmem:[%s12377_s7 + $0x2170] sm:$0xff] }
 0x11d   : > { %v2602_v24 = vld [vmem:[%s12377_s7 + $0x2180] sm:$0xff]  ;;  %2599 = vst [vmem:[%s12385_s8 + $0x10b0] sm:$0xff] %v2598_v22  ;;  %2601 = vst [vmem:[%s12385_s8 + $0x10b8] sm:$0xff] %v2600_v23  ;;  %v2604_v25 = vld [vmem:[%s12377_s7 + $0x2190] sm:$0xff] }
 0x11e   : > { %2603 = vst [vmem:[%s12385_s8 + $0x10c0] sm:$0xff] %v2602_v24  ;;  %v2606_v26 = vld [vmem:[%s12377_s7 + $0x21a0] sm:$0xff]  ;;  %v2608_v27 = vld [vmem:[%s12377_s7 + $0x21b0] sm:$0xff]  ;;  %2605 = vst [vmem:[%s12385_s8 + $0x10c8] sm:$0xff] %v2604_v25 }
 0x11f   : > { %2607 = vst [vmem:[%s12385_s8 + $0x10d0] sm:$0xff] %v2606_v26  ;;  %2609 = vst [vmem:[%s12385_s8 + $0x10d8] sm:$0xff] %v2608_v27  ;;  %v2610_v28 = vld [vmem:[%s12377_s7 + $0x21c0] sm:$0xff]  ;;  %v2612_v29 = vld [vmem:[%s12377_s7 + $0x21d0] sm:$0xff] }
 0x120   : > { %v2614_v30 = vld [vmem:[%s12377_s7 + $0x21e0] sm:$0xff]  ;;  %2611 = vst [vmem:[%s12385_s8 + $0x10e0] sm:$0xff] %v2610_v28  ;;  %2613 = vst [vmem:[%s12385_s8 + $0x10e8] sm:$0xff] %v2612_v29  ;;  %v2616_v31 = vld [vmem:[%s12377_s7 + $0x21f0] sm:$0xff] }
 0x121   : > { %2615 = vst [vmem:[%s12385_s8 + $0x10f0] sm:$0xff] %v2614_v30  ;;  %v2618_v32 = vld [vmem:[%s12377_s7 + $0x2200] sm:$0xff]  ;;  %v2620_v33 = vld [vmem:[%s12377_s7 + $0x2210] sm:$0xff]  ;;  %2617 = vst [vmem:[%s12385_s8 + $0x10f8] sm:$0xff] %v2616_v31 }
 0x122   : > { %2619 = vst [vmem:[%s12385_s8 + $0x1100] sm:$0xff] %v2618_v32  ;;  %2621 = vst [vmem:[%s12385_s8 + $0x1108] sm:$0xff] %v2620_v33  ;;  %v2622_v34 = vld [vmem:[%s12377_s7 + $0x2220] sm:$0xff]  ;;  %v2624_v35 = vld [vmem:[%s12377_s7 + $0x2230] sm:$0xff] }
 0x123   : > { %v2626_v36 = vld [vmem:[%s12377_s7 + $0x2240] sm:$0xff]  ;;  %2623 = vst [vmem:[%s12385_s8 + $0x1110] sm:$0xff] %v2622_v34  ;;  %2625 = vst [vmem:[%s12385_s8 + $0x1118] sm:$0xff] %v2624_v35  ;;  %v2628_v37 = vld [vmem:[%s12377_s7 + $0x2250] sm:$0xff] }
 0x124   : > { %2627 = vst [vmem:[%s12385_s8 + $0x1120] sm:$0xff] %v2626_v36  ;;  %v2630_v38 = vld [vmem:[%s12377_s7 + $0x2260] sm:$0xff]  ;;  %v2632_v39 = vld [vmem:[%s12377_s7 + $0x2270] sm:$0xff]  ;;  %2629 = vst [vmem:[%s12385_s8 + $0x1128] sm:$0xff] %v2628_v37 }
 0x125   : > { %2631 = vst [vmem:[%s12385_s8 + $0x1130] sm:$0xff] %v2630_v38  ;;  %2633 = vst [vmem:[%s12385_s8 + $0x1138] sm:$0xff] %v2632_v39  ;;  %v2634_v40 = vld [vmem:[%s12377_s7 + $0x2280] sm:$0xff]  ;;  %v2636_v41 = vld [vmem:[%s12377_s7 + $0x2290] sm:$0xff] }
 0x126   : > { %v2638_v42 = vld [vmem:[%s12377_s7 + $0x22a0] sm:$0xff]  ;;  %2635 = vst [vmem:[%s12385_s8 + $0x1140] sm:$0xff] %v2634_v40  ;;  %2637 = vst [vmem:[%s12385_s8 + $0x1148] sm:$0xff] %v2636_v41  ;;  %v2640_v43 = vld [vmem:[%s12377_s7 + $0x22b0] sm:$0xff] }
 0x127   : > { %2639 = vst [vmem:[%s12385_s8 + $0x1150] sm:$0xff] %v2638_v42  ;;  %v2642_v44 = vld [vmem:[%s12377_s7 + $0x22c0] sm:$0xff]  ;;  %v2644_v45 = vld [vmem:[%s12377_s7 + $0x22d0] sm:$0xff]  ;;  %2641 = vst [vmem:[%s12385_s8 + $0x1158] sm:$0xff] %v2640_v43 }
 0x128   : > { %2643 = vst [vmem:[%s12385_s8 + $0x1160] sm:$0xff] %v2642_v44  ;;  %2645 = vst [vmem:[%s12385_s8 + $0x1168] sm:$0xff] %v2644_v45  ;;  %v2646_v46 = vld [vmem:[%s12377_s7 + $0x22e0] sm:$0xff]  ;;  %v2648_v47 = vld [vmem:[%s12377_s7 + $0x22f0] sm:$0xff] }
 0x129   : > { %v2650_v48 = vld [vmem:[%s12377_s7 + $0x2300] sm:$0xff]  ;;  %2647 = vst [vmem:[%s12385_s8 + $0x1170] sm:$0xff] %v2646_v46  ;;  %2649 = vst [vmem:[%s12385_s8 + $0x1178] sm:$0xff] %v2648_v47  ;;  %v2652_v49 = vld [vmem:[%s12377_s7 + $0x2310] sm:$0xff] }
 0x12a   : > { %2651 = vst [vmem:[%s12385_s8 + $0x1180] sm:$0xff] %v2650_v48  ;;  %v2654_v50 = vld [vmem:[%s12377_s7 + $0x2320] sm:$0xff]  ;;  %v2656_v51 = vld [vmem:[%s12377_s7 + $0x2330] sm:$0xff]  ;;  %2653 = vst [vmem:[%s12385_s8 + $0x1188] sm:$0xff] %v2652_v49 }
 0x12b   : > { %2655 = vst [vmem:[%s12385_s8 + $0x1190] sm:$0xff] %v2654_v50  ;;  %2657 = vst [vmem:[%s12385_s8 + $0x1198] sm:$0xff] %v2656_v51  ;;  %v2658_v52 = vld [vmem:[%s12377_s7 + $0x2340] sm:$0xff]  ;;  %v2660_v53 = vld [vmem:[%s12377_s7 + $0x2350] sm:$0xff] }
 0x12c   : > { %v2662_v54 = vld [vmem:[%s12377_s7 + $0x2360] sm:$0xff]  ;;  %2659 = vst [vmem:[%s12385_s8 + $0x11a0] sm:$0xff] %v2658_v52  ;;  %2661 = vst [vmem:[%s12385_s8 + $0x11a8] sm:$0xff] %v2660_v53  ;;  %v2664_v55 = vld [vmem:[%s12377_s7 + $0x2370] sm:$0xff] }
 0x12d   : > { %2663 = vst [vmem:[%s12385_s8 + $0x11b0] sm:$0xff] %v2662_v54  ;;  %v2666_v56 = vld [vmem:[%s12377_s7 + $0x2380] sm:$0xff]  ;;  %v2668_v57 = vld [vmem:[%s12377_s7 + $0x2390] sm:$0xff]  ;;  %2665 = vst [vmem:[%s12385_s8 + $0x11b8] sm:$0xff] %v2664_v55 }
 0x12e   : > { %2667 = vst [vmem:[%s12385_s8 + $0x11c0] sm:$0xff] %v2666_v56  ;;  %2669 = vst [vmem:[%s12385_s8 + $0x11c8] sm:$0xff] %v2668_v57  ;;  %v2670_v58 = vld [vmem:[%s12377_s7 + $0x23a0] sm:$0xff]  ;;  %v2672_v59 = vld [vmem:[%s12377_s7 + $0x23b0] sm:$0xff] }
 0x12f   : > { %v2674_v60 = vld [vmem:[%s12377_s7 + $0x23c0] sm:$0xff]  ;;  %2671 = vst [vmem:[%s12385_s8 + $0x11d0] sm:$0xff] %v2670_v58  ;;  %2673 = vst [vmem:[%s12385_s8 + $0x11d8] sm:$0xff] %v2672_v59  ;;  %v2676_v61 = vld [vmem:[%s12377_s7 + $0x23d0] sm:$0xff] }
 0x130   : > { %2675 = vst [vmem:[%s12385_s8 + $0x11e0] sm:$0xff] %v2674_v60  ;;  %v2678_v62 = vld [vmem:[%s12377_s7 + $0x23e0] sm:$0xff]  ;;  %v2680_v63 = vld [vmem:[%s12377_s7 + $0x23f0] sm:$0xff]  ;;  %2677 = vst [vmem:[%s12385_s8 + $0x11e8] sm:$0xff] %v2676_v61 }
 0x131   : > { %2679 = vst [vmem:[%s12385_s8 + $0x11f0] sm:$0xff] %v2678_v62  ;;  %2681 = vst [vmem:[%s12385_s8 + $0x11f8] sm:$0xff] %v2680_v63  ;;  %v2682_v0 = vld [vmem:[%s12377_s7 + $0x2400] sm:$0xff]  ;;  %v2684_v1 = vld [vmem:[%s12377_s7 + $0x2410] sm:$0xff] }
 0x132   : > { %v2686_v2 = vld [vmem:[%s12377_s7 + $0x2420] sm:$0xff]  ;;  %2683 = vst [vmem:[%s12385_s8 + $0x1200] sm:$0xff] %v2682_v0  ;;  %2685 = vst [vmem:[%s12385_s8 + $0x1208] sm:$0xff] %v2684_v1  ;;  %v2688_v3 = vld [vmem:[%s12377_s7 + $0x2430] sm:$0xff] }
 0x133   : > { %2687 = vst [vmem:[%s12385_s8 + $0x1210] sm:$0xff] %v2686_v2  ;;  %v2690_v4 = vld [vmem:[%s12377_s7 + $0x2440] sm:$0xff]  ;;  %v2692_v5 = vld [vmem:[%s12377_s7 + $0x2450] sm:$0xff]  ;;  %2689 = vst [vmem:[%s12385_s8 + $0x1218] sm:$0xff] %v2688_v3 }
 0x134   : > { %2691 = vst [vmem:[%s12385_s8 + $0x1220] sm:$0xff] %v2690_v4  ;;  %2693 = vst [vmem:[%s12385_s8 + $0x1228] sm:$0xff] %v2692_v5  ;;  %v2694_v6 = vld [vmem:[%s12377_s7 + $0x2460] sm:$0xff]  ;;  %v2696_v7 = vld [vmem:[%s12377_s7 + $0x2470] sm:$0xff] }
 0x135   : > { %v2698_v8 = vld [vmem:[%s12377_s7 + $0x2480] sm:$0xff]  ;;  %2695 = vst [vmem:[%s12385_s8 + $0x1230] sm:$0xff] %v2694_v6  ;;  %2697 = vst [vmem:[%s12385_s8 + $0x1238] sm:$0xff] %v2696_v7  ;;  %v2700_v9 = vld [vmem:[%s12377_s7 + $0x2490] sm:$0xff] }
 0x136   : > { %2699 = vst [vmem:[%s12385_s8 + $0x1240] sm:$0xff] %v2698_v8  ;;  %v2702_v10 = vld [vmem:[%s12377_s7 + $0x24a0] sm:$0xff]  ;;  %v2704_v11 = vld [vmem:[%s12377_s7 + $0x24b0] sm:$0xff]  ;;  %2701 = vst [vmem:[%s12385_s8 + $0x1248] sm:$0xff] %v2700_v9 }
 0x137   : > { %2703 = vst [vmem:[%s12385_s8 + $0x1250] sm:$0xff] %v2702_v10  ;;  %2705 = vst [vmem:[%s12385_s8 + $0x1258] sm:$0xff] %v2704_v11  ;;  %v2706_v12 = vld [vmem:[%s12377_s7 + $0x24c0] sm:$0xff]  ;;  %v2708_v13 = vld [vmem:[%s12377_s7 + $0x24d0] sm:$0xff] }
 0x138   : > { %v2710_v14 = vld [vmem:[%s12377_s7 + $0x24e0] sm:$0xff]  ;;  %2707 = vst [vmem:[%s12385_s8 + $0x1260] sm:$0xff] %v2706_v12  ;;  %2709 = vst [vmem:[%s12385_s8 + $0x1268] sm:$0xff] %v2708_v13  ;;  %v2712_v15 = vld [vmem:[%s12377_s7 + $0x24f0] sm:$0xff] }
 0x139   : > { %2711 = vst [vmem:[%s12385_s8 + $0x1270] sm:$0xff] %v2710_v14  ;;  %v2714_v16 = vld [vmem:[%s12377_s7 + $0x2500] sm:$0xff]  ;;  %v2716_v17 = vld [vmem:[%s12377_s7 + $0x2510] sm:$0xff]  ;;  %2713 = vst [vmem:[%s12385_s8 + $0x1278] sm:$0xff] %v2712_v15 }
 0x13a   : > { %2715 = vst [vmem:[%s12385_s8 + $0x1280] sm:$0xff] %v2714_v16  ;;  %2717 = vst [vmem:[%s12385_s8 + $0x1288] sm:$0xff] %v2716_v17  ;;  %v2718_v18 = vld [vmem:[%s12377_s7 + $0x2520] sm:$0xff]  ;;  %v2720_v19 = vld [vmem:[%s12377_s7 + $0x2530] sm:$0xff] }
 0x13b   : > { %v2722_v20 = vld [vmem:[%s12377_s7 + $0x2540] sm:$0xff]  ;;  %2719 = vst [vmem:[%s12385_s8 + $0x1290] sm:$0xff] %v2718_v18  ;;  %2721 = vst [vmem:[%s12385_s8 + $0x1298] sm:$0xff] %v2720_v19  ;;  %v2724_v21 = vld [vmem:[%s12377_s7 + $0x2550] sm:$0xff] }
 0x13c   : > { %2723 = vst [vmem:[%s12385_s8 + $0x12a0] sm:$0xff] %v2722_v20  ;;  %v2726_v22 = vld [vmem:[%s12377_s7 + $0x2560] sm:$0xff]  ;;  %v2728_v23 = vld [vmem:[%s12377_s7 + $0x2570] sm:$0xff]  ;;  %2725 = vst [vmem:[%s12385_s8 + $0x12a8] sm:$0xff] %v2724_v21 }
 0x13d   : > { %2727 = vst [vmem:[%s12385_s8 + $0x12b0] sm:$0xff] %v2726_v22  ;;  %2729 = vst [vmem:[%s12385_s8 + $0x12b8] sm:$0xff] %v2728_v23  ;;  %v2730_v24 = vld [vmem:[%s12377_s7 + $0x2580] sm:$0xff]  ;;  %v2732_v25 = vld [vmem:[%s12377_s7 + $0x2590] sm:$0xff] }
 0x13e   : > { %v2734_v26 = vld [vmem:[%s12377_s7 + $0x25a0] sm:$0xff]  ;;  %2731 = vst [vmem:[%s12385_s8 + $0x12c0] sm:$0xff] %v2730_v24  ;;  %2733 = vst [vmem:[%s12385_s8 + $0x12c8] sm:$0xff] %v2732_v25  ;;  %v2736_v27 = vld [vmem:[%s12377_s7 + $0x25b0] sm:$0xff] }
 0x13f   : > { %2735 = vst [vmem:[%s12385_s8 + $0x12d0] sm:$0xff] %v2734_v26  ;;  %v2738_v28 = vld [vmem:[%s12377_s7 + $0x25c0] sm:$0xff]  ;;  %v2740_v29 = vld [vmem:[%s12377_s7 + $0x25d0] sm:$0xff]  ;;  %2737 = vst [vmem:[%s12385_s8 + $0x12d8] sm:$0xff] %v2736_v27 }
 0x140   : > { %2739 = vst [vmem:[%s12385_s8 + $0x12e0] sm:$0xff] %v2738_v28  ;;  %2741 = vst [vmem:[%s12385_s8 + $0x12e8] sm:$0xff] %v2740_v29  ;;  %v2742_v30 = vld [vmem:[%s12377_s7 + $0x25e0] sm:$0xff]  ;;  %v2744_v31 = vld [vmem:[%s12377_s7 + $0x25f0] sm:$0xff] }
 0x141   : > { %v2746_v32 = vld [vmem:[%s12377_s7 + $0x2600] sm:$0xff]  ;;  %2743 = vst [vmem:[%s12385_s8 + $0x12f0] sm:$0xff] %v2742_v30  ;;  %2745 = vst [vmem:[%s12385_s8 + $0x12f8] sm:$0xff] %v2744_v31  ;;  %v2748_v33 = vld [vmem:[%s12377_s7 + $0x2610] sm:$0xff] }
 0x142   : > { %2747 = vst [vmem:[%s12385_s8 + $0x1300] sm:$0xff] %v2746_v32  ;;  %v2750_v34 = vld [vmem:[%s12377_s7 + $0x2620] sm:$0xff]  ;;  %v2752_v35 = vld [vmem:[%s12377_s7 + $0x2630] sm:$0xff]  ;;  %2749 = vst [vmem:[%s12385_s8 + $0x1308] sm:$0xff] %v2748_v33 }
 0x143   : > { %2751 = vst [vmem:[%s12385_s8 + $0x1310] sm:$0xff] %v2750_v34  ;;  %2753 = vst [vmem:[%s12385_s8 + $0x1318] sm:$0xff] %v2752_v35  ;;  %v2754_v36 = vld [vmem:[%s12377_s7 + $0x2640] sm:$0xff]  ;;  %v2756_v37 = vld [vmem:[%s12377_s7 + $0x2650] sm:$0xff] }
 0x144   : > { %v2758_v38 = vld [vmem:[%s12377_s7 + $0x2660] sm:$0xff]  ;;  %2755 = vst [vmem:[%s12385_s8 + $0x1320] sm:$0xff] %v2754_v36  ;;  %2757 = vst [vmem:[%s12385_s8 + $0x1328] sm:$0xff] %v2756_v37  ;;  %v2760_v39 = vld [vmem:[%s12377_s7 + $0x2670] sm:$0xff] }
 0x145   : > { %2759 = vst [vmem:[%s12385_s8 + $0x1330] sm:$0xff] %v2758_v38  ;;  %v2762_v40 = vld [vmem:[%s12377_s7 + $0x2680] sm:$0xff]  ;;  %v2764_v41 = vld [vmem:[%s12377_s7 + $0x2690] sm:$0xff]  ;;  %2761 = vst [vmem:[%s12385_s8 + $0x1338] sm:$0xff] %v2760_v39 }
 0x146   : > { %2763 = vst [vmem:[%s12385_s8 + $0x1340] sm:$0xff] %v2762_v40  ;;  %2765 = vst [vmem:[%s12385_s8 + $0x1348] sm:$0xff] %v2764_v41  ;;  %v2766_v42 = vld [vmem:[%s12377_s7 + $0x26a0] sm:$0xff]  ;;  %v2768_v43 = vld [vmem:[%s12377_s7 + $0x26b0] sm:$0xff] }
 0x147   : > { %v2770_v44 = vld [vmem:[%s12377_s7 + $0x26c0] sm:$0xff]  ;;  %2767 = vst [vmem:[%s12385_s8 + $0x1350] sm:$0xff] %v2766_v42  ;;  %2769 = vst [vmem:[%s12385_s8 + $0x1358] sm:$0xff] %v2768_v43  ;;  %v2772_v45 = vld [vmem:[%s12377_s7 + $0x26d0] sm:$0xff] }
 0x148   : > { %2771 = vst [vmem:[%s12385_s8 + $0x1360] sm:$0xff] %v2770_v44  ;;  %v2774_v46 = vld [vmem:[%s12377_s7 + $0x26e0] sm:$0xff]  ;;  %v2776_v47 = vld [vmem:[%s12377_s7 + $0x26f0] sm:$0xff]  ;;  %2773 = vst [vmem:[%s12385_s8 + $0x1368] sm:$0xff] %v2772_v45 }
 0x149   : > { %2775 = vst [vmem:[%s12385_s8 + $0x1370] sm:$0xff] %v2774_v46  ;;  %2777 = vst [vmem:[%s12385_s8 + $0x1378] sm:$0xff] %v2776_v47  ;;  %v2778_v48 = vld [vmem:[%s12377_s7 + $0x2700] sm:$0xff]  ;;  %v2780_v49 = vld [vmem:[%s12377_s7 + $0x2710] sm:$0xff] }
 0x14a   : > { %v2782_v50 = vld [vmem:[%s12377_s7 + $0x2720] sm:$0xff]  ;;  %2779 = vst [vmem:[%s12385_s8 + $0x1380] sm:$0xff] %v2778_v48  ;;  %2781 = vst [vmem:[%s12385_s8 + $0x1388] sm:$0xff] %v2780_v49  ;;  %v2784_v51 = vld [vmem:[%s12377_s7 + $0x2730] sm:$0xff] }
 0x14b   : > { %2783 = vst [vmem:[%s12385_s8 + $0x1390] sm:$0xff] %v2782_v50  ;;  %v2786_v52 = vld [vmem:[%s12377_s7 + $0x2740] sm:$0xff]  ;;  %v2788_v53 = vld [vmem:[%s12377_s7 + $0x2750] sm:$0xff]  ;;  %2785 = vst [vmem:[%s12385_s8 + $0x1398] sm:$0xff] %v2784_v51 }
 0x14c   : > { %2787 = vst [vmem:[%s12385_s8 + $0x13a0] sm:$0xff] %v2786_v52  ;;  %2789 = vst [vmem:[%s12385_s8 + $0x13a8] sm:$0xff] %v2788_v53  ;;  %v2790_v54 = vld [vmem:[%s12377_s7 + $0x2760] sm:$0xff]  ;;  %v2792_v55 = vld [vmem:[%s12377_s7 + $0x2770] sm:$0xff] }
 0x14d   : > { %v2794_v56 = vld [vmem:[%s12377_s7 + $0x2780] sm:$0xff]  ;;  %2791 = vst [vmem:[%s12385_s8 + $0x13b0] sm:$0xff] %v2790_v54  ;;  %2793 = vst [vmem:[%s12385_s8 + $0x13b8] sm:$0xff] %v2792_v55  ;;  %v2796_v57 = vld [vmem:[%s12377_s7 + $0x2790] sm:$0xff] }
 0x14e   : > { %2795 = vst [vmem:[%s12385_s8 + $0x13c0] sm:$0xff] %v2794_v56  ;;  %v2798_v58 = vld [vmem:[%s12377_s7 + $0x27a0] sm:$0xff]  ;;  %v2800_v59 = vld [vmem:[%s12377_s7 + $0x27b0] sm:$0xff]  ;;  %2797 = vst [vmem:[%s12385_s8 + $0x13c8] sm:$0xff] %v2796_v57 }
 0x14f   : > { %2799 = vst [vmem:[%s12385_s8 + $0x13d0] sm:$0xff] %v2798_v58  ;;  %2801 = vst [vmem:[%s12385_s8 + $0x13d8] sm:$0xff] %v2800_v59  ;;  %v2802_v60 = vld [vmem:[%s12377_s7 + $0x27c0] sm:$0xff]  ;;  %v2804_v61 = vld [vmem:[%s12377_s7 + $0x27d0] sm:$0xff] }
 0x150   : > { %v2806_v62 = vld [vmem:[%s12377_s7 + $0x27e0] sm:$0xff]  ;;  %2803 = vst [vmem:[%s12385_s8 + $0x13e0] sm:$0xff] %v2802_v60  ;;  %2805 = vst [vmem:[%s12385_s8 + $0x13e8] sm:$0xff] %v2804_v61  ;;  %v2808_v63 = vld [vmem:[%s12377_s7 + $0x27f0] sm:$0xff] }
 0x151   : > { %2807 = vst [vmem:[%s12385_s8 + $0x13f0] sm:$0xff] %v2806_v62  ;;  %2809 = vst [vmem:[%s12385_s8 + $0x13f8] sm:$0xff] %v2808_v63 }
 0x152 PF: > { %p10531_p6 = scmp.ge.s32.totalorder %s12301_s22, 1  ;;  %p5434_p7 = scmp.lt.s32.totalorder %s12301_s22, 3 }
 0x154   : > { %p5435_p8 = pnand %p10531_p6, %p5434_p7 }
 0x155   : > { %s5441_s9 = sand.u32 (!%p5435_p8), 1, %s12285_s18   ;;  %v13667_v0 = vld [vmem:[%s14566_s0] sm:$0xff] (!%p5435_p8)  ;;  %v13672_v1 = vld [vmem:[%s14566_s0 + $0x8] sm:$0xff] (!%p5435_p8) }
 0x156   : > { %5438 = sbr.rel (%p5435_p8) target bundleno = 1221 (0x4c5), region = 88  ;;  %v10538_v2 = vcombine.high (!%p5435_p8), %v13667_v0, %v13667_v0  ;;  %v10540_v3 = vcombine.high (!%p5435_p8), %v13672_v1, %v13672_v1 }
 0x157   : > { %s11221_s14 = smul.u32 (!%p5435_p8), 5120, %s5441_s9 }
 0x158   : > { %9554 = vmatprep.mubr.bf16.mxu0 (!%p5435_p8), %v10538_v2  ;;  %9595 = vmatprep.mubr.bf16.mxu1 (!%p5435_p8), %v10540_v3 }
 0x159   : > { %s13678_s15 = scalar_lea.vmem (!%p5435_p8), [#allocation2], %s11221_s14 }
 0x15a   : > { %v11263_v4 = vld [vmem:[%s13678_s15 + $0x4] ss:$8 sps:$4 sm:$0xff] (!%p5435_p8)   ;;  %v11267_v6 = vld [vmem:[%s13678_s15] ss:$8 sps:$4 sm:$0xff] (!%p5435_p8)   ;;  %v11269_v8 = vld [vmem:[%s13678_s15 + $0x14] ss:$8 sps:$4 sm:$0xff] (!%p5435_p8)  }
 0x15b   : > { %v11265_v5 = vld [vmem:[%s13678_s15 + $0x104] ss:$8 sps:$4 sm:$0xff] (!%p5435_p8)   ;;  %9522 = vmatprep.subr.bf16.mxu0 (!%p5435_p8), %v11263_v4  ;;  %v11268_v7 = vld [vmem:[%s13678_s15 + $0x100] ss:$8 sps:$4 sm:$0xff] (!%p5435_p8)   ;;  %v11271_v9 = vld [vmem:[%s13678_s15 + $0x114] ss:$8 sps:$4 sm:$0xff] (!%p5435_p8)  }
 0x15c   : > { %9563 = vmatprep.subr.bf16.mxu1 (!%p5435_p8), %v11265_v5  ;;  %9523 = vmatpush1.bf16.msra.mxu0 (!%p5435_p8), %v11267_v6  ;;  %v11273_v10 = vld [vmem:[%s13678_s15 + $0x10] ss:$8 sps:$4 sm:$0xff] (!%p5435_p8)   ;;  %v11275_v12 = vld [vmem:[%s13678_s15 + $0x24] ss:$8 sps:$4 sm:$0xff] (!%p5435_p8)   ;;  %v11279_v14 = vld [vmem:[%s13678_s15 + $0x20] ss:$8 sps:$4 sm:$0xff] (!%p5435_p8)  }
 0x15d   : > { %9564 = vmatpush1.bf16.msra.mxu1 %v11268_v7  ;;  %9524 = vmatprep.subr.bf16.mxu0 %v11269_v8  ;;  %v11274_v11 = vld [vmem:[%s13678_s15 + $0x110] ss:$8 sps:$4 sm:$0xff]   ;;  %v11277_v13 = vld [vmem:[%s13678_s15 + $0x124] ss:$8 sps:$4 sm:$0xff]   ;;  %v11280_v15 = vld [vmem:[%s13678_s15 + $0x120] ss:$8 sps:$4 sm:$0xff]  }
 0x15e   : > { %9565 = vmatprep.subr.bf16.mxu1 %v11271_v9  ;;  %v11281_v16 = vld [vmem:[%s13678_s15 + $0x34] ss:$8 sps:$4 sm:$0xff]   ;;  %v11285_v18 = vld [vmem:[%s13678_s15 + $0x30] ss:$8 sps:$4 sm:$0xff]   ;;  %v11287_v20 = vld [vmem:[%s13678_s15 + $0x44] ss:$8 sps:$4 sm:$0xff]  }
 0x15f   : > { %v11283_v17 = vld [vmem:[%s13678_s15 + $0x134] ss:$8 sps:$4 sm:$0xff]   ;;  %v11286_v19 = vld [vmem:[%s13678_s15 + $0x130] ss:$8 sps:$4 sm:$0xff]   ;;  %v11289_v21 = vld [vmem:[%s13678_s15 + $0x144] ss:$8 sps:$4 sm:$0xff]  }
 0x160   : > { %9525 = vmatpush1.bf16.msra.mxu0 %v11273_v10  ;;  %v11291_v22 = vld [vmem:[%s13678_s15 + $0x40] ss:$8 sps:$4 sm:$0xff]   ;;  %v11293_v24 = vld [vmem:[%s13678_s15 + $0x54] ss:$8 sps:$4 sm:$0xff]   ;;  %v11297_v26 = vld [vmem:[%s13678_s15 + $0x50] ss:$8 sps:$4 sm:$0xff]   ;;  %v10537_v10 = vcombine.low %v13667_v0, %v13667_v0 }
 0x161   : > { %9566 = vmatpush1.bf16.msra.mxu1 %v11274_v11  ;;  %9526 = vmatprep.subr.bf16.mxu0 %v11275_v12  ;;  %v11292_v23 = vld [vmem:[%s13678_s15 + $0x140] ss:$8 sps:$4 sm:$0xff]   ;;  %v11295_v25 = vld [vmem:[%s13678_s15 + $0x154] ss:$8 sps:$4 sm:$0xff]   ;;  %v11298_v27 = vld [vmem:[%s13678_s15 + $0x150] ss:$8 sps:$4 sm:$0xff]   ;;  %v10539_v11 = vcombine.low %v13672_v1, %v13672_v1 }
 0x162   : > { %9567 = vmatprep.subr.bf16.mxu1 %v11277_v13  ;;  %v11299_v28 = vld [vmem:[%s13678_s15 + $0x64] ss:$8 sps:$4 sm:$0xff]   ;;  %v11303_v30 = vld [vmem:[%s13678_s15 + $0x60] ss:$8 sps:$4 sm:$0xff]   ;;  %v11305_v32 = vld [vmem:[%s13678_s15 + $0x74] ss:$8 sps:$4 sm:$0xff]  }
 0x163   : > { %v11301_v29 = vld [vmem:[%s13678_s15 + $0x164] ss:$8 sps:$4 sm:$0xff]   ;;  %v11304_v31 = vld [vmem:[%s13678_s15 + $0x160] ss:$8 sps:$4 sm:$0xff]   ;;  %v11307_v33 = vld [vmem:[%s13678_s15 + $0x174] ss:$8 sps:$4 sm:$0xff]  }
 0x164   : > { %9527 = vmatpush1.bf16.msra.mxu0 %v11279_v14  ;;  %v11309_v34 = vld [vmem:[%s13678_s15 + $0x70] ss:$8 sps:$4 sm:$0xff]   ;;  %v11311_v36 = vld [vmem:[%s13678_s15 + $0x84] ss:$8 sps:$4 sm:$0xff]   ;;  %v11315_v38 = vld [vmem:[%s13678_s15 + $0x80] ss:$8 sps:$4 sm:$0xff]  }
 0x165   : > { %9568 = vmatpush1.bf16.msra.mxu1 %v11280_v15  ;;  %9528 = vmatprep.subr.bf16.mxu0 %v11281_v16  ;;  %v11310_v35 = vld [vmem:[%s13678_s15 + $0x170] ss:$8 sps:$4 sm:$0xff]   ;;  %v11313_v37 = vld [vmem:[%s13678_s15 + $0x184] ss:$8 sps:$4 sm:$0xff]   ;;  %v11316_v39 = vld [vmem:[%s13678_s15 + $0x180] ss:$8 sps:$4 sm:$0xff]  }
 0x166   : > { %9569 = vmatprep.subr.bf16.mxu1 %v11283_v17  ;;  %v11317_v40 = vld [vmem:[%s13678_s15 + $0x94] ss:$8 sps:$4 sm:$0xff]   ;;  %v11321_v42 = vld [vmem:[%s13678_s15 + $0x90] ss:$8 sps:$4 sm:$0xff]   ;;  %v11323_v44 = vld [vmem:[%s13678_s15 + $0xa4] ss:$8 sps:$4 sm:$0xff]  }
 0x167   : > { %v11319_v41 = vld [vmem:[%s13678_s15 + $0x194] ss:$8 sps:$4 sm:$0xff]   ;;  %v11322_v43 = vld [vmem:[%s13678_s15 + $0x190] ss:$8 sps:$4 sm:$0xff]   ;;  %v11325_v45 = vld [vmem:[%s13678_s15 + $0x1a4] ss:$8 sps:$4 sm:$0xff]  }
 0x168   : > { %9529 = vmatpush1.bf16.msra.mxu0 %v11285_v18  ;;  %v11327_v46 = vld [vmem:[%s13678_s15 + $0xa0] ss:$8 sps:$4 sm:$0xff]   ;;  %v11329_v48 = vld [vmem:[%s13678_s15 + $0xb4] ss:$8 sps:$4 sm:$0xff]   ;;  %v11333_v50 = vld [vmem:[%s13678_s15 + $0xb0] ss:$8 sps:$4 sm:$0xff]  }
 0x169   : > { %9570 = vmatpush1.bf16.msra.mxu1 %v11286_v19  ;;  %9530 = vmatprep.subr.bf16.mxu0 %v11287_v20  ;;  %v11328_v47 = vld [vmem:[%s13678_s15 + $0x1a0] ss:$8 sps:$4 sm:$0xff]   ;;  %v11331_v49 = vld [vmem:[%s13678_s15 + $0x1b4] ss:$8 sps:$4 sm:$0xff]   ;;  %v11334_v51 = vld [vmem:[%s13678_s15 + $0x1b0] ss:$8 sps:$4 sm:$0xff]  }
 0x16a   : > { %9571 = vmatprep.subr.bf16.mxu1 %v11289_v21  ;;  %v11335_v52 = vld [vmem:[%s13678_s15 + $0xc4] ss:$8 sps:$4 sm:$0xff]   ;;  %v11339_v54 = vld [vmem:[%s13678_s15 + $0xc0] ss:$8 sps:$4 sm:$0xff]   ;;  %v11341_v56 = vld [vmem:[%s13678_s15 + $0xd4] ss:$8 sps:$4 sm:$0xff]  }
 0x16b   : > { %v11337_v53 = vld [vmem:[%s13678_s15 + $0x1c4] ss:$8 sps:$4 sm:$0xff]   ;;  %v11340_v55 = vld [vmem:[%s13678_s15 + $0x1c0] ss:$8 sps:$4 sm:$0xff]   ;;  %v11343_v57 = vld [vmem:[%s13678_s15 + $0x1d4] ss:$8 sps:$4 sm:$0xff]  }
 0x16c   : > { %9531 = vmatpush1.bf16.msra.mxu0 %v11291_v22  ;;  %v11345_v58 = vld [vmem:[%s13678_s15 + $0xd0] ss:$8 sps:$4 sm:$0xff]   ;;  %v11347_v60 = vld [vmem:[%s13678_s15 + $0xe4] ss:$8 sps:$4 sm:$0xff]   ;;  %v11351_v62 = vld [vmem:[%s13678_s15 + $0xe0] ss:$8 sps:$4 sm:$0xff]  }
 0x16d   : > { %9572 = vmatpush1.bf16.msra.mxu1 %v11292_v23  ;;  %9532 = vmatprep.subr.bf16.mxu0 %v11293_v24  ;;  %v11346_v59 = vld [vmem:[%s13678_s15 + $0x1d0] ss:$8 sps:$4 sm:$0xff]   ;;  %v11349_v61 = vld [vmem:[%s13678_s15 + $0x1e4] ss:$8 sps:$4 sm:$0xff]   ;;  %v11352_v63 = vld [vmem:[%s13678_s15 + $0x1e0] ss:$8 sps:$4 sm:$0xff]  }
 0x16e   : > { %9573 = vmatprep.subr.bf16.mxu1 %v11295_v25  ;;  %v11353_v2 = vld [vmem:[%s13678_s15 + $0xf4] ss:$8 sps:$4 sm:$0xff]   ;;  %v11357_v4 = vld [vmem:[%s13678_s15 + $0xf0] ss:$8 sps:$4 sm:$0xff]   ;;  %v11365_v6 = vld [vmem:[%s13678_s15 + $0x204] ss:$8 sps:$4 sm:$0xff]  }
 0x16f   : > { %v11355_v3 = vld [vmem:[%s13678_s15 + $0x1f4] ss:$8 sps:$4 sm:$0xff]   ;;  %v11358_v5 = vld [vmem:[%s13678_s15 + $0x1f0] ss:$8 sps:$4 sm:$0xff]   ;;  %v11368_v7 = vld [vmem:[%s13678_s15 + $0x304] ss:$8 sps:$4 sm:$0xff]  }
 0x170   : > { %9533 = vmatpush1.bf16.msra.mxu0 %v11297_v26  ;;  %v13749_v8 = vld [vmem:[%s14566_s0 + $0x10] sm:$0xff]  ;;  %v13754_v9 = vld [vmem:[%s14566_s0 + $0x18] sm:$0xff]  ;;  %v11363_v12 = vld [vmem:[%s13678_s15 + $0x200] ss:$8 sps:$4 sm:$0xff]  }
 0x171   : > { %9574 = vmatpush1.bf16.msra.mxu1 %v11298_v27  ;;  %9534 = vmatprep.subr.bf16.mxu0 %v11299_v28  ;;  %v11366_v13 = vld [vmem:[%s13678_s15 + $0x300] ss:$8 sps:$4 sm:$0xff]   ;;  %v11371_v14 = vld [vmem:[%s13678_s15 + $0x214] ss:$8 sps:$4 sm:$0xff]   ;;  %v10542_v16 = vcombine.high %v13749_v8, %v13749_v8  ;;  %v10544_v0 = vcombine.high %v13754_v9, %v13754_v9  ;;  %v11369_v1 = vld [vmem:[%s13678_s15 + $0x210] ss:$8 sps:$4 sm:$0xff]  }
 0x172   : > { %9575 = vmatprep.subr.bf16.mxu1 %v11301_v29  ;;  %v11374_v15 = vld [vmem:[%s13678_s15 + $0x314] ss:$8 sps:$4 sm:$0xff]   ;;  %v11372_v17 = vld [vmem:[%s13678_s15 + $0x310] ss:$8 sps:$4 sm:$0xff]   ;;  %v11377_v18 = vld [vmem:[%s13678_s15 + $0x224] ss:$8 sps:$4 sm:$0xff]  }
 0x173   : > { %v11380_v19 = vld [vmem:[%s13678_s15 + $0x324] ss:$8 sps:$4 sm:$0xff]   ;;  %v11375_v20 = vld [vmem:[%s13678_s15 + $0x220] ss:$8 sps:$4 sm:$0xff]   ;;  %v11383_v22 = vld [vmem:[%s13678_s15 + $0x234] ss:$8 sps:$4 sm:$0xff]  }
 0x174   : > { %9535 = vmatpush1.bf16.msra.mxu0 %v11303_v30  ;;  %v11378_v21 = vld [vmem:[%s13678_s15 + $0x320] ss:$8 sps:$4 sm:$0xff]   ;;  %v11386_v23 = vld [vmem:[%s13678_s15 + $0x334] ss:$8 sps:$4 sm:$0xff]   ;;  %v11381_v24 = vld [vmem:[%s13678_s15 + $0x230] ss:$8 sps:$4 sm:$0xff]  }
 0x175   : > { %9576 = vmatpush1.bf16.msra.mxu1 %v11304_v31  ;;  %9536 = vmatprep.subr.bf16.mxu0 %v11305_v32  ;;  %v11384_v25 = vld [vmem:[%s13678_s15 + $0x330] ss:$8 sps:$4 sm:$0xff]   ;;  %v11389_v26 = vld [vmem:[%s13678_s15 + $0x244] ss:$8 sps:$4 sm:$0xff]   ;;  %v11387_v28 = vld [vmem:[%s13678_s15 + $0x240] ss:$8 sps:$4 sm:$0xff]  }
 0x176   : > { %9577 = vmatprep.subr.bf16.mxu1 %v11307_v33  ;;  %v11392_v27 = vld [vmem:[%s13678_s15 + $0x344] ss:$8 sps:$4 sm:$0xff]   ;;  %v11390_v29 = vld [vmem:[%s13678_s15 + $0x340] ss:$8 sps:$4 sm:$0xff]   ;;  %v11395_v30 = vld [vmem:[%s13678_s15 + $0x254] ss:$8 sps:$4 sm:$0xff]  }
 0x177   : > { %v11398_v31 = vld [vmem:[%s13678_s15 + $0x354] ss:$8 sps:$4 sm:$0xff]   ;;  %v11393_v32 = vld [vmem:[%s13678_s15 + $0x250] ss:$8 sps:$4 sm:$0xff]  }
 0x178   : > { %9537 = vmatpush1.bf16.msra.mxu0 %v11309_v34  ;;  %v11396_v33 = vld [vmem:[%s13678_s15 + $0x350] ss:$8 sps:$4 sm:$0xff]   ;;  %v11401_v34 = vld [vmem:[%s13678_s15 + $0x264] ss:$8 sps:$4 sm:$0xff]  }
 0x179   : > { %9578 = vmatpush1.bf16.msra.mxu1 %v11310_v35  ;;  %9538 = vmatprep.subr.bf16.mxu0 %v11311_v36  ;;  %v11404_v35 = vld [vmem:[%s13678_s15 + $0x364] ss:$8 sps:$4 sm:$0xff]   ;;  %v11399_v36 = vld [vmem:[%s13678_s15 + $0x260] ss:$8 sps:$4 sm:$0xff]  }
 0x17a   : > { %9579 = vmatprep.subr.bf16.mxu1 %v11313_v37  ;;  %v11402_v37 = vld [vmem:[%s13678_s15 + $0x360] ss:$8 sps:$4 sm:$0xff]  }
 0x17c   : > { %9539 = vmatpush1.bf16.msra.mxu0 %v11315_v38  ;;  %v11407_v38 = vld [vmem:[%s13678_s15 + $0x274] ss:$8 sps:$4 sm:$0xff]  }
 0x17d   : > { %9580 = vmatpush1.bf16.msra.mxu1 %v11316_v39  ;;  %9540 = vmatprep.subr.bf16.mxu0 %v11317_v40  ;;  %v11410_v39 = vld [vmem:[%s13678_s15 + $0x374] ss:$8 sps:$4 sm:$0xff]   ;;  %v11405_v40 = vld [vmem:[%s13678_s15 + $0x270] ss:$8 sps:$4 sm:$0xff]  }
 0x17e   : > { %9581 = vmatprep.subr.bf16.mxu1 %v11319_v41  ;;  %v11408_v41 = vld [vmem:[%s13678_s15 + $0x370] ss:$8 sps:$4 sm:$0xff]  }
 0x180   : > { %9541 = vmatpush1.bf16.msra.mxu0 %v11321_v42  ;;  %v11413_v42 = vld [vmem:[%s13678_s15 + $0x284] ss:$8 sps:$4 sm:$0xff]  }
 0x181   : > { %9582 = vmatpush1.bf16.msra.mxu1 %v11322_v43  ;;  %9542 = vmatprep.subr.bf16.mxu0 %v11323_v44  ;;  %v11416_v43 = vld [vmem:[%s13678_s15 + $0x384] ss:$8 sps:$4 sm:$0xff]   ;;  %v11411_v44 = vld [vmem:[%s13678_s15 + $0x280] ss:$8 sps:$4 sm:$0xff]  }
 0x182   : > { %9583 = vmatprep.subr.bf16.mxu1 %v11325_v45  ;;  %v11414_v45 = vld [vmem:[%s13678_s15 + $0x380] ss:$8 sps:$4 sm:$0xff]  }
 0x184   : > { %9543 = vmatpush1.bf16.msra.mxu0 %v11327_v46  ;;  %v11419_v46 = vld [vmem:[%s13678_s15 + $0x294] ss:$8 sps:$4 sm:$0xff]  }
 0x185   : > { %9584 = vmatpush1.bf16.msra.mxu1 %v11328_v47  ;;  %9544 = vmatprep.subr.bf16.mxu0 %v11329_v48  ;;  %v11422_v47 = vld [vmem:[%s13678_s15 + $0x394] ss:$8 sps:$4 sm:$0xff]   ;;  %v11417_v48 = vld [vmem:[%s13678_s15 + $0x290] ss:$8 sps:$4 sm:$0xff]  }
 0x186   : > { %9585 = vmatprep.subr.bf16.mxu1 %v11331_v49  ;;  %v11420_v49 = vld [vmem:[%s13678_s15 + $0x390] ss:$8 sps:$4 sm:$0xff]  }
 0x188   : > { %9545 = vmatpush1.bf16.msra.mxu0 %v11333_v50  ;;  %v11425_v50 = vld [vmem:[%s13678_s15 + $0x2a4] ss:$8 sps:$4 sm:$0xff]  }
 0x189   : > { %9586 = vmatpush1.bf16.msra.mxu1 %v11334_v51  ;;  %9546 = vmatprep.subr.bf16.mxu0 %v11335_v52  ;;  %v11428_v51 = vld [vmem:[%s13678_s15 + $0x3a4] ss:$8 sps:$4 sm:$0xff]   ;;  %v11423_v52 = vld [vmem:[%s13678_s15 + $0x2a0] ss:$8 sps:$4 sm:$0xff]  }
 0x18a   : > { %9587 = vmatprep.subr.bf16.mxu1 %v11337_v53  ;;  %v11426_v53 = vld [vmem:[%s13678_s15 + $0x3a0] ss:$8 sps:$4 sm:$0xff]  }
 0x18c   : > { %9547 = vmatpush1.bf16.msra.mxu0 %v11339_v54  ;;  %v11431_v54 = vld [vmem:[%s13678_s15 + $0x2b4] ss:$8 sps:$4 sm:$0xff]  }
 0x18d   : > { %9588 = vmatpush1.bf16.msra.mxu1 %v11340_v55  ;;  %9548 = vmatprep.subr.bf16.mxu0 %v11341_v56  ;;  %v11434_v55 = vld [vmem:[%s13678_s15 + $0x3b4] ss:$8 sps:$4 sm:$0xff]   ;;  %v11429_v56 = vld [vmem:[%s13678_s15 + $0x2b0] ss:$8 sps:$4 sm:$0xff]  }
 0x18e   : > { %9589 = vmatprep.subr.bf16.mxu1 %v11343_v57  ;;  %v11432_v57 = vld [vmem:[%s13678_s15 + $0x3b0] ss:$8 sps:$4 sm:$0xff]  }
 0x190   : > { %9549 = vmatpush1.bf16.msra.mxu0 %v11345_v58  ;;  %v11437_v58 = vld [vmem:[%s13678_s15 + $0x2c4] ss:$8 sps:$4 sm:$0xff]  }
 0x191   : > { %9590 = vmatpush1.bf16.msra.mxu1 %v11346_v59  ;;  %9550 = vmatprep.subr.bf16.mxu0 %v11347_v60  ;;  %v11440_v59 = vld [vmem:[%s13678_s15 + $0x3c4] ss:$8 sps:$4 sm:$0xff]   ;;  %v11435_v60 = vld [vmem:[%s13678_s15 + $0x2c0] ss:$8 sps:$4 sm:$0xff]  }
 0x192   : > { %9591 = vmatprep.subr.bf16.mxu1 %v11349_v61  ;;  %v11438_v61 = vld [vmem:[%s13678_s15 + $0x3c0] ss:$8 sps:$4 sm:$0xff]  }
 0x194   : > { %9551 = vmatpush1.bf16.msra.mxu0 %v11351_v62  ;;  %v11443_v62 = vld [vmem:[%s13678_s15 + $0x2d4] ss:$8 sps:$4 sm:$0xff]  }
 0x195   : > { %9592 = vmatpush1.bf16.msra.mxu1 %v11352_v63  ;;  %9552 = vmatprep.subr.bf16.mxu0 %v11353_v2  ;;  %v11446_v63 = vld [vmem:[%s13678_s15 + $0x3d4] ss:$8 sps:$4 sm:$0xff]   ;;  %v11441_v2 = vld [vmem:[%s13678_s15 + $0x2d0] ss:$8 sps:$4 sm:$0xff]  }
 0x196   : > { %9593 = vmatprep.subr.bf16.mxu1 %v11355_v3  ;;  %v11444_v3 = vld [vmem:[%s13678_s15 + $0x3d0] ss:$8 sps:$4 sm:$0xff]  }
 0x198   : > { %9553 = vmatpush1.bf16.msra.mxu0 %v11357_v4  ;;  %v11449_v4 = vld [vmem:[%s13678_s15 + $0x2e4] ss:$8 sps:$4 sm:$0xff]  }
 0x199   : > { %9594 = vmatpush1.bf16.msra.mxu1 %v11358_v5  ;;  %9604 = vmatprep.subr.bf16.mxu0 %v11365_v6  ;;  %v11452_v5 = vld [vmem:[%s13678_s15 + $0x3e4] ss:$8 sps:$4 sm:$0xff]   ;;  %v11447_v6 = vld [vmem:[%s13678_s15 + $0x2e0] ss:$8 sps:$4 sm:$0xff]  }
 0x19a   : > { %9645 = vmatprep.subr.bf16.mxu1 %v11368_v7  ;;  %v11450_v7 = vld [vmem:[%s13678_s15 + $0x3e0] ss:$8 sps:$4 sm:$0xff]  }
 0x19b   : > { %9555 = vmatmul.mubr.bf16.vlgmr.msra.gmra.mrb[0].mxu0 %v10537_v10  ;;  %v11455_v10 = vld [vmem:[%s13678_s15 + $0x2f4] ss:$8 sps:$4 sm:$0xff]  }
 0x19c   : > { %9596 = vmatmul.mubr.bf16.vlgmr.msra.gmra.mrb[0].mxu1 %v10539_v11  ;;  %9605 = vmatpush1.bf16.msra.mxu0 %v11363_v12  ;;  %v11458_v11 = vld [vmem:[%s13678_s15 + $0x3f4] ss:$8 sps:$4 sm:$0xff]   ;;  %v11453_v12 = vld [vmem:[%s13678_s15 + $0x2f0] ss:$8 sps:$4 sm:$0xff]  }
 0x19d   : > { %9646 = vmatpush1.bf16.msra.mxu1 %v11366_v13  ;;  %9606 = vmatprep.subr.bf16.mxu0 %v11371_v14  ;;  %v11456_v13 = vld [vmem:[%s13678_s15 + $0x3f0] ss:$8 sps:$4 sm:$0xff]   ;;  %v11465_v14 = vld [vmem:[%s13678_s15 + $0x404] ss:$8 sps:$4 sm:$0xff]  }
 0x19e   : > { %9647 = vmatprep.subr.bf16.mxu1 %v11374_v15  ;;  %9636 = vmatprep.mubr.bf16.mxu0 %v10542_v16  ;;  %v11468_v15 = vld [vmem:[%s13678_s15 + $0x504] ss:$8 sps:$4 sm:$0xff]   ;;  %v10541_v16 = vcombine.low %v13749_v8, %v13749_v8  ;;  %v11471_v8 = vld [vmem:[%s13678_s15 + $0x414] ss:$8 sps:$4 sm:$0xff]  }
 0x19f   : > { %9677 = vmatprep.mubr.bf16.mxu1 %v10544_v0  ;;  %v10543_v0 = vcombine.low %v13754_v9, %v13754_v9  ;;  %v11474_v9 = vld [vmem:[%s13678_s15 + $0x514] ss:$8 sps:$4 sm:$0xff]  }
 0x1a0   : > { %9607 = vmatpush1.bf16.msra.mxu0 %v11369_v1  ;;  %v11463_v1 = vld [vmem:[%s13678_s15 + $0x400] ss:$8 sps:$4 sm:$0xff]  }
 0x1a1   : > { %9648 = vmatpush1.bf16.msra.mxu1 %v11372_v17  ;;  %9608 = vmatprep.subr.bf16.mxu0 %v11377_v18  ;;  %v11466_v17 = vld [vmem:[%s13678_s15 + $0x500] ss:$8 sps:$4 sm:$0xff]  }
 0x1a2   : > { %9649 = vmatprep.subr.bf16.mxu1 %v11380_v19  ;;  %v13837_v18 = vld [vmem:[%s14566_s0 + $0x20] sm:$0xff]  ;;  %v13842_v19 = vld [vmem:[%s14566_s0 + $0x28] sm:$0xff] }
 0x1a4   : > { %9609 = vmatpush1.bf16.msra.mxu0 %v11375_v20  ;;  %v10546_v20 = vcombine.high %v13837_v18, %v13837_v18 }
 0x1a5   : > { %9650 = vmatpush1.bf16.msra.mxu1 %v11378_v21  ;;  %9610 = vmatprep.subr.bf16.mxu0 %v11383_v22  ;;  %v10548_v21 = vcombine.high %v13842_v19, %v13842_v19  ;;  %v11469_v22 = vld [vmem:[%s13678_s15 + $0x410] ss:$8 sps:$4 sm:$0xff]  }
 0x1a6   : > { %9651 = vmatprep.subr.bf16.mxu1 %v11386_v23  ;;  %v11472_v23 = vld [vmem:[%s13678_s15 + $0x510] ss:$8 sps:$4 sm:$0xff]  }
 0x1a8   : > { %9611 = vmatpush1.bf16.msra.mxu0 %v11381_v24  ;;  %v11477_v24 = vld [vmem:[%s13678_s15 + $0x424] ss:$8 sps:$4 sm:$0xff]  }
 0x1a9   : > { %9652 = vmatpush1.bf16.msra.mxu1 %v11384_v25  ;;  %9612 = vmatprep.subr.bf16.mxu0 %v11389_v26  ;;  %v11480_v25 = vld [vmem:[%s13678_s15 + $0x524] ss:$8 sps:$4 sm:$0xff]   ;;  %v11475_v26 = vld [vmem:[%s13678_s15 + $0x420] ss:$8 sps:$4 sm:$0xff]  }
 0x1aa   : > { %9653 = vmatprep.subr.bf16.mxu1 %v11392_v27  ;;  %v11478_v27 = vld [vmem:[%s13678_s15 + $0x520] ss:$8 sps:$4 sm:$0xff]  }
 0x1ac   : > { %9613 = vmatpush1.bf16.msra.mxu0 %v11387_v28  ;;  %v11483_v28 = vld [vmem:[%s13678_s15 + $0x434] ss:$8 sps:$4 sm:$0xff]  }
 0x1ad   : > { %9654 = vmatpush1.bf16.msra.mxu1 %v11390_v29  ;;  %9614 = vmatprep.subr.bf16.mxu0 %v11395_v30  ;;  %v11486_v29 = vld [vmem:[%s13678_s15 + $0x534] ss:$8 sps:$4 sm:$0xff]   ;;  %v11481_v30 = vld [vmem:[%s13678_s15 + $0x430] ss:$8 sps:$4 sm:$0xff]  }
 0x1ae   : > { %9655 = vmatprep.subr.bf16.mxu1 %v11398_v31  ;;  %v11484_v31 = vld [vmem:[%s13678_s15 + $0x530] ss:$8 sps:$4 sm:$0xff]  }
 0x1b0   : > { %9615 = vmatpush1.bf16.msra.mxu0 %v11393_v32  ;;  %v11489_v32 = vld [vmem:[%s13678_s15 + $0x444] ss:$8 sps:$4 sm:$0xff]  }
 0x1b1   : > { %9656 = vmatpush1.bf16.msra.mxu1 %v11396_v33  ;;  %9616 = vmatprep.subr.bf16.mxu0 %v11401_v34  ;;  %v11492_v33 = vld [vmem:[%s13678_s15 + $0x544] ss:$8 sps:$4 sm:$0xff]   ;;  %v11487_v34 = vld [vmem:[%s13678_s15 + $0x440] ss:$8 sps:$4 sm:$0xff]  }
 0x1b2   : > { %9657 = vmatprep.subr.bf16.mxu1 %v11404_v35  ;;  %v11490_v35 = vld [vmem:[%s13678_s15 + $0x540] ss:$8 sps:$4 sm:$0xff]  }
 0x1b4   : > { %9617 = vmatpush1.bf16.msra.mxu0 %v11399_v36  ;;  %v11495_v36 = vld [vmem:[%s13678_s15 + $0x454] ss:$8 sps:$4 sm:$0xff]  }
 0x1b5   : > { %9658 = vmatpush1.bf16.msra.mxu1 %v11402_v37  ;;  %9618 = vmatprep.subr.bf16.mxu0 %v11407_v38  ;;  %v11498_v37 = vld [vmem:[%s13678_s15 + $0x554] ss:$8 sps:$4 sm:$0xff]   ;;  %v11493_v38 = vld [vmem:[%s13678_s15 + $0x450] ss:$8 sps:$4 sm:$0xff]  }
 0x1b6   : > { %9659 = vmatprep.subr.bf16.mxu1 %v11410_v39  ;;  %v11496_v39 = vld [vmem:[%s13678_s15 + $0x550] ss:$8 sps:$4 sm:$0xff]  }
 0x1b8   : > { %9619 = vmatpush1.bf16.msra.mxu0 %v11405_v40  ;;  %v11501_v40 = vld [vmem:[%s13678_s15 + $0x464] ss:$8 sps:$4 sm:$0xff]  }
 0x1b9   : > { %9660 = vmatpush1.bf16.msra.mxu1 %v11408_v41  ;;  %9620 = vmatprep.subr.bf16.mxu0 %v11413_v42  ;;  %v11504_v41 = vld [vmem:[%s13678_s15 + $0x564] ss:$8 sps:$4 sm:$0xff]   ;;  %v11499_v42 = vld [vmem:[%s13678_s15 + $0x460] ss:$8 sps:$4 sm:$0xff]  }
 0x1ba   : > { %9661 = vmatprep.subr.bf16.mxu1 %v11416_v43  ;;  %v11502_v43 = vld [vmem:[%s13678_s15 + $0x560] ss:$8 sps:$4 sm:$0xff]  }
 0x1bc   : > { %9621 = vmatpush1.bf16.msra.mxu0 %v11411_v44  ;;  %v11507_v44 = vld [vmem:[%s13678_s15 + $0x474] ss:$8 sps:$4 sm:$0xff]  }
 0x1bd   : > { %9662 = vmatpush1.bf16.msra.mxu1 %v11414_v45  ;;  %9622 = vmatprep.subr.bf16.mxu0 %v11419_v46  ;;  %v11510_v45 = vld [vmem:[%s13678_s15 + $0x574] ss:$8 sps:$4 sm:$0xff]   ;;  %v11505_v46 = vld [vmem:[%s13678_s15 + $0x470] ss:$8 sps:$4 sm:$0xff]  }
 0x1be   : > { %9663 = vmatprep.subr.bf16.mxu1 %v11422_v47  ;;  %v11508_v47 = vld [vmem:[%s13678_s15 + $0x570] ss:$8 sps:$4 sm:$0xff]  }
 0x1c0   : > { %9623 = vmatpush1.bf16.msra.mxu0 %v11417_v48  ;;  %v11513_v48 = vld [vmem:[%s13678_s15 + $0x484] ss:$8 sps:$4 sm:$0xff]  }
 0x1c1   : > { %9664 = vmatpush1.bf16.msra.mxu1 %v11420_v49  ;;  %9624 = vmatprep.subr.bf16.mxu0 %v11425_v50  ;;  %v11516_v49 = vld [vmem:[%s13678_s15 + $0x584] ss:$8 sps:$4 sm:$0xff]   ;;  %v11511_v50 = vld [vmem:[%s13678_s15 + $0x480] ss:$8 sps:$4 sm:$0xff]  }
 0x1c2   : > { %9665 = vmatprep.subr.bf16.mxu1 %v11428_v51  ;;  %v11514_v51 = vld [vmem:[%s13678_s15 + $0x580] ss:$8 sps:$4 sm:$0xff]  }
 0x1c4   : > { %9625 = vmatpush1.bf16.msra.mxu0 %v11423_v52  ;;  %v11519_v52 = vld [vmem:[%s13678_s15 + $0x494] ss:$8 sps:$4 sm:$0xff]  }
 0x1c5   : > { %9666 = vmatpush1.bf16.msra.mxu1 %v11426_v53  ;;  %9626 = vmatprep.subr.bf16.mxu0 %v11431_v54  ;;  %v11522_v53 = vld [vmem:[%s13678_s15 + $0x594] ss:$8 sps:$4 sm:$0xff]   ;;  %v11517_v54 = vld [vmem:[%s13678_s15 + $0x490] ss:$8 sps:$4 sm:$0xff]  }
 0x1c6   : > { %9667 = vmatprep.subr.bf16.mxu1 %v11434_v55  ;;  %v11520_v55 = vld [vmem:[%s13678_s15 + $0x590] ss:$8 sps:$4 sm:$0xff]  }
 0x1c8   : > { %9627 = vmatpush1.bf16.msra.mxu0 %v11429_v56  ;;  %v11525_v56 = vld [vmem:[%s13678_s15 + $0x4a4] ss:$8 sps:$4 sm:$0xff]  }
 0x1c9   : > { %9668 = vmatpush1.bf16.msra.mxu1 %v11432_v57  ;;  %9628 = vmatprep.subr.bf16.mxu0 %v11437_v58  ;;  %v11528_v57 = vld [vmem:[%s13678_s15 + $0x5a4] ss:$8 sps:$4 sm:$0xff]   ;;  %v11523_v58 = vld [vmem:[%s13678_s15 + $0x4a0] ss:$8 sps:$4 sm:$0xff]  }
 0x1ca   : > { %9669 = vmatprep.subr.bf16.mxu1 %v11440_v59  ;;  %v11526_v59 = vld [vmem:[%s13678_s15 + $0x5a0] ss:$8 sps:$4 sm:$0xff]  }
 0x1cc   : > { %9629 = vmatpush1.bf16.msra.mxu0 %v11435_v60  ;;  %v11531_v60 = vld [vmem:[%s13678_s15 + $0x4b4] ss:$8 sps:$4 sm:$0xff]  }
 0x1cd   : > { %9670 = vmatpush1.bf16.msra.mxu1 %v11438_v61  ;;  %9630 = vmatprep.subr.bf16.mxu0 %v11443_v62  ;;  %v11534_v61 = vld [vmem:[%s13678_s15 + $0x5b4] ss:$8 sps:$4 sm:$0xff]   ;;  %v11529_v62 = vld [vmem:[%s13678_s15 + $0x4b0] ss:$8 sps:$4 sm:$0xff]  }
 0x1ce   : > { %9671 = vmatprep.subr.bf16.mxu1 %v11446_v63  ;;  %v11532_v63 = vld [vmem:[%s13678_s15 + $0x5b0] ss:$8 sps:$4 sm:$0xff]  }
 0x1d0   : > { %9631 = vmatpush1.bf16.msra.mxu0 %v11441_v2  ;;  %v11537_v2 = vld [vmem:[%s13678_s15 + $0x4c4] ss:$8 sps:$4 sm:$0xff]  }
 0x1d1   : > { %9672 = vmatpush1.bf16.msra.mxu1 %v11444_v3  ;;  %9632 = vmatprep.subr.bf16.mxu0 %v11449_v4  ;;  %v11540_v3 = vld [vmem:[%s13678_s15 + $0x5c4] ss:$8 sps:$4 sm:$0xff]   ;;  %v11535_v4 = vld [vmem:[%s13678_s15 + $0x4c0] ss:$8 sps:$4 sm:$0xff]  }
 0x1d2   : > { %9673 = vmatprep.subr.bf16.mxu1 %v11452_v5  ;;  %v11538_v5 = vld [vmem:[%s13678_s15 + $0x5c0] ss:$8 sps:$4 sm:$0xff]  }
 0x1d4   : > { %9633 = vmatpush1.bf16.msra.mxu0 %v11447_v6  ;;  %v11543_v6 = vld [vmem:[%s13678_s15 + $0x4d4] ss:$8 sps:$4 sm:$0xff]  }
 0x1d5   : > { %9674 = vmatpush1.bf16.msra.mxu1 %v11450_v7  ;;  %9634 = vmatprep.subr.bf16.mxu0 %v11455_v10  ;;  %v11546_v7 = vld [vmem:[%s13678_s15 + $0x5d4] ss:$8 sps:$4 sm:$0xff]   ;;  %v11541_v10 = vld [vmem:[%s13678_s15 + $0x4d0] ss:$8 sps:$4 sm:$0xff]  }
 0x1d6   : > { %9675 = vmatprep.subr.bf16.mxu1 %v11458_v11  ;;  %v11544_v11 = vld [vmem:[%s13678_s15 + $0x5d0] ss:$8 sps:$4 sm:$0xff]  }
 0x1d8   : > { %9635 = vmatpush1.bf16.msra.mxu0 %v11453_v12  ;;  %v11549_v12 = vld [vmem:[%s13678_s15 + $0x4e4] ss:$8 sps:$4 sm:$0xff]  }
 0x1d9   : > { %9676 = vmatpush1.bf16.msra.mxu1 %v11456_v13  ;;  %9686 = vmatprep.subr.bf16.mxu0 %v11465_v14  ;;  %v11552_v13 = vld [vmem:[%s13678_s15 + $0x5e4] ss:$8 sps:$4 sm:$0xff]   ;;  %v11547_v14 = vld [vmem:[%s13678_s15 + $0x4e0] ss:$8 sps:$4 sm:$0xff]  }
 0x1da   : > { %9727 = vmatprep.subr.bf16.mxu1 %v11468_v15  ;;  %v11550_v15 = vld [vmem:[%s13678_s15 + $0x5e0] ss:$8 sps:$4 sm:$0xff]  }
 0x1db   : > { %9637 = vmatmul.mubr.bf16.vlgmr.msra.gmra.mrb[4].mxu0 %v10541_v16  ;;  %v11555_v16 = vld [vmem:[%s13678_s15 + $0x4f4] ss:$8 sps:$4 sm:$0xff]  }
 0x1dc   : > { %9678 = vmatmul.mubr.bf16.vlgmr.msra.gmra.mrb[4].mxu1 %v10543_v0  ;;  %9687 = vmatpush1.bf16.msra.mxu0 %v11463_v1  ;;  %v11558_v0 = vld [vmem:[%s13678_s15 + $0x5f4] ss:$8 sps:$4 sm:$0xff]   ;;  %v11553_v1 = vld [vmem:[%s13678_s15 + $0x4f0] ss:$8 sps:$4 sm:$0xff]  }
 0x1dd   : > { %9728 = vmatpush1.bf16.msra.mxu1 %v11466_v17  ;;  %9688 = vmatprep.subr.bf16.mxu0 %v11471_v8  ;;  %v11556_v17 = vld [vmem:[%s13678_s15 + $0x5f0] ss:$8 sps:$4 sm:$0xff]   ;;  %v11565_v8 = vld [vmem:[%s13678_s15 + $0x604] ss:$8 sps:$4 sm:$0xff]  }
 0x1de   : > { %9729 = vmatprep.subr.bf16.mxu1 %v11474_v9  ;;  %9718 = vmatprep.mubr.bf16.mxu0 %v10546_v20  ;;  %v11568_v9 = vld [vmem:[%s13678_s15 + $0x704] ss:$8 sps:$4 sm:$0xff]   ;;  %v11563_v20 = vld [vmem:[%s13678_s15 + $0x600] ss:$8 sps:$4 sm:$0xff]  }
 0x1df   : > { %9759 = vmatprep.mubr.bf16.mxu1 %v10548_v21  ;;  %v11566_v21 = vld [vmem:[%s13678_s15 + $0x700] ss:$8 sps:$4 sm:$0xff]  }
 0x1e0   : > { %9689 = vmatpush1.bf16.msra.mxu0 %v11469_v22  ;;  %v10545_v22 = vcombine.low %v13837_v18, %v13837_v18  ;;  %v11574_v18 = vld [vmem:[%s13678_s15 + $0x714] ss:$8 sps:$4 sm:$0xff]  }
 0x1e1   : > { %9730 = vmatpush1.bf16.msra.mxu1 %v11472_v23  ;;  %9690 = vmatprep.subr.bf16.mxu0 %v11477_v24  ;;  %v10547_v23 = vcombine.low %v13842_v19, %v13842_v19  ;;  %v13919_v24 = vld [vmem:[%s14566_s0 + $0x30] sm:$0xff] }
 0x1e2   : > { %9731 = vmatprep.subr.bf16.mxu1 %v11480_v25  ;;  %v13924_v25 = vld [vmem:[%s14566_s0 + $0x38] sm:$0xff]  ;;  %v10550_v19 = vcombine.high %v13919_v24, %v13919_v24 }
 0x1e4   : > { %9691 = vmatpush1.bf16.msra.mxu0 %v11475_v26  ;;  %v11571_v26 = vld [vmem:[%s13678_s15 + $0x614] ss:$8 sps:$4 sm:$0xff]  }
 0x1e5   : > { %9732 = vmatpush1.bf16.msra.mxu1 %v11478_v27  ;;  %9692 = vmatprep.subr.bf16.mxu0 %v11483_v28  ;;  %v10552_v27 = vcombine.high %v13924_v25, %v13924_v25  ;;  %v11569_v28 = vld [vmem:[%s13678_s15 + $0x610] ss:$8 sps:$4 sm:$0xff]  }
 0x1e6   : > { %9733 = vmatprep.subr.bf16.mxu1 %v11486_v29  ;;  %v11572_v29 = vld [vmem:[%s13678_s15 + $0x710] ss:$8 sps:$4 sm:$0xff]  }
 0x1e8   : > { %9693 = vmatpush1.bf16.msra.mxu0 %v11481_v30  ;;  %v11577_v30 = vld [vmem:[%s13678_s15 + $0x624] ss:$8 sps:$4 sm:$0xff]  }
 0x1e9   : > { %9734 = vmatpush1.bf16.msra.mxu1 %v11484_v31  ;;  %9694 = vmatprep.subr.bf16.mxu0 %v11489_v32  ;;  %v11580_v31 = vld [vmem:[%s13678_s15 + $0x724] ss:$8 sps:$4 sm:$0xff]   ;;  %v11575_v32 = vld [vmem:[%s13678_s15 + $0x620] ss:$8 sps:$4 sm:$0xff]  }
 0x1ea   : > { %9735 = vmatprep.subr.bf16.mxu1 %v11492_v33  ;;  %v11578_v33 = vld [vmem:[%s13678_s15 + $0x720] ss:$8 sps:$4 sm:$0xff]  }
 0x1ec   : > { %9695 = vmatpush1.bf16.msra.mxu0 %v11487_v34  ;;  %v11583_v34 = vld [vmem:[%s13678_s15 + $0x634] ss:$8 sps:$4 sm:$0xff]  }
 0x1ed   : > { %9736 = vmatpush1.bf16.msra.mxu1 %v11490_v35  ;;  %9696 = vmatprep.subr.bf16.mxu0 %v11495_v36  ;;  %v11586_v35 = vld [vmem:[%s13678_s15 + $0x734] ss:$8 sps:$4 sm:$0xff]   ;;  %v11581_v36 = vld [vmem:[%s13678_s15 + $0x630] ss:$8 sps:$4 sm:$0xff]  }
 0x1ee   : > { %9737 = vmatprep.subr.bf16.mxu1 %v11498_v37  ;;  %v11584_v37 = vld [vmem:[%s13678_s15 + $0x730] ss:$8 sps:$4 sm:$0xff]  }
 0x1f0   : > { %9697 = vmatpush1.bf16.msra.mxu0 %v11493_v38  ;;  %v11589_v38 = vld [vmem:[%s13678_s15 + $0x644] ss:$8 sps:$4 sm:$0xff]  }
 0x1f1   : > { %9738 = vmatpush1.bf16.msra.mxu1 %v11496_v39  ;;  %9698 = vmatprep.subr.bf16.mxu0 %v11501_v40  ;;  %v11592_v39 = vld [vmem:[%s13678_s15 + $0x744] ss:$8 sps:$4 sm:$0xff]   ;;  %v11587_v40 = vld [vmem:[%s13678_s15 + $0x640] ss:$8 sps:$4 sm:$0xff]  }
 0x1f2   : > { %9739 = vmatprep.subr.bf16.mxu1 %v11504_v41  ;;  %v11590_v41 = vld [vmem:[%s13678_s15 + $0x740] ss:$8 sps:$4 sm:$0xff]  }
 0x1f4   : > { %9699 = vmatpush1.bf16.msra.mxu0 %v11499_v42  ;;  %v11595_v42 = vld [vmem:[%s13678_s15 + $0x654] ss:$8 sps:$4 sm:$0xff]  }
 0x1f5   : > { %9740 = vmatpush1.bf16.msra.mxu1 %v11502_v43  ;;  %9700 = vmatprep.subr.bf16.mxu0 %v11507_v44  ;;  %v11598_v43 = vld [vmem:[%s13678_s15 + $0x754] ss:$8 sps:$4 sm:$0xff]   ;;  %v11593_v44 = vld [vmem:[%s13678_s15 + $0x650] ss:$8 sps:$4 sm:$0xff]  }
 0x1f6   : > { %9741 = vmatprep.subr.bf16.mxu1 %v11510_v45  ;;  %v11596_v45 = vld [vmem:[%s13678_s15 + $0x750] ss:$8 sps:$4 sm:$0xff]  }
 0x1f8   : > { %9701 = vmatpush1.bf16.msra.mxu0 %v11505_v46  ;;  %v11601_v46 = vld [vmem:[%s13678_s15 + $0x664] ss:$8 sps:$4 sm:$0xff]  }
 0x1f9   : > { %9742 = vmatpush1.bf16.msra.mxu1 %v11508_v47  ;;  %9702 = vmatprep.subr.bf16.mxu0 %v11513_v48  ;;  %v11604_v47 = vld [vmem:[%s13678_s15 + $0x764] ss:$8 sps:$4 sm:$0xff]   ;;  %v11599_v48 = vld [vmem:[%s13678_s15 + $0x660] ss:$8 sps:$4 sm:$0xff]  }
 0x1fa   : > { %9743 = vmatprep.subr.bf16.mxu1 %v11516_v49  ;;  %v11602_v49 = vld [vmem:[%s13678_s15 + $0x760] ss:$8 sps:$4 sm:$0xff]  }
 0x1fc   : > { %9703 = vmatpush1.bf16.msra.mxu0 %v11511_v50  ;;  %v11607_v50 = vld [vmem:[%s13678_s15 + $0x674] ss:$8 sps:$4 sm:$0xff]  }
 0x1fd   : > { %9744 = vmatpush1.bf16.msra.mxu1 %v11514_v51  ;;  %9704 = vmatprep.subr.bf16.mxu0 %v11519_v52  ;;  %v11610_v51 = vld [vmem:[%s13678_s15 + $0x774] ss:$8 sps:$4 sm:$0xff]   ;;  %v11605_v52 = vld [vmem:[%s13678_s15 + $0x670] ss:$8 sps:$4 sm:$0xff]  }
 0x1fe   : > { %9745 = vmatprep.subr.bf16.mxu1 %v11522_v53  ;;  %v11608_v53 = vld [vmem:[%s13678_s15 + $0x770] ss:$8 sps:$4 sm:$0xff]  }
 0x200   : > { %9705 = vmatpush1.bf16.msra.mxu0 %v11517_v54  ;;  %v11613_v54 = vld [vmem:[%s13678_s15 + $0x684] ss:$8 sps:$4 sm:$0xff]  }
 0x201   : > { %9746 = vmatpush1.bf16.msra.mxu1 %v11520_v55  ;;  %9706 = vmatprep.subr.bf16.mxu0 %v11525_v56  ;;  %v11616_v55 = vld [vmem:[%s13678_s15 + $0x784] ss:$8 sps:$4 sm:$0xff]   ;;  %v11611_v56 = vld [vmem:[%s13678_s15 + $0x680] ss:$8 sps:$4 sm:$0xff]  }
 0x202   : > { %9747 = vmatprep.subr.bf16.mxu1 %v11528_v57  ;;  %v11614_v57 = vld [vmem:[%s13678_s15 + $0x780] ss:$8 sps:$4 sm:$0xff]  }
 0x204   : > { %9707 = vmatpush1.bf16.msra.mxu0 %v11523_v58  ;;  %v11619_v58 = vld [vmem:[%s13678_s15 + $0x694] ss:$8 sps:$4 sm:$0xff]  }
 0x205   : > { %9748 = vmatpush1.bf16.msra.mxu1 %v11526_v59  ;;  %9708 = vmatprep.subr.bf16.mxu0 %v11531_v60  ;;  %v11622_v59 = vld [vmem:[%s13678_s15 + $0x794] ss:$8 sps:$4 sm:$0xff]   ;;  %v11617_v60 = vld [vmem:[%s13678_s15 + $0x690] ss:$8 sps:$4 sm:$0xff]  }
 0x206   : > { %9749 = vmatprep.subr.bf16.mxu1 %v11534_v61  ;;  %v11620_v61 = vld [vmem:[%s13678_s15 + $0x790] ss:$8 sps:$4 sm:$0xff]  }
 0x208   : > { %9709 = vmatpush1.bf16.msra.mxu0 %v11529_v62  ;;  %v11625_v62 = vld [vmem:[%s13678_s15 + $0x6a4] ss:$8 sps:$4 sm:$0xff]  }
 0x209   : > { %9750 = vmatpush1.bf16.msra.mxu1 %v11532_v63  ;;  %9710 = vmatprep.subr.bf16.mxu0 %v11537_v2  ;;  %v11628_v63 = vld [vmem:[%s13678_s15 + $0x7a4] ss:$8 sps:$4 sm:$0xff]   ;;  %v11623_v2 = vld [vmem:[%s13678_s15 + $0x6a0] ss:$8 sps:$4 sm:$0xff]  }
 0x20a   : > { %9751 = vmatprep.subr.bf16.mxu1 %v11540_v3  ;;  %v11626_v3 = vld [vmem:[%s13678_s15 + $0x7a0] ss:$8 sps:$4 sm:$0xff]  }
 0x20c   : > { %9711 = vmatpush1.bf16.msra.mxu0 %v11535_v4  ;;  %v11631_v4 = vld [vmem:[%s13678_s15 + $0x6b4] ss:$8 sps:$4 sm:$0xff]  }
 0x20d   : > { %9752 = vmatpush1.bf16.msra.mxu1 %v11538_v5  ;;  %9712 = vmatprep.subr.bf16.mxu0 %v11543_v6  ;;  %v11634_v5 = vld [vmem:[%s13678_s15 + $0x7b4] ss:$8 sps:$4 sm:$0xff]   ;;  %v11629_v6 = vld [vmem:[%s13678_s15 + $0x6b0] ss:$8 sps:$4 sm:$0xff]  }
 0x20e   : > { %9753 = vmatprep.subr.bf16.mxu1 %v11546_v7  ;;  %v11632_v7 = vld [vmem:[%s13678_s15 + $0x7b0] ss:$8 sps:$4 sm:$0xff]  }
 0x210   : > { %9713 = vmatpush1.bf16.msra.mxu0 %v11541_v10  ;;  %v11637_v10 = vld [vmem:[%s13678_s15 + $0x6c4] ss:$8 sps:$4 sm:$0xff]  }
 0x211   : > { %9754 = vmatpush1.bf16.msra.mxu1 %v11544_v11  ;;  %9714 = vmatprep.subr.bf16.mxu0 %v11549_v12  ;;  %v11640_v11 = vld [vmem:[%s13678_s15 + $0x7c4] ss:$8 sps:$4 sm:$0xff]   ;;  %v11635_v12 = vld [vmem:[%s13678_s15 + $0x6c0] ss:$8 sps:$4 sm:$0xff]  }
 0x212   : > { %9755 = vmatprep.subr.bf16.mxu1 %v11552_v13  ;;  %v11638_v13 = vld [vmem:[%s13678_s15 + $0x7c0] ss:$8 sps:$4 sm:$0xff]  }
 0x214   : > { %9715 = vmatpush1.bf16.msra.mxu0 %v11547_v14  ;;  %v11643_v14 = vld [vmem:[%s13678_s15 + $0x6d4] ss:$8 sps:$4 sm:$0xff]  }
 0x215   : > { %9756 = vmatpush1.bf16.msra.mxu1 %v11550_v15  ;;  %9716 = vmatprep.subr.bf16.mxu0 %v11555_v16  ;;  %v11646_v15 = vld [vmem:[%s13678_s15 + $0x7d4] ss:$8 sps:$4 sm:$0xff]   ;;  %v11641_v16 = vld [vmem:[%s13678_s15 + $0x6d0] ss:$8 sps:$4 sm:$0xff]  }
 0x216   : > { %9757 = vmatprep.subr.bf16.mxu1 %v11558_v0  ;;  %v11644_v0 = vld [vmem:[%s13678_s15 + $0x7d0] ss:$8 sps:$4 sm:$0xff]  }
 0x218   : > { %9717 = vmatpush1.bf16.msra.mxu0 %v11553_v1  ;;  %v11649_v1 = vld [vmem:[%s13678_s15 + $0x6e4] ss:$8 sps:$4 sm:$0xff]  }
 0x219   : > { %9758 = vmatpush1.bf16.msra.mxu1 %v11556_v17  ;;  %9768 = vmatprep.subr.bf16.mxu0 %v11565_v8  ;;  %v11652_v17 = vld [vmem:[%s13678_s15 + $0x7e4] ss:$8 sps:$4 sm:$0xff]   ;;  %v11647_v8 = vld [vmem:[%s13678_s15 + $0x6e0] ss:$8 sps:$4 sm:$0xff]  }
 0x21a   : > { %9809 = vmatprep.subr.bf16.mxu1 %v11568_v9  ;;  %v11650_v9 = vld [vmem:[%s13678_s15 + $0x7e0] ss:$8 sps:$4 sm:$0xff]  }
 0x21b   : > { %9719 = vmatmul.mubr.bf16.vlgmr.msra.gmra.mrb[8].mxu0 %v10545_v22  ;;  %v11653_v22 = vld [vmem:[%s13678_s15 + $0x6f0] ss:$8 sps:$4 sm:$0xff]  }
 0x21c   : > { %9760 = vmatmul.mubr.bf16.vlgmr.msra.gmra.mrb[8].mxu1 %v10547_v23  ;;  %9769 = vmatpush1.bf16.msra.mxu0 %v11563_v20  ;;  %v11655_v20 = vld [vmem:[%s13678_s15 + $0x6f4] ss:$8 sps:$4 sm:$0xff]   ;;  %v11656_v23 = vld [vmem:[%s13678_s15 + $0x7f0] ss:$8 sps:$4 sm:$0xff]  }
 0x21d   : > { %9810 = vmatpush1.bf16.msra.mxu1 %v11566_v21  ;;  %9770 = vmatprep.subr.bf16.mxu0 %v11571_v26  ;;  %v11658_v21 = vld [vmem:[%s13678_s15 + $0x7f4] ss:$8 sps:$4 sm:$0xff]   ;;  %v11665_v26 = vld [vmem:[%s13678_s15 + $0x804] ss:$8 sps:$4 sm:$0xff]  }
 0x21e   : > { %9811 = vmatprep.subr.bf16.mxu1 %v11574_v18  ;;  %9800 = vmatprep.mubr.bf16.mxu0 %v10550_v19  ;;  %v11668_v18 = vld [vmem:[%s13678_s15 + $0x904] ss:$8 sps:$4 sm:$0xff]  }
 0x21f   : > { %9841 = vmatprep.mubr.bf16.mxu1 %v10552_v27  ;;  %v13995_v19 = vld [vmem:[%s14566_s0 + $0x40] sm:$0xff]  ;;  %v10549_v27 = vcombine.low %v13919_v24, %v13919_v24  ;;  %v11674_v24 = vld [vmem:[%s13678_s15 + $0x914] ss:$8 sps:$4 sm:$0xff]  }
 0x220   : > { %9771 = vmatpush1.bf16.msra.mxu0 %v11569_v28  ;;  %v10551_v28 = vcombine.low %v13924_v25, %v13924_v25  ;;  %v10554_v25 = vcombine.high %v13995_v19, %v13995_v19 }
 0x221   : > { %9812 = vmatpush1.bf16.msra.mxu1 %v11572_v29  ;;  %9772 = vmatprep.subr.bf16.mxu0 %v11577_v30  ;;  %v14004_v29 = vld [vmem:[%s14566_s0 + $0x48] sm:$0xff] }
 0x222   : > { %9813 = vmatprep.subr.bf16.mxu1 %v11580_v31  ;;  %v11663_v30 = vld [vmem:[%s13678_s15 + $0x800] ss:$8 sps:$4 sm:$0xff]  }
 0x223   : > { %v11666_v31 = vld [vmem:[%s13678_s15 + $0x900] ss:$8 sps:$4 sm:$0xff]  }
 0x224   : > { %9773 = vmatpush1.bf16.msra.mxu0 %v11575_v32  ;;  %v11671_v32 = vld [vmem:[%s13678_s15 + $0x814] ss:$8 sps:$4 sm:$0xff]  }
 0x225   : > { %9814 = vmatpush1.bf16.msra.mxu1 %v11578_v33  ;;  %9774 = vmatprep.subr.bf16.mxu0 %v11583_v34  ;;  %v10556_v33 = vcombine.high %v14004_v29, %v14004_v29  ;;  %v11669_v34 = vld [vmem:[%s13678_s15 + $0x810] ss:$8 sps:$4 sm:$0xff]  }
 0x226   : > { %9815 = vmatprep.subr.bf16.mxu1 %v11586_v35  ;;  %v11672_v35 = vld [vmem:[%s13678_s15 + $0x910] ss:$8 sps:$4 sm:$0xff]  }
 0x228   : > { %9775 = vmatpush1.bf16.msra.mxu0 %v11581_v36  ;;  %v11677_v36 = vld [vmem:[%s13678_s15 + $0x824] ss:$8 sps:$4 sm:$0xff]  }
 0x229   : > { %9816 = vmatpush1.bf16.msra.mxu1 %v11584_v37  ;;  %9776 = vmatprep.subr.bf16.mxu0 %v11589_v38  ;;  %v11680_v37 = vld [vmem:[%s13678_s15 + $0x924] ss:$8 sps:$4 sm:$0xff]   ;;  %v11675_v38 = vld [vmem:[%s13678_s15 + $0x820] ss:$8 sps:$4 sm:$0xff]  }
 0x22a   : > { %9817 = vmatprep.subr.bf16.mxu1 %v11592_v39  ;;  %v11678_v39 = vld [vmem:[%s13678_s15 + $0x920] ss:$8 sps:$4 sm:$0xff]  }
 0x22c   : > { %9777 = vmatpush1.bf16.msra.mxu0 %v11587_v40  ;;  %v11683_v40 = vld [vmem:[%s13678_s15 + $0x834] ss:$8 sps:$4 sm:$0xff]  }
 0x22d   : > { %9818 = vmatpush1.bf16.msra.mxu1 %v11590_v41  ;;  %9778 = vmatprep.subr.bf16.mxu0 %v11595_v42  ;;  %v11686_v41 = vld [vmem:[%s13678_s15 + $0x934] ss:$8 sps:$4 sm:$0xff]   ;;  %v11681_v42 = vld [vmem:[%s13678_s15 + $0x830] ss:$8 sps:$4 sm:$0xff]  }
 0x22e   : > { %9819 = vmatprep.subr.bf16.mxu1 %v11598_v43  ;;  %v11684_v43 = vld [vmem:[%s13678_s15 + $0x930] ss:$8 sps:$4 sm:$0xff]  }
 0x230   : > { %9779 = vmatpush1.bf16.msra.mxu0 %v11593_v44  ;;  %v11689_v44 = vld [vmem:[%s13678_s15 + $0x844] ss:$8 sps:$4 sm:$0xff]  }
 0x231   : > { %9820 = vmatpush1.bf16.msra.mxu1 %v11596_v45  ;;  %9780 = vmatprep.subr.bf16.mxu0 %v11601_v46  ;;  %v11692_v45 = vld [vmem:[%s13678_s15 + $0x944] ss:$8 sps:$4 sm:$0xff]   ;;  %v11687_v46 = vld [vmem:[%s13678_s15 + $0x840] ss:$8 sps:$4 sm:$0xff]  }
 0x232   : > { %9821 = vmatprep.subr.bf16.mxu1 %v11604_v47  ;;  %v11690_v47 = vld [vmem:[%s13678_s15 + $0x940] ss:$8 sps:$4 sm:$0xff]  }
 0x234   : > { %9781 = vmatpush1.bf16.msra.mxu0 %v11599_v48  ;;  %v11695_v48 = vld [vmem:[%s13678_s15 + $0x854] ss:$8 sps:$4 sm:$0xff]  }
 0x235   : > { %9822 = vmatpush1.bf16.msra.mxu1 %v11602_v49  ;;  %9782 = vmatprep.subr.bf16.mxu0 %v11607_v50  ;;  %v11698_v49 = vld [vmem:[%s13678_s15 + $0x954] ss:$8 sps:$4 sm:$0xff]   ;;  %v11693_v50 = vld [vmem:[%s13678_s15 + $0x850] ss:$8 sps:$4 sm:$0xff]  }
 0x236   : > { %9823 = vmatprep.subr.bf16.mxu1 %v11610_v51  ;;  %v11696_v51 = vld [vmem:[%s13678_s15 + $0x950] ss:$8 sps:$4 sm:$0xff]  }
 0x238   : > { %9783 = vmatpush1.bf16.msra.mxu0 %v11605_v52  ;;  %v11701_v52 = vld [vmem:[%s13678_s15 + $0x864] ss:$8 sps:$4 sm:$0xff]  }
 0x239   : > { %9824 = vmatpush1.bf16.msra.mxu1 %v11608_v53  ;;  %9784 = vmatprep.subr.bf16.mxu0 %v11613_v54  ;;  %v11704_v53 = vld [vmem:[%s13678_s15 + $0x964] ss:$8 sps:$4 sm:$0xff]  }
 0x23a   : > { %9825 = vmatprep.subr.bf16.mxu1 %v11616_v55 }
 0x23c   : > { %9785 = vmatpush1.bf16.msra.mxu0 %v11611_v56  ;;  %v11699_v56 = vld [vmem:[%s13678_s15 + $0x860] ss:$8 sps:$4 sm:$0xff]  }
 0x23d   : > { %9826 = vmatpush1.bf16.msra.mxu1 %v11614_v57  ;;  %9786 = vmatprep.subr.bf16.mxu0 %v11619_v58  ;;  %v11702_v57 = vld [vmem:[%s13678_s15 + $0x960] ss:$8 sps:$4 sm:$0xff]  }
 0x23e   : > { %9827 = vmatprep.subr.bf16.mxu1 %v11622_v59 }
 0x240   : > { %9787 = vmatpush1.bf16.msra.mxu0 %v11617_v60 }
 0x241   : > { %9828 = vmatpush1.bf16.msra.mxu1 %v11620_v61  ;;  %9788 = vmatprep.subr.bf16.mxu0 %v11625_v62 }
 0x242   : > { %9829 = vmatprep.subr.bf16.mxu1 %v11628_v63 }
 0x244   : > { %9789 = vmatpush1.bf16.msra.mxu0 %v11623_v2 }
 0x245   : > { %9830 = vmatpush1.bf16.msra.mxu1 %v11626_v3  ;;  %9790 = vmatprep.subr.bf16.mxu0 %v11631_v4  ;;  %v11707_v4 = vld [vmem:[%s13678_s15 + $0x874] ss:$8 sps:$4 sm:$0xff]  }
 0x246   : > { %9831 = vmatprep.subr.bf16.mxu1 %v11634_v5  ;;  %v11710_v5 = vld [vmem:[%s13678_s15 + $0x974] ss:$8 sps:$4 sm:$0xff]  }
 0x248   : > { %9791 = vmatpush1.bf16.msra.mxu0 %v11629_v6  ;;  %v11705_v6 = vld [vmem:[%s13678_s15 + $0x870] ss:$8 sps:$4 sm:$0xff]  }
 0x249   : > { %9832 = vmatpush1.bf16.msra.mxu1 %v11632_v7  ;;  %9792 = vmatprep.subr.bf16.mxu0 %v11637_v10  ;;  %v11708_v7 = vld [vmem:[%s13678_s15 + $0x970] ss:$8 sps:$4 sm:$0xff]   ;;  %v11713_v10 = vld [vmem:[%s13678_s15 + $0x884] ss:$8 sps:$4 sm:$0xff]  }
 0x24a   : > { %9833 = vmatprep.subr.bf16.mxu1 %v11640_v11  ;;  %v11716_v11 = vld [vmem:[%s13678_s15 + $0x984] ss:$8 sps:$4 sm:$0xff]  }
 0x24c   : > { %9793 = vmatpush1.bf16.msra.mxu0 %v11635_v12  ;;  %v11711_v12 = vld [vmem:[%s13678_s15 + $0x880] ss:$8 sps:$4 sm:$0xff]  }
 0x24d   : > { %9834 = vmatpush1.bf16.msra.mxu1 %v11638_v13  ;;  %9794 = vmatprep.subr.bf16.mxu0 %v11643_v14  ;;  %v11714_v13 = vld [vmem:[%s13678_s15 + $0x980] ss:$8 sps:$4 sm:$0xff]   ;;  %v11719_v14 = vld [vmem:[%s13678_s15 + $0x894] ss:$8 sps:$4 sm:$0xff]  }
 0x24e   : > { %9835 = vmatprep.subr.bf16.mxu1 %v11646_v15  ;;  %v11722_v15 = vld [vmem:[%s13678_s15 + $0x994] ss:$8 sps:$4 sm:$0xff]  }
 0x250   : > { %9795 = vmatpush1.bf16.msra.mxu0 %v11641_v16  ;;  %v11717_v16 = vld [vmem:[%s13678_s15 + $0x890] ss:$8 sps:$4 sm:$0xff]  }
 0x251   : > { %9836 = vmatpush1.bf16.msra.mxu1 %v11644_v0  ;;  %9796 = vmatprep.subr.bf16.mxu0 %v11649_v1  ;;  %v11720_v0 = vld [vmem:[%s13678_s15 + $0x990] ss:$8 sps:$4 sm:$0xff]   ;;  %v11725_v1 = vld [vmem:[%s13678_s15 + $0x8a4] ss:$8 sps:$4 sm:$0xff]  }
 0x252   : > { %9837 = vmatprep.subr.bf16.mxu1 %v11652_v17  ;;  %v11728_v17 = vld [vmem:[%s13678_s15 + $0x9a4] ss:$8 sps:$4 sm:$0xff]  }
 0x254   : > { %9797 = vmatpush1.bf16.msra.mxu0 %v11647_v8  ;;  %v11723_v8 = vld [vmem:[%s13678_s15 + $0x8a0] ss:$8 sps:$4 sm:$0xff]  }
 0x255   : > { %9838 = vmatpush1.bf16.msra.mxu1 %v11650_v9  ;;  %9798 = vmatprep.subr.bf16.mxu0 %v11655_v20  ;;  %v11726_v9 = vld [vmem:[%s13678_s15 + $0x9a0] ss:$8 sps:$4 sm:$0xff]   ;;  %v11731_v20 = vld [vmem:[%s13678_s15 + $0x8b4] ss:$8 sps:$4 sm:$0xff]  }
 0x256   : > { %9839 = vmatprep.subr.bf16.mxu1 %v11658_v21  ;;  %v11734_v21 = vld [vmem:[%s13678_s15 + $0x9b4] ss:$8 sps:$4 sm:$0xff]  }
 0x258   : > { %9799 = vmatpush1.bf16.msra.mxu0 %v11653_v22  ;;  %v11729_v22 = vld [vmem:[%s13678_s15 + $0x8b0] ss:$8 sps:$4 sm:$0xff]  }
 0x259   : > { %9840 = vmatpush1.bf16.msra.mxu1 %v11656_v23  ;;  %9850 = vmatprep.subr.bf16.mxu0 %v11665_v26  ;;  %v11732_v23 = vld [vmem:[%s13678_s15 + $0x9b0] ss:$8 sps:$4 sm:$0xff]   ;;  %v11737_v26 = vld [vmem:[%s13678_s15 + $0x8c4] ss:$8 sps:$4 sm:$0xff]  }
 0x25a   : > { %9891 = vmatprep.subr.bf16.mxu1 %v11668_v18  ;;  %v11740_v18 = vld [vmem:[%s13678_s15 + $0x9c4] ss:$8 sps:$4 sm:$0xff]  }
 0x25b   : > { %9801 = vmatmul.mubr.bf16.vlgmr.msra.gmra.mrb[12].mxu0 %v10549_v27  ;;  %v11735_v27 = vld [vmem:[%s13678_s15 + $0x8c0] ss:$8 sps:$4 sm:$0xff]  }
 0x25c   : > { %9842 = vmatmul.mubr.bf16.vlgmr.msra.gmra.mrb[12].mxu1 %v10551_v28  ;;  %9851 = vmatpush1.bf16.msra.mxu0 %v11663_v30  ;;  %v11738_v28 = vld [vmem:[%s13678_s15 + $0x9c0] ss:$8 sps:$4 sm:$0xff]   ;;  %v11743_v30 = vld [vmem:[%s13678_s15 + $0x8d4] ss:$8 sps:$4 sm:$0xff]  }
 0x25d   : > { %9892 = vmatpush1.bf16.msra.mxu1 %v11666_v31  ;;  %9852 = vmatprep.subr.bf16.mxu0 %v11671_v32  ;;  %v11746_v31 = vld [vmem:[%s13678_s15 + $0x9d4] ss:$8 sps:$4 sm:$0xff]   ;;  %v11741_v32 = vld [vmem:[%s13678_s15 + $0x8d0] ss:$8 sps:$4 sm:$0xff]  }
 0x25e   : > { %9893 = vmatprep.subr.bf16.mxu1 %v11674_v24  ;;  %9882 = vmatprep.mubr.bf16.mxu0 %v10554_v25  ;;  %v11744_v24 = vld [vmem:[%s13678_s15 + $0x9d0] ss:$8 sps:$4 sm:$0xff]   ;;  %v11749_v25 = vld [vmem:[%s13678_s15 + $0x8e4] ss:$8 sps:$4 sm:$0xff]  }
 0x25f   : > { %9923 = vmatprep.mubr.bf16.mxu1 %v10556_v33  ;;  %v11752_v33 = vld [vmem:[%s13678_s15 + $0x9e4] ss:$8 sps:$4 sm:$0xff]  }
 0x260   : > { %9853 = vmatpush1.bf16.msra.mxu0 %v11669_v34  ;;  %v11747_v34 = vld [vmem:[%s13678_s15 + $0x8e0] ss:$8 sps:$4 sm:$0xff]  }
 0x261   : > { %9894 = vmatpush1.bf16.msra.mxu1 %v11672_v35  ;;  %9854 = vmatprep.subr.bf16.mxu0 %v11677_v36  ;;  %v11750_v35 = vld [vmem:[%s13678_s15 + $0x9e0] ss:$8 sps:$4 sm:$0xff]   ;;  %v11755_v36 = vld [vmem:[%s13678_s15 + $0x8f4] ss:$8 sps:$4 sm:$0xff]  }
 0x262   : > { %9895 = vmatprep.subr.bf16.mxu1 %v11680_v37  ;;  %v11758_v37 = vld [vmem:[%s13678_s15 + $0x9f4] ss:$8 sps:$4 sm:$0xff]  }
 0x264   : > { %9855 = vmatpush1.bf16.msra.mxu0 %v11675_v38  ;;  %v11753_v38 = vld [vmem:[%s13678_s15 + $0x8f0] ss:$8 sps:$4 sm:$0xff]  }
 0x265   : > { %9896 = vmatpush1.bf16.msra.mxu1 %v11678_v39  ;;  %9856 = vmatprep.subr.bf16.mxu0 %v11683_v40  ;;  %v11756_v39 = vld [vmem:[%s13678_s15 + $0x9f0] ss:$8 sps:$4 sm:$0xff]   ;;  %v11765_v40 = vld [vmem:[%s13678_s15 + $0xa04] ss:$8 sps:$4 sm:$0xff]  }
 0x266   : > { %9897 = vmatprep.subr.bf16.mxu1 %v11686_v41  ;;  %v11768_v41 = vld [vmem:[%s13678_s15 + $0xb04] ss:$8 sps:$4 sm:$0xff]  }
 0x268   : > { %9857 = vmatpush1.bf16.msra.mxu0 %v11681_v42  ;;  %v11763_v42 = vld [vmem:[%s13678_s15 + $0xa00] ss:$8 sps:$4 sm:$0xff]  }
 0x269   : > { %9898 = vmatpush1.bf16.msra.mxu1 %v11684_v43  ;;  %9858 = vmatprep.subr.bf16.mxu0 %v11689_v44  ;;  %v11766_v43 = vld [vmem:[%s13678_s15 + $0xb00] ss:$8 sps:$4 sm:$0xff]   ;;  %v10553_v44 = vcombine.low %v13995_v19, %v13995_v19  ;;  %v11771_v19 = vld [vmem:[%s13678_s15 + $0xa14] ss:$8 sps:$4 sm:$0xff]  }
 0x26a   : > { %9899 = vmatprep.subr.bf16.mxu1 %v11692_v45  ;;  %v10555_v45 = vcombine.low %v14004_v29, %v14004_v29 }
 0x26c   : > { %9859 = vmatpush1.bf16.msra.mxu0 %v11687_v46  ;;  %v14087_v46 = vld [vmem:[%s14566_s0 + $0x50] sm:$0xff] }
 0x26d   : > { %9900 = vmatpush1.bf16.msra.mxu1 %v11690_v47  ;;  %9860 = vmatprep.subr.bf16.mxu0 %v11695_v48  ;;  %v14092_v47 = vld [vmem:[%s14566_s0 + $0x58] sm:$0xff]  ;;  %v10558_v29 = vcombine.high %v14087_v46, %v14087_v46 }
 0x26e   : > { %9901 = vmatprep.subr.bf16.mxu1 %v11698_v49  ;;  %v9556_v54 = vpop.f32.mrb[0].mxu0  ;;  %v11774_v48 = vld [vmem:[%s13678_s15 + $0xb14] ss:$8 sps:$4 sm:$0xff]   ;;  %v10560_v49 = vcombine.high %v14092_v47, %v14092_v47 }
 0x26f   : > { %v9597_v55 = vpop.f32.mrb[0].mxu1  ;;  %v9558_v59 = vpop.f32.mrb[1].mxu0 }
 0x270   : > { %v14036_v58 = vadd.f32 %v9597_v55, %v9556_v54  ;;  %v9599_v60 = vpop.f32.mrb[1].mxu1  ;;  %v9560_v62 = vpop.f32.mrb[2].mxu0  ;;  %9861 = vmatpush1.bf16.msra.mxu0 %v11693_v50  ;;  %v11769_v50 = vld [vmem:[%s13678_s15 + $0xa10] ss:$8 sps:$4 sm:$0xff]   ;;  %v11775_v54 = vld [vmem:[%s13678_s15 + $0xa20] ss:$8 sps:$4 sm:$0xff]  }
 0x271   : > { %v14038_v61 = vadd.f32 %v9599_v60, %v9558_v59  ;;  %v9601_v63 = vpop.f32.mrb[2].mxu1  ;;  %9902 = vmatpush1.bf16.msra.mxu1 %v11696_v51  ;;  %v9561_v2 = vpop.f32.mrb[3].mxu0  ;;  %9862 = vmatprep.subr.bf16.mxu0 %v11701_v52  ;;  %v11772_v51 = vld [vmem:[%s13678_s15 + $0xb10] ss:$8 sps:$4 sm:$0xff]   ;;  %v11777_v52 = vld [vmem:[%s13678_s15 + $0xa24] ss:$8 sps:$4 sm:$0xff]  }
 0x272   : > { %v9602_v3 = vpop.f32.mrb[3].mxu1  ;;  %9903 = vmatprep.subr.bf16.mxu1 %v11704_v53  ;;  %v11780_v53 = vld [vmem:[%s13678_s15 + $0xb24] ss:$8 sps:$4 sm:$0xff]   ;;  %v11778_v55 = vld [vmem:[%s13678_s15 + $0xb20] ss:$8 sps:$4 sm:$0xff]  }
 0x273   : > { %v11781_v59 = vld [vmem:[%s13678_s15 + $0xa30] ss:$8 sps:$4 sm:$0xff]   ;;  %v11789_v62 = vld [vmem:[%s13678_s15 + $0xa44] ss:$8 sps:$4 sm:$0xff]   ;;  %v11787_v2 = vld [vmem:[%s13678_s15 + $0xa40] ss:$8 sps:$4 sm:$0xff]  }
 0x274   : > { %9863 = vmatpush1.bf16.msra.mxu0 %v11699_v56  ;;  %v11783_v56 = vld [vmem:[%s13678_s15 + $0xa34] ss:$8 sps:$4 sm:$0xff]   ;;  %v11784_v60 = vld [vmem:[%s13678_s15 + $0xb30] ss:$8 sps:$4 sm:$0xff]   ;;  %v11792_v63 = vld [vmem:[%s13678_s15 + $0xb44] ss:$8 sps:$4 sm:$0xff]  }
 0x275   : > { %9904 = vmatpush1.bf16.msra.mxu1 %v11702_v57  ;;  %9864 = vmatprep.subr.bf16.mxu0 %v11707_v4  ;;  %v11786_v57 = vld [vmem:[%s13678_s15 + $0xb34] ss:$8 sps:$4 sm:$0xff]   ;;  %v11790_v3 = vld [vmem:[%s13678_s15 + $0xb40] ss:$8 sps:$4 sm:$0xff]  }
 0x276   : > { %9905 = vmatprep.subr.bf16.mxu1 %v11710_v5  ;;  %v11795_v4 = vld [vmem:[%s13678_s15 + $0xa54] ss:$8 sps:$4 sm:$0xff]  }
 0x277   : > { %v11798_v5 = vld [vmem:[%s13678_s15 + $0xb54] ss:$8 sps:$4 sm:$0xff]  }
 0x278   : > { %9865 = vmatpush1.bf16.msra.mxu0 %v11705_v6  ;;  %v11793_v6 = vld [vmem:[%s13678_s15 + $0xa50] ss:$8 sps:$4 sm:$0xff]  }
 0x279   : > { %9906 = vmatpush1.bf16.msra.mxu1 %v11708_v7  ;;  %9866 = vmatprep.subr.bf16.mxu0 %v11713_v10  ;;  %v11796_v7 = vld [vmem:[%s13678_s15 + $0xb50] ss:$8 sps:$4 sm:$0xff]   ;;  %v11801_v10 = vld [vmem:[%s13678_s15 + $0xa64] ss:$8 sps:$4 sm:$0xff]  }
 0x27a   : > { %9907 = vmatprep.subr.bf16.mxu1 %v11716_v11  ;;  %v11804_v11 = vld [vmem:[%s13678_s15 + $0xb64] ss:$8 sps:$4 sm:$0xff]  }
 0x27c   : > { %9867 = vmatpush1.bf16.msra.mxu0 %v11711_v12 }
 0x27d   : > { %9908 = vmatpush1.bf16.msra.mxu1 %v11714_v13  ;;  %9868 = vmatprep.subr.bf16.mxu0 %v11719_v14  ;;  %v11799_v14 = vld [vmem:[%s13678_s15 + $0xa60] ss:$8 sps:$4 sm:$0xff]  }
 0x27e   : > { %9909 = vmatprep.subr.bf16.mxu1 %v11722_v15  ;;  %v11802_v15 = vld [vmem:[%s13678_s15 + $0xb60] ss:$8 sps:$4 sm:$0xff]  }
 0x280   : > { %9869 = vmatpush1.bf16.msra.mxu0 %v11717_v16 }
 0x281   : > { %9910 = vmatpush1.bf16.msra.mxu1 %v11720_v0  ;;  %9870 = vmatprep.subr.bf16.mxu0 %v11725_v1 }
 0x282   : > { %9911 = vmatprep.subr.bf16.mxu1 %v11728_v17 }
 0x284   : > { %9871 = vmatpush1.bf16.msra.mxu0 %v11723_v8 }
 0x285   : > { %9912 = vmatpush1.bf16.msra.mxu1 %v11726_v9  ;;  %9872 = vmatprep.subr.bf16.mxu0 %v11731_v20 }
 0x286   : > { %9913 = vmatprep.subr.bf16.mxu1 %v11734_v21 }
 0x288   : > { %9873 = vmatpush1.bf16.msra.mxu0 %v11729_v22 }
 0x289   : > { %9914 = vmatpush1.bf16.msra.mxu1 %v11732_v23  ;;  %9874 = vmatprep.subr.bf16.mxu0 %v11737_v26  ;;  %v11810_v23 = vld [vmem:[%s13678_s15 + $0xb74] ss:$8 sps:$4 sm:$0xff]  }
 0x28a   : > { %9915 = vmatprep.subr.bf16.mxu1 %v11740_v18  ;;  %v11808_v18 = vld [vmem:[%s13678_s15 + $0xb70] ss:$8 sps:$4 sm:$0xff]  }
 0x28c   : > { %9875 = vmatpush1.bf16.msra.mxu0 %v11735_v27  ;;  %v11813_v27 = vld [vmem:[%s13678_s15 + $0xa84] ss:$8 sps:$4 sm:$0xff]  }
 0x28d   : > { %9916 = vmatpush1.bf16.msra.mxu1 %v11738_v28  ;;  %9876 = vmatprep.subr.bf16.mxu0 %v11743_v30  ;;  %v11816_v28 = vld [vmem:[%s13678_s15 + $0xb84] ss:$8 sps:$4 sm:$0xff]   ;;  %v11811_v30 = vld [vmem:[%s13678_s15 + $0xa80] ss:$8 sps:$4 sm:$0xff]  }
 0x28e   : > { %9917 = vmatprep.subr.bf16.mxu1 %v11746_v31  ;;  %v11814_v31 = vld [vmem:[%s13678_s15 + $0xb80] ss:$8 sps:$4 sm:$0xff]  }
 0x290   : > { %9877 = vmatpush1.bf16.msra.mxu0 %v11741_v32  ;;  %v11819_v32 = vld [vmem:[%s13678_s15 + $0xa94] ss:$8 sps:$4 sm:$0xff]  }
 0x291   : > { %9918 = vmatpush1.bf16.msra.mxu1 %v11744_v24  ;;  %9878 = vmatprep.subr.bf16.mxu0 %v11749_v25  ;;  %v11822_v24 = vld [vmem:[%s13678_s15 + $0xb94] ss:$8 sps:$4 sm:$0xff]   ;;  %v11817_v25 = vld [vmem:[%s13678_s15 + $0xa90] ss:$8 sps:$4 sm:$0xff]  }
 0x292   : > { %9919 = vmatprep.subr.bf16.mxu1 %v11752_v33  ;;  %v11820_v33 = vld [vmem:[%s13678_s15 + $0xb90] ss:$8 sps:$4 sm:$0xff]  }
 0x294   : > { %9879 = vmatpush1.bf16.msra.mxu0 %v11747_v34  ;;  %v11825_v34 = vld [vmem:[%s13678_s15 + $0xaa4] ss:$8 sps:$4 sm:$0xff]  }
 0x295   : > { %9920 = vmatpush1.bf16.msra.mxu1 %v11750_v35  ;;  %9880 = vmatprep.subr.bf16.mxu0 %v11755_v36  ;;  %v11828_v35 = vld [vmem:[%s13678_s15 + $0xba4] ss:$8 sps:$4 sm:$0xff]   ;;  %v11823_v36 = vld [vmem:[%s13678_s15 + $0xaa0] ss:$8 sps:$4 sm:$0xff]  }
 0x296   : > { %9921 = vmatprep.subr.bf16.mxu1 %v11758_v37  ;;  %v11826_v37 = vld [vmem:[%s13678_s15 + $0xba0] ss:$8 sps:$4 sm:$0xff]  }
 0x298   : > { %9881 = vmatpush1.bf16.msra.mxu0 %v11753_v38  ;;  %v11831_v38 = vld [vmem:[%s13678_s15 + $0xab4] ss:$8 sps:$4 sm:$0xff]  }
 0x299   : > { %9922 = vmatpush1.bf16.msra.mxu1 %v11756_v39  ;;  %9932 = vmatprep.subr.bf16.mxu0 %v11765_v40  ;;  %v11834_v39 = vld [vmem:[%s13678_s15 + $0xbb4] ss:$8 sps:$4 sm:$0xff]   ;;  %v11829_v40 = vld [vmem:[%s13678_s15 + $0xab0] ss:$8 sps:$4 sm:$0xff]  }
 0x29a   : > { %9973 = vmatprep.subr.bf16.mxu1 %v11768_v41  ;;  %v11832_v41 = vld [vmem:[%s13678_s15 + $0xbb0] ss:$8 sps:$4 sm:$0xff]  }
 0x29b   : > { %9883 = vmatmul.mubr.bf16.vlgmr.msra.gmra.mrb[16].mxu0 %v10553_v44  ;;  %v11835_v44 = vld [vmem:[%s13678_s15 + $0xac0] ss:$8 sps:$4 sm:$0xff]  }
 0x29c   : > { %9924 = vmatmul.mubr.bf16.vlgmr.msra.gmra.mrb[16].mxu1 %v10555_v45  ;;  %9933 = vmatpush1.bf16.msra.mxu0 %v11763_v42  ;;  %v11837_v42 = vld [vmem:[%s13678_s15 + $0xac4] ss:$8 sps:$4 sm:$0xff]   ;;  %v11838_v45 = vld [vmem:[%s13678_s15 + $0xbc0] ss:$8 sps:$4 sm:$0xff]  }
 0x29d   : > { %9974 = vmatpush1.bf16.msra.mxu1 %v11766_v43  ;;  %9934 = vmatprep.subr.bf16.mxu0 %v11771_v19  ;;  %v11840_v43 = vld [vmem:[%s13678_s15 + $0xbc4] ss:$8 sps:$4 sm:$0xff]   ;;  %v11843_v19 = vld [vmem:[%s13678_s15 + $0xad4] ss:$8 sps:$4 sm:$0xff]  }
 0x29e   : > { %9975 = vmatprep.subr.bf16.mxu1 %v11774_v48  ;;  %9964 = vmatprep.mubr.bf16.mxu0 %v10558_v29  ;;  %v11846_v48 = vld [vmem:[%s13678_s15 + $0xbd4] ss:$8 sps:$4 sm:$0xff]   ;;  %v11841_v29 = vld [vmem:[%s13678_s15 + $0xad0] ss:$8 sps:$4 sm:$0xff]  }
 0x29f   : > { %10005 = vmatprep.mubr.bf16.mxu1 %v10560_v49  ;;  %v11844_v49 = vld [vmem:[%s13678_s15 + $0xbd0] ss:$8 sps:$4 sm:$0xff]  }
 0x2a0   : > { %9935 = vmatpush1.bf16.msra.mxu0 %v11769_v50  ;;  %v11849_v50 = vld [vmem:[%s13678_s15 + $0xae4] ss:$8 sps:$4 sm:$0xff]  }
 0x2a1   : > { %9976 = vmatpush1.bf16.msra.mxu1 %v11772_v51  ;;  %9936 = vmatprep.subr.bf16.mxu0 %v11777_v52  ;;  %v11852_v51 = vld [vmem:[%s13678_s15 + $0xbe4] ss:$8 sps:$4 sm:$0xff]   ;;  %v11847_v52 = vld [vmem:[%s13678_s15 + $0xae0] ss:$8 sps:$4 sm:$0xff]  }
 0x2a2   : > { %9977 = vmatprep.subr.bf16.mxu1 %v11780_v53  ;;  %v11850_v53 = vld [vmem:[%s13678_s15 + $0xbe0] ss:$8 sps:$4 sm:$0xff]  }
 0x2a4   : > { %9937 = vmatpush1.bf16.msra.mxu0 %v11775_v54  ;;  %v11855_v54 = vld [vmem:[%s13678_s15 + $0xaf4] ss:$8 sps:$4 sm:$0xff]  }
 0x2a5   : > { %9978 = vmatpush1.bf16.msra.mxu1 %v11778_v55  ;;  %9938 = vmatprep.subr.bf16.mxu0 %v11783_v56  ;;  %v11858_v55 = vld [vmem:[%s13678_s15 + $0xbf4] ss:$8 sps:$4 sm:$0xff]   ;;  %v11853_v56 = vld [vmem:[%s13678_s15 + $0xaf0] ss:$8 sps:$4 sm:$0xff]  }
 0x2a6   : > { %9979 = vmatprep.subr.bf16.mxu1 %v11786_v57  ;;  %v11856_v57 = vld [vmem:[%s13678_s15 + $0xbf0] ss:$8 sps:$4 sm:$0xff]  }
 0x2a8   : > { %9939 = vmatpush1.bf16.msra.mxu0 %v11781_v59  ;;  %v11865_v59 = vld [vmem:[%s13678_s15 + $0xc04] ss:$8 sps:$4 sm:$0xff]  }
 0x2a9   : > { %9980 = vmatpush1.bf16.msra.mxu1 %v11784_v60  ;;  %9940 = vmatprep.subr.bf16.mxu0 %v11789_v62  ;;  %v11868_v60 = vld [vmem:[%s13678_s15 + $0xd04] ss:$8 sps:$4 sm:$0xff]   ;;  %v11863_v62 = vld [vmem:[%s13678_s15 + $0xc00] ss:$8 sps:$4 sm:$0xff]  }
 0x2aa   : > { %9981 = vmatprep.subr.bf16.mxu1 %v11792_v63  ;;  %v11866_v63 = vld [vmem:[%s13678_s15 + $0xd00] ss:$8 sps:$4 sm:$0xff]  }
 0x2ac   : > { %9941 = vmatpush1.bf16.msra.mxu0 %v11787_v2  ;;  %v10557_v2 = vcombine.low %v14087_v46, %v14087_v46  ;;  %v11871_v46 = vld [vmem:[%s13678_s15 + $0xc14] ss:$8 sps:$4 sm:$0xff]  }
 0x2ad   : > { %9982 = vmatpush1.bf16.msra.mxu1 %v11790_v3  ;;  %9942 = vmatprep.subr.bf16.mxu0 %v11795_v4  ;;  %v10559_v3 = vcombine.low %v14092_v47, %v14092_v47  ;;  %v14175_v4 = vld [vmem:[%s14566_s0 + $0x60] sm:$0xff] }
 0x2ae   : > { %9983 = vmatprep.subr.bf16.mxu1 %v11798_v5  ;;  %v9638_v12 = vpop.f32.mrb[4].mxu0  ;;  %v14180_v5 = vld [vmem:[%s14566_s0 + $0x68] sm:$0xff]  ;;  %v10562_v47 = vcombine.high %v14175_v4, %v14175_v4 }
 0x2af   : > { %v9679_v13 = vpop.f32.mrb[4].mxu1  ;;  %v9639_v16 = vadd.f32 %v9638_v12, %v14036_v58  ;;  %v9640_v0 = vpop.f32.mrb[5].mxu0  ;;  %v11807_v58 = vld [vmem:[%s13678_s15 + $0xa74] ss:$8 sps:$4 sm:$0xff]   ;;  %v11877_v12 = vld [vmem:[%s13678_s15 + $0xc24] ss:$8 sps:$4 sm:$0xff]  }
 0x2b0   : > { %v9681_v1 = vpop.f32.mrb[5].mxu1  ;;  %v9641_v17 = vadd.f32 %v9640_v0, %v14038_v61  ;;  %v9642_v8 = vpop.f32.mrb[6].mxu0  ;;  %9943 = vmatpush1.bf16.msra.mxu0 %v11793_v6  ;;  %v11805_v61 = vld [vmem:[%s13678_s15 + $0xa70] ss:$8 sps:$4 sm:$0xff]   ;;  %v11874_v6 = vld [vmem:[%s13678_s15 + $0xd14] ss:$8 sps:$4 sm:$0xff]  }
 0x2b1   : > { %v9683_v9 = vpop.f32.mrb[6].mxu1  ;;  %9984 = vmatpush1.bf16.msra.mxu1 %v11796_v7  ;;  %v14124_v20 = vadd.f32 %v9679_v13, %v9639_v16  ;;  %v9643_v21 = vpop.f32.mrb[7].mxu0  ;;  %9944 = vmatprep.subr.bf16.mxu0 %v11801_v10  ;;  %v10564_v7 = vcombine.high %v14180_v5, %v14180_v5  ;;  %v11869_v10 = vld [vmem:[%s13678_s15 + $0xc10] ss:$8 sps:$4 sm:$0xff]   ;;  %v11880_v13 = vld [vmem:[%s13678_s15 + $0xd24] ss:$8 sps:$4 sm:$0xff]  }
 0x2b2   : > { %v9684_v22 = vpop.f32.mrb[7].mxu1  ;;  %9985 = vmatprep.subr.bf16.mxu1 %v11804_v11  ;;  %v14128_v26 = vadd.f32 %v9681_v1, %v9641_v17  ;;  %v11872_v11 = vld [vmem:[%s13678_s15 + $0xd10] ss:$8 sps:$4 sm:$0xff]   ;;  %v11883_v16 = vld [vmem:[%s13678_s15 + $0xc34] ss:$8 sps:$4 sm:$0xff]  }
 0x2b3   : > { %v11886_v0 = vld [vmem:[%s13678_s15 + $0xd34] ss:$8 sps:$4 sm:$0xff]   ;;  %v11881_v1 = vld [vmem:[%s13678_s15 + $0xc30] ss:$8 sps:$4 sm:$0xff]   ;;  %v11889_v8 = vld [vmem:[%s13678_s15 + $0xc44] ss:$8 sps:$4 sm:$0xff]  }
 0x2b4   : > { %9945 = vmatpush1.bf16.msra.mxu0 %v11799_v14  ;;  %v11875_v14 = vld [vmem:[%s13678_s15 + $0xc20] ss:$8 sps:$4 sm:$0xff]   ;;  %v11884_v17 = vld [vmem:[%s13678_s15 + $0xd30] ss:$8 sps:$4 sm:$0xff]   ;;  %v11892_v9 = vld [vmem:[%s13678_s15 + $0xd44] ss:$8 sps:$4 sm:$0xff]  }
 0x2b5   : > { %9986 = vmatpush1.bf16.msra.mxu1 %v11802_v15  ;;  %9946 = vmatprep.subr.bf16.mxu0 %v11807_v58  ;;  %v11878_v15 = vld [vmem:[%s13678_s15 + $0xd20] ss:$8 sps:$4 sm:$0xff]   ;;  %v11895_v58 = vld [vmem:[%s13678_s15 + $0xc54] ss:$8 sps:$4 sm:$0xff]  }
 0x2b6   : > { %9987 = vmatprep.subr.bf16.mxu1 %v11810_v23  ;;  %v11887_v21 = vld [vmem:[%s13678_s15 + $0xc40] ss:$8 sps:$4 sm:$0xff]   ;;  %v11898_v23 = vld [vmem:[%s13678_s15 + $0xd54] ss:$8 sps:$4 sm:$0xff]  }
 0x2b7   : > { %v11890_v22 = vld [vmem:[%s13678_s15 + $0xd40] ss:$8 sps:$4 sm:$0xff]  }
 0x2b8   : > { %9947 = vmatpush1.bf16.msra.mxu0 %v11805_v61  ;;  %v11893_v61 = vld [vmem:[%s13678_s15 + $0xc50] ss:$8 sps:$4 sm:$0xff]  }
 0x2b9   : > { %9988 = vmatpush1.bf16.msra.mxu1 %v11808_v18  ;;  %9948 = vmatprep.subr.bf16.mxu0 %v11813_v27  ;;  %v11896_v18 = vld [vmem:[%s13678_s15 + $0xd50] ss:$8 sps:$4 sm:$0xff]   ;;  %v11901_v27 = vld [vmem:[%s13678_s15 + $0xc64] ss:$8 sps:$4 sm:$0xff]  }
 0x2ba   : > { %9989 = vmatprep.subr.bf16.mxu1 %v11816_v28  ;;  %v11904_v28 = vld [vmem:[%s13678_s15 + $0xd64] ss:$8 sps:$4 sm:$0xff]  }
 0x2bc   : > { %9949 = vmatpush1.bf16.msra.mxu0 %v11811_v30 }
 0x2bd   : > { %9990 = vmatpush1.bf16.msra.mxu1 %v11814_v31  ;;  %9950 = vmatprep.subr.bf16.mxu0 %v11819_v32 }
 0x2be   : > { %9991 = vmatprep.subr.bf16.mxu1 %v11822_v24 }
 0x2c0   : > { %9951 = vmatpush1.bf16.msra.mxu0 %v11817_v25 }
 0x2c1   : > { %9992 = vmatpush1.bf16.msra.mxu1 %v11820_v33  ;;  %9952 = vmatprep.subr.bf16.mxu0 %v11825_v34 }
 0x2c2   : > { %9993 = vmatprep.subr.bf16.mxu1 %v11828_v35 }
 0x2c4   : > { %9953 = vmatpush1.bf16.msra.mxu0 %v11823_v36  ;;  %v11899_v36 = vld [vmem:[%s13678_s15 + $0xc60] ss:$8 sps:$4 sm:$0xff]  }
 0x2c5   : > { %9994 = vmatpush1.bf16.msra.mxu1 %v11826_v37  ;;  %9954 = vmatprep.subr.bf16.mxu0 %v11831_v38  ;;  %v11902_v37 = vld [vmem:[%s13678_s15 + $0xd60] ss:$8 sps:$4 sm:$0xff]  }
 0x2c6   : > { %9995 = vmatprep.subr.bf16.mxu1 %v11834_v39 }
 0x2c8   : > { %9955 = vmatpush1.bf16.msra.mxu0 %v11829_v40 }
 0x2c9   : > { %9996 = vmatpush1.bf16.msra.mxu1 %v11832_v41  ;;  %9956 = vmatprep.subr.bf16.mxu0 %v11837_v42  ;;  %v11905_v42 = vld [vmem:[%s13678_s15 + $0xc70] ss:$8 sps:$4 sm:$0xff]  }
 0x2ca   : > { %9997 = vmatprep.subr.bf16.mxu1 %v11840_v43  ;;  %v11908_v43 = vld [vmem:[%s13678_s15 + $0xd70] ss:$8 sps:$4 sm:$0xff]  }
 0x2cc   : > { %9957 = vmatpush1.bf16.msra.mxu0 %v11835_v44  ;;  %v11913_v44 = vld [vmem:[%s13678_s15 + $0xc84] ss:$8 sps:$4 sm:$0xff]  }
 0x2cd   : > { %9998 = vmatpush1.bf16.msra.mxu1 %v11838_v45  ;;  %9958 = vmatprep.subr.bf16.mxu0 %v11843_v19  ;;  %v11916_v45 = vld [vmem:[%s13678_s15 + $0xd84] ss:$8 sps:$4 sm:$0xff]   ;;  %v11911_v19 = vld [vmem:[%s13678_s15 + $0xc80] ss:$8 sps:$4 sm:$0xff]  }
 0x2ce   : > { %9999 = vmatprep.subr.bf16.mxu1 %v11846_v48  ;;  %v11914_v48 = vld [vmem:[%s13678_s15 + $0xd80] ss:$8 sps:$4 sm:$0xff]  }
 0x2d0   : > { %9959 = vmatpush1.bf16.msra.mxu0 %v11841_v29  ;;  %v11919_v29 = vld [vmem:[%s13678_s15 + $0xc94] ss:$8 sps:$4 sm:$0xff]  }
 0x2d1   : > { %10000 = vmatpush1.bf16.msra.mxu1 %v11844_v49  ;;  %9960 = vmatprep.subr.bf16.mxu0 %v11849_v50  ;;  %v11922_v49 = vld [vmem:[%s13678_s15 + $0xd94] ss:$8 sps:$4 sm:$0xff]   ;;  %v11917_v50 = vld [vmem:[%s13678_s15 + $0xc90] ss:$8 sps:$4 sm:$0xff]  }
 0x2d2   : > { %10001 = vmatprep.subr.bf16.mxu1 %v11852_v51  ;;  %v11920_v51 = vld [vmem:[%s13678_s15 + $0xd90] ss:$8 sps:$4 sm:$0xff]  }
 0x2d4   : > { %9961 = vmatpush1.bf16.msra.mxu0 %v11847_v52  ;;  %v11925_v52 = vld [vmem:[%s13678_s15 + $0xca4] ss:$8 sps:$4 sm:$0xff]  }
 0x2d5   : > { %10002 = vmatpush1.bf16.msra.mxu1 %v11850_v53  ;;  %9962 = vmatprep.subr.bf16.mxu0 %v11855_v54  ;;  %v11928_v53 = vld [vmem:[%s13678_s15 + $0xda4] ss:$8 sps:$4 sm:$0xff]   ;;  %v11923_v54 = vld [vmem:[%s13678_s15 + $0xca0] ss:$8 sps:$4 sm:$0xff]  }
 0x2d6   : > { %10003 = vmatprep.subr.bf16.mxu1 %v11858_v55  ;;  %v11926_v55 = vld [vmem:[%s13678_s15 + $0xda0] ss:$8 sps:$4 sm:$0xff]  }
 0x2d8   : > { %9963 = vmatpush1.bf16.msra.mxu0 %v11853_v56  ;;  %v11931_v56 = vld [vmem:[%s13678_s15 + $0xcb4] ss:$8 sps:$4 sm:$0xff]  }
 0x2d9   : > { %10004 = vmatpush1.bf16.msra.mxu1 %v11856_v57  ;;  %10014 = vmatprep.subr.bf16.mxu0 %v11865_v59  ;;  %v11934_v57 = vld [vmem:[%s13678_s15 + $0xdb4] ss:$8 sps:$4 sm:$0xff]   ;;  %v11929_v59 = vld [vmem:[%s13678_s15 + $0xcb0] ss:$8 sps:$4 sm:$0xff]  }
 0x2da   : > { %10055 = vmatprep.subr.bf16.mxu1 %v11868_v60  ;;  %v11932_v60 = vld [vmem:[%s13678_s15 + $0xdb0] ss:$8 sps:$4 sm:$0xff]  }
 0x2db   : > { %9965 = vmatmul.mubr.bf16.vlgmr.msra.gmra.mrb[20].mxu0 %v10557_v2  ;;  %v11935_v2 = vld [vmem:[%s13678_s15 + $0xcc0] ss:$8 sps:$4 sm:$0xff]  }
 0x2dc   : > { %10006 = vmatmul.mubr.bf16.vlgmr.msra.gmra.mrb[20].mxu1 %v10559_v3  ;;  %10015 = vmatpush1.bf16.msra.mxu0 %v11863_v62  ;;  %v11937_v62 = vld [vmem:[%s13678_s15 + $0xcc4] ss:$8 sps:$4 sm:$0xff]   ;;  %v11938_v3 = vld [vmem:[%s13678_s15 + $0xdc0] ss:$8 sps:$4 sm:$0xff]  }
 0x2dd   : > { %10056 = vmatpush1.bf16.msra.mxu1 %v11866_v63  ;;  %10016 = vmatprep.subr.bf16.mxu0 %v11871_v46  ;;  %v11940_v63 = vld [vmem:[%s13678_s15 + $0xdc4] ss:$8 sps:$4 sm:$0xff]   ;;  %v11943_v46 = vld [vmem:[%s13678_s15 + $0xcd4] ss:$8 sps:$4 sm:$0xff]  }
 0x2de   : > { %10057 = vmatprep.subr.bf16.mxu1 %v11874_v6  ;;  %10046 = vmatprep.mubr.bf16.mxu0 %v10562_v47  ;;  %v11946_v6 = vld [vmem:[%s13678_s15 + $0xdd4] ss:$8 sps:$4 sm:$0xff]   ;;  %v11941_v47 = vld [vmem:[%s13678_s15 + $0xcd0] ss:$8 sps:$4 sm:$0xff]  }
 0x2df   : > { %10087 = vmatprep.mubr.bf16.mxu1 %v10564_v7  ;;  %v11944_v7 = vld [vmem:[%s13678_s15 + $0xdd0] ss:$8 sps:$4 sm:$0xff]  }
 0x2e0   : > { %10017 = vmatpush1.bf16.msra.mxu0 %v11869_v10  ;;  %v11949_v10 = vld [vmem:[%s13678_s15 + $0xce4] ss:$8 sps:$4 sm:$0xff]  }
 0x2e1   : > { %10058 = vmatpush1.bf16.msra.mxu1 %v11872_v11  ;;  %10018 = vmatprep.subr.bf16.mxu0 %v11877_v12  ;;  %v11952_v11 = vld [vmem:[%s13678_s15 + $0xde4] ss:$8 sps:$4 sm:$0xff]   ;;  %v11947_v12 = vld [vmem:[%s13678_s15 + $0xce0] ss:$8 sps:$4 sm:$0xff]  }
 0x2e2   : > { %10059 = vmatprep.subr.bf16.mxu1 %v11880_v13  ;;  %v11950_v13 = vld [vmem:[%s13678_s15 + $0xde0] ss:$8 sps:$4 sm:$0xff]  }
 0x2e4   : > { %10019 = vmatpush1.bf16.msra.mxu0 %v11875_v14  ;;  %v11955_v14 = vld [vmem:[%s13678_s15 + $0xcf4] ss:$8 sps:$4 sm:$0xff]  }
 0x2e5   : > { %10060 = vmatpush1.bf16.msra.mxu1 %v11878_v15  ;;  %10020 = vmatprep.subr.bf16.mxu0 %v11883_v16  ;;  %v11958_v15 = vld [vmem:[%s13678_s15 + $0xdf4] ss:$8 sps:$4 sm:$0xff]   ;;  %v11953_v16 = vld [vmem:[%s13678_s15 + $0xcf0] ss:$8 sps:$4 sm:$0xff]  }
 0x2e6   : > { %10061 = vmatprep.subr.bf16.mxu1 %v11886_v0  ;;  %v11956_v0 = vld [vmem:[%s13678_s15 + $0xdf0] ss:$8 sps:$4 sm:$0xff]  }
 0x2e8   : > { %10021 = vmatpush1.bf16.msra.mxu0 %v11881_v1  ;;  %v11965_v1 = vld [vmem:[%s13678_s15 + $0xe04] ss:$8 sps:$4 sm:$0xff]  }
 0x2e9   : > { %10062 = vmatpush1.bf16.msra.mxu1 %v11884_v17  ;;  %10022 = vmatprep.subr.bf16.mxu0 %v11889_v8  ;;  %v11968_v17 = vld [vmem:[%s13678_s15 + $0xf04] ss:$8 sps:$4 sm:$0xff]   ;;  %v10561_v8 = vcombine.low %v14175_v4, %v14175_v4  ;;  %v11966_v4 = vld [vmem:[%s13678_s15 + $0xf00] ss:$8 sps:$4 sm:$0xff]  }
 0x2ea   : > { %10063 = vmatprep.subr.bf16.mxu1 %v11892_v9  ;;  %v10563_v9 = vcombine.low %v14180_v5, %v14180_v5  ;;  %v11971_v5 = vld [vmem:[%s13678_s15 + $0xe14] ss:$8 sps:$4 sm:$0xff]  }
 0x2ec   : > { %10023 = vmatpush1.bf16.msra.mxu0 %v11887_v21  ;;  %v14261_v21 = vld [vmem:[%s14566_s0 + $0x70] sm:$0xff] }
 0x2ed   : > { %10064 = vmatpush1.bf16.msra.mxu1 %v11890_v22  ;;  %10024 = vmatprep.subr.bf16.mxu0 %v11895_v58  ;;  %v14266_v22 = vld [vmem:[%s14566_s0 + $0x78] sm:$0xff]  ;;  %v11963_v58 = vld [vmem:[%s13678_s15 + $0xe00] ss:$8 sps:$4 sm:$0xff]  }
 0x2ee   : > { %10065 = vmatprep.subr.bf16.mxu1 %v11898_v23  ;;  %v9720_v30 = vpop.f32.mrb[8].mxu0  ;;  %v11974_v23 = vld [vmem:[%s13678_s15 + $0xf14] ss:$8 sps:$4 sm:$0xff]  }
 0x2ef   : > { %v9761_v31 = vpop.f32.mrb[8].mxu1  ;;  %v9721_v32 = vadd.f32 %v9720_v30, %v14124_v20  ;;  %v9722_v24 = vpop.f32.mrb[9].mxu0  ;;  %v11907_v20 = vld [vmem:[%s13678_s15 + $0xc74] ss:$8 sps:$4 sm:$0xff]   ;;  %v11977_v30 = vld [vmem:[%s13678_s15 + $0xe24] ss:$8 sps:$4 sm:$0xff]  }
 0x2f0   : > { %v9763_v25 = vpop.f32.mrb[9].mxu1  ;;  %v9723_v33 = vadd.f32 %v9722_v24, %v14128_v26  ;;  %v9724_v34 = vpop.f32.mrb[10].mxu0  ;;  %10025 = vmatpush1.bf16.msra.mxu0 %v11893_v61  ;;  %v11910_v26 = vld [vmem:[%s13678_s15 + $0xd74] ss:$8 sps:$4 sm:$0xff]   ;;  %v10566_v61 = vcombine.high %v14261_v21, %v14261_v21  ;;  %v11978_v24 = vld [vmem:[%s13678_s15 + $0xf20] ss:$8 sps:$4 sm:$0xff]  }
 0x2f1   : > { %v9765_v35 = vpop.f32.mrb[10].mxu1  ;;  %10066 = vmatpush1.bf16.msra.mxu1 %v11896_v18  ;;  %v14212_v38 = vadd.f32 %v9761_v31, %v9721_v32  ;;  %v9725_v39 = vpop.f32.mrb[11].mxu0  ;;  %10026 = vmatprep.subr.bf16.mxu0 %v11901_v27  ;;  %v10568_v18 = vcombine.high %v14266_v22, %v14266_v22  ;;  %v11969_v27 = vld [vmem:[%s13678_s15 + $0xe10] ss:$8 sps:$4 sm:$0xff]   ;;  %v11980_v31 = vld [vmem:[%s13678_s15 + $0xf24] ss:$8 sps:$4 sm:$0xff]  }
 0x2f2   : > { %v9766_v40 = vpop.f32.mrb[11].mxu1  ;;  %10067 = vmatprep.subr.bf16.mxu1 %v11904_v28  ;;  %v14216_v41 = vadd.f32 %v9763_v25, %v9723_v33  ;;  %v11972_v28 = vld [vmem:[%s13678_s15 + $0xf10] ss:$8 sps:$4 sm:$0xff]   ;;  %v11975_v32 = vld [vmem:[%s13678_s15 + $0xe20] ss:$8 sps:$4 sm:$0xff]  }
 0x2f3   : > { %v11983_v25 = vld [vmem:[%s13678_s15 + $0xe34] ss:$8 sps:$4 sm:$0xff]   ;;  %v11981_v34 = vld [vmem:[%s13678_s15 + $0xe30] ss:$8 sps:$4 sm:$0xff]   ;;  %v11987_v39 = vld [vmem:[%s13678_s15 + $0xe40] ss:$8 sps:$4 sm:$0xff]  }
 0x2f4   : > { %10027 = vmatpush1.bf16.msra.mxu0 %v11899_v36  ;;  %v11986_v33 = vld [vmem:[%s13678_s15 + $0xf34] ss:$8 sps:$4 sm:$0xff]   ;;  %v11984_v35 = vld [vmem:[%s13678_s15 + $0xf30] ss:$8 sps:$4 sm:$0xff]   ;;  %v11989_v36 = vld [vmem:[%s13678_s15 + $0xe44] ss:$8 sps:$4 sm:$0xff]  }
 0x2f5   : > { %10068 = vmatpush1.bf16.msra.mxu1 %v11902_v37  ;;  %10028 = vmatprep.subr.bf16.mxu0 %v11907_v20  ;;  %v11992_v37 = vld [vmem:[%s13678_s15 + $0xf44] ss:$8 sps:$4 sm:$0xff]   ;;  %v11990_v40 = vld [vmem:[%s13678_s15 + $0xf40] ss:$8 sps:$4 sm:$0xff]   ;;  %v11995_v20 = vld [vmem:[%s13678_s15 + $0xe54] ss:$8 sps:$4 sm:$0xff]  }
 0x2f6   : > { %10069 = vmatprep.subr.bf16.mxu1 %v11910_v26  ;;  %v11998_v26 = vld [vmem:[%s13678_s15 + $0xf54] ss:$8 sps:$4 sm:$0xff]  }
 0x2f8   : > { %10029 = vmatpush1.bf16.msra.mxu0 %v11905_v42  ;;  %v11993_v42 = vld [vmem:[%s13678_s15 + $0xe50] ss:$8 sps:$4 sm:$0xff]  }
 0x2f9   : > { %10070 = vmatpush1.bf16.msra.mxu1 %v11908_v43  ;;  %10030 = vmatprep.subr.bf16.mxu0 %v11913_v44  ;;  %v11996_v43 = vld [vmem:[%s13678_s15 + $0xf50] ss:$8 sps:$4 sm:$0xff]   ;;  %v12001_v44 = vld [vmem:[%s13678_s15 + $0xe64] ss:$8 sps:$4 sm:$0xff]  }
 0x2fa   : > { %10071 = vmatprep.subr.bf16.mxu1 %v11916_v45  ;;  %v12004_v45 = vld [vmem:[%s13678_s15 + $0xf64] ss:$8 sps:$4 sm:$0xff]  }
 0x2fc   : > { %10031 = vmatpush1.bf16.msra.mxu0 %v11911_v19 }
 0x2fd   : > { %10072 = vmatpush1.bf16.msra.mxu1 %v11914_v48  ;;  %10032 = vmatprep.subr.bf16.mxu0 %v11919_v29 }
 0x2fe   : > { %10073 = vmatprep.subr.bf16.mxu1 %v11922_v49 }
 0x300   : > { %10033 = vmatpush1.bf16.msra.mxu0 %v11917_v50 }
 0x301   : > { %10074 = vmatpush1.bf16.msra.mxu1 %v11920_v51  ;;  %10034 = vmatprep.subr.bf16.mxu0 %v11925_v52 }
 0x302   : > { %10075 = vmatprep.subr.bf16.mxu1 %v11928_v53 }
 0x304   : > { %10035 = vmatpush1.bf16.msra.mxu0 %v11923_v54  ;;  %v11999_v54 = vld [vmem:[%s13678_s15 + $0xe60] ss:$8 sps:$4 sm:$0xff]  }
 0x305   : > { %10076 = vmatpush1.bf16.msra.mxu1 %v11926_v55  ;;  %10036 = vmatprep.subr.bf16.mxu0 %v11931_v56  ;;  %v12002_v55 = vld [vmem:[%s13678_s15 + $0xf60] ss:$8 sps:$4 sm:$0xff]  }
 0x306   : > { %10077 = vmatprep.subr.bf16.mxu1 %v11934_v57 }
 0x308   : > { %10037 = vmatpush1.bf16.msra.mxu0 %v11929_v59 }
 0x309   : > { %10078 = vmatpush1.bf16.msra.mxu1 %v11932_v60  ;;  %10038 = vmatprep.subr.bf16.mxu0 %v11937_v62  ;;  %v12005_v62 = vld [vmem:[%s13678_s15 + $0xe70] ss:$8 sps:$4 sm:$0xff]  }
 0x30a   : > { %10079 = vmatprep.subr.bf16.mxu1 %v11940_v63  ;;  %v12008_v63 = vld [vmem:[%s13678_s15 + $0xf70] ss:$8 sps:$4 sm:$0xff]  }
 0x30c   : > { %10039 = vmatpush1.bf16.msra.mxu0 %v11935_v2  ;;  %v12013_v2 = vld [vmem:[%s13678_s15 + $0xe84] ss:$8 sps:$4 sm:$0xff]  }
 0x30d   : > { %10080 = vmatpush1.bf16.msra.mxu1 %v11938_v3  ;;  %10040 = vmatprep.subr.bf16.mxu0 %v11943_v46  ;;  %v12016_v3 = vld [vmem:[%s13678_s15 + $0xf84] ss:$8 sps:$4 sm:$0xff]   ;;  %v12011_v46 = vld [vmem:[%s13678_s15 + $0xe80] ss:$8 sps:$4 sm:$0xff]  }
 0x30e   : > { %10081 = vmatprep.subr.bf16.mxu1 %v11946_v6  ;;  %v12014_v6 = vld [vmem:[%s13678_s15 + $0xf80] ss:$8 sps:$4 sm:$0xff]  }
 0x310   : > { %10041 = vmatpush1.bf16.msra.mxu0 %v11941_v47  ;;  %v12019_v47 = vld [vmem:[%s13678_s15 + $0xe94] ss:$8 sps:$4 sm:$0xff]  }
 0x311   : > { %10082 = vmatpush1.bf16.msra.mxu1 %v11944_v7  ;;  %10042 = vmatprep.subr.bf16.mxu0 %v11949_v10  ;;  %v12022_v7 = vld [vmem:[%s13678_s15 + $0xf94] ss:$8 sps:$4 sm:$0xff]   ;;  %v12017_v10 = vld [vmem:[%s13678_s15 + $0xe90] ss:$8 sps:$4 sm:$0xff]  }
 0x312   : > { %10083 = vmatprep.subr.bf16.mxu1 %v11952_v11  ;;  %v12020_v11 = vld [vmem:[%s13678_s15 + $0xf90] ss:$8 sps:$4 sm:$0xff]  }
 0x314   : > { %10043 = vmatpush1.bf16.msra.mxu0 %v11947_v12  ;;  %v12025_v12 = vld [vmem:[%s13678_s15 + $0xea4] ss:$8 sps:$4 sm:$0xff]  }
 0x315   : > { %10084 = vmatpush1.bf16.msra.mxu1 %v11950_v13  ;;  %10044 = vmatprep.subr.bf16.mxu0 %v11955_v14  ;;  %v12028_v13 = vld [vmem:[%s13678_s15 + $0xfa4] ss:$8 sps:$4 sm:$0xff]   ;;  %v12023_v14 = vld [vmem:[%s13678_s15 + $0xea0] ss:$8 sps:$4 sm:$0xff]  }
 0x316   : > { %10085 = vmatprep.subr.bf16.mxu1 %v11958_v15  ;;  %v12026_v15 = vld [vmem:[%s13678_s15 + $0xfa0] ss:$8 sps:$4 sm:$0xff]  }
 0x318   : > { %10045 = vmatpush1.bf16.msra.mxu0 %v11953_v16  ;;  %v12031_v16 = vld [vmem:[%s13678_s15 + $0xeb4] ss:$8 sps:$4 sm:$0xff]  }
 0x319   : > { %10086 = vmatpush1.bf16.msra.mxu1 %v11956_v0  ;;  %10096 = vmatprep.subr.bf16.mxu0 %v11965_v1  ;;  %v12034_v0 = vld [vmem:[%s13678_s15 + $0xfb4] ss:$8 sps:$4 sm:$0xff]   ;;  %v12029_v1 = vld [vmem:[%s13678_s15 + $0xeb0] ss:$8 sps:$4 sm:$0xff]  }
 0x31a   : > { %10137 = vmatprep.subr.bf16.mxu1 %v11968_v17  ;;  %v12032_v17 = vld [vmem:[%s13678_s15 + $0xfb0] ss:$8 sps:$4 sm:$0xff]  }
 0x31b   : > { %10047 = vmatmul.mubr.bf16.vlgmr.msra.gmra.mrb[24].mxu0 %v10561_v8  ;;  %v12037_v8 = vld [vmem:[%s13678_s15 + $0xec4] ss:$8 sps:$4 sm:$0xff]  }
 0x31c   : > { %10088 = vmatmul.mubr.bf16.vlgmr.msra.gmra.mrb[24].mxu1 %v10563_v9  ;;  %10097 = vmatpush1.bf16.msra.mxu0 %v11963_v58  ;;  %v12040_v9 = vld [vmem:[%s13678_s15 + $0xfc4] ss:$8 sps:$4 sm:$0xff]   ;;  %v12035_v58 = vld [vmem:[%s13678_s15 + $0xec0] ss:$8 sps:$4 sm:$0xff]  }
 0x31d   : > { %10138 = vmatpush1.bf16.msra.mxu1 %v11966_v4  ;;  %10098 = vmatprep.subr.bf16.mxu0 %v11971_v5  ;;  %v12038_v4 = vld [vmem:[%s13678_s15 + $0xfc0] ss:$8 sps:$4 sm:$0xff]   ;;  %v12043_v5 = vld [vmem:[%s13678_s15 + $0xed4] ss:$8 sps:$4 sm:$0xff]  }
 0x31e   : > { %10139 = vmatprep.subr.bf16.mxu1 %v11974_v23  ;;  %10128 = vmatprep.mubr.bf16.mxu0 %v10566_v61  ;;  %v12046_v23 = vld [vmem:[%s13678_s15 + $0xfd4] ss:$8 sps:$4 sm:$0xff]   ;;  %v12041_v61 = vld [vmem:[%s13678_s15 + $0xed0] ss:$8 sps:$4 sm:$0xff]  }
 0x31f   : > { %10169 = vmatprep.mubr.bf16.mxu1 %v10568_v18  ;;  %v12044_v18 = vld [vmem:[%s13678_s15 + $0xfd0] ss:$8 sps:$4 sm:$0xff]  }
 0x320   : > { %10099 = vmatpush1.bf16.msra.mxu0 %v11969_v27  ;;  %v12049_v27 = vld [vmem:[%s13678_s15 + $0xee4] ss:$8 sps:$4 sm:$0xff]  }
 0x321   : > { %10140 = vmatpush1.bf16.msra.mxu1 %v11972_v28  ;;  %10100 = vmatprep.subr.bf16.mxu0 %v11977_v30  ;;  %v12052_v28 = vld [vmem:[%s13678_s15 + $0xfe4] ss:$8 sps:$4 sm:$0xff]   ;;  %v12047_v30 = vld [vmem:[%s13678_s15 + $0xee0] ss:$8 sps:$4 sm:$0xff]  }
 0x322   : > { %10141 = vmatprep.subr.bf16.mxu1 %v11980_v31  ;;  %v12050_v31 = vld [vmem:[%s13678_s15 + $0xfe0] ss:$8 sps:$4 sm:$0xff]  }
 0x324   : > { %10101 = vmatpush1.bf16.msra.mxu0 %v11975_v32  ;;  %v12055_v32 = vld [vmem:[%s13678_s15 + $0xef4] ss:$8 sps:$4 sm:$0xff]  }
 0x325   : > { %10142 = vmatpush1.bf16.msra.mxu1 %v11978_v24  ;;  %10102 = vmatprep.subr.bf16.mxu0 %v11983_v25  ;;  %v12058_v24 = vld [vmem:[%s13678_s15 + $0xff4] ss:$8 sps:$4 sm:$0xff]   ;;  %v12053_v25 = vld [vmem:[%s13678_s15 + $0xef0] ss:$8 sps:$4 sm:$0xff]  }
 0x326   : > { %10143 = vmatprep.subr.bf16.mxu1 %v11986_v33  ;;  %v12056_v33 = vld [vmem:[%s13678_s15 + $0xff0] ss:$8 sps:$4 sm:$0xff]  }
 0x328   : > { %10103 = vmatpush1.bf16.msra.mxu0 %v11981_v34  ;;  %v12065_v34 = vld [vmem:[%s13678_s15 + $0x1004] ss:$8 sps:$4 sm:$0xff]  }
 0x329   : > { %10144 = vmatpush1.bf16.msra.mxu1 %v11984_v35  ;;  %10104 = vmatprep.subr.bf16.mxu0 %v11989_v36  ;;  %v12068_v35 = vld [vmem:[%s13678_s15 + $0x1104] ss:$8 sps:$4 sm:$0xff]   ;;  %v10565_v36 = vcombine.low %v14261_v21, %v14261_v21  ;;  %v12066_v21 = vld [vmem:[%s13678_s15 + $0x1100] ss:$8 sps:$4 sm:$0xff]  }
 0x32a   : > { %10145 = vmatprep.subr.bf16.mxu1 %v11992_v37  ;;  %v10567_v37 = vcombine.low %v14266_v22, %v14266_v22  ;;  %v12071_v22 = vld [vmem:[%s13678_s15 + $0x1014] ss:$8 sps:$4 sm:$0xff]  }
 0x32c   : > { %10105 = vmatpush1.bf16.msra.mxu0 %v11987_v39  ;;  %v14349_v39 = vld [vmem:[%s14566_s0 + $0x80] sm:$0xff] }
 0x32d   : > { %10146 = vmatpush1.bf16.msra.mxu1 %v11990_v40  ;;  %10106 = vmatprep.subr.bf16.mxu0 %v11995_v20  ;;  %v14354_v40 = vld [vmem:[%s14566_s0 + $0x88] sm:$0xff] }
 0x32e   : > { %10147 = vmatprep.subr.bf16.mxu1 %v11998_v26  ;;  %v9802_v19 = vpop.f32.mrb[12].mxu0  ;;  %v12063_v20 = vld [vmem:[%s13678_s15 + $0x1000] ss:$8 sps:$4 sm:$0xff]   ;;  %v12074_v26 = vld [vmem:[%s13678_s15 + $0x1114] ss:$8 sps:$4 sm:$0xff]  }
 0x32f   : > { %v9843_v48 = vpop.f32.mrb[12].mxu1  ;;  %v9803_v29 = vadd.f32 %v9802_v19, %v14212_v38  ;;  %v9804_v49 = vpop.f32.mrb[13].mxu0  ;;  %v12007_v38 = vld [vmem:[%s13678_s15 + $0xe74] ss:$8 sps:$4 sm:$0xff]   ;;  %v12077_v19 = vld [vmem:[%s13678_s15 + $0x1024] ss:$8 sps:$4 sm:$0xff]  }
 0x330   : > { %v9845_v50 = vpop.f32.mrb[13].mxu1  ;;  %v9805_v51 = vadd.f32 %v9804_v49, %v14216_v41  ;;  %v9806_v52 = vpop.f32.mrb[14].mxu0  ;;  %10107 = vmatpush1.bf16.msra.mxu0 %v11993_v42  ;;  %v12010_v41 = vld [vmem:[%s13678_s15 + $0xf74] ss:$8 sps:$4 sm:$0xff]   ;;  %v10570_v42 = vcombine.high %v14349_v39, %v14349_v39  ;;  %v12078_v49 = vld [vmem:[%s13678_s15 + $0x1120] ss:$8 sps:$4 sm:$0xff]  }
 0x331   : > { %v9847_v53 = vpop.f32.mrb[14].mxu1  ;;  %10148 = vmatpush1.bf16.msra.mxu1 %v11996_v43  ;;  %v14300_v56 = vadd.f32 %v9843_v48, %v9803_v29  ;;  %v9807_v57 = vpop.f32.mrb[15].mxu0  ;;  %10108 = vmatprep.subr.bf16.mxu0 %v12001_v44  ;;  %v10572_v43 = vcombine.high %v14354_v40, %v14354_v40  ;;  %v12069_v44 = vld [vmem:[%s13678_s15 + $0x1010] ss:$8 sps:$4 sm:$0xff]   ;;  %v12080_v48 = vld [vmem:[%s13678_s15 + $0x1124] ss:$8 sps:$4 sm:$0xff]  }
 0x332   : > { %v9848_v59 = vpop.f32.mrb[15].mxu1  ;;  %10149 = vmatprep.subr.bf16.mxu1 %v12004_v45  ;;  %v14304_v60 = vadd.f32 %v9845_v50, %v9805_v51  ;;  %v12072_v45 = vld [vmem:[%s13678_s15 + $0x1110] ss:$8 sps:$4 sm:$0xff]   ;;  %v12075_v29 = vld [vmem:[%s13678_s15 + $0x1020] ss:$8 sps:$4 sm:$0xff]  }
 0x333   : > { %v12083_v50 = vld [vmem:[%s13678_s15 + $0x1034] ss:$8 sps:$4 sm:$0xff]   ;;  %v12081_v52 = vld [vmem:[%s13678_s15 + $0x1030] ss:$8 sps:$4 sm:$0xff]   ;;  %v12087_v57 = vld [vmem:[%s13678_s15 + $0x1040] ss:$8 sps:$4 sm:$0xff]  }
 0x334   : > { %10109 = vmatpush1.bf16.msra.mxu0 %v11999_v54  ;;  %v12086_v51 = vld [vmem:[%s13678_s15 + $0x1134] ss:$8 sps:$4 sm:$0xff]   ;;  %v12084_v53 = vld [vmem:[%s13678_s15 + $0x1130] ss:$8 sps:$4 sm:$0xff]   ;;  %v12089_v54 = vld [vmem:[%s13678_s15 + $0x1044] ss:$8 sps:$4 sm:$0xff]  }
 0x335   : > { %10150 = vmatpush1.bf16.msra.mxu1 %v12002_v55  ;;  %10110 = vmatprep.subr.bf16.mxu0 %v12007_v38  ;;  %v12092_v55 = vld [vmem:[%s13678_s15 + $0x1144] ss:$8 sps:$4 sm:$0xff]   ;;  %v12090_v59 = vld [vmem:[%s13678_s15 + $0x1140] ss:$8 sps:$4 sm:$0xff]   ;;  %v12095_v38 = vld [vmem:[%s13678_s15 + $0x1054] ss:$8 sps:$4 sm:$0xff]  }
 0x336   : > { %10151 = vmatprep.subr.bf16.mxu1 %v12010_v41  ;;  %v12098_v41 = vld [vmem:[%s13678_s15 + $0x1154] ss:$8 sps:$4 sm:$0xff]  }
 0x338   : > { %10111 = vmatpush1.bf16.msra.mxu0 %v12005_v62  ;;  %v12093_v62 = vld [vmem:[%s13678_s15 + $0x1050] ss:$8 sps:$4 sm:$0xff]  }
 0x339   : > { %10152 = vmatpush1.bf16.msra.mxu1 %v12008_v63  ;;  %10112 = vmatprep.subr.bf16.mxu0 %v12013_v2  ;;  %v12096_v63 = vld [vmem:[%s13678_s15 + $0x1150] ss:$8 sps:$4 sm:$0xff]   ;;  %v12101_v2 = vld [vmem:[%s13678_s15 + $0x1064] ss:$8 sps:$4 sm:$0xff]  }
 0x33a   : > { %10153 = vmatprep.subr.bf16.mxu1 %v12016_v3  ;;  %v12104_v3 = vld [vmem:[%s13678_s15 + $0x1164] ss:$8 sps:$4 sm:$0xff]  }
 0x33c   : > { %10113 = vmatpush1.bf16.msra.mxu0 %v12011_v46 }
 0x33d   : > { %10154 = vmatpush1.bf16.msra.mxu1 %v12014_v6  ;;  %10114 = vmatprep.subr.bf16.mxu0 %v12019_v47 }
 0x33e   : > { %10155 = vmatprep.subr.bf16.mxu1 %v12022_v7 }
 0x340   : > { %10115 = vmatpush1.bf16.msra.mxu0 %v12017_v10 }
 0x341   : > { %10156 = vmatpush1.bf16.msra.mxu1 %v12020_v11  ;;  %10116 = vmatprep.subr.bf16.mxu0 %v12025_v12 }
 0x342   : > { %10157 = vmatprep.subr.bf16.mxu1 %v12028_v13 }
 0x344   : > { %10117 = vmatpush1.bf16.msra.mxu0 %v12023_v14  ;;  %v12099_v14 = vld [vmem:[%s13678_s15 + $0x1060] ss:$8 sps:$4 sm:$0xff]  }
 0x345   : > { %10158 = vmatpush1.bf16.msra.mxu1 %v12026_v15  ;;  %10118 = vmatprep.subr.bf16.mxu0 %v12031_v16  ;;  %v12102_v15 = vld [vmem:[%s13678_s15 + $0x1160] ss:$8 sps:$4 sm:$0xff]  }
 0x346   : > { %10159 = vmatprep.subr.bf16.mxu1 %v12034_v0 }
 0x348   : > { %10119 = vmatpush1.bf16.msra.mxu0 %v12029_v1 }
 0x349   : > { %10160 = vmatpush1.bf16.msra.mxu1 %v12032_v17  ;;  %10120 = vmatprep.subr.bf16.mxu0 %v12037_v8  ;;  %v12105_v8 = vld [vmem:[%s13678_s15 + $0x1070] ss:$8 sps:$4 sm:$0xff]  }
 0x34a   : > { %10161 = vmatprep.subr.bf16.mxu1 %v12040_v9  ;;  %v12108_v9 = vld [vmem:[%s13678_s15 + $0x1170] ss:$8 sps:$4 sm:$0xff]  }
 0x34c   : > { %10121 = vmatpush1.bf16.msra.mxu0 %v12035_v58  ;;  %v12113_v58 = vld [vmem:[%s13678_s15 + $0x1084] ss:$8 sps:$4 sm:$0xff]  }
 0x34d   : > { %10162 = vmatpush1.bf16.msra.mxu1 %v12038_v4  ;;  %10122 = vmatprep.subr.bf16.mxu0 %v12043_v5  ;;  %v12116_v4 = vld [vmem:[%s13678_s15 + $0x1184] ss:$8 sps:$4 sm:$0xff]   ;;  %v12111_v5 = vld [vmem:[%s13678_s15 + $0x1080] ss:$8 sps:$4 sm:$0xff]  }
 0x34e   : > { %10163 = vmatprep.subr.bf16.mxu1 %v12046_v23  ;;  %v12114_v23 = vld [vmem:[%s13678_s15 + $0x1180] ss:$8 sps:$4 sm:$0xff]  }
 0x350   : > { %10123 = vmatpush1.bf16.msra.mxu0 %v12041_v61  ;;  %v12119_v61 = vld [vmem:[%s13678_s15 + $0x1094] ss:$8 sps:$4 sm:$0xff]  }
 0x351   : > { %10164 = vmatpush1.bf16.msra.mxu1 %v12044_v18  ;;  %10124 = vmatprep.subr.bf16.mxu0 %v12049_v27  ;;  %v12122_v18 = vld [vmem:[%s13678_s15 + $0x1194] ss:$8 sps:$4 sm:$0xff]   ;;  %v12117_v27 = vld [vmem:[%s13678_s15 + $0x1090] ss:$8 sps:$4 sm:$0xff]  }
 0x352   : > { %10165 = vmatprep.subr.bf16.mxu1 %v12052_v28  ;;  %v12120_v28 = vld [vmem:[%s13678_s15 + $0x1190] ss:$8 sps:$4 sm:$0xff]  }
 0x354   : > { %10125 = vmatpush1.bf16.msra.mxu0 %v12047_v30  ;;  %v12125_v30 = vld [vmem:[%s13678_s15 + $0x10a4] ss:$8 sps:$4 sm:$0xff]  }
 0x355   : > { %10166 = vmatpush1.bf16.msra.mxu1 %v12050_v31  ;;  %10126 = vmatprep.subr.bf16.mxu0 %v12055_v32  ;;  %v12128_v31 = vld [vmem:[%s13678_s15 + $0x11a4] ss:$8 sps:$4 sm:$0xff]   ;;  %v12123_v32 = vld [vmem:[%s13678_s15 + $0x10a0] ss:$8 sps:$4 sm:$0xff]  }
 0x356   : > { %10167 = vmatprep.subr.bf16.mxu1 %v12058_v24  ;;  %v12126_v24 = vld [vmem:[%s13678_s15 + $0x11a0] ss:$8 sps:$4 sm:$0xff]  }
 0x358   : > { %10127 = vmatpush1.bf16.msra.mxu0 %v12053_v25  ;;  %v12131_v25 = vld [vmem:[%s13678_s15 + $0x10b4] ss:$8 sps:$4 sm:$0xff]  }
 0x359   : > { %10168 = vmatpush1.bf16.msra.mxu1 %v12056_v33  ;;  %10178 = vmatprep.subr.bf16.mxu0 %v12065_v34  ;;  %v12134_v33 = vld [vmem:[%s13678_s15 + $0x11b4] ss:$8 sps:$4 sm:$0xff]   ;;  %v12129_v34 = vld [vmem:[%s13678_s15 + $0x10b0] ss:$8 sps:$4 sm:$0xff]  }
 0x35a   : > { %10219 = vmatprep.subr.bf16.mxu1 %v12068_v35  ;;  %v12132_v35 = vld [vmem:[%s13678_s15 + $0x11b0] ss:$8 sps:$4 sm:$0xff]  }
 0x35b   : > { %10129 = vmatmul.mubr.bf16.vlgmr.msra.gmra.mrb[28].mxu0 %v10565_v36  ;;  %v12137_v36 = vld [vmem:[%s13678_s15 + $0x10c4] ss:$8 sps:$4 sm:$0xff]  }
 0x35c   : > { %10170 = vmatmul.mubr.bf16.vlgmr.msra.gmra.mrb[28].mxu1 %v10567_v37  ;;  %10179 = vmatpush1.bf16.msra.mxu0 %v12063_v20  ;;  %v12140_v37 = vld [vmem:[%s13678_s15 + $0x11c4] ss:$8 sps:$4 sm:$0xff]   ;;  %v12135_v20 = vld [vmem:[%s13678_s15 + $0x10c0] ss:$8 sps:$4 sm:$0xff]  }
 0x35d   : > { %10220 = vmatpush1.bf16.msra.mxu1 %v12066_v21  ;;  %10180 = vmatprep.subr.bf16.mxu0 %v12071_v22  ;;  %v12138_v21 = vld [vmem:[%s13678_s15 + $0x11c0] ss:$8 sps:$4 sm:$0xff]   ;;  %v12143_v22 = vld [vmem:[%s13678_s15 + $0x10d4] ss:$8 sps:$4 sm:$0xff]  }
 0x35e   : > { %10221 = vmatprep.subr.bf16.mxu1 %v12074_v26  ;;  %10210 = vmatprep.mubr.bf16.mxu0 %v10570_v42  ;;  %v12146_v26 = vld [vmem:[%s13678_s15 + $0x11d4] ss:$8 sps:$4 sm:$0xff]   ;;  %v12141_v42 = vld [vmem:[%s13678_s15 + $0x10d0] ss:$8 sps:$4 sm:$0xff]  }
 0x35f   : > { %10251 = vmatprep.mubr.bf16.mxu1 %v10572_v43  ;;  %v12144_v43 = vld [vmem:[%s13678_s15 + $0x11d0] ss:$8 sps:$4 sm:$0xff]  }
 0x360   : > { %10181 = vmatpush1.bf16.msra.mxu0 %v12069_v44  ;;  %v12149_v44 = vld [vmem:[%s13678_s15 + $0x10e4] ss:$8 sps:$4 sm:$0xff]  }
 0x361   : > { %10222 = vmatpush1.bf16.msra.mxu1 %v12072_v45  ;;  %10182 = vmatprep.subr.bf16.mxu0 %v12077_v19  ;;  %v12152_v45 = vld [vmem:[%s13678_s15 + $0x11e4] ss:$8 sps:$4 sm:$0xff]   ;;  %v12147_v19 = vld [vmem:[%s13678_s15 + $0x10e0] ss:$8 sps:$4 sm:$0xff]  }
 0x362   : > { %10223 = vmatprep.subr.bf16.mxu1 %v12080_v48  ;;  %v12150_v48 = vld [vmem:[%s13678_s15 + $0x11e0] ss:$8 sps:$4 sm:$0xff]  }
 0x364   : > { %10183 = vmatpush1.bf16.msra.mxu0 %v12075_v29  ;;  %v12155_v29 = vld [vmem:[%s13678_s15 + $0x10f4] ss:$8 sps:$4 sm:$0xff]  }
 0x365   : > { %10224 = vmatpush1.bf16.msra.mxu1 %v12078_v49  ;;  %10184 = vmatprep.subr.bf16.mxu0 %v12083_v50  ;;  %v12158_v49 = vld [vmem:[%s13678_s15 + $0x11f4] ss:$8 sps:$4 sm:$0xff]   ;;  %v12153_v50 = vld [vmem:[%s13678_s15 + $0x10f0] ss:$8 sps:$4 sm:$0xff]  }
 0x366   : > { %10225 = vmatprep.subr.bf16.mxu1 %v12086_v51  ;;  %v12156_v51 = vld [vmem:[%s13678_s15 + $0x11f0] ss:$8 sps:$4 sm:$0xff]  }
 0x368   : > { %10185 = vmatpush1.bf16.msra.mxu0 %v12081_v52  ;;  %v12165_v52 = vld [vmem:[%s13678_s15 + $0x1204] ss:$8 sps:$4 sm:$0xff]  }
 0x369   : > { %10226 = vmatpush1.bf16.msra.mxu1 %v12084_v53  ;;  %10186 = vmatprep.subr.bf16.mxu0 %v12089_v54  ;;  %v12168_v53 = vld [vmem:[%s13678_s15 + $0x1304] ss:$8 sps:$4 sm:$0xff]   ;;  %v10569_v54 = vcombine.low %v14349_v39, %v14349_v39  ;;  %v12166_v39 = vld [vmem:[%s13678_s15 + $0x1300] ss:$8 sps:$4 sm:$0xff]  }
 0x36a   : > { %10227 = vmatprep.subr.bf16.mxu1 %v12092_v55  ;;  %v10571_v55 = vcombine.low %v14354_v40, %v14354_v40  ;;  %v12171_v40 = vld [vmem:[%s13678_s15 + $0x1214] ss:$8 sps:$4 sm:$0xff]  }
 0x36c   : > { %10187 = vmatpush1.bf16.msra.mxu0 %v12087_v57  ;;  %v14437_v57 = vld [vmem:[%s14566_s0 + $0x90] sm:$0xff] }
 0x36d   : > { %10228 = vmatpush1.bf16.msra.mxu1 %v12090_v59  ;;  %10188 = vmatprep.subr.bf16.mxu0 %v12095_v38  ;;  %v14442_v59 = vld [vmem:[%s14566_s0 + $0x98] sm:$0xff]  ;;  %v12163_v38 = vld [vmem:[%s13678_s15 + $0x1200] ss:$8 sps:$4 sm:$0xff]  }
 0x36e   : > { %10229 = vmatprep.subr.bf16.mxu1 %v12098_v41  ;;  %v9884_v46 = vpop.f32.mrb[16].mxu0  ;;  %v12174_v41 = vld [vmem:[%s13678_s15 + $0x1314] ss:$8 sps:$4 sm:$0xff]  }
 0x36f   : > { %v9925_v6 = vpop.f32.mrb[16].mxu1  ;;  %v9885_v47 = vadd.f32 %v9884_v46, %v14300_v56  ;;  %v9886_v7 = vpop.f32.mrb[17].mxu0  ;;  %v12107_v56 = vld [vmem:[%s13678_s15 + $0x1074] ss:$8 sps:$4 sm:$0xff]   ;;  %v12177_v46 = vld [vmem:[%s13678_s15 + $0x1224] ss:$8 sps:$4 sm:$0xff]  }
 0x370   : > { %v9927_v10 = vpop.f32.mrb[17].mxu1  ;;  %v9887_v11 = vadd.f32 %v9886_v7, %v14304_v60  ;;  %v9888_v12 = vpop.f32.mrb[18].mxu0  ;;  %10189 = vmatpush1.bf16.msra.mxu0 %v12093_v62  ;;  %v12110_v60 = vld [vmem:[%s13678_s15 + $0x1174] ss:$8 sps:$4 sm:$0xff]   ;;  %v10574_v62 = vcombine.high %v14437_v57, %v14437_v57  ;;  %v12178_v7 = vld [vmem:[%s13678_s15 + $0x1320] ss:$8 sps:$4 sm:$0xff]  }
 0x371   : > { %v9929_v13 = vpop.f32.mrb[18].mxu1  ;;  %10230 = vmatpush1.bf16.msra.mxu1 %v12096_v63  ;;  %v14388_v16 = vadd.f32 %v9925_v6, %v9885_v47  ;;  %v9889_v0 = vpop.f32.mrb[19].mxu0  ;;  %10190 = vmatprep.subr.bf16.mxu0 %v12101_v2  ;;  %v10576_v63 = vcombine.high %v14442_v59, %v14442_v59  ;;  %v12169_v2 = vld [vmem:[%s13678_s15 + $0x1210] ss:$8 sps:$4 sm:$0xff]   ;;  %v12180_v6 = vld [vmem:[%s13678_s15 + $0x1324] ss:$8 sps:$4 sm:$0xff]  }
 0x372   : > { %v9930_v1 = vpop.f32.mrb[19].mxu1  ;;  %10231 = vmatprep.subr.bf16.mxu1 %v12104_v3  ;;  %v14392_v17 = vadd.f32 %v9927_v10, %v9887_v11  ;;  %v12172_v3 = vld [vmem:[%s13678_s15 + $0x1310] ss:$8 sps:$4 sm:$0xff]   ;;  %v12175_v47 = vld [vmem:[%s13678_s15 + $0x1220] ss:$8 sps:$4 sm:$0xff]  }
 0x373   : > { %v12183_v10 = vld [vmem:[%s13678_s15 + $0x1234] ss:$8 sps:$4 sm:$0xff]   ;;  %v12181_v12 = vld [vmem:[%s13678_s15 + $0x1230] ss:$8 sps:$4 sm:$0xff]   ;;  %v12187_v0 = vld [vmem:[%s13678_s15 + $0x1240] ss:$8 sps:$4 sm:$0xff]  }
 0x374   : > { %10191 = vmatpush1.bf16.msra.mxu0 %v12099_v14  ;;  %v12186_v11 = vld [vmem:[%s13678_s15 + $0x1334] ss:$8 sps:$4 sm:$0xff]   ;;  %v12184_v13 = vld [vmem:[%s13678_s15 + $0x1330] ss:$8 sps:$4 sm:$0xff]   ;;  %v12189_v14 = vld [vmem:[%s13678_s15 + $0x1244] ss:$8 sps:$4 sm:$0xff]  }
 0x375   : > { %10232 = vmatpush1.bf16.msra.mxu1 %v12102_v15  ;;  %10192 = vmatprep.subr.bf16.mxu0 %v12107_v56  ;;  %v12192_v15 = vld [vmem:[%s13678_s15 + $0x1344] ss:$8 sps:$4 sm:$0xff]   ;;  %v12190_v1 = vld [vmem:[%s13678_s15 + $0x1340] ss:$8 sps:$4 sm:$0xff]   ;;  %v12195_v56 = vld [vmem:[%s13678_s15 + $0x1254] ss:$8 sps:$4 sm:$0xff]  }
 0x376   : > { %10233 = vmatprep.subr.bf16.mxu1 %v12110_v60  ;;  %v12198_v60 = vld [vmem:[%s13678_s15 + $0x1354] ss:$8 sps:$4 sm:$0xff]  }
 0x378   : > { %10193 = vmatpush1.bf16.msra.mxu0 %v12105_v8  ;;  %v12193_v8 = vld [vmem:[%s13678_s15 + $0x1250] ss:$8 sps:$4 sm:$0xff]  }
 0x379   : > { %10234 = vmatpush1.bf16.msra.mxu1 %v12108_v9  ;;  %10194 = vmatprep.subr.bf16.mxu0 %v12113_v58  ;;  %v12196_v9 = vld [vmem:[%s13678_s15 + $0x1350] ss:$8 sps:$4 sm:$0xff]   ;;  %v12201_v58 = vld [vmem:[%s13678_s15 + $0x1264] ss:$8 sps:$4 sm:$0xff]  }
 0x37a   : > { %10235 = vmatprep.subr.bf16.mxu1 %v12116_v4  ;;  %v12204_v4 = vld [vmem:[%s13678_s15 + $0x1364] ss:$8 sps:$4 sm:$0xff]  }
 0x37c   : > { %10195 = vmatpush1.bf16.msra.mxu0 %v12111_v5 }
 0x37d   : > { %10236 = vmatpush1.bf16.msra.mxu1 %v12114_v23  ;;  %10196 = vmatprep.subr.bf16.mxu0 %v12119_v61 }
 0x37e   : > { %10237 = vmatprep.subr.bf16.mxu1 %v12122_v18 }
 0x380   : > { %10197 = vmatpush1.bf16.msra.mxu0 %v12117_v27 }
 0x381   : > { %10238 = vmatpush1.bf16.msra.mxu1 %v12120_v28  ;;  %10198 = vmatprep.subr.bf16.mxu0 %v12125_v30 }
 0x382   : > { %10239 = vmatprep.subr.bf16.mxu1 %v12128_v31 }
 0x384   : > { %10199 = vmatpush1.bf16.msra.mxu0 %v12123_v32  ;;  %v12199_v32 = vld [vmem:[%s13678_s15 + $0x1260] ss:$8 sps:$4 sm:$0xff]  }
 0x385   : > { %10240 = vmatpush1.bf16.msra.mxu1 %v12126_v24  ;;  %10200 = vmatprep.subr.bf16.mxu0 %v12131_v25  ;;  %v12202_v24 = vld [vmem:[%s13678_s15 + $0x1360] ss:$8 sps:$4 sm:$0xff]  }
 0x386   : > { %10241 = vmatprep.subr.bf16.mxu1 %v12134_v33 }
 0x388   : > { %10201 = vmatpush1.bf16.msra.mxu0 %v12129_v34 }
 0x389   : > { %10242 = vmatpush1.bf16.msra.mxu1 %v12132_v35  ;;  %10202 = vmatprep.subr.bf16.mxu0 %v12137_v36  ;;  %v12205_v36 = vld [vmem:[%s13678_s15 + $0x1270] ss:$8 sps:$4 sm:$0xff]  }
 0x38a   : > { %10243 = vmatprep.subr.bf16.mxu1 %v12140_v37  ;;  %v12208_v37 = vld [vmem:[%s13678_s15 + $0x1370] ss:$8 sps:$4 sm:$0xff]  }
 0x38c   : > { %10203 = vmatpush1.bf16.msra.mxu0 %v12135_v20  ;;  %v12213_v20 = vld [vmem:[%s13678_s15 + $0x1284] ss:$8 sps:$4 sm:$0xff]  }
 0x38d   : > { %10244 = vmatpush1.bf16.msra.mxu1 %v12138_v21  ;;  %10204 = vmatprep.subr.bf16.mxu0 %v12143_v22  ;;  %v12216_v21 = vld [vmem:[%s13678_s15 + $0x1384] ss:$8 sps:$4 sm:$0xff]   ;;  %v12211_v22 = vld [vmem:[%s13678_s15 + $0x1280] ss:$8 sps:$4 sm:$0xff]  }
 0x38e   : > { %10245 = vmatprep.subr.bf16.mxu1 %v12146_v26  ;;  %v12214_v26 = vld [vmem:[%s13678_s15 + $0x1380] ss:$8 sps:$4 sm:$0xff]  }
 0x390   : > { %10205 = vmatpush1.bf16.msra.mxu0 %v12141_v42  ;;  %v12219_v42 = vld [vmem:[%s13678_s15 + $0x1294] ss:$8 sps:$4 sm:$0xff]  }
 0x391   : > { %10246 = vmatpush1.bf16.msra.mxu1 %v12144_v43  ;;  %10206 = vmatprep.subr.bf16.mxu0 %v12149_v44  ;;  %v12222_v43 = vld [vmem:[%s13678_s15 + $0x1394] ss:$8 sps:$4 sm:$0xff]   ;;  %v12217_v44 = vld [vmem:[%s13678_s15 + $0x1290] ss:$8 sps:$4 sm:$0xff]  }
 0x392   : > { %10247 = vmatprep.subr.bf16.mxu1 %v12152_v45  ;;  %v12220_v45 = vld [vmem:[%s13678_s15 + $0x1390] ss:$8 sps:$4 sm:$0xff]  }
 0x394   : > { %10207 = vmatpush1.bf16.msra.mxu0 %v12147_v19  ;;  %v12225_v19 = vld [vmem:[%s13678_s15 + $0x12a4] ss:$8 sps:$4 sm:$0xff]  }
 0x395   : > { %10248 = vmatpush1.bf16.msra.mxu1 %v12150_v48  ;;  %10208 = vmatprep.subr.bf16.mxu0 %v12155_v29  ;;  %v12228_v48 = vld [vmem:[%s13678_s15 + $0x13a4] ss:$8 sps:$4 sm:$0xff]   ;;  %v12223_v29 = vld [vmem:[%s13678_s15 + $0x12a0] ss:$8 sps:$4 sm:$0xff]  }
 0x396   : > { %10249 = vmatprep.subr.bf16.mxu1 %v12158_v49  ;;  %v12226_v49 = vld [vmem:[%s13678_s15 + $0x13a0] ss:$8 sps:$4 sm:$0xff]  }
 0x398   : > { %10209 = vmatpush1.bf16.msra.mxu0 %v12153_v50  ;;  %v12231_v50 = vld [vmem:[%s13678_s15 + $0x12b4] ss:$8 sps:$4 sm:$0xff]  }
 0x399   : > { %10250 = vmatpush1.bf16.msra.mxu1 %v12156_v51  ;;  %10260 = vmatprep.subr.bf16.mxu0 %v12165_v52  ;;  %v12234_v51 = vld [vmem:[%s13678_s15 + $0x13b4] ss:$8 sps:$4 sm:$0xff]   ;;  %v12229_v52 = vld [vmem:[%s13678_s15 + $0x12b0] ss:$8 sps:$4 sm:$0xff]  }
 0x39a   : > { %10301 = vmatprep.subr.bf16.mxu1 %v12168_v53  ;;  %v12232_v53 = vld [vmem:[%s13678_s15 + $0x13b0] ss:$8 sps:$4 sm:$0xff]  }
 0x39b   : > { %10211 = vmatmul.mubr.bf16.vlgmr.msra.gmra.mrb[32].mxu0 %v10569_v54  ;;  %v12237_v54 = vld [vmem:[%s13678_s15 + $0x12c4] ss:$8 sps:$4 sm:$0xff]  }
 0x39c   : > { %10252 = vmatmul.mubr.bf16.vlgmr.msra.gmra.mrb[32].mxu1 %v10571_v55  ;;  %10261 = vmatpush1.bf16.msra.mxu0 %v12163_v38  ;;  %v12240_v55 = vld [vmem:[%s13678_s15 + $0x13c4] ss:$8 sps:$4 sm:$0xff]   ;;  %v12235_v38 = vld [vmem:[%s13678_s15 + $0x12c0] ss:$8 sps:$4 sm:$0xff]  }
 0x39d   : > { %10302 = vmatpush1.bf16.msra.mxu1 %v12166_v39  ;;  %10262 = vmatprep.subr.bf16.mxu0 %v12171_v40  ;;  %v12238_v39 = vld [vmem:[%s13678_s15 + $0x13c0] ss:$8 sps:$4 sm:$0xff]   ;;  %v12243_v40 = vld [vmem:[%s13678_s15 + $0x12d4] ss:$8 sps:$4 sm:$0xff]  }
 0x39e   : > { %10303 = vmatprep.subr.bf16.mxu1 %v12174_v41  ;;  %10292 = vmatprep.mubr.bf16.mxu0 %v10574_v62  ;;  %v12246_v41 = vld [vmem:[%s13678_s15 + $0x13d4] ss:$8 sps:$4 sm:$0xff]   ;;  %v12241_v62 = vld [vmem:[%s13678_s15 + $0x12d0] ss:$8 sps:$4 sm:$0xff]  }
 0x39f   : > { %10333 = vmatprep.mubr.bf16.mxu1 %v10576_v63  ;;  %v12244_v63 = vld [vmem:[%s13678_s15 + $0x13d0] ss:$8 sps:$4 sm:$0xff]  }
 0x3a0   : > { %10263 = vmatpush1.bf16.msra.mxu0 %v12169_v2  ;;  %v12249_v2 = vld [vmem:[%s13678_s15 + $0x12e4] ss:$8 sps:$4 sm:$0xff]  }
 0x3a1   : > { %10304 = vmatpush1.bf16.msra.mxu1 %v12172_v3  ;;  %10264 = vmatprep.subr.bf16.mxu0 %v12177_v46  ;;  %v12252_v3 = vld [vmem:[%s13678_s15 + $0x13e4] ss:$8 sps:$4 sm:$0xff]   ;;  %v12247_v46 = vld [vmem:[%s13678_s15 + $0x12e0] ss:$8 sps:$4 sm:$0xff]  }
 0x3a2   : > { %10305 = vmatprep.subr.bf16.mxu1 %v12180_v6  ;;  %v12250_v6 = vld [vmem:[%s13678_s15 + $0x13e0] ss:$8 sps:$4 sm:$0xff]  }
 0x3a4   : > { %10265 = vmatpush1.bf16.msra.mxu0 %v12175_v47  ;;  %v12255_v47 = vld [vmem:[%s13678_s15 + $0x12f4] ss:$8 sps:$4 sm:$0xff]  }
 0x3a5   : > { %10306 = vmatpush1.bf16.msra.mxu1 %v12178_v7  ;;  %10266 = vmatprep.subr.bf16.mxu0 %v12183_v10  ;;  %v12258_v7 = vld [vmem:[%s13678_s15 + $0x13f4] ss:$8 sps:$4 sm:$0xff]   ;;  %v12253_v10 = vld [vmem:[%s13678_s15 + $0x12f0] ss:$8 sps:$4 sm:$0xff]  }
 0x3a6   : > { %10307 = vmatprep.subr.bf16.mxu1 %v12186_v11  ;;  %v12256_v11 = vld [vmem:[%s13678_s15 + $0x13f0] ss:$8 sps:$4 sm:$0xff]  }
 0x3a8   : > { %10267 = vmatpush1.bf16.msra.mxu0 %v12181_v12  ;;  %v10573_v12 = vcombine.low %v14437_v57, %v14437_v57 }
 0x3a9   : > { %10308 = vmatpush1.bf16.msra.mxu1 %v12184_v13  ;;  %10268 = vmatprep.subr.bf16.mxu0 %v12189_v14  ;;  %v10575_v13 = vcombine.low %v14442_v59, %v14442_v59  ;;  %v12303_v59 = vmov 0.0  }
 0x3aa   : > { %10309 = vmatprep.subr.bf16.mxu1 %v12192_v15 }
 0x3ac   : > { %10269 = vmatpush1.bf16.msra.mxu0 %v12187_v0 }
 0x3ad   : > { %10310 = vmatpush1.bf16.msra.mxu1 %v12190_v1  ;;  %10270 = vmatprep.subr.bf16.mxu0 %v12195_v56 }
 0x3ae   : > { %10311 = vmatprep.subr.bf16.mxu1 %v12198_v60  ;;  %v9966_v5 = vpop.f32.mrb[20].mxu0 }
 0x3af   : > { %v10007_v23 = vpop.f32.mrb[20].mxu1  ;;  %v9967_v61 = vadd.f32 %v9966_v5, %v14388_v16  ;;  %v9968_v18 = vpop.f32.mrb[21].mxu0  ;;  %v12207_v16 = vld [vmem:[%s13678_s15 + $0x1274] ss:$8 sps:$4 sm:$0xff]  }
 0x3b0   : > { %v10009_v27 = vpop.f32.mrb[21].mxu1  ;;  %v9969_v28 = vadd.f32 %v9968_v18, %v14392_v17  ;;  %v9970_v30 = vpop.f32.mrb[22].mxu0  ;;  %10271 = vmatpush1.bf16.msra.mxu0 %v12193_v8  ;;  %v12210_v17 = vld [vmem:[%s13678_s15 + $0x1374] ss:$8 sps:$4 sm:$0xff]   ;;  %s10532_s15 = sshll.u32 %s12293_s20, 1 }
 0x3b1   : > { %v10011_v31 = vpop.f32.mrb[22].mxu1  ;;  %10312 = vmatpush1.bf16.msra.mxu1 %v12196_v9  ;;  %v14476_v25 = vadd.f32 %v10007_v23, %v9967_v61  ;;  %v9971_v33 = vpop.f32.mrb[23].mxu0  ;;  %10272 = vmatprep.subr.bf16.mxu0 %v12201_v58  ;;  %p5494_p9 = scmp.lt.s32.totalorder %s10532_s15, 3 }
 0x3b2   : > { %v10012_v34 = vpop.f32.mrb[23].mxu1  ;;  %10313 = vmatprep.subr.bf16.mxu1 %v12204_v4  ;;  %v14480_v35 = vadd.f32 %v10009_v27, %v9969_v28 }
 0x3b3   : > { %s14579_s15 = smov (!%p5494_p9, %s10532_s15), 3 }
 0x3b4   : > { %10273 = vmatpush1.bf16.msra.mxu0 %v12199_v32  ;;  %s10536_s16 = sshll.u32 %s14579_s15, 3  ;;  %s5496_s27 = scalar_lea.vmem %s14568_s2, %s14579_s15 }
 0x3b5   : > { %10314 = vmatpush1.bf16.msra.mxu1 %v12202_v24  ;;  %10274 = vmatprep.subr.bf16.mxu0 %v12207_v16  ;;  %s14529_s24 = scalar_lea.vmem %s14571_s5, %s10536_s16  ;;  %s5501_s30 = scalar_lea.vmem %s14569_s3, %s14579_s15 }
 0x3b6   : > { %10315 = vmatprep.subr.bf16.mxu1 %v12210_v17  ;;  %5518 = vst [vmem:[%s14529_s24] sm:$0xff] %v12303_v59  ;;  %5519 = vst [vmem:[%s14529_s24 + $0x8] sm:$0xff] %v12303_v59  ;;  %s5506_s8 = scalar_lea.vmem %s14570_s4, %s14579_s15 }
 0x3b8   : > { %10275 = vmatpush1.bf16.msra.mxu0 %v12205_v36 }
 0x3b9   : > { %10316 = vmatpush1.bf16.msra.mxu1 %v12208_v37  ;;  %10276 = vmatprep.subr.bf16.mxu0 %v12213_v20 }
 0x3ba   : > { %10317 = vmatprep.subr.bf16.mxu1 %v12216_v21 }
 0x3bc   : > { %10277 = vmatpush1.bf16.msra.mxu0 %v12211_v22 }
 0x3bd   : > { %10318 = vmatpush1.bf16.msra.mxu1 %v12214_v26  ;;  %10278 = vmatprep.subr.bf16.mxu0 %v12219_v42 }
 0x3be   : > { %10319 = vmatprep.subr.bf16.mxu1 %v12222_v43 }
 0x3c0   : > { %10279 = vmatpush1.bf16.msra.mxu0 %v12217_v44 }
 0x3c1   : > { %10320 = vmatpush1.bf16.msra.mxu1 %v12220_v45  ;;  %10280 = vmatprep.subr.bf16.mxu0 %v12225_v19  ;;  %v10353_v45 = vlaneseq }
 0x3c2   : > { %10321 = vmatprep.subr.bf16.mxu1 %v12228_v48 }
 0x3c3   : > { %v10354_v19 = vshrl.u32 %v10353_v45, 7 }
 0x3c4   : > { %10281 = vmatpush1.bf16.msra.mxu0 %v12223_v29 }
 0x3c5   : > { %10322 = vmatpush1.bf16.msra.mxu1 %v12226_v49  ;;  %10282 = vmatprep.subr.bf16.mxu0 %v12231_v50  ;;  %v10359_v49 = vsub.s32 1, %v10354_v19 }
 0x3c6   : > { %10323 = vmatprep.subr.bf16.mxu1 %v12234_v51 }
 0x3c8   : > { %10283 = vmatpush1.bf16.msra.mxu0 %v12229_v52 }
 0x3c9   : > { %10324 = vmatpush1.bf16.msra.mxu1 %v12232_v53  ;;  %10284 = vmatprep.subr.bf16.mxu0 %v12237_v54  ;;  %v10351_v53 = vld [vmem:[%s5496_s27] sm:$0x3] }
 0x3ca   : > { %10325 = vmatprep.subr.bf16.mxu1 %v12240_v55  ;;  %v5520_v54 = vld [vmem:[%s14529_s24] sm:$0xff] }
 0x3cc   : > { %10285 = vmatpush1.bf16.msra.mxu0 %v12235_v38 }
 0x3cd   : > { %10326 = vmatpush1.bf16.msra.mxu1 %v12238_v39  ;;  %10286 = vmatprep.subr.bf16.mxu0 %v12243_v40 }
 0x3ce   : > { %10327 = vmatprep.subr.bf16.mxu1 %v12246_v41  ;;  %v10365_v41 = vld [vmem:[%s5501_s30] sm:$0x3] }
 0x3d0   : > { %10287 = vmatpush1.bf16.msra.mxu0 %v12241_v62 }
 0x3d1   : > { %10328 = vmatpush1.bf16.msra.mxu1 %v12244_v63  ;;  %10288 = vmatprep.subr.bf16.mxu0 %v12249_v2 }
 0x3d2   : > { %10329 = vmatprep.subr.bf16.mxu1 %v12252_v3  ;;  %v10360_v3 = vrot.slane %v10351_v53, %v10359_v49 }
 0x3d4   : > { %10289 = vmatpush1.bf16.msra.mxu0 %v12247_v46 }
 0x3d5   : > { %10330 = vmatpush1.bf16.msra.mxu1 %v12250_v6  ;;  %10290 = vmatprep.subr.bf16.mxu0 %v12255_v47  ;;  %v10381_v6 = vld [vmem:[%s5506_s8] sm:$0x3]  ;;  %v10374_v47 = vrot.slane %v10365_v41, %v10359_v49 }
 0x3d6   : > { %10331 = vmatprep.subr.bf16.mxu1 %v12258_v7  ;;  %v10355_v7 = vsub.s32 0, %v10354_v19 }
 0x3d8   : > { %10291 = vmatpush1.bf16.msra.mxu0 %v12253_v10 }
 0x3d9   : > { %10332 = vmatpush1.bf16.msra.mxu1 %v12256_v11  ;;  %v10390_v11 = vrot.slane %v10381_v6, %v10359_v49 }
 0x3db   : > { %10293 = vmatmul.mubr.bf16.vlgmr.msra.gmra.mrb[36].mxu0 %v10573_v12 }
 0x3dc   : > { %10334 = vmatmul.mubr.bf16.vlgmr.msra.gmra.mrb[36].mxu1 %v10575_v13  ;;  %v10356_v13 = vrot.slane %v10351_v53, %v10355_v7 }
 0x3ee   : > { %v10048_v14 = vpop.f32.mrb[24].mxu0 }
 0x3ef   : > { %v10089_v15 = vpop.f32.mrb[24].mxu1  ;;  %v10049_v0 = vadd.f32 %v10048_v14, %v14476_v25  ;;  %v10050_v1 = vpop.f32.mrb[25].mxu0 }
 0x3f0   : > { %v10091_v56 = vpop.f32.mrb[25].mxu1  ;;  %v10051_v60 = vadd.f32 %v10050_v1, %v14480_v35  ;;  %v10052_v8 = vpop.f32.mrb[26].mxu0 }
 0x3f1   : > { %v10093_v9 = vpop.f32.mrb[26].mxu1  ;;  %v10090_v58 = vadd.f32 %v10089_v15, %v10049_v0  ;;  %v10053_v57 = vpop.f32.mrb[27].mxu0  ;;  %v10370_v15 = vrot.slane %v10365_v41, %v10355_v7 }
 0x3f2   : > { %v10094_v4 = vpop.f32.mrb[27].mxu1  ;;  %v10092_v5 = vadd.f32 %v10091_v56, %v10051_v60  ;;  %v10386_v60 = vrot.slane %v10381_v6, %v10355_v7 }
 0x42e   : > { %v10130_v23 = vpop.f32.mrb[28].mxu0 }
 0x42f   : > { %v10171_v61 = vpop.f32.mrb[28].mxu1  ;;  %v10131_v18 = vadd.f32 %v10130_v23, %v10090_v58  ;;  %v10132_v27 = vpop.f32.mrb[29].mxu0 }
 0x430   : > { %v10173_v28 = vpop.f32.mrb[29].mxu1  ;;  %v10133_v30 = vadd.f32 %v10132_v27, %v10092_v5  ;;  %v10134_v31 = vpop.f32.mrb[30].mxu0 }
 0x431   : > { %v10175_v32 = vpop.f32.mrb[30].mxu1  ;;  %v10172_v24 = vadd.f32 %v10171_v61, %v10131_v18  ;;  %v10135_v25 = vpop.f32.mrb[31].mxu0 }
 0x432   : > { %v10176_v33 = vpop.f32.mrb[31].mxu1  ;;  %v10174_v34 = vadd.f32 %v10173_v28, %v10133_v30 }
 0x46e   : > { %v10212_v16 = vpop.f32.mrb[32].mxu0 }
 0x46f   : > { %v10253_v17 = vpop.f32.mrb[32].mxu1  ;;  %v10213_v35 = vadd.f32 %v10212_v16, %v10172_v24  ;;  %v10214_v36 = vpop.f32.mrb[33].mxu0 }
 0x470   : > { %v10255_v37 = vpop.f32.mrb[33].mxu1  ;;  %v10215_v20 = vadd.f32 %v10214_v36, %v10174_v34  ;;  %v10216_v21 = vpop.f32.mrb[34].mxu0 }
 0x471   : > { %v10257_v22 = vpop.f32.mrb[34].mxu1  ;;  %v10254_v26 = vadd.f32 %v10253_v17, %v10213_v35  ;;  %v10217_v42 = vpop.f32.mrb[35].mxu0 }
 0x472   : > { %v10258_v43 = vpop.f32.mrb[35].mxu1  ;;  %v10256_v44 = vadd.f32 %v10255_v37, %v10215_v20 }
 0x4ae   : > { %v10294_v48 = vpop.f32.mrb[36].mxu0 }
 0x4af   : > { %v10335_v29 = vpop.f32.mrb[36].mxu1  ;;  %v10295_v50 = vadd.f32 %v10294_v48, %v10254_v26  ;;  %v10296_v51 = vpop.f32.mrb[37].mxu0 }
 0x4b0   : > { %v10337_v52 = vpop.f32.mrb[37].mxu1  ;;  %v10297_v55 = vadd.f32 %v10296_v51, %v10256_v44  ;;  %v10298_v38 = vpop.f32.mrb[38].mxu0 }
 0x4b1   : > { %v10339_v39 = vpop.f32.mrb[38].mxu1  ;;  %v10336_v40 = vadd.f32 %v10335_v29, %v10295_v50  ;;  %v10299_v62 = vpop.f32.mrb[39].mxu0 }
 0x4b2   : > { %v10340_v63 = vpop.f32.mrb[39].mxu1  ;;  %v10338_v2 = vadd.f32 %v10337_v52, %v10297_v55 }
 0x4b3   : > { %v10342_v46 = vadd.f32 %v10336_v40, %v5520_v54 }
 0x4b4   : > { %10345 = vst [vmem:[%s14529_s24 + $0x8] sm:$0xff] %v10338_v2  ;;  %v10364_v10 = vmul.f32 %v10360_v3, %v10338_v2 }
 0x4b5   : > { %10344 = vst [vmem:[%s14529_s24] sm:$0xff] %v10342_v46 }
 0x4b6   : > { %v10378_v12 = vadd.f32 %v10374_v47, %v10364_v10 }
 0x4b8   : > { %vm10380_vm0 = vcmp.ge.f32.partialorder %v10378_v12, 0.0  ;;  %v10394_v14 = vmul.f32 %v10390_v11, %v10378_v12 }
 0x4ba   : > { %v10396_v0 = vsel %vm10380_vm0, %v10378_v12, %v10394_v14 }
 0x4bb   : > { %10398 = vst [vmem:[%s14529_s24 + $0x8] sm:$0xff] %v10396_v0 }
 0x4bc   : > { %v10349_v1 = vld [vmem:[%s14529_s24] sm:$0xff] }
 0x4bd   : > { %v10363_v56 = vmul.f32 %v10356_v13, %v10349_v1 }
 0x4bf   : > { %v10377_v8 = vadd.f32 %v10370_v15, %v10363_v56 }
 0x4c1   : > { %vm10379_vm1 = vcmp.ge.f32.partialorder %v10377_v8, 0.0  ;;  %v10393_v9 = vmul.f32 %v10386_v60, %v10377_v8 }
 0x4c3   : > { %v10395_v58 = vsel %vm10379_vm1, %v10377_v8, %v10393_v9 }
 0x4c4   : > { %10397 = vst [vmem:[%s14529_s24] sm:$0xff] %v10395_v58 }
 0x4c5 PF: > { %s15_s22 = sadd.s32 1, %s12301_s22   ;;  %s14572_s18 = smov %s12289_s19 }
 0x4c6   : > { %p12_p10 = scmp.ge.s32.totalorder %s15_s22, 4   ;;  %s14573_s19 = smov %s12369_s26 }
 0x4c7   : > { %s14574_s20 = smov %s12297_s21  ;;  %s14575_s21 = smov %s14577_s23 }
 0x4c8   :  { %14 = sbr.rel (!%p12_p10) target bundleno = 3 (0x3), region = 153 }

</bundles_post_ra>
